<compile_context>
chip_gen: v5e
topology: v5e:2x2
jax: 0.10.0
libtpu: 0.0.40
codegen_flags: <defaults>
</compile_context>

<pallas_src>
import functools
import math

import jax
import jax.numpy as jnp
from jax.experimental import pallas as pl
from jax.experimental.pallas import tpu as pltpu


_MAX_TM = 1024   # row-tile size for the matmul phase (multiple of 16 for bf16)


def _round_up(x, m):
    return (x + m - 1) // m * m


def _choose_row_tile(m):
    """Row-tile size (multiple of 16 for bf16 sublane packing) and padded rows."""
    tm = _MAX_TM if m >= _MAX_TM else _round_up(m, 16)
    return tm, _round_up(m, tm)


def _vmem_limit_bytes():
    """Generation-aware scoped-VMEM budget (3/4 of physical, capped at 96 MiB)."""
    try:
        cap = getattr(pltpu.get_tpu_info(), "vmem_capacity_bytes", None)
        if cap:
            return min(int(cap) * 3 // 4, 96 * 1024 * 1024)
    except Exception:
        pass
    return 32 * 1024 * 1024


_VMEM_LIMIT = _vmem_limit_bytes()


def _cparams(semantics):
    return pltpu.CompilerParams(dimension_semantics=semantics,
                                vmem_limit_bytes=_VMEM_LIMIT)


# ---------------------------------------------------------------------------
# Pallas kernels
# ---------------------------------------------------------------------------
def _conv_bn_lrelu_kernel(p_ref, w_ref, g_ref, b_ref, o_ref, sum_ref, sq_ref,
                          *, inv_m):
    """Fused Conv (im2col matmul, bf16 x bf16 -> f32 MXU) + train-mode
    BatchNorm + LeakyReLU(0.2).

    Grid axis 0 iterates over M-row tiles of the patch matrix.  The layer
    output block is the FULL (Mp, Cp) array (constant block index), so the
    conv result is streamed into VMEM in bf16, batch statistics are
    accumulated in f32 scratch, and BN + LeakyReLU are applied in place in an
    epilogue at the last grid step -- no HBM round trip of the intermediate.
    """
    i = pl.program_id(0)
    nt = pl.num_programs(0)
    tm = p_ref.shape[0]

    @pl.when(i == 0)
    def _():
        sum_ref[...] = jnp.zeros_like(sum_ref)
        sq_ref[...] = jnp.zeros_like(sq_ref)

    y = jnp.dot(p_ref[...], w_ref[...], preferred_element_type=jnp.float32)
    # Padded patch rows are all-zero => contribute nothing to the statistics.
    sum_ref[...] += jnp.sum(y, axis=0, keepdims=True)
    sq_ref[...] += jnp.sum(y * y, axis=0, keepdims=True)

    row = pl.multiple_of(i * tm, tm)
    o_ref[pl.ds(row, tm), :] = y.astype(o_ref.dtype)

    @pl.when(i == nt - 1)
    def _():
        mean = sum_ref[...] * inv_m
        var = jnp.maximum(sq_ref[...] * inv_m - mean * mean, 0.0)
        scale = g_ref[...] * jax.lax.rsqrt(var + 1e-5)
        shift = b_ref[...] - mean * scale

        def body(t, carry):
            r = pl.multiple_of(t * tm, tm)
            z = o_ref[pl.ds(r, tm), :].astype(jnp.float32) * scale + shift
            o_ref[pl.ds(r, tm), :] = jnp.maximum(z, 0.2 * z).astype(o_ref.dtype)
            return carry

        jax.lax.fori_loop(0, nt, body, 0)


def _final_conv_sigmoid_kernel(x_ref, w_ref, o_ref):
    """Final Conv2d(256->1, 4, 1, 0) as a single matmul per row tile -> Sigmoid."""
    y = jnp.dot(x_ref[...], w_ref[...], preferred_element_type=jnp.float32)
    o_ref[...] = jax.nn.sigmoid(y)


# ---------------------------------------------------------------------------
# Host-side glue
# ---------------------------------------------------------------------------
def _im2col(x_nhwc, k, s, p):
    """Extract conv patches. Returns (patches[M, k*k*C], OH, OW). Keeps dtype."""
    N, H, W, C = x_nhwc.shape
    xp = jnp.pad(x_nhwc, ((0, 0), (p, p), (p, p), (0, 0)))
    OH = (H + 2 * p - k) // s + 1
    OW = (W + 2 * p - k) // s + 1
    cols = []
    for kh in range(k):
        for kw in range(k):
            cols.append(xp[:, kh:kh + s * OH:s, kw:kw + s * OW:s, :])
    patches = jnp.stack(cols, axis=3)                      # (N, OH, OW, k*k, C)
    return patches.reshape(N * OH * OW, k * k * C), OH, OW


def _weight_matrix(w_oihw):
    """PyTorch [Cout, Cin, KH, KW] -> [KH*KW*Cin, Cout] matching im2col order."""
    cout = w_oihw.shape[0]
    return jnp.transpose(w_oihw, (2, 3, 1, 0)).reshape(-1, cout)


def conv_bn_lrelu(x_nhwc, w_oihw, gamma, beta, k, s, p):
    N, H, W, C = x_nhwc.shape
    Cout = w_oihw.shape[0]

    # Pad input channels so K = k*k*C is already a multiple of 128 (layer 1:
    # 3 -> 8); avoids a second padded copy of the much larger patch matrix.
    c_mult = 128 // math.gcd(k * k, 128)
    c_pad = _round_up(C, c_mult)
    if c_pad != C:
        x_nhwc = jnp.pad(x_nhwc, ((0, 0), (0, 0), (0, 0), (0, c_pad - C)))
        w_oihw = jnp.pad(w_oihw, ((0, 0), (0, c_pad - C), (0, 0), (0, 0)))

    patches, OH, OW = _im2col(x_nhwc.astype(jnp.bfloat16), k, s, p)
    M, K = patches.shape                       # K multiple of 128 by construction
    w_mat = _weight_matrix(w_oihw).astype(jnp.bfloat16)

    tm, Mp = _choose_row_tile(M)
    Mt = Mp // tm
    Cp = _round_up(Cout, 128)

    patches_p = jnp.pad(patches, ((0, Mp - M), (0, 0)))
    w_p = jnp.pad(w_mat, ((0, 0), (0, Cp - Cout)))
    gamma_p = jnp.pad(gamma.astype(jnp.float32), (0, Cp - Cout)).reshape(1, Cp)
    beta_p = jnp.pad(beta.astype(jnp.float32), (0, Cp - Cout)).reshape(1, Cp)

    out = pl.pallas_call(
        functools.partial(_conv_bn_lrelu_kernel, inv_m=1.0 / M),
        grid=(Mt,),
        in_specs=[
            pl.BlockSpec((tm, K), lambda i: (i, 0)),
            pl.BlockSpec((K, Cp), lambda i: (0, 0)),
            pl.BlockSpec((1, Cp), lambda i: (0, 0)),
            pl.BlockSpec((1, Cp), lambda i: (0, 0)),
        ],
        out_specs=pl.BlockSpec((Mp, Cp), lambda i: (0, 0)),
        out_shape=jax.ShapeDtypeStruct((Mp, Cp), jnp.bfloat16),
        scratch_shapes=[pltpu.VMEM((1, Cp), jnp.float32),
                        pltpu.VMEM((1, Cp), jnp.float32)],
        compiler_params=_cparams(("arbitrary",)),   # stats/output carried over tiles
    )(patches_p, w_p, gamma_p, beta_p)

    return out[:M, :Cout].reshape(N, OH, OW, Cout)


def final_conv_sigmoid(x_nhwc, w_oihw):
    """Conv2d(Cin->1, k=H, s=1, p=0) + Sigmoid: full-window conv == one dot per
    sample, so 'im2col' is a pure reshape (no duplicated patch matrix)."""
    N, H, W, C = x_nhwc.shape
    Cout = w_oihw.shape[0]
    flat = x_nhwc.astype(jnp.bfloat16).reshape(N, H * W * C)   # (h, w, c) order
    K = H * W * C
    w_mat = _weight_matrix(w_oihw).astype(jnp.bfloat16)        # (K, Cout)

    tm, Np = _choose_row_tile(N)
    Mt = Np // tm
    Kp = _round_up(K, 128)
    Cp = _round_up(Cout, 128)

    x_p = jnp.pad(flat, ((0, Np - N), (0, Kp - K)))
    w_p = jnp.pad(w_mat, ((0, Kp - K), (0, Cp - Cout)))

    out = pl.pallas_call(
        _final_conv_sigmoid_kernel,
        grid=(Mt,),
        in_specs=[
            pl.BlockSpec((tm, Kp), lambda i: (i, 0)),
            pl.BlockSpec((Kp, Cp), lambda i: (0, 0)),
        ],
        out_specs=pl.BlockSpec((tm, Cp), lambda i: (i, 0)),
        out_shape=jax.ShapeDtypeStruct((Np, Cp), jnp.float32),
        compiler_params=_cparams(("parallel",)),
    )(x_p, w_p)

    return out[:N, :Cout]                                      # (N, 1)


def discriminator_forward(img_nchw, params):
    """Forward pass of the DCGAN Discriminator. Input: NCHW float32."""
    x = jnp.transpose(img_nchw, (0, 2, 3, 1))                      # NCHW -> NHWC
    x = conv_bn_lrelu(x, params["w1"], params["g1"], params["b1"], 4, 2, 1)
    x = conv_bn_lrelu(x, params["w2"], params["g2"], params["b2"], 4, 2, 1)
    x = conv_bn_lrelu(x, params["w3"], params["g3"], params["b3"], 4, 2, 1)
    x = final_conv_sigmoid(x, params["w4"])                        # (N, 1)
    return x.reshape(-1, 1)                                        # output.view(-1, 1)


def init_params(key):
    """Deterministic DCGAN-style init: conv ~ N(0, 0.02), BN gamma=1, beta=0."""
    ks = jax.random.split(key, 4)

    def conv_w(k, cout, cin, kh, kw):
        return 0.02 * jax.random.normal(k, (cout, cin, kh, kw), jnp.float32)

    return {
        "w1": conv_w(ks[0], 64, 3, 4, 4),
        "g1": jnp.ones((64,), jnp.float32), "b1": jnp.zeros((64,), jnp.float32),
        "w2": conv_w(ks[1], 128, 64, 4, 4),
        "g2": jnp.ones((128,), jnp.float32), "b2": jnp.zeros((128,), jnp.float32),
        "w3": conv_w(ks[2], 256, 128, 4, 4),
        "g3": jnp.ones((256,), jnp.float32), "b3": jnp.zeros((256,), jnp.float32),
        "w4": conv_w(ks[3], 1, 256, 4, 4),
    }


def _ref_forward(img_nchw, params):
    """Pure-JAX reference (lax.conv with bf16 operands / f32 accumulation,
    bf16 inter-layer activations) matching the kernel pipeline's precision."""
    def conv(x, w, s, p):
        return jax.lax.conv_general_dilated(
            x.astype(jnp.bfloat16), w.astype(jnp.bfloat16),
            window_strides=(s, s), padding=[(p, p), (p, p)],
            dimension_numbers=("NCHW", "OIHW", "NCHW"),
            preferred_element_type=jnp.float32)

    def bn_lrelu(x, g, b):
        mean = jnp.mean(x, axis=(0, 2, 3), keepdims=True)
        var = jnp.mean(jnp.square(x - mean), axis=(0, 2, 3), keepdims=True)
        z = (x - mean) * jax.lax.rsqrt(var + 1e-5)
        z = z * g.reshape(1, -1, 1, 1) + b.reshape(1, -1, 1, 1)
        return jnp.where(z >= 0, z, 0.2 * z).astype(jnp.bfloat16)

    x = bn_lrelu(conv(img_nchw, params["w1"], 2, 1), params["g1"], params["b1"])
    x = bn_lrelu(conv(x, params["w2"], 2, 1), params["g2"], params["b2"])
    x = bn_lrelu(conv(x, params["w3"], 2, 1), params["g3"], params["b3"])
    x = jax.nn.sigmoid(conv(x, params["w4"], 1, 0))
    return x.reshape(-1, 1)


if __name__ == "__main__":
    key = jax.random.PRNGKey(0)
    pkey, xkey = jax.random.split(key)
    params = init_params(pkey)

    # DCGAN discriminator geometry requires 32x32 input (32->16->8->4->1).
    img = jax.random.normal(xkey, (2, 3, 32, 32), jnp.float32)  # NCHW, like PyTorch

    fwd = jax.jit(discriminator_forward)
    out = jax.block_until_ready(fwd(img, params))
    assert out.shape == (2, 1), out.shape

    ref = jax.block_until_ready(jax.jit(_ref_forward)(img, params))
    # bf16 activations/patches => compare at bf16-level tolerance.
    assert jnp.allclose(out, ref, atol=2e-2, rtol=2e-2), (out, ref)

    print("KERNEL_OK")
</pallas_src>

<mosaic_0001>
module attributes {stable_mosaic.version = 11 : i64} {
  func.func @_conv_bn_lrelu_kernel(%arg0: i32, %arg1: memref<512x128xbf16, #tpu.memory_space<vmem>>, %arg2: memref<128x128xbf16, #tpu.memory_space<vmem>>, %arg3: memref<1x128xf32, #tpu.memory_space<vmem>>, %arg4: memref<1x128xf32, #tpu.memory_space<vmem>>, %arg5: memref<512x128xbf16, #tpu.memory_space<vmem>>, %arg6: memref<1x128xf32, #tpu.memory_space<vmem>>, %arg7: memref<1x128xf32, #tpu.memory_space<vmem>>) attributes {dimension_semantics = [#tpu.dimension_semantics<arbitrary>], iteration_bounds = array<i64: 1>, scalar_prefetch = 0 : i64, scratch_operands = 2 : i64, tpu.core_type = #tpu.core_type<tc>, window_params = [{transform_indices = @transform_0, window_bounds = array<i64: 512, 128>}, {pipeline_mode = #tpu.pipeline_mode<synchronous>, transform_indices = @transform_1, window_bounds = array<i64: 128, 128>}, {pipeline_mode = #tpu.pipeline_mode<synchronous>, transform_indices = @transform_2, window_bounds = array<i64: 1, 128>}, {pipeline_mode = #tpu.pipeline_mode<synchronous>, transform_indices = @transform_3, window_bounds = array<i64: 1, 128>}, {pipeline_mode = #tpu.pipeline_mode<synchronous>, transform_indices = @transform_4, window_bounds = array<i64: 512, 128>}]} {
    %c0_i32 = arith.constant 0 : i32
    %0 = arith.cmpi eq, %arg0, %c0_i32 : i32
    %1 = arith.extui %0 : i1 to i32
    %c0_i32_0 = arith.constant 0 : i32
    %2 = arith.cmpi ne, %1, %c0_i32_0 : i32
    scf.if %2 {
      %cst_17 = arith.constant 0.000000e+00 : f32
      %25 = vector.broadcast %cst_17 : f32 to vector<1x128xf32>
      %c0_18 = arith.constant 0 : index
      %c0_19 = arith.constant 0 : index
      %26 = vector.load %arg6[%c0_18, %c0_19] : memref<1x128xf32, #tpu.memory_space<vmem>>, vector<1x128xf32>
      tpu.vector_store %arg6[%c0_18, %c0_19], %25 {strides = array<i32>} : memref<1x128xf32, #tpu.memory_space<vmem>>, vector<1x128xf32>,
      %cst_20 = arith.constant 0.000000e+00 : f32
      %27 = vector.broadcast %cst_20 : f32 to vector<1x128xf32>
      %c0_21 = arith.constant 0 : index
      %c0_22 = arith.constant 0 : index
      %28 = vector.load %arg7[%c0_21, %c0_22] : memref<1x128xf32, #tpu.memory_space<vmem>>, vector<1x128xf32>
      tpu.vector_store %arg7[%c0_21, %c0_22], %27 {strides = array<i32>} : memref<1x128xf32, #tpu.memory_space<vmem>>, vector<1x128xf32>,
    } else {
    }
    %c0 = arith.constant 0 : index
    %c0_1 = arith.constant 0 : index
    %3 = vector.load %arg1[%c0, %c0_1] : memref<512x128xbf16, #tpu.memory_space<vmem>>, vector<512x128xbf16>
    %c0_2 = arith.constant 0 : index
    %c0_3 = arith.constant 0 : index
    %4 = vector.load %arg2[%c0_2, %c0_3] : memref<128x128xbf16, #tpu.memory_space<vmem>>, vector<128x128xbf16>
    %cst = arith.constant dense<0.000000e+00> : vector<512x128xf32>
    %5 = tpu.matmul %3, %4, %cst {dimension_numbers = #tpu.dot_dimension_numbers<[1], [0], [0], [1], [0, 0, 1, 1], [], []>} : vector<512x128xbf16>, vector<128x128xbf16>, vector<512x128xf32> -> vector<512x128xf32>
    %c0_4 = arith.constant 0 : index
    %c0_5 = arith.constant 0 : index
    %6 = vector.load %arg6[%c0_4, %c0_5] : memref<1x128xf32, #tpu.memory_space<vmem>>, vector<1x128xf32>
    %cst_6 = arith.constant dense<0.000000e+00> : vector<128xf32>
    %7 = vector.multi_reduction <add>, %5, %cst_6 [0] : vector<512x128xf32> to vector<128xf32>
    %8 = vector.shape_cast %7 : vector<128xf32> to vector<1x128xf32>
    %9 = arith.addf %6, %8 : vector<1x128xf32>
    %c0_7 = arith.constant 0 : index
    %c0_8 = arith.constant 0 : index
    %10 = vector.load %arg6[%c0_7, %c0_8] : memref<1x128xf32, #tpu.memory_space<vmem>>, vector<1x128xf32>
    tpu.vector_store %arg6[%c0_7, %c0_8], %9 {strides = array<i32>} : memref<1x128xf32, #tpu.memory_space<vmem>>, vector<1x128xf32>,
    %c0_9 = arith.constant 0 : index
    %c0_10 = arith.constant 0 : index
    %11 = vector.load %arg7[%c0_9, %c0_10] : memref<1x128xf32, #tpu.memory_space<vmem>>, vector<1x128xf32>
    %12 = arith.mulf %5, %5 : vector<512x128xf32>
    %cst_11 = arith.constant dense<0.000000e+00> : vector<128xf32>
    %13 = vector.multi_reduction <add>, %12, %cst_11 [0] : vector<512x128xf32> to vector<128xf32>
    %14 = vector.shape_cast %13 : vector<128xf32> to vector<1x128xf32>
    %15 = arith.addf %11, %14 : vector<1x128xf32>
    %c0_12 = arith.constant 0 : index
    %c0_13 = arith.constant 0 : index
    %16 = vector.load %arg7[%c0_12, %c0_13] : memref<1x128xf32, #tpu.memory_space<vmem>>, vector<1x128xf32>
    tpu.vector_store %arg7[%c0_12, %c0_13], %15 {strides = array<i32>} : memref<1x128xf32, #tpu.memory_space<vmem>>, vector<1x128xf32>,
    %c512_i32 = arith.constant 512 : i32
    %17 = arith.muli %arg0, %c512_i32 : i32
    %18 = tpu.assume_multiple %17, 512 : i32
    %19 = arith.truncf %5 : vector<512x128xf32> to vector<512x128xbf16>
    %20 = arith.index_cast %18 : i32 to index
    %c0_14 = arith.constant 0 : index
    %21 = vector.load %arg5[%20, %c0_14] : memref<512x128xbf16, #tpu.memory_space<vmem>>, vector<512x128xbf16>
    tpu.vector_store %arg5[%20, %c0_14], %19 {strides = array<i32>} : memref<512x128xbf16, #tpu.memory_space<vmem>>, vector<512x128xbf16>,
    %c0_i32_15 = arith.constant 0 : i32
    %22 = arith.cmpi eq, %arg0, %c0_i32_15 : i32
    %23 = arith.extui %22 : i1 to i32
    %c0_i32_16 = arith.constant 0 : i32
    %24 = arith.cmpi ne, %23, %c0_i32_16 : i32
    scf.if %24 {
      %c0_17 = arith.constant 0 : index
      %c0_18 = arith.constant 0 : index
      %25 = vector.load %arg6[%c0_17, %c0_18] : memref<1x128xf32, #tpu.memory_space<vmem>>, vector<1x128xf32>
      %cst_19 = arith.constant 0.001953125 : f32
      %26 = vector.broadcast %cst_19 : f32 to vector<1x128xf32>
      %27 = arith.mulf %25, %26 : vector<1x128xf32>
      %c0_20 = arith.constant 0 : index
      %c0_21 = arith.constant 0 : index
      %28 = vector.load %arg7[%c0_20, %c0_21] : memref<1x128xf32, #tpu.memory_space<vmem>>, vector<1x128xf32>
      %cst_22 = arith.constant 0.001953125 : f32
      %29 = vector.broadcast %cst_22 : f32 to vector<1x128xf32>
      %30 = arith.mulf %28, %29 : vector<1x128xf32>
      %31 = arith.mulf %27, %27 : vector<1x128xf32>
      %32 = arith.subf %30, %31 : vector<1x128xf32>
      %cst_23 = arith.constant 0.000000e+00 : f32
      %33 = vector.broadcast %cst_23 : f32 to vector<1x128xf32>
      %34 = arith.maximumf %32, %33 : vector<1x128xf32>
      %c0_24 = arith.constant 0 : index
      %c0_25 = arith.constant 0 : index
      %35 = vector.load %arg3[%c0_24, %c0_25] : memref<1x128xf32, #tpu.memory_space<vmem>>, vector<1x128xf32>
      %cst_26 = arith.constant 9.99999974E-6 : f32
      %36 = vector.broadcast %cst_26 : f32 to vector<1x128xf32>
      %37 = arith.addf %34, %36 : vector<1x128xf32>
      %38 = math.rsqrt %37 : vector<1x128xf32>
      %39 = arith.mulf %35, %38 : vector<1x128xf32>
      %c0_27 = arith.constant 0 : index
      %c0_28 = arith.constant 0 : index
      %40 = vector.load %arg4[%c0_27, %c0_28] : memref<1x128xf32, #tpu.memory_space<vmem>>, vector<1x128xf32>
      %41 = arith.mulf %27, %39 : vector<1x128xf32>
      %42 = arith.subf %40, %41 : vector<1x128xf32>
      %c0_i32_29 = arith.constant 0 : i32
      %c512_i32_30 = arith.constant 512 : i32
      %43 = arith.muli %c0_i32_29, %c512_i32_30 : i32
      %44 = tpu.assume_multiple %43, 512 : i32
      %45 = arith.index_cast %44 : i32 to index
      %c0_31 = arith.constant 0 : index
      %46 = vector.load %arg5[%45, %c0_31] : memref<512x128xbf16, #tpu.memory_space<vmem>>, vector<512x128xbf16>
      %47 = arith.extf %46 : vector<512x128xbf16> to vector<512x128xf32>
      %48 = vector.broadcast %39 : vector<1x128xf32> to vector<512x128xf32>
      %49 = arith.mulf %47, %48 : vector<512x128xf32>
      %50 = vector.broadcast %42 : vector<1x128xf32> to vector<512x128xf32>
      %51 = arith.addf %49, %50 : vector<512x128xf32>
      %cst_32 = arith.constant 2.000000e-01 : f32
      %52 = vector.broadcast %cst_32 : f32 to vector<512x128xf32>
      %53 = arith.mulf %52, %51 : vector<512x128xf32>
      %54 = arith.maximumf %51, %53 : vector<512x128xf32>
      %55 = arith.truncf %54 : vector<512x128xf32> to vector<512x128xbf16>
      %56 = arith.index_cast %44 : i32 to index
      %c0_33 = arith.constant 0 : index
      %57 = vector.load %arg5[%56, %c0_33] : memref<512x128xbf16, #tpu.memory_space<vmem>>, vector<512x128xbf16>
      tpu.vector_store %arg5[%56, %c0_33], %55 {strides = array<i32>} : memref<512x128xbf16, #tpu.memory_space<vmem>>, vector<512x128xbf16>,
      %c1_i32 = arith.constant 1 : i32
    } else {
    }
    return
  }
  func.func @transform_0(%arg0: i32) -> (i32, i32) {
    %c0_i32 = arith.constant 0 : i32
    %c0_i32_0 = arith.constant 0 : i32
    return %arg0, %c0_i32 : i32, i32
  }
  func.func @transform_1(%arg0: i32) -> (i32, i32) {
    %c0_i32 = arith.constant 0 : i32
    %c0_i32_0 = arith.constant 0 : i32
    %c0_i32_1 = arith.constant 0 : i32
    return %c0_i32, %c0_i32_0 : i32, i32
  }
  func.func @transform_2(%arg0: i32) -> (i32, i32) {
    %c0_i32 = arith.constant 0 : i32
    %c0_i32_0 = arith.constant 0 : i32
    %c0_i32_1 = arith.constant 0 : i32
    return %c0_i32, %c0_i32_0 : i32, i32
  }
  func.func @transform_3(%arg0: i32) -> (i32, i32) {
    %c0_i32 = arith.constant 0 : i32
    %c0_i32_0 = arith.constant 0 : i32
    %c0_i32_1 = arith.constant 0 : i32
    return %c0_i32, %c0_i32_0 : i32, i32
  }
  func.func @transform_4(%arg0: i32) -> (i32, i32) {
    %c0_i32 = arith.constant 0 : i32
    %c0_i32_0 = arith.constant 0 : i32
    %c0_i32_1 = arith.constant 0 : i32
    return %c0_i32, %c0_i32_0 : i32, i32
  }
}

module attributes {stable_mosaic.version = 11 : i64} {
  func.func @_conv_bn_lrelu_kernel(%arg0: i32, %arg1: memref<128x1024xbf16, #tpu.memory_space<vmem>>, %arg2: memref<1024x128xbf16, #tpu.memory_space<vmem>>, %arg3: memref<1x128xf32, #tpu.memory_space<vmem>>, %arg4: memref<1x128xf32, #tpu.memory_space<vmem>>, %arg5: memref<128x128xbf16, #tpu.memory_space<vmem>>, %arg6: memref<1x128xf32, #tpu.memory_space<vmem>>, %arg7: memref<1x128xf32, #tpu.memory_space<vmem>>) attributes {dimension_semantics = [#tpu.dimension_semantics<arbitrary>], iteration_bounds = array<i64: 1>, scalar_prefetch = 0 : i64, scratch_operands = 2 : i64, tpu.core_type = #tpu.core_type<tc>, window_params = [{transform_indices = @transform_0, window_bounds = array<i64: 128, 1024>}, {pipeline_mode = #tpu.pipeline_mode<synchronous>, transform_indices = @transform_1, window_bounds = array<i64: 1024, 128>}, {pipeline_mode = #tpu.pipeline_mode<synchronous>, transform_indices = @transform_2, window_bounds = array<i64: 1, 128>}, {pipeline_mode = #tpu.pipeline_mode<synchronous>, transform_indices = @transform_3, window_bounds = array<i64: 1, 128>}, {pipeline_mode = #tpu.pipeline_mode<synchronous>, transform_indices = @transform_4, window_bounds = array<i64: 128, 128>}]} {
    %c0_i32 = arith.constant 0 : i32
    %0 = arith.cmpi eq, %arg0, %c0_i32 : i32
    %1 = arith.extui %0 : i1 to i32
    %c0_i32_0 = arith.constant 0 : i32
    %2 = arith.cmpi ne, %1, %c0_i32_0 : i32
    scf.if %2 {
      %cst_17 = arith.constant 0.000000e+00 : f32
      %25 = vector.broadcast %cst_17 : f32 to vector<1x128xf32>
      %c0_18 = arith.constant 0 : index
      %c0_19 = arith.constant 0 : index
      %26 = vector.load %arg6[%c0_18, %c0_19] : memref<1x128xf32, #tpu.memory_space<vmem>>, vector<1x128xf32>
      tpu.vector_store %arg6[%c0_18, %c0_19], %25 {strides = array<i32>} : memref<1x128xf32, #tpu.memory_space<vmem>>, vector<1x128xf32>,
      %cst_20 = arith.constant 0.000000e+00 : f32
      %27 = vector.broadcast %cst_20 : f32 to vector<1x128xf32>
      %c0_21 = arith.constant 0 : index
      %c0_22 = arith.constant 0 : index
      %28 = vector.load %arg7[%c0_21, %c0_22] : memref<1x128xf32, #tpu.memory_space<vmem>>, vector<1x128xf32>
      tpu.vector_store %arg7[%c0_21, %c0_22], %27 {strides = array<i32>} : memref<1x128xf32, #tpu.memory_space<vmem>>, vector<1x128xf32>,
    } else {
    }
    %c0 = arith.constant 0 : index
    %c0_1 = arith.constant 0 : index
    %3 = vector.load %arg1[%c0, %c0_1] : memref<128x1024xbf16, #tpu.memory_space<vmem>>, vector<128x1024xbf16>
    %c0_2 = arith.constant 0 : index
    %c0_3 = arith.constant 0 : index
    %4 = vector.load %arg2[%c0_2, %c0_3] : memref<1024x128xbf16, #tpu.memory_space<vmem>>, vector<1024x128xbf16>
    %cst = arith.constant dense<0.000000e+00> : vector<128x128xf32>
    %5 = tpu.matmul %3, %4, %cst {dimension_numbers = #tpu.dot_dimension_numbers<[1], [0], [0], [1], [0, 0, 1, 1], [], []>} : vector<128x1024xbf16>, vector<1024x128xbf16>, vector<128x128xf32> -> vector<128x128xf32>
    %c0_4 = arith.constant 0 : index
    %c0_5 = arith.constant 0 : index
    %6 = vector.load %arg6[%c0_4, %c0_5] : memref<1x128xf32, #tpu.memory_space<vmem>>, vector<1x128xf32>
    %cst_6 = arith.constant dense<0.000000e+00> : vector<128xf32>
    %7 = vector.multi_reduction <add>, %5, %cst_6 [0] : vector<128x128xf32> to vector<128xf32>
    %8 = vector.shape_cast %7 : vector<128xf32> to vector<1x128xf32>
    %9 = arith.addf %6, %8 : vector<1x128xf32>
    %c0_7 = arith.constant 0 : index
    %c0_8 = arith.constant 0 : index
    %10 = vector.load %arg6[%c0_7, %c0_8] : memref<1x128xf32, #tpu.memory_space<vmem>>, vector<1x128xf32>
    tpu.vector_store %arg6[%c0_7, %c0_8], %9 {strides = array<i32>} : memref<1x128xf32, #tpu.memory_space<vmem>>, vector<1x128xf32>,
    %c0_9 = arith.constant 0 : index
    %c0_10 = arith.constant 0 : index
    %11 = vector.load %arg7[%c0_9, %c0_10] : memref<1x128xf32, #tpu.memory_space<vmem>>, vector<1x128xf32>
    %12 = arith.mulf %5, %5 : vector<128x128xf32>
    %cst_11 = arith.constant dense<0.000000e+00> : vector<128xf32>
    %13 = vector.multi_reduction <add>, %12, %cst_11 [0] : vector<128x128xf32> to vector<128xf32>
    %14 = vector.shape_cast %13 : vector<128xf32> to vector<1x128xf32>
    %15 = arith.addf %11, %14 : vector<1x128xf32>
    %c0_12 = arith.constant 0 : index
    %c0_13 = arith.constant 0 : index
    %16 = vector.load %arg7[%c0_12, %c0_13] : memref<1x128xf32, #tpu.memory_space<vmem>>, vector<1x128xf32>
    tpu.vector_store %arg7[%c0_12, %c0_13], %15 {strides = array<i32>} : memref<1x128xf32, #tpu.memory_space<vmem>>, vector<1x128xf32>,
    %c128_i32 = arith.constant 128 : i32
    %17 = arith.muli %arg0, %c128_i32 : i32
    %18 = tpu.assume_multiple %17, 128 : i32
    %19 = arith.truncf %5 : vector<128x128xf32> to vector<128x128xbf16>
    %20 = arith.index_cast %18 : i32 to index
    %c0_14 = arith.constant 0 : index
    %21 = vector.load %arg5[%20, %c0_14] : memref<128x128xbf16, #tpu.memory_space<vmem>>, vector<128x128xbf16>
    tpu.vector_store %arg5[%20, %c0_14], %19 {strides = array<i32>} : memref<128x128xbf16, #tpu.memory_space<vmem>>, vector<128x128xbf16>,
    %c0_i32_15 = arith.constant 0 : i32
    %22 = arith.cmpi eq, %arg0, %c0_i32_15 : i32
    %23 = arith.extui %22 : i1 to i32
    %c0_i32_16 = arith.constant 0 : i32
    %24 = arith.cmpi ne, %23, %c0_i32_16 : i32
    scf.if %24 {
      %c0_17 = arith.constant 0 : index
      %c0_18 = arith.constant 0 : index
      %25 = vector.load %arg6[%c0_17, %c0_18] : memref<1x128xf32, #tpu.memory_space<vmem>>, vector<1x128xf32>
      %cst_19 = arith.constant 7.812500e-03 : f32
      %26 = vector.broadcast %cst_19 : f32 to vector<1x128xf32>
      %27 = arith.mulf %25, %26 : vector<1x128xf32>
      %c0_20 = arith.constant 0 : index
      %c0_21 = arith.constant 0 : index
      %28 = vector.load %arg7[%c0_20, %c0_21] : memref<1x128xf32, #tpu.memory_space<vmem>>, vector<1x128xf32>
      %cst_22 = arith.constant 7.812500e-03 : f32
      %29 = vector.broadcast %cst_22 : f32 to vector<1x128xf32>
      %30 = arith.mulf %28, %29 : vector<1x128xf32>
      %31 = arith.mulf %27, %27 : vector<1x128xf32>
      %32 = arith.subf %30, %31 : vector<1x128xf32>
      %cst_23 = arith.constant 0.000000e+00 : f32
      %33 = vector.broadcast %cst_23 : f32 to vector<1x128xf32>
      %34 = arith.maximumf %32, %33 : vector<1x128xf32>
      %c0_24 = arith.constant 0 : index
      %c0_25 = arith.constant 0 : index
      %35 = vector.load %arg3[%c0_24, %c0_25] : memref<1x128xf32, #tpu.memory_space<vmem>>, vector<1x128xf32>
      %cst_26 = arith.constant 9.99999974E-6 : f32
      %36 = vector.broadcast %cst_26 : f32 to vector<1x128xf32>
      %37 = arith.addf %34, %36 : vector<1x128xf32>
      %38 = math.rsqrt %37 : vector<1x128xf32>
      %39 = arith.mulf %35, %38 : vector<1x128xf32>
      %c0_27 = arith.constant 0 : index
      %c0_28 = arith.constant 0 : index
      %40 = vector.load %arg4[%c0_27, %c0_28] : memref<1x128xf32, #tpu.memory_space<vmem>>, vector<1x128xf32>
      %41 = arith.mulf %27, %39 : vector<1x128xf32>
      %42 = arith.subf %40, %41 : vector<1x128xf32>
      %c0_i32_29 = arith.constant 0 : i32
      %c128_i32_30 = arith.constant 128 : i32
      %43 = arith.muli %c0_i32_29, %c128_i32_30 : i32
      %44 = tpu.assume_multiple %43, 128 : i32
      %45 = arith.index_cast %44 : i32 to index
      %c0_31 = arith.constant 0 : index
      %46 = vector.load %arg5[%45, %c0_31] : memref<128x128xbf16, #tpu.memory_space<vmem>>, vector<128x128xbf16>
      %47 = arith.extf %46 : vector<128x128xbf16> to vector<128x128xf32>
      %48 = vector.broadcast %39 : vector<1x128xf32> to vector<128x128xf32>
      %49 = arith.mulf %47, %48 : vector<128x128xf32>
      %50 = vector.broadcast %42 : vector<1x128xf32> to vector<128x128xf32>
      %51 = arith.addf %49, %50 : vector<128x128xf32>
      %cst_32 = arith.constant 2.000000e-01 : f32
      %52 = vector.broadcast %cst_32 : f32 to vector<128x128xf32>
      %53 = arith.mulf %52, %51 : vector<128x128xf32>
      %54 = arith.maximumf %51, %53 : vector<128x128xf32>
      %55 = arith.truncf %54 : vector<128x128xf32> to vector<128x128xbf16>
      %56 = arith.index_cast %44 : i32 to index
      %c0_33 = arith.constant 0 : index
      %57 = vector.load %arg5[%56, %c0_33] : memref<128x128xbf16, #tpu.memory_space<vmem>>, vector<128x128xbf16>
      tpu.vector_store %arg5[%56, %c0_33], %55 {strides = array<i32>} : memref<128x128xbf16, #tpu.memory_space<vmem>>, vector<128x128xbf16>,
      %c1_i32 = arith.constant 1 : i32
    } else {
    }
    return
  }
  func.func @transform_0(%arg0: i32) -> (i32, i32) {
    %c0_i32 = arith.constant 0 : i32
    %c0_i32_0 = arith.constant 0 : i32
    return %arg0, %c0_i32 : i32, i32
  }
  func.func @transform_1(%arg0: i32) -> (i32, i32) {
    %c0_i32 = arith.constant 0 : i32
    %c0_i32_0 = arith.constant 0 : i32
    %c0_i32_1 = arith.constant 0 : i32
    return %c0_i32, %c0_i32_0 : i32, i32
  }
  func.func @transform_2(%arg0: i32) -> (i32, i32) {
    %c0_i32 = arith.constant 0 : i32
    %c0_i32_0 = arith.constant 0 : i32
    %c0_i32_1 = arith.constant 0 : i32
    return %c0_i32, %c0_i32_0 : i32, i32
  }
  func.func @transform_3(%arg0: i32) -> (i32, i32) {
    %c0_i32 = arith.constant 0 : i32
    %c0_i32_0 = arith.constant 0 : i32
    %c0_i32_1 = arith.constant 0 : i32
    return %c0_i32, %c0_i32_0 : i32, i32
  }
  func.func @transform_4(%arg0: i32) -> (i32, i32) {
    %c0_i32 = arith.constant 0 : i32
    %c0_i32_0 = arith.constant 0 : i32
    %c0_i32_1 = arith.constant 0 : i32
    return %c0_i32, %c0_i32_0 : i32, i32
  }
}

module attributes {stable_mosaic.version = 11 : i64} {
  func.func @_conv_bn_lrelu_kernel(%arg0: i32, %arg1: memref<32x2048xbf16, #tpu.memory_space<vmem>>, %arg2: memref<2048x256xbf16, #tpu.memory_space<vmem>>, %arg3: memref<1x256xf32, #tpu.memory_space<vmem>>, %arg4: memref<1x256xf32, #tpu.memory_space<vmem>>, %arg5: memref<32x256xbf16, #tpu.memory_space<vmem>>, %arg6: memref<1x256xf32, #tpu.memory_space<vmem>>, %arg7: memref<1x256xf32, #tpu.memory_space<vmem>>) attributes {dimension_semantics = [#tpu.dimension_semantics<arbitrary>], iteration_bounds = array<i64: 1>, scalar_prefetch = 0 : i64, scratch_operands = 2 : i64, tpu.core_type = #tpu.core_type<tc>, window_params = [{transform_indices = @transform_0, window_bounds = array<i64: 32, 2048>}, {pipeline_mode = #tpu.pipeline_mode<synchronous>, transform_indices = @transform_1, window_bounds = array<i64: 2048, 256>}, {pipeline_mode = #tpu.pipeline_mode<synchronous>, transform_indices = @transform_2, window_bounds = array<i64: 1, 256>}, {pipeline_mode = #tpu.pipeline_mode<synchronous>, transform_indices = @transform_3, window_bounds = array<i64: 1, 256>}, {pipeline_mode = #tpu.pipeline_mode<synchronous>, transform_indices = @transform_4, window_bounds = array<i64: 32, 256>}]} {
    %c0_i32 = arith.constant 0 : i32
    %0 = arith.cmpi eq, %arg0, %c0_i32 : i32
    %1 = arith.extui %0 : i1 to i32
    %c0_i32_0 = arith.constant 0 : i32
    %2 = arith.cmpi ne, %1, %c0_i32_0 : i32
    scf.if %2 {
      %cst_17 = arith.constant 0.000000e+00 : f32
      %25 = vector.broadcast %cst_17 : f32 to vector<1x256xf32>
      %c0_18 = arith.constant 0 : index
      %c0_19 = arith.constant 0 : index
      %26 = vector.load %arg6[%c0_18, %c0_19] : memref<1x256xf32, #tpu.memory_space<vmem>>, vector<1x256xf32>
      tpu.vector_store %arg6[%c0_18, %c0_19], %25 {strides = array<i32>} : memref<1x256xf32, #tpu.memory_space<vmem>>, vector<1x256xf32>,
      %cst_20 = arith.constant 0.000000e+00 : f32
      %27 = vector.broadcast %cst_20 : f32 to vector<1x256xf32>
      %c0_21 = arith.constant 0 : index
      %c0_22 = arith.constant 0 : index
      %28 = vector.load %arg7[%c0_21, %c0_22] : memref<1x256xf32, #tpu.memory_space<vmem>>, vector<1x256xf32>
      tpu.vector_store %arg7[%c0_21, %c0_22], %27 {strides = array<i32>} : memref<1x256xf32, #tpu.memory_space<vmem>>, vector<1x256xf32>,
    } else {
    }
    %c0 = arith.constant 0 : index
    %c0_1 = arith.constant 0 : index
    %3 = vector.load %arg1[%c0, %c0_1] : memref<32x2048xbf16, #tpu.memory_space<vmem>>, vector<32x2048xbf16>
    %c0_2 = arith.constant 0 : index
    %c0_3 = arith.constant 0 : index
    %4 = vector.load %arg2[%c0_2, %c0_3] : memref<2048x256xbf16, #tpu.memory_space<vmem>>, vector<2048x256xbf16>
    %cst = arith.constant dense<0.000000e+00> : vector<32x256xf32>
    %5 = tpu.matmul %3, %4, %cst {dimension_numbers = #tpu.dot_dimension_numbers<[1], [0], [0], [1], [0, 0, 1, 1], [], []>} : vector<32x2048xbf16>, vector<2048x256xbf16>, vector<32x256xf32> -> vector<32x256xf32>
    %c0_4 = arith.constant 0 : index
    %c0_5 = arith.constant 0 : index
    %6 = vector.load %arg6[%c0_4, %c0_5] : memref<1x256xf32, #tpu.memory_space<vmem>>, vector<1x256xf32>
    %cst_6 = arith.constant dense<0.000000e+00> : vector<256xf32>
    %7 = vector.multi_reduction <add>, %5, %cst_6 [0] : vector<32x256xf32> to vector<256xf32>
    %8 = vector.shape_cast %7 : vector<256xf32> to vector<1x256xf32>
    %9 = arith.addf %6, %8 : vector<1x256xf32>
    %c0_7 = arith.constant 0 : index
    %c0_8 = arith.constant 0 : index
    %10 = vector.load %arg6[%c0_7, %c0_8] : memref<1x256xf32, #tpu.memory_space<vmem>>, vector<1x256xf32>
    tpu.vector_store %arg6[%c0_7, %c0_8], %9 {strides = array<i32>} : memref<1x256xf32, #tpu.memory_space<vmem>>, vector<1x256xf32>,
    %c0_9 = arith.constant 0 : index
    %c0_10 = arith.constant 0 : index
    %11 = vector.load %arg7[%c0_9, %c0_10] : memref<1x256xf32, #tpu.memory_space<vmem>>, vector<1x256xf32>
    %12 = arith.mulf %5, %5 : vector<32x256xf32>
    %cst_11 = arith.constant dense<0.000000e+00> : vector<256xf32>
    %13 = vector.multi_reduction <add>, %12, %cst_11 [0] : vector<32x256xf32> to vector<256xf32>
    %14 = vector.shape_cast %13 : vector<256xf32> to vector<1x256xf32>
    %15 = arith.addf %11, %14 : vector<1x256xf32>
    %c0_12 = arith.constant 0 : index
    %c0_13 = arith.constant 0 : index
    %16 = vector.load %arg7[%c0_12, %c0_13] : memref<1x256xf32, #tpu.memory_space<vmem>>, vector<1x256xf32>
    tpu.vector_store %arg7[%c0_12, %c0_13], %15 {strides = array<i32>} : memref<1x256xf32, #tpu.memory_space<vmem>>, vector<1x256xf32>,
    %c32_i32 = arith.constant 32 : i32
    %17 = arith.muli %arg0, %c32_i32 : i32
    %18 = tpu.assume_multiple %17, 32 : i32
    %19 = arith.truncf %5 : vector<32x256xf32> to vector<32x256xbf16>
    %20 = arith.index_cast %18 : i32 to index
    %c0_14 = arith.constant 0 : index
    %21 = vector.load %arg5[%20, %c0_14] : memref<32x256xbf16, #tpu.memory_space<vmem>>, vector<32x256xbf16>
    tpu.vector_store %arg5[%20, %c0_14], %19 {strides = array<i32>} : memref<32x256xbf16, #tpu.memory_space<vmem>>, vector<32x256xbf16>,
    %c0_i32_15 = arith.constant 0 : i32
    %22 = arith.cmpi eq, %arg0, %c0_i32_15 : i32
    %23 = arith.extui %22 : i1 to i32
    %c0_i32_16 = arith.constant 0 : i32
    %24 = arith.cmpi ne, %23, %c0_i32_16 : i32
    scf.if %24 {
      %c0_17 = arith.constant 0 : index
      %c0_18 = arith.constant 0 : index
      %25 = vector.load %arg6[%c0_17, %c0_18] : memref<1x256xf32, #tpu.memory_space<vmem>>, vector<1x256xf32>
      %cst_19 = arith.constant 3.125000e-02 : f32
      %26 = vector.broadcast %cst_19 : f32 to vector<1x256xf32>
      %27 = arith.mulf %25, %26 : vector<1x256xf32>
      %c0_20 = arith.constant 0 : index
      %c0_21 = arith.constant 0 : index
      %28 = vector.load %arg7[%c0_20, %c0_21] : memref<1x256xf32, #tpu.memory_space<vmem>>, vector<1x256xf32>
      %cst_22 = arith.constant 3.125000e-02 : f32
      %29 = vector.broadcast %cst_22 : f32 to vector<1x256xf32>
      %30 = arith.mulf %28, %29 : vector<1x256xf32>
      %31 = arith.mulf %27, %27 : vector<1x256xf32>
      %32 = arith.subf %30, %31 : vector<1x256xf32>
      %cst_23 = arith.constant 0.000000e+00 : f32
      %33 = vector.broadcast %cst_23 : f32 to vector<1x256xf32>
      %34 = arith.maximumf %32, %33 : vector<1x256xf32>
      %c0_24 = arith.constant 0 : index
      %c0_25 = arith.constant 0 : index
      %35 = vector.load %arg3[%c0_24, %c0_25] : memref<1x256xf32, #tpu.memory_space<vmem>>, vector<1x256xf32>
      %cst_26 = arith.constant 9.99999974E-6 : f32
      %36 = vector.broadcast %cst_26 : f32 to vector<1x256xf32>
      %37 = arith.addf %34, %36 : vector<1x256xf32>
      %38 = math.rsqrt %37 : vector<1x256xf32>
      %39 = arith.mulf %35, %38 : vector<1x256xf32>
      %c0_27 = arith.constant 0 : index
      %c0_28 = arith.constant 0 : index
      %40 = vector.load %arg4[%c0_27, %c0_28] : memref<1x256xf32, #tpu.memory_space<vmem>>, vector<1x256xf32>
      %41 = arith.mulf %27, %39 : vector<1x256xf32>
      %42 = arith.subf %40, %41 : vector<1x256xf32>
      %c0_i32_29 = arith.constant 0 : i32
      %c32_i32_30 = arith.constant 32 : i32
      %43 = arith.muli %c0_i32_29, %c32_i32_30 : i32
      %44 = tpu.assume_multiple %43, 32 : i32
      %45 = arith.index_cast %44 : i32 to index
      %c0_31 = arith.constant 0 : index
      %46 = vector.load %arg5[%45, %c0_31] : memref<32x256xbf16, #tpu.memory_space<vmem>>, vector<32x256xbf16>
      %47 = arith.extf %46 : vector<32x256xbf16> to vector<32x256xf32>
      %48 = vector.broadcast %39 : vector<1x256xf32> to vector<32x256xf32>
      %49 = arith.mulf %47, %48 : vector<32x256xf32>
      %50 = vector.broadcast %42 : vector<1x256xf32> to vector<32x256xf32>
      %51 = arith.addf %49, %50 : vector<32x256xf32>
      %cst_32 = arith.constant 2.000000e-01 : f32
      %52 = vector.broadcast %cst_32 : f32 to vector<32x256xf32>
      %53 = arith.mulf %52, %51 : vector<32x256xf32>
      %54 = arith.maximumf %51, %53 : vector<32x256xf32>
      %55 = arith.truncf %54 : vector<32x256xf32> to vector<32x256xbf16>
      %56 = arith.index_cast %44 : i32 to index
      %c0_33 = arith.constant 0 : index
      %57 = vector.load %arg5[%56, %c0_33] : memref<32x256xbf16, #tpu.memory_space<vmem>>, vector<32x256xbf16>
      tpu.vector_store %arg5[%56, %c0_33], %55 {strides = array<i32>} : memref<32x256xbf16, #tpu.memory_space<vmem>>, vector<32x256xbf16>,
      %c1_i32 = arith.constant 1 : i32
    } else {
    }
    return
  }
  func.func @transform_0(%arg0: i32) -> (i32, i32) {
    %c0_i32 = arith.constant 0 : i32
    %c0_i32_0 = arith.constant 0 : i32
    return %arg0, %c0_i32 : i32, i32
  }
  func.func @transform_1(%arg0: i32) -> (i32, i32) {
    %c0_i32 = arith.constant 0 : i32
    %c0_i32_0 = arith.constant 0 : i32
    %c0_i32_1 = arith.constant 0 : i32
    return %c0_i32, %c0_i32_0 : i32, i32
  }
  func.func @transform_2(%arg0: i32) -> (i32, i32) {
    %c0_i32 = arith.constant 0 : i32
    %c0_i32_0 = arith.constant 0 : i32
    %c0_i32_1 = arith.constant 0 : i32
    return %c0_i32, %c0_i32_0 : i32, i32
  }
  func.func @transform_3(%arg0: i32) -> (i32, i32) {
    %c0_i32 = arith.constant 0 : i32
    %c0_i32_0 = arith.constant 0 : i32
    %c0_i32_1 = arith.constant 0 : i32
    return %c0_i32, %c0_i32_0 : i32, i32
  }
  func.func @transform_4(%arg0: i32) -> (i32, i32) {
    %c0_i32 = arith.constant 0 : i32
    %c0_i32_0 = arith.constant 0 : i32
    %c0_i32_1 = arith.constant 0 : i32
    return %c0_i32, %c0_i32_0 : i32, i32
  }
}

module attributes {stable_mosaic.version = 11 : i64} {
  func.func @_final_conv_sigmoid_kernel(%arg0: i32, %arg1: memref<16x4096xbf16, #tpu.memory_space<vmem>>, %arg2: memref<4096x128xbf16, #tpu.memory_space<vmem>>, %arg3: memref<16x128xf32, #tpu.memory_space<vmem>>) attributes {dimension_semantics = [#tpu.dimension_semantics<parallel>], iteration_bounds = array<i64: 1>, scalar_prefetch = 0 : i64, scratch_operands = 0 : i64, tpu.core_type = #tpu.core_type<tc>, window_params = [{transform_indices = @transform_0, window_bounds = array<i64: 16, 4096>}, {pipeline_mode = #tpu.pipeline_mode<synchronous>, transform_indices = @transform_1, window_bounds = array<i64: 4096, 128>}, {transform_indices = @transform_2, window_bounds = array<i64: 16, 128>}]} {
    %c0 = arith.constant 0 : index
    %c0_0 = arith.constant 0 : index
    %0 = vector.load %arg1[%c0, %c0_0] : memref<16x4096xbf16, #tpu.memory_space<vmem>>, vector<16x4096xbf16>
    %c0_1 = arith.constant 0 : index
    %c0_2 = arith.constant 0 : index
    %1 = vector.load %arg2[%c0_1, %c0_2] : memref<4096x128xbf16, #tpu.memory_space<vmem>>, vector<4096x128xbf16>
    %cst = arith.constant dense<0.000000e+00> : vector<16x128xf32>
    %2 = tpu.matmul %0, %1, %cst {dimension_numbers = #tpu.dot_dimension_numbers<[1], [0], [0], [1], [0, 0, 1, 1], [], []>} : vector<16x4096xbf16>, vector<4096x128xbf16>, vector<16x128xf32> -> vector<16x128xf32>
    %3 = arith.negf %2 : vector<16x128xf32>
    %4 = math.exp %3 : vector<16x128xf32>
    %cst_3 = arith.constant 1.000000e+00 : f32
    %5 = vector.broadcast %cst_3 : f32 to vector<16x128xf32>
    %6 = arith.addf %5, %4 : vector<16x128xf32>
    %7 = arith.divf %5, %6 : vector<16x128xf32>
    %c0_4 = arith.constant 0 : index
    %c0_5 = arith.constant 0 : index
    %8 = vector.load %arg3[%c0_4, %c0_5] : memref<16x128xf32, #tpu.memory_space<vmem>>, vector<16x128xf32>
    tpu.vector_store %arg3[%c0_4, %c0_5], %7 {strides = array<i32>} : memref<16x128xf32, #tpu.memory_space<vmem>>, vector<16x128xf32>,
    return
  }
  func.func @transform_0(%arg0: i32) -> (i32, i32) {
    %c0_i32 = arith.constant 0 : i32
    %c0_i32_0 = arith.constant 0 : i32
    return %arg0, %c0_i32 : i32, i32
  }
  func.func @transform_1(%arg0: i32) -> (i32, i32) {
    %c0_i32 = arith.constant 0 : i32
    %c0_i32_0 = arith.constant 0 : i32
    %c0_i32_1 = arith.constant 0 : i32
    return %c0_i32, %c0_i32_0 : i32, i32
  }
  func.func @transform_2(%arg0: i32) -> (i32, i32) {
    %c0_i32 = arith.constant 0 : i32
    %c0_i32_0 = arith.constant 0 : i32
    return %arg0, %c0_i32 : i32, i32
  }
}

</mosaic_0001>

<bundles_post_ra>
// kernel: discriminator_forward.4
= control target key start
LH: loop header
LB: loop body
LE: loop exit
PB: predicated region body
PF: predicated region fallthrough
CT: control target
= control target key end

     0   :  { %s3675_s1 = inlined_call_operand.vmem [shape: bf16[128,128], index: 1, kind: input, shape index: {}]   ;;  %s3676_s0 = inlined_call_operand.vmem [shape: bf16[512,128], index: 0, kind: input, shape index: {}]   ;;  %s3677_s2 = inlined_call_operand.vmem [shape: f32[1,128], index: 2, kind: input, shape index: {}]   ;;  %s3678_s3 = inlined_call_operand.vmem [shape: f32[1,128], index: 3, kind: input, shape index: {}]   ;;  %s3679_s4 = inlined_call_operand.vmem [shape: bf16[512,128], index: 4, kind: output, shape index: {}]  }
   0x1   :  { %v1602_v0 = vld [vmem:[%s3675_s1 + $0x38] sm:$0xff]  ;;  %v1601_v1 = vld [vmem:[%s3675_s1 + $0x30] sm:$0xff]  ;;  %v1600_v2 = vld [vmem:[%s3675_s1 + $0x28] sm:$0xff] }
   0x2   :  { %343 = vmatpush.bf16.msra.mxu0 %v1602_v0  ;;  %2144 = vmatpush.bf16.msra.mxu1 %v1602_v0  ;;  %v1599_v3 = vld [vmem:[%s3675_s1 + $0x20] sm:$0xff]  ;;  %v1598_v4 = vld [vmem:[%s3675_s1 + $0x18] sm:$0xff]  ;;  %v1597_v5 = vld [vmem:[%s3675_s1 + $0x10] sm:$0xff] }
   0x3   :  { %2145 = vmatpush.bf16.msra.mxu2 %v1602_v0  ;;  %2146 = vmatpush.bf16.msra.mxu3 %v1602_v0  ;;  %v1596_v6 = vld [vmem:[%s3675_s1 + $0x8] sm:$0xff]  ;;  %v1595_v7 = vld [vmem:[%s3675_s1] sm:$0xff]  ;;  %v1565_v13 = vld [vmem:[%s3676_s0 + $0x10] sm:$0xff] }
   0x4   :  { %v1563_v8 = vld [vmem:[%s3676_s0] sm:$0xff]  ;;  %v1564_v10 = vld [vmem:[%s3676_s0 + $0x8] sm:$0xff]  ;;  %v1573_v14 = vld [vmem:[%s3676_s0 + $0x50] sm:$0xff] }
   0x5   :  { %v1571_v9 = vld [vmem:[%s3676_s0 + $0x40] sm:$0xff]  ;;  %v1572_v11 = vld [vmem:[%s3676_s0 + $0x48] sm:$0xff]  ;;  %v1566_v16 = vld [vmem:[%s3676_s0 + $0x18] sm:$0xff] }
   0x6   :  { %344 = vmatpush.bf16.msra.mxu0 %v1601_v1  ;;  %2147 = vmatpush.bf16.msra.mxu1 %v1601_v1  ;;  %v1579_v12 = vld [vmem:[%s3676_s0 + $0x80] sm:$0xff]  ;;  %v1580_v15 = vld [vmem:[%s3676_s0 + $0x88] sm:$0xff]  ;;  %v1574_v17 = vld [vmem:[%s3676_s0 + $0x58] sm:$0xff] }
   0x7   :  { %2148 = vmatpush.bf16.msra.mxu2 %v1601_v1  ;;  %2149 = vmatpush.bf16.msra.mxu3 %v1601_v1  ;;  %v1581_v18 = vld [vmem:[%s3676_s0 + $0x90] sm:$0xff]  ;;  %v1587_v19 = vld [vmem:[%s3676_s0 + $0xc0] sm:$0xff]  ;;  %v1582_v22 = vld [vmem:[%s3676_s0 + $0x98] sm:$0xff] }
   0x8   :  { %v1567_v20 = vld [vmem:[%s3676_s0 + $0x20] sm:$0xff]  ;;  %v1588_v23 = vld [vmem:[%s3676_s0 + $0xc8] sm:$0xff]  ;;  %v1589_v27 = vld [vmem:[%s3676_s0 + $0xd0] sm:$0xff] }
   0x9   :  { %v1575_v21 = vld [vmem:[%s3676_s0 + $0x60] sm:$0xff]  ;;  %v1568_v24 = vld [vmem:[%s3676_s0 + $0x28] sm:$0xff]  ;;  %v1569_v28 = vld [vmem:[%s3676_s0 + $0x30] sm:$0xff] }
   0xa   :  { %345 = vmatpush.bf16.msra.mxu0 %v1600_v2  ;;  %2150 = vmatpush.bf16.msra.mxu1 %v1600_v2  ;;  %v1576_v25 = vld [vmem:[%s3676_s0 + $0x68] sm:$0xff]  ;;  %v1583_v26 = vld [vmem:[%s3676_s0 + $0xa0] sm:$0xff]  ;;  %v1577_v29 = vld [vmem:[%s3676_s0 + $0x70] sm:$0xff] }
   0xb   :  { %2151 = vmatpush.bf16.msra.mxu2 %v1600_v2  ;;  %2152 = vmatpush.bf16.msra.mxu3 %v1600_v2  ;;  %v1584_v30 = vld [vmem:[%s3676_s0 + $0xa8] sm:$0xff]  ;;  %v1590_v31 = vld [vmem:[%s3676_s0 + $0xd8] sm:$0xff]  ;;  %v1585_v34 = vld [vmem:[%s3676_s0 + $0xb0] sm:$0xff] }
   0xc   :  { %v1570_v32 = vld [vmem:[%s3676_s0 + $0x38] sm:$0xff]  ;;  %v1591_v35 = vld [vmem:[%s3676_s0 + $0xe0] sm:$0xff]  ;;  %v1592_v39 = vld [vmem:[%s3676_s0 + $0xe8] sm:$0xff] }
   0xd   :  { %v1578_v33 = vld [vmem:[%s3676_s0 + $0x78] sm:$0xff]  ;;  %v1593_v52 = vld [vmem:[%s3676_s0 + $0xf0] sm:$0xff] }
   0xe   :  { %346 = vmatpush.bf16.msra.mxu0 %v1599_v3  ;;  %2153 = vmatpush.bf16.msra.mxu1 %v1599_v3  ;;  %v1586_v38 = vld [vmem:[%s3676_s0 + $0xb8] sm:$0xff] }
   0xf   :  { %2154 = vmatpush.bf16.msra.mxu2 %v1599_v3  ;;  %2155 = vmatpush.bf16.msra.mxu3 %v1599_v3  ;;  %v1594_v2 = vld [vmem:[%s3676_s0 + $0xf8] sm:$0xff] }
  0x12   :  { %347 = vmatpush.bf16.msra.mxu0 %v1598_v4  ;;  %2156 = vmatpush.bf16.msra.mxu1 %v1598_v4 }
  0x13   :  { %2157 = vmatpush.bf16.msra.mxu2 %v1598_v4  ;;  %2158 = vmatpush.bf16.msra.mxu3 %v1598_v4 }
  0x16   :  { %348 = vmatpush.bf16.msra.mxu0 %v1597_v5  ;;  %2159 = vmatpush.bf16.msra.mxu1 %v1597_v5 }
  0x17   :  { %2160 = vmatpush.bf16.msra.mxu2 %v1597_v5  ;;  %2161 = vmatpush.bf16.msra.mxu3 %v1597_v5 }
  0x1a   :  { %349 = vmatpush.bf16.msra.mxu0 %v1596_v6  ;;  %2162 = vmatpush.bf16.msra.mxu1 %v1596_v6 }
  0x1b   :  { %2163 = vmatpush.bf16.msra.mxu2 %v1596_v6  ;;  %2164 = vmatpush.bf16.msra.mxu3 %v1596_v6 }
  0x1e   :  { %350 = vmatpush.bf16.msra.mxu0 %v1595_v7  ;;  %2165 = vmatpush.bf16.msra.mxu1 %v1595_v7 }
  0x1f   :  { %2166 = vmatpush.bf16.msra.mxu2 %v1595_v7  ;;  %2167 = vmatpush.bf16.msra.mxu3 %v1595_v7 }
  0x21   :  { %351 = vmatmul.bf16.vlgmr.msra.gmra.mxu0 %v1563_v8  ;;  %391 = vmatmul.bf16.vlgmr.msra.gmra.mxu1 %v1571_v9 }
  0x22   :  { %431 = vmatmul.bf16.vlgmr.msra.gmra.mxu2 %v1579_v12  ;;  %471 = vmatmul.bf16.vlgmr.msra.gmra.mxu3 %v1587_v19 }
  0x31   :  { %356 = vmatmul.bf16.gmra.mxu0 %v1564_v10  ;;  %396 = vmatmul.bf16.gmra.mxu1 %v1572_v11 }
  0x32   :  { %436 = vmatmul.bf16.gmra.mxu2 %v1580_v15  ;;  %476 = vmatmul.bf16.gmra.mxu3 %v1588_v23 }
  0x41   :  { %361 = vmatmul.bf16.gmra.mxu0 %v1565_v13  ;;  %401 = vmatmul.bf16.gmra.mxu1 %v1573_v14 }
  0x42   :  { %441 = vmatmul.bf16.gmra.mxu2 %v1581_v18  ;;  %481 = vmatmul.bf16.gmra.mxu3 %v1589_v27 }
  0x51   :  { %366 = vmatmul.bf16.gmra.mxu0 %v1566_v16  ;;  %406 = vmatmul.bf16.gmra.mxu1 %v1574_v17 }
  0x52   :  { %446 = vmatmul.bf16.gmra.mxu2 %v1582_v22  ;;  %486 = vmatmul.bf16.gmra.mxu3 %v1590_v31 }
  0x61   :  { %371 = vmatmul.bf16.gmra.mxu0 %v1567_v20  ;;  %411 = vmatmul.bf16.gmra.mxu1 %v1575_v21 }
  0x62   :  { %451 = vmatmul.bf16.gmra.mxu2 %v1583_v26  ;;  %491 = vmatmul.bf16.gmra.mxu3 %v1591_v35 }
  0x71   :  { %376 = vmatmul.bf16.gmra.mxu0 %v1568_v24  ;;  %416 = vmatmul.bf16.gmra.mxu1 %v1576_v25 }
  0x72   :  { %456 = vmatmul.bf16.gmra.mxu2 %v1584_v30  ;;  %496 = vmatmul.bf16.gmra.mxu3 %v1592_v39 }
  0x81   :  { %381 = vmatmul.bf16.gmra.mxu0 %v1569_v28  ;;  %421 = vmatmul.bf16.gmra.mxu1 %v1577_v29 }
  0x82   :  { %461 = vmatmul.bf16.gmra.mxu2 %v1585_v34  ;;  %501 = vmatmul.bf16.gmra.mxu3 %v1593_v52 }
  0x91   :  { %386 = vmatmul.bf16.gmra.mxu0 %v1570_v32  ;;  %426 = vmatmul.bf16.gmra.mxu1 %v1578_v33 }
  0x92   :  { %466 = vmatmul.bf16.gmra.mxu2 %v1586_v38  ;;  %506 = vmatmul.bf16.gmra.mxu3 %v1594_v2 }
  0x9e   :  { %v352_v36 = vpop.f32.mrf.mxu0  ;;  %v2305_v37 = vpop.f32.mrf.mxu1 }
  0x9f   :  { %v585_v42 = vmul.f32 %v352_v36, %v352_v36 }
  0xa5   :  { %v2326_v58 = vpop.f32.mrf.mxu2  ;;  %v2351_v14 = vpop.f32.mrf.mxu3 }
  0xa6   :  { %v354_v40 = vpop.f32.mrf.mxu0  ;;  %v2313_v41 = vpop.f32.mrf.mxu1 }
  0xa7   :  { %v513_v43 = vadd.f32 %v354_v40, %v352_v36  ;;  %v586_v44 = vmul.f32 %v354_v40, %v354_v40  ;;  %v2315_v45 = vpack.c.bf16 %v354_v40, %v352_v36 }
  0xa9   :  { %v649_v46 = vadd.f32 %v586_v44, %v585_v42 }
  0xad   :  { %v2330_v0 = vpop.f32.mrf.mxu2  ;;  %v2357_v18 = vpop.f32.mrf.mxu3 }
  0xae   :  { %v357_v47 = vpop.f32.mrf.mxu0  ;;  %v2317_v48 = vpop.f32.mrf.mxu1 }
  0xaf   :  { %v514_v49 = vadd.f32 %v513_v43, %v357_v47  ;;  %v587_v50 = vmul.f32 %v357_v47, %v357_v47 }
  0xb1   :  { %v650_v51 = vadd.f32 %v649_v46, %v587_v50 }
  0xb5   :  { %v2339_v6 = vpop.f32.mrf.mxu2  ;;  %v2365_v23 = vpop.f32.mrf.mxu3 }
  0xb6   :  { %v359_v53 = vpop.f32.mrf.mxu0  ;;  %v2322_v54 = vpop.f32.mrf.mxu1 }
  0xb7   :  { %v515_v55 = vadd.f32 %v514_v49, %v359_v53  ;;  %v588_v56 = vmul.f32 %v359_v53, %v359_v53  ;;  %v2324_v57 = vpack.c.bf16 %v359_v53, %v357_v47 }
  0xb9   :  { %v651_v59 = vadd.f32 %v650_v51, %v588_v56 }
  0xbd   :  { %v2343_v9 = vpop.f32.mrf.mxu2  ;;  %v2371_v27 = vpop.f32.mrf.mxu3 }
  0xbe   :  { %v362_v60 = vpop.f32.mrf.mxu0  ;;  %v2328_v61 = vpop.f32.mrf.mxu1 }
  0xbf   :  { %v516_v62 = vadd.f32 %v515_v55, %v362_v60  ;;  %v589_v63 = vmul.f32 %v362_v60, %v362_v60 }
  0xc1   :  { %v652_v1 = vadd.f32 %v651_v59, %v589_v63 }
  0xc5   :  { %v2349_v13 = vpop.f32.mrf.mxu2  ;;  %v2379_v32 = vpop.f32.mrf.mxu3 }
  0xc6   :  { %v364_v3 = vpop.f32.mrf.mxu0  ;;  %v2335_v4 = vpop.f32.mrf.mxu1 }
  0xc7   :  { %v2337_v5 = vpack.c.bf16 %v364_v3, %v362_v60  ;;  %v590_v39 = vmul.f32 %v364_v3, %v364_v3  ;;  %v517_v40 = vadd.f32 %v516_v62, %v364_v3 }
  0xc9   :  { %v653_v43 = vadd.f32 %v652_v1, %v590_v39 }
  0xcd   :  { %v2355_v17 = vpop.f32.mrf.mxu2  ;;  %v2389_v38 = vpop.f32.mrf.mxu3 }
  0xce   :  { %v367_v7 = vpop.f32.mrf.mxu0  ;;  %v2341_v8 = vpop.f32.mrf.mxu1 }
  0xcf   :  { %v591_v42 = vmul.f32 %v367_v7, %v367_v7  ;;  %v518_v44 = vadd.f32 %v517_v40, %v367_v7 }
  0xd1   :  { %v654_v50 = vadd.f32 %v653_v43, %v591_v42 }
  0xd5   :  { %v2363_v22 = vpop.f32.mrf.mxu2  ;;  %v2397_v56 = vpop.f32.mrf.mxu3 }
  0xd6   :  { %v369_v10 = vpop.f32.mrf.mxu0  ;;  %v2345_v11 = vpop.f32.mrf.mxu1 }
  0xd7   :  { %v2347_v12 = vpack.c.bf16 %v369_v10, %v367_v7  ;;  %v592_v46 = vmul.f32 %v369_v10, %v369_v10  ;;  %v519_v51 = vadd.f32 %v518_v44, %v369_v10 }
  0xd9   :  { %v655_v60 = vadd.f32 %v654_v50, %v592_v46 }
  0xdd   :  { %v2369_v26 = vpop.f32.mrf.mxu2 }
  0xde   :  { %v372_v15 = vpop.f32.mrf.mxu0  ;;  %v2353_v16 = vpop.f32.mrf.mxu1 }
  0xdf   :  { %v593_v52 = vmul.f32 %v372_v15, %v372_v15  ;;  %v520_v62 = vadd.f32 %v519_v51, %v372_v15 }
  0xe1   :  { %v656_v1 = vadd.f32 %v655_v60, %v593_v52 }
  0xe5   :  { %v2377_v31 = vpop.f32.mrf.mxu2 }
  0xe6   :  { %v374_v19 = vpop.f32.mrf.mxu0  ;;  %v2359_v20 = vpop.f32.mrf.mxu1 }
  0xe7   :  { %v2361_v21 = vpack.c.bf16 %v374_v19, %v372_v15  ;;  %v594_v63 = vmul.f32 %v374_v19, %v374_v19  ;;  %v521_v2 = vadd.f32 %v520_v62, %v374_v19 }
  0xe9   :  { %v657_v7 = vadd.f32 %v656_v1, %v594_v63 }
  0xed   :  { %v2387_v36 = vpop.f32.mrf.mxu2 }
  0xee   :  { %v377_v24 = vpop.f32.mrf.mxu0  ;;  %v2367_v25 = vpop.f32.mrf.mxu1 }
  0xef   :  { %v595_v3 = vmul.f32 %v377_v24, %v377_v24  ;;  %v522_v39 = vadd.f32 %v521_v2, %v377_v24 }
  0xf1   :  { %v658_v43 = vadd.f32 %v657_v7, %v595_v3 }
  0xf5   :  { %v2395_v55 = vpop.f32.mrf.mxu2 }
  0xf6   :  { %v379_v28 = vpop.f32.mrf.mxu0  ;;  %v2373_v29 = vpop.f32.mrf.mxu1 }
  0xf7   :  { %v2375_v30 = vpack.c.bf16 %v379_v28, %v377_v24  ;;  %v2383_v33 = vpack.c.bf16 %v2373_v29, %v2367_v25  ;;  %v596_v10 = vmul.f32 %v379_v28, %v379_v28  ;;  %v523_v44 = vadd.f32 %v522_v39, %v379_v28 }
  0xf9   :  { %3729 = vst [vmem:[#allocation4_spill] sm:$0xff] %v2375_v30  ;;  %v2407_v30 = vpop.f32.mrf.mxu3  ;;  %v659_v46 = vadd.f32 %v658_v43, %v596_v10  ;;  %v602_v43 = vmul.f32 %v2313_v41, %v2313_v41 }
  0xfa   :  { %3730 = vst [vmem:[#allocation5_spill] sm:$0xff] %v2383_v33 }
  0xfd   :  { %v2405_v33 = vpop.f32.mrf.mxu2 }
  0xfe   :  { %v382_v34 = vpop.f32.mrf.mxu0  ;;  %v2385_v35 = vpop.f32.mrf.mxu1  ;;  %v2411_v15 = vpack.c.bf16 %v2405_v33, %v2395_v55 }
  0xff   :  { %v524_v19 = vadd.f32 %v523_v44, %v382_v34 }
 0x105   :  { %v2417_v39 = vpop.f32.mrf.mxu2 }
 0x106   :  { %v384_v47 = vpop.f32.mrf.mxu0  ;;  %v2391_v49 = vpop.f32.mrf.mxu1 }
 0x107   :  { %v2393_v53 = vpack.c.bf16 %v384_v47, %v382_v34  ;;  %v2401_v59 = vpack.c.bf16 %v2391_v49, %v2385_v35  ;;  %v598_v50 = vmul.f32 %v384_v47, %v384_v47  ;;  %v525_v24 = vadd.f32 %v524_v19, %v384_v47 }
 0x108   :  { %v601_v47 = vmul.f32 %v2305_v37, %v2305_v37 }
 0x109   :  { %3731 = vst [vmem:[#allocation6_spill] sm:$0xff] %v2393_v53  ;;  %v597_v53 = vmul.f32 %v382_v34, %v382_v34 }
 0x10a   :  { %3732 = vst [vmem:[#allocation7_spill] sm:$0xff] %v2401_v59  ;;  %v2419_v59 = vpop.f32.mrf.mxu3 }
 0x10b   :  { %v660_v51 = vadd.f32 %v659_v46, %v597_v53  ;;  %v603_v46 = vmul.f32 %v2317_v48, %v2317_v48 }
 0x10d   :  { %v661_v60 = vadd.f32 %v660_v51, %v598_v50  ;;  %v604_v51 = vmul.f32 %v2322_v54, %v2322_v54 }
 0x10e   :  { %v387_v40 = vpop.f32.mrf.mxu0  ;;  %v2403_v42 = vpop.f32.mrf.mxu1 }
 0x10f   :  { %v599_v52 = vmul.f32 %v387_v40, %v387_v40  ;;  %v526_v62 = vadd.f32 %v525_v24, %v387_v40 }
 0x111   :  { %v662_v28 = vadd.f32 %v661_v60, %v599_v52  ;;  %v2437_v60 = vpop.f32.mrf.mxu2 }
 0x116   :  { %v389_v63 = vpop.f32.mrf.mxu0  ;;  %v2413_v1 = vpop.f32.mrf.mxu1 }
 0x117   :  { %v527_v2 = vadd.f32 %v526_v62, %v389_v63  ;;  %v600_v3 = vmul.f32 %v389_v63, %v389_v63  ;;  %v2415_v7 = vpack.c.bf16 %v389_v63, %v387_v40  ;;  %v2423_v34 = vpack.c.bf16 %v2413_v1, %v2403_v42  ;;  %v2439_v62 = vpop.f32.mrf.mxu3 }
 0x118   :  { %v2443_v63 = vpack.c.bf16 %v2437_v60, %v2417_v39 }
 0x119   :  { %3733 = vst [vmem:[#allocation8_spill] sm:$0xff] %v2423_v34  ;;  %v528_v53 = vadd.f32 %v527_v2, %v2305_v37  ;;  %v663_v10 = vadd.f32 %v662_v28, %v600_v3  ;;  %v605_v28 = vmul.f32 %v2328_v61, %v2328_v61 }
 0x11a   :  { %3734 = vst [vmem:[#allocation9_spill] sm:$0xff] %v2443_v63 }
 0x11b   :  { %v529_v40 = vadd.f32 %v528_v53, %v2313_v41  ;;  %v664_v44 = vadd.f32 %v663_v10, %v601_v47  ;;  %v606_v47 = vmul.f32 %v2335_v4, %v2335_v4 }
 0x11d   :  { %v530_v19 = vadd.f32 %v529_v40, %v2317_v48  ;;  %v665_v50 = vadd.f32 %v664_v44, %v602_v43  ;;  %v607_v43 = vmul.f32 %v2341_v8, %v2341_v8 }
 0x11f   :  { %v531_v24 = vadd.f32 %v530_v19, %v2322_v54  ;;  %v666_v52 = vadd.f32 %v665_v50, %v603_v46  ;;  %v608_v46 = vmul.f32 %v2345_v11, %v2345_v11 }
 0x121   :  { %v532_v2 = vadd.f32 %v531_v24, %v2328_v61  ;;  %v667_v3 = vadd.f32 %v666_v52, %v604_v51  ;;  %v2457_v24 = vpop.f32.mrf.mxu2  ;;  %v2459_v51 = vpop.f32.mrf.mxu3  ;;  %v609_v52 = vmul.f32 %v2353_v16, %v2353_v16 }
 0x123   :  { %v533_v53 = vadd.f32 %v532_v2, %v2335_v4  ;;  %v668_v10 = vadd.f32 %v667_v3, %v605_v28  ;;  %v610_v3 = vmul.f32 %v2359_v20, %v2359_v20 }
 0x125   :  { %v669_v40 = vadd.f32 %v668_v10, %v606_v47  ;;  %v534_v44 = vadd.f32 %v533_v53, %v2341_v8  ;;  %v611_v10 = vmul.f32 %v2367_v25, %v2367_v25 }
 0x127   :  { %v535_v19 = vadd.f32 %v534_v44, %v2345_v11  ;;  %v670_v50 = vadd.f32 %v669_v40, %v607_v43  ;;  %v612_v44 = vmul.f32 %v2373_v29, %v2373_v29 }
 0x129   :  { %v536_v28 = vadd.f32 %v535_v19, %v2353_v16  ;;  %v671_v2 = vadd.f32 %v670_v50, %v608_v46  ;;  %v2473_v19 = vpop.f32.mrf.mxu2  ;;  %v2475_v46 = vpop.f32.mrf.mxu3 }
 0x12a   :  { %v2479_v50 = vpack.c.bf16 %v2473_v19, %v2457_v24 }
 0x12b   :  { %v537_v47 = vadd.f32 %v536_v28, %v2359_v20  ;;  %v672_v53 = vadd.f32 %v671_v2, %v609_v52  ;;  %v2483_v52 = vpack.c.bf16 %v2475_v46, %v2459_v51  ;;  %v613_v28 = vmul.f32 %v2385_v35, %v2385_v35 }
 0x12d   :  { %v538_v43 = vadd.f32 %v537_v47, %v2367_v25  ;;  %v673_v40 = vadd.f32 %v672_v53, %v610_v3  ;;  %3735 = vst [vmem:[#allocation10_spill] sm:$0xff] %v2483_v52  ;;  %v614_v47 = vmul.f32 %v2391_v49, %v2391_v49 }
 0x12f   :  { %v539_v63 = vadd.f32 %v538_v43, %v2373_v29  ;;  %v674_v34 = vadd.f32 %v673_v40, %v611_v10  ;;  %v615_v43 = vmul.f32 %v2403_v42, %v2403_v42 }
 0x131   :  { %v540_v25 = vadd.f32 %v539_v63, %v2385_v35  ;;  %v675_v2 = vadd.f32 %v674_v34, %v612_v44  ;;  %v616_v63 = vmul.f32 %v2413_v1, %v2413_v1  ;;  %v2497_v35 = vpop.f32.mrf.mxu3  ;;  %v617_v34 = vmul.f32 %v2326_v58, %v2326_v58 }
 0x133   :  { %v676_v29 = vadd.f32 %v675_v2, %v613_v28  ;;  %v541_v3 = vadd.f32 %v540_v25, %v2391_v49  ;;  %v618_v25 = vmul.f32 %v2330_v0, %v2330_v0  ;;  %v619_v2 = vmul.f32 %v2339_v6, %v2339_v6 }
 0x135   :  { %v677_v53 = vadd.f32 %v676_v29, %v614_v47  ;;  %v542_v10 = vadd.f32 %v541_v3, %v2403_v42  ;;  %v620_v3 = vmul.f32 %v2343_v9, %v2343_v9 }
 0x137   :  { %v678_v40 = vadd.f32 %v677_v53, %v615_v43  ;;  %v543_v52 = vadd.f32 %v542_v10, %v2413_v1  ;;  %v621_v43 = vmul.f32 %v2349_v13, %v2349_v13 }
 0x139   :  { %v544_v44 = vadd.f32 %v543_v52, %v2326_v58  ;;  %v679_v49 = vadd.f32 %v678_v40, %v616_v63  ;;  %v2511_v52 = vpop.f32.mrf.mxu3 }
 0x13a   :  { %v2515_v10 = vpack.c.bf16 %v2511_v52, %v2497_v35 }
 0x13b   :  { %v545_v28 = vadd.f32 %v544_v44, %v2330_v0  ;;  %v680_v42 = vadd.f32 %v679_v49, %v617_v34  ;;  %v622_v34 = vmul.f32 %v2355_v17, %v2355_v17 }
 0x13c   :  { %3736 = vst [vmem:[#allocation11_spill] sm:$0xff] %v2515_v10 }
 0x13d   :  { %v546_v29 = vadd.f32 %v545_v28, %v2339_v6  ;;  %v681_v1 = vadd.f32 %v680_v42, %v618_v25  ;;  %v623_v25 = vmul.f32 %v2363_v22, %v2363_v22 }
 0x13f   :  { %v547_v47 = vadd.f32 %v546_v29, %v2343_v9  ;;  %v682_v53 = vadd.f32 %v681_v1, %v619_v2  ;;  %v624_v2 = vmul.f32 %v2369_v26, %v2369_v26 }
 0x141   :  { %v548_v40 = vadd.f32 %v547_v47, %v2349_v13  ;;  %v683_v63 = vadd.f32 %v682_v53, %v620_v3  ;;  %v2529_v47 = vpop.f32.mrf.mxu3  ;;  %v625_v3 = vmul.f32 %v2377_v31, %v2377_v31 }
 0x143   :  { %v549_v44 = vadd.f32 %v548_v40, %v2355_v17  ;;  %v684_v49 = vadd.f32 %v683_v63, %v621_v43  ;;  %v626_v40 = vmul.f32 %v2387_v36, %v2387_v36 }
 0x145   :  { %v685_v28 = vadd.f32 %v684_v49, %v622_v34  ;;  %v550_v42 = vadd.f32 %v549_v44, %v2363_v22  ;;  %v627_v44 = vmul.f32 %v2395_v55, %v2395_v55 }
 0x147   :  { %v551_v29 = vadd.f32 %v550_v42, %v2369_v26  ;;  %v686_v1 = vadd.f32 %v685_v28, %v623_v25  ;;  %v628_v42 = vmul.f32 %v2405_v33, %v2405_v33 }
 0x149   :  { %v552_v53 = vadd.f32 %v551_v29, %v2377_v31  ;;  %v687_v43 = vadd.f32 %v686_v1, %v624_v2  ;;  %v2543_v29 = vpop.f32.mrf.mxu3 }
 0x14a   :  { %v2547_v2 = vpack.c.bf16 %v2543_v29, %v2529_v47 }
 0x14b   :  { %v553_v63 = vadd.f32 %v552_v53, %v2387_v36  ;;  %v688_v34 = vadd.f32 %v687_v43, %v625_v3  ;;  %v629_v53 = vmul.f32 %v2417_v39, %v2417_v39 }
 0x14d   :  { %v554_v49 = vadd.f32 %v553_v63, %v2395_v55  ;;  %v689_v25 = vadd.f32 %v688_v34, %v626_v40  ;;  %v630_v40 = vmul.f32 %v2437_v60, %v2437_v60  ;;  %v631_v34 = vmul.f32 %v2457_v24, %v2457_v24 }
 0x14f   :  { %v555_v28 = vadd.f32 %v554_v49, %v2405_v33  ;;  %v690_v10 = vadd.f32 %v689_v25, %v627_v44  ;;  %v632_v49 = vmul.f32 %v2473_v19, %v2473_v19  ;;  %v2171_v25 = vmov 0.0  }
 0x150   :  { %21 = vst [vmem:[#allocation2] sm:$0x1] %v2171_v25 }
 0x151   :  { %v691_v1 = vadd.f32 %v690_v10, %v628_v42  ;;  %v556_v3 = vadd.f32 %v555_v28, %v2417_v39  ;;  %v633_v39 = vmul.f32 %v2351_v14, %v2351_v14  ;;  %22 = vst [vmem:[#allocation3] sm:$0x1] %v2171_v25  ;;  %v634_v42 = vmul.f32 %v2357_v18, %v2357_v18 }
 0x152   :  { %v639_v25 = vmul.f32 %v2397_v56, %v2397_v56 }
 0x153   :  { %v692_v55 = vadd.f32 %v691_v1, %v629_v53  ;;  %v557_v43 = vadd.f32 %v556_v3, %v2437_v60  ;;  %v635_v3 = vmul.f32 %v2365_v23, %v2365_v23 }
 0x155   :  { %v693_v33 = vadd.f32 %v692_v55, %v630_v40  ;;  %v558_v63 = vadd.f32 %v557_v43, %v2457_v24  ;;  %v636_v55 = vmul.f32 %v2371_v27, %v2371_v27 }
 0x157   :  { %v694_v44 = vadd.f32 %v693_v33, %v631_v34  ;;  %v559_v10 = vadd.f32 %v558_v63, %v2473_v19  ;;  %v637_v33 = vmul.f32 %v2379_v32, %v2379_v32 }
 0x159   :  { %v560_v28 = vadd.f32 %v559_v10, %v2351_v14  ;;  %v695_v60 = vadd.f32 %v694_v44, %v632_v49  ;;  %v638_v44 = vmul.f32 %v2389_v38, %v2389_v38 }
 0x15b   :  { %v561_v24 = vadd.f32 %v560_v28, %v2357_v18  ;;  %v696_v1 = vadd.f32 %v695_v60, %v633_v39  ;;  %v640_v60 = vmul.f32 %v2407_v30, %v2407_v30 }
 0x15d   :  { %v562_v19 = vadd.f32 %v561_v24, %v2365_v23  ;;  %v697_v53 = vadd.f32 %v696_v1, %v634_v42  ;;  %v641_v1 = vmul.f32 %v2419_v59, %v2419_v59 }
 0x15f   :  { %v563_v43 = vadd.f32 %v562_v19, %v2371_v27  ;;  %v698_v40 = vadd.f32 %v697_v53, %v635_v3  ;;  %v642_v53 = vmul.f32 %v2439_v62, %v2439_v62 }
 0x161   :  { %v564_v63 = vadd.f32 %v563_v43, %v2379_v32  ;;  %v699_v34 = vadd.f32 %v698_v40, %v636_v55  ;;  %v643_v40 = vmul.f32 %v2459_v51, %v2459_v51 }
 0x163   :  { %v565_v10 = vadd.f32 %v564_v63, %v2389_v38  ;;  %v700_v49 = vadd.f32 %v699_v34, %v637_v33 }
 0x165   :  { %v701_v39 = vadd.f32 %v700_v49, %v638_v44  ;;  %v566_v28 = vadd.f32 %v565_v10, %v2397_v56  ;;  %v644_v44 = vmul.f32 %v2475_v46, %v2475_v46 }
 0x167   :  { %v567_v42 = vadd.f32 %v566_v28, %v2407_v30  ;;  %v702_v24 = vadd.f32 %v701_v39, %v639_v25  ;;  %v645_v39 = vmul.f32 %v2497_v35, %v2497_v35 }
 0x169   :  { %v568_v3 = vadd.f32 %v567_v42, %v2419_v59  ;;  %v703_v19 = vadd.f32 %v702_v24, %v640_v60  ;;  %v646_v42 = vmul.f32 %v2511_v52, %v2511_v52 }
 0x16b   :  { %v569_v55 = vadd.f32 %v568_v3, %v2439_v62  ;;  %v704_v43 = vadd.f32 %v703_v19, %v641_v1  ;;  %v647_v1 = vmul.f32 %v2529_v47, %v2529_v47  ;;  %v648_v19 = vmul.f32 %v2543_v29, %v2543_v29 }
 0x16d   :  { %v570_v33 = vadd.f32 %v569_v55, %v2459_v51  ;;  %v705_v63 = vadd.f32 %v704_v43, %v642_v53 }
 0x16f   :  { %v571_v34 = vadd.f32 %v570_v33, %v2475_v46  ;;  %v706_v10 = vadd.f32 %v705_v63, %v643_v40 }
 0x171   :  { %v707_v49 = vadd.f32 %v706_v10, %v644_v44  ;;  %v572_v25 = vadd.f32 %v571_v34, %v2497_v35  ;;  %v512_v10 = vld [vmem:[#allocation2] sm:$0x1] }
 0x173   :  { %v708_v28 = vadd.f32 %v707_v49, %v645_v39  ;;  %v573_v60 = vadd.f32 %v572_v25, %v2511_v52 }
 0x175   :  { %v709_v51 = vadd.f32 %v708_v28, %v646_v42  ;;  %v574_v24 = vadd.f32 %v573_v60, %v2529_v47  ;;  %v584_v47 = vld [vmem:[#allocation3] sm:$0x1] }
 0x177   :  { %v710_v46 = vadd.f32 %v709_v51, %v647_v1  ;;  %v575_v3 = vadd.f32 %v574_v24, %v2543_v29 }
 0x179   :  { %v576_v53 = vrot.slane %v575_v3, 4  ;;  %v711_v35 = vadd.f32 %v710_v46, %v648_v19 }
 0x17b   :  { %v577_v55 = vadd.f32 %v576_v53, %v575_v3  ;;  %v712_v43 = vrot.slane %v711_v35, 4 }
 0x17d   :  { %v578_v40 = vrot.slane %v577_v55, 2  ;;  %v713_v33 = vadd.f32 %v712_v43, %v711_v35  ;;  %v2619_v43 = vpack.c.bf16 %v2313_v41, %v2305_v37 }
 0x17f   :  { %v579_v63 = vadd.f32 %v578_v40, %v577_v55  ;;  %v714_v52 = vrot.slane %v713_v33, 2  ;;  %v2623_v40 = vpack.c.bf16 %v2322_v54, %v2317_v48  ;;  %v1797_v37 = vunpack.c.l.bf16 %v2619_v43 }
 0x180   :  { %v1798_v41 = vunpack.c.h.bf16 %v2619_v43  ;;  %v2639_v48 = vpack.c.bf16 %v2343_v9, %v2339_v6  ;;  %v1769_v54 = vunpack.c.l.bf16 %v2324_v57  ;;  %v1773_v6 = vunpack.c.l.bf16 %v2337_v5 }
 0x181   :  { %v580_v34 = vrot.slane %v579_v63, 1  ;;  %v715_v44 = vadd.f32 %v714_v52, %v713_v33  ;;  %v1765_v52 = vunpack.c.l.bf16 %v2315_v45  ;;  %v1774_v9 = vunpack.c.h.bf16 %v2337_v5 }
 0x183   :  { %v581_v49 = vadd.f32 %v580_v34, %v579_v63  ;;  %v716_v25 = vrot.slane %v715_v44, 1  ;;  %v2627_v63 = vpack.c.bf16 %v2330_v0, %v2326_v58  ;;  %v2632_v34 = vpack.c.bf16 %v2335_v4, %v2328_v61  ;;  %v3742_v4 = vld [vmem:[#allocation7_spill] sm:$0xff] }
 0x184   :  { %v1770_v58 = vunpack.c.h.bf16 %v2324_v57  ;;  %v1801_v0 = vunpack.c.l.bf16 %v2623_v40 }
 0x185   :  { %v582_v39 = vadd.f32 %v581_v49, %v512_v10  ;;  %v717_v28 = vadd.f32 %v716_v25, %v715_v44  ;;  %v1766_v44 = vunpack.c.h.bf16 %v2315_v45  ;;  %v2649_v25 = vpack.c.bf16 %v2345_v11, %v2341_v8  ;;  %v2751_v49 = vld [vmem:[%s3678_s3] sm:$0x1] }
 0x186   :  { %v2663_v8 = vpack.c.bf16 %v2357_v18, %v2351_v14  ;;  %v1777_v11 = vunpack.c.l.bf16 %v2347_v12  ;;  %v2680_v14 = vpack.c.bf16 %v2371_v27, %v2365_v23  ;;  %v3740_v23 = vld [vmem:[#allocation5_spill] sm:$0xff]  ;;  %v3745_v27 = vld [vmem:[#allocation10_spill] sm:$0xff]  ;;  %v3749_v43 = vunpack.c.h.bf16 %v2632_v34 }
 0x187   :  { %583 = vst [vmem:[#allocation2] sm:$0x1] %v582_v39  ;;  %v718_v60 = vadd.f32 %v717_v28, %v584_v47  ;;  %v2656_v39 = vpack.c.bf16 %v2355_v17, %v2349_v13  ;;  %v1778_v13 = vunpack.c.h.bf16 %v2347_v12  ;;  %v3746_v17 = vld [vmem:[#allocation11_spill] sm:$0xff]  ;;  %v3767_v18 = vunpack.c.l.bf16 %v2411_v15 }
 0x189   :  { %719 = vst [vmem:[#allocation3] sm:$0x1] %v718_v60  ;;  %v3760_v61 = vunpack.c.l.bf16 %v2656_v39 }
 0x18e   :  { %v856_v29 = vld [vmem:[#allocation2] sm:$0x1] }
 0x18f   :  { %v2609_v42 = vmul.f32 0.001953125, %v856_v29 }
 0x190   :  { %v858_v51 = vld [vmem:[#allocation3] sm:$0x1] }
 0x191   :  { %v859_v24 = vmul.f32 0.001953125, %v858_v51  ;;  %v860_v1 = vmul.f32 %v2609_v42, %v2609_v42  ;;  %v2668_v51 = vpack.c.bf16 %v2359_v20, %v2353_v16  ;;  %v2717_v16 = vpack.c.bf16 %v2407_v30, %v2397_v56 }
 0x192   :  { %v1821_v30 = vunpack.c.l.bf16 %v3742_v4  ;;  %v1822_v56 = vunpack.c.h.bf16 %v3742_v4 }
 0x193   :  { %v861_v46 = vsub.f32 %v859_v24, %v860_v1  ;;  %v2676_v1 = vpack.c.bf16 %v2369_v26, %v2363_v22  ;;  %v2690_v22 = vpack.c.bf16 %v2387_v36, %v2377_v31  ;;  %v1782_v26 = vunpack.c.h.bf16 %v2361_v21 }
 0x195   :  { %v862_v3 = vmax.f32 %v861_v46, 0.0  ;;  %v1781_v46 = vunpack.c.l.bf16 %v2361_v21  ;;  %v3762_v28 = vunpack.c.l.bf16 %v2676_v1 }
 0x197   :  { %v864_v19 = vadd.f32 1e-05, %v862_v3  ;;  %v3739_v3 = vld [vmem:[#allocation4_spill] sm:$0xff] }
 0x198   :  { %v1785_v20 = vunpack.c.l.bf16 %v3739_v3 }
 0x199   :  { %2169 = vrsqrt.f32 %v864_v19  ;;  %vm871_vm1 = vweird.f32 %v864_v19 }
 0x19f   :  { %v2613_v53 = vpop.eup %2169 }
 0x1a0   :  { %v866_v35 = vmul.f32 %v2613_v53, %v864_v19  ;;  %vm872_vm0 = vweird.f32 %v2613_v53  ;;  %v2700_v19 = vpack.c.bf16 %v2389_v38, %v2379_v32  ;;  %v1786_v32 = vunpack.c.h.bf16 %v3739_v3 }
 0x1a1   :  { %vm2692_vm2 = vmor %vm871_vm1, %vm872_vm0  ;;  %v1793_v3 = vunpack.c.l.bf16 %v2415_v7 }
 0x1a2   :  { %v867_v55 = vmul.f32 %v2613_v53, %v866_v35  ;;  %v1858_v35 = vunpack.c.h.bf16 %v2479_v50 }
 0x1a4   :  { %v868_v33 = vmul.f32 0.5, %v867_v55  ;;  %v863_v55 = vld [vmem:[%s3677_s2] sm:$0x1] }
 0x1a6   :  { %v869_v10 = vsub.f32 1.5, %v868_v33 }
 0x1a8   :  { %v870_v24 = vmul.f32 %v2613_v53, %v869_v10  ;;  %v3741_v10 = vld [vmem:[#allocation6_spill] sm:$0xff] }
 0x1a9   :  { %v1789_v60 = vunpack.c.l.bf16 %v3741_v10  ;;  %v1790_v38 = vunpack.c.h.bf16 %v3741_v10  ;;  %v1794_v10 = vunpack.c.h.bf16 %v2415_v7 }
 0x1aa   :  { %v874_v31 = vsel %vm2692_vm2, %v2613_v53, %v870_v24  ;;  %v2731_v24 = vpack.c.bf16 %v2439_v62, %v2419_v59  ;;  %v3743_v53 = vld [vmem:[#allocation8_spill] sm:$0xff] }
 0x1ab   :  { %v875_v29 = vmul.f32 %v874_v31, %v863_v55  ;;  %v1825_v59 = vunpack.c.l.bf16 %v3743_v53  ;;  %v1826_v62 = vunpack.c.h.bf16 %v3743_v53  ;;  %v3744_v55 = vld [vmem:[#allocation9_spill] sm:$0xff]  ;;  %v3765_v53 = vunpack.c.l.bf16 %v2690_v22 }
 0x1ac   :  { %v1853_v36 = vunpack.c.l.bf16 %v3744_v55  ;;  %v1854_v31 = vunpack.c.h.bf16 %v3744_v55 }
 0x1ad   :  { %v2740_v33 = vmul.f32 %v875_v29, %v2609_v42  ;;  %v2742_v4 = vperm.slane %v875_v29, 0  ;;  %v1857_v29 = vunpack.c.l.bf16 %v2479_v50 }
 0x1af   :  { %v878_v47 = vsub.f32 %v2751_v49, %v2740_v33  ;;  %v2768_v42 = vmul.f32 %v1765_v52, %v2742_v4  ;;  %v2773_v50 = vmul.f32 %v1766_v44, %v2742_v4  ;;  %v2778_v55 = vmul.f32 %v1769_v54, %v2742_v4 }
 0x1b0   :  { %v2783_v49 = vmul.f32 %v1770_v58, %v2742_v4  ;;  %v2788_v52 = vmul.f32 %v1773_v6, %v2742_v4  ;;  %v2793_v45 = vmul.f32 %v1774_v9, %v2742_v4  ;;  %v2798_v44 = vmul.f32 %v1777_v11, %v2742_v4 }
 0x1b1   :  { %v2803_v57 = vmul.f32 %v1778_v13, %v2742_v4  ;;  %v2808_v54 = vmul.f32 %v1781_v46, %v2742_v4  ;;  %v2811_v58 = vmul.f32 %v1782_v26, %v2742_v4  ;;  %v2814_v5 = vmul.f32 %v1785_v20, %v2742_v4 }
 0x1b2   :  { %v2817_v6 = vmul.f32 %v1786_v32, %v2742_v4  ;;  %v2820_v9 = vmul.f32 %v1789_v60, %v2742_v4  ;;  %v2823_v12 = vmul.f32 %v1790_v38, %v2742_v4  ;;  %v2826_v11 = vmul.f32 %v1793_v3, %v2742_v4 }
 0x1b3   :  { %v2829_v21 = vmul.f32 %v1794_v10, %v2742_v4  ;;  %v2834_v13 = vmul.f32 %v1797_v37, %v2742_v4  ;;  %v2839_v20 = vmul.f32 %v1798_v41, %v2742_v4  ;;  %v2844_v60 = vmul.f32 %v1801_v0, %v2742_v4 }
 0x1b4   :  { %v3747_v46 = vunpack.c.h.bf16 %v2623_v40  ;;  %v3748_v33 = vunpack.c.l.bf16 %v2632_v34  ;;  %v2859_v41 = vmul.f32 %v3749_v43, %v2742_v4  ;;  %v3750_v32 = vunpack.c.l.bf16 %v2649_v25 }
 0x1b5   :  { %v3751_v40 = vunpack.c.h.bf16 %v2649_v25  ;;  %v3752_v3 = vunpack.c.l.bf16 %v2668_v51  ;;  %v3753_v34 = vunpack.c.h.bf16 %v2668_v51  ;;  %v3755_v25 = vunpack.c.h.bf16 %v3740_v23 }
 0x1b6   :  { %v2849_v26 = vmul.f32 %v3747_v46, %v2742_v4  ;;  %v2854_v37 = vmul.f32 %v3748_v33, %v2742_v4  ;;  %v2864_v0 = vmul.f32 %v3750_v32, %v2742_v4  ;;  %v3754_v33 = vunpack.c.l.bf16 %v3740_v23 }
 0x1b7   :  { %v2869_v38 = vmul.f32 %v3751_v40, %v2742_v4  ;;  %v2874_v10 = vmul.f32 %v3752_v3, %v2742_v4  ;;  %v2879_v46 = vmul.f32 %v3753_v34, %v2742_v4  ;;  %v2889_v32 = vmul.f32 %v3755_v25, %v2742_v4 }
 0x1b8   :  { %v2884_v43 = vmul.f32 %v3754_v33, %v2742_v4  ;;  %v2892_v40 = vmul.f32 %v1821_v30, %v2742_v4  ;;  %v2895_v3 = vmul.f32 %v1822_v56, %v2742_v4  ;;  %v2898_v51 = vmul.f32 %v1825_v59, %v2742_v4 }
 0x1b9   :  { %v2901_v34 = vmul.f32 %v1826_v62, %v2742_v4  ;;  %v3756_v33 = vunpack.c.l.bf16 %v2627_v63  ;;  %v3757_v23 = vunpack.c.h.bf16 %v2627_v63  ;;  %v3758_v30 = vunpack.c.l.bf16 %v2639_v48 }
 0x1ba   :  { %v3759_v59 = vunpack.c.h.bf16 %v2639_v48  ;;  %v3761_v63 = vunpack.c.h.bf16 %v2656_v39  ;;  %v3763_v48 = vunpack.c.h.bf16 %v2676_v1  ;;  %v3766_v39 = vunpack.c.h.bf16 %v2690_v22 }
 0x1bb   :  { %v2906_v7 = vmul.f32 %v3756_v33, %v2742_v4  ;;  %v2911_v25 = vmul.f32 %v3757_v23, %v2742_v4  ;;  %v2916_v56 = vmul.f32 %v3758_v30, %v2742_v4  ;;  %v2926_v33 = vmul.f32 %v3760_v61, %v2742_v4 }
 0x1bc   :  { %v2921_v62 = vmul.f32 %v3759_v59, %v2742_v4  ;;  %v2931_v23 = vmul.f32 %v3761_v63, %v2742_v4  ;;  %v2936_v30 = vmul.f32 %v3762_v28, %v2742_v4  ;;  %v2941_v59 = vmul.f32 %v3763_v48, %v2742_v4 }
 0x1bd   :  { %v2946_v61 = vmul.f32 %v3765_v53, %v2742_v4  ;;  %v2951_v63 = vmul.f32 %v3766_v39, %v2742_v4  ;;  %v2956_v28 = vmul.f32 %v3767_v18, %v2742_v4  ;;  %v3769_v1 = vunpack.c.h.bf16 %v2411_v15 }
 0x1be   :  { %3764 = vst [vmem:[#allocation4_spill] sm:$0xff] %v2941_v59  ;;  %v2964_v59 = vmul.f32 %v1853_v36, %v2742_v4  ;;  %v2967_v53 = vmul.f32 %v1854_v31, %v2742_v4  ;;  %v2970_v22 = vmul.f32 %v1857_v29, %v2742_v4  ;;  %v2973_v39 = vmul.f32 %v1858_v35, %v2742_v4 }
 0x1bf   :  { %3768 = vst [vmem:[#allocation5_spill] sm:$0xff] %v2956_v28  ;;  %v2961_v48 = vmul.f32 %v3769_v1, %v2742_v4  ;;  %v3771_v18 = vunpack.c.l.bf16 %v2663_v8  ;;  %v3773_v15 = vunpack.c.h.bf16 %v2663_v8  ;;  %v3774_v36 = vunpack.c.l.bf16 %v2680_v14 }
 0x1c0   :  { %3770 = vst [vmem:[#allocation6_spill] sm:$0xff] %v2973_v39  ;;  %v3776_v29 = vunpack.c.h.bf16 %v2680_v14  ;;  %v2995_v39 = vperm.slane %v878_v47, 0  ;;  %v3778_v8 = vunpack.c.h.bf16 %v2700_v19  ;;  %v3781_v14 = vunpack.c.h.bf16 %v2717_v16 }
 0x1c1   :  { %v2978_v28 = vmul.f32 %v3771_v18, %v2742_v4  ;;  %v2983_v1 = vmul.f32 %v3773_v15, %v2742_v4  ;;  %v2988_v31 = vmul.f32 %v3774_v36, %v2742_v4  ;;  %v3777_v18 = vunpack.c.l.bf16 %v2700_v19 }
 0x1c2   :  { %v2993_v35 = vmul.f32 %v3776_v29, %v2742_v4  ;;  %v3005_v15 = vmul.f32 %v3778_v8, %v2742_v4  ;;  %v3780_v36 = vunpack.c.l.bf16 %v2717_v16  ;;  %v3015_v47 = vmul.f32 %v3781_v14, %v2742_v4 }
 0x1c3   :  { %3772 = vst [vmem:[#allocation7_spill] sm:$0xff] %v2978_v28  ;;  %v3000_v28 = vmul.f32 %v3777_v18, %v2742_v4  ;;  %v3783_v29 = vunpack.c.l.bf16 %v2731_v24  ;;  %v3784_v19 = vunpack.c.h.bf16 %v2731_v24  ;;  %v3787_v16 = vunpack.c.h.bf16 %v3745_v27 }
 0x1c4   :  { %3775 = vst [vmem:[#allocation8_spill] sm:$0xff] %v2988_v31  ;;  %v3010_v31 = vmul.f32 %v3780_v36, %v2742_v4  ;;  %v3790_v24 = vunpack.c.h.bf16 %v3746_v17 }
 0x1c5   :  { %3779 = vst [vmem:[#allocation9_spill] sm:$0xff] %v3005_v15  ;;  %v3020_v18 = vmul.f32 %v3783_v29, %v2742_v4  ;;  %v3025_v8 = vmul.f32 %v3784_v19, %v2742_v4  ;;  %v3786_v15 = vunpack.c.l.bf16 %v3745_v27  ;;  %v3035_v14 = vmul.f32 %v3787_v16, %v2742_v4 }
 0x1c6   :  { %3782 = vst [vmem:[#allocation10_spill] sm:$0xff] %v3015_v47  ;;  %v3789_v47 = vunpack.c.l.bf16 %v3746_v17  ;;  %v3045_v19 = vmul.f32 %v3790_v24, %v2742_v4  ;;  %v3792_v27 = vunpack.c.h.bf16 %v2547_v2  ;;  %v3067_v17 = vadd.f32 %v2995_v39, %v2778_v55  ;;  %v3813_v24 = vld [vmem:[#allocation5_spill] sm:$0xff] }
 0x1c7   :  { %3785 = vst [vmem:[#allocation11_spill] sm:$0xff] %v3025_v8  ;;  %v3030_v36 = vmul.f32 %v3786_v15, %v2742_v4  ;;  %v3791_v8 = vunpack.c.l.bf16 %v2547_v2  ;;  %v3075_v2 = vadd.f32 %v2995_v39, %v2788_v52  ;;  %v3087_v55 = vadd.f32 %v2995_v39, %v2803_v57 }
 0x1c8   :  { %3788 = vst [vmem:[#allocation12_spill] sm:$0xff] %v3035_v14  ;;  %v3040_v29 = vmul.f32 %v3789_v47, %v2742_v4  ;;  %v3055_v16 = vmul.f32 %v3792_v27, %v2742_v4  ;;  %v3059_v14 = vadd.f32 %v2995_v39, %v2768_v42  ;;  %v3063_v47 = vadd.f32 %v2995_v39, %v2773_v50 }
 0x1c9   :  { %v3050_v15 = vmul.f32 %v3791_v8, %v2742_v4  ;;  %v3071_v8 = vadd.f32 %v2995_v39, %v2783_v49  ;;  %v3079_v4 = vadd.f32 %v2995_v39, %v2793_v45  ;;  %v3083_v42 = vadd.f32 %v2995_v39, %v2798_v44 }
 0x1ca   :  { %v3091_v50 = vadd.f32 %v2995_v39, %v2808_v54  ;;  %v3095_v49 = vadd.f32 %v2995_v39, %v2811_v58  ;;  %v3099_v52 = vadd.f32 %v2995_v39, %v2814_v5  ;;  %v3103_v45 = vadd.f32 %v2995_v39, %v2817_v6 }
 0x1cb   :  { %v3107_v44 = vadd.f32 %v2995_v39, %v2820_v9  ;;  %v3111_v57 = vadd.f32 %v2995_v39, %v2823_v12  ;;  %v3115_v54 = vadd.f32 %v2995_v39, %v2826_v11  ;;  %v3119_v58 = vadd.f32 %v2995_v39, %v2829_v21 }
 0x1cc   :  { %v3123_v5 = vadd.f32 %v2995_v39, %v2834_v13  ;;  %v3127_v6 = vadd.f32 %v2995_v39, %v2839_v20  ;;  %v3131_v9 = vadd.f32 %v2995_v39, %v2844_v60  ;;  %v3135_v12 = vadd.f32 %v2995_v39, %v2849_v26 }
 0x1cd   :  { %3793 = vst [vmem:[#allocation13_spill] sm:$0xff] %v3119_v58  ;;  %v3139_v11 = vadd.f32 %v2995_v39, %v2854_v37  ;;  %v3143_v21 = vadd.f32 %v2995_v39, %v2859_v41  ;;  %v3147_v13 = vadd.f32 %v2995_v39, %v2864_v0  ;;  %v3151_v20 = vadd.f32 %v2995_v39, %v2869_v38 }
 0x1ce   :  { %3794 = vst [vmem:[#allocation14_spill] sm:$0xff] %v3123_v5  ;;  %v3155_v60 = vadd.f32 %v2995_v39, %v2874_v10  ;;  %v3159_v26 = vadd.f32 %v2995_v39, %v2879_v46  ;;  %v3163_v37 = vadd.f32 %v2995_v39, %v2884_v43  ;;  %v3167_v41 = vadd.f32 %v2995_v39, %v2889_v32 }
 0x1cf   :  { %3795 = vst [vmem:[#allocation15_spill] sm:$0xff] %v3131_v9  ;;  %v3171_v0 = vadd.f32 %v2995_v39, %v2892_v40  ;;  %v3175_v38 = vadd.f32 %v2995_v39, %v2895_v3  ;;  %v3179_v10 = vadd.f32 %v2995_v39, %v2898_v51  ;;  %v3183_v46 = vadd.f32 %v2995_v39, %v2901_v34 }
 0x1d0   :  { %3796 = vst [vmem:[#allocation16_spill] sm:$0xff] %v3135_v12  ;;  %v3187_v43 = vadd.f32 %v2995_v39, %v2906_v7  ;;  %v3191_v32 = vadd.f32 %v2995_v39, %v2911_v25  ;;  %v3195_v40 = vadd.f32 %v2995_v39, %v2916_v56  ;;  %v3199_v3 = vadd.f32 %v2995_v39, %v2921_v62  ;;  %v3809_v25 = vld [vmem:[#allocation4_spill] sm:$0xff] }
 0x1d1   :  { %3797 = vst [vmem:[#allocation17_spill] sm:$0xff] %v3143_v21  ;;  %v3203_v51 = vadd.f32 %v2995_v39, %v2926_v33  ;;  %v3207_v7 = vadd.f32 %v2995_v39, %v2931_v23  ;;  %v3211_v34 = vadd.f32 %v2995_v39, %v2936_v30  ;;  %v3215_v56 = vadd.f32 %v2995_v39, %v3809_v25  ;;  %v3819_v25 = vld [vmem:[#allocation6_spill] sm:$0xff] }
 0x1d2   :  { %3798 = vst [vmem:[#allocation18_spill] sm:$0xff] %v3147_v13  ;;  %v3219_v62 = vadd.f32 %v2995_v39, %v2946_v61  ;;  %v3223_v33 = vadd.f32 %v2995_v39, %v2951_v63  ;;  %v3227_v23 = vadd.f32 %v2995_v39, %v3813_v24  ;;  %v3231_v30 = vadd.f32 %v2995_v39, %v2961_v48 }
 0x1d3   :  { %3799 = vst [vmem:[#allocation19_spill] sm:$0xff] %v3155_v60  ;;  %v3235_v27 = vadd.f32 %v2995_v39, %v2964_v59  ;;  %v3239_v61 = vadd.f32 %v2995_v39, %v2967_v53  ;;  %v3243_v63 = vadd.f32 %v2995_v39, %v2970_v22  ;;  %v3247_v24 = vadd.f32 %v2995_v39, %v3819_v25 }
 0x1d4   :  { %3800 = vst [vmem:[#allocation20_spill] sm:$0xff] %v3159_v26  ;;  %v3255_v59 = vadd.f32 %v2995_v39, %v2983_v1  ;;  %v3263_v22 = vadd.f32 %v2995_v39, %v2993_v35  ;;  %v3267_v25 = vadd.f32 %v2995_v39, %v3000_v28  ;;  %v3275_v1 = vadd.f32 %v2995_v39, %v3010_v31  ;;  %v3837_v31 = vld [vmem:[#allocation12_spill] sm:$0xff] }
 0x1d5   :  { %3801 = vst [vmem:[#allocation21_spill] sm:$0xff] %v3167_v41  ;;  %v3283_v35 = vadd.f32 %v2995_v39, %v3020_v18  ;;  %v3306_v18 = vadd.f32 %v2995_v39, %v3045_v19  ;;  %v1147_v19 = vmul.f32 0.2, %v3083_v42 }
 0x1d6   :  { %3802 = vst [vmem:[#allocation22_spill] sm:$0xff] %v3171_v0 }
 0x1d7   :  { %3803 = vst [vmem:[#allocation23_spill] sm:$0xff] %v3179_v10 }
 0x1d8   :  { %3804 = vst [vmem:[#allocation24_spill] sm:$0xff] %v3183_v46 }
 0x1d9   :  { %3805 = vst [vmem:[#allocation25_spill] sm:$0xff] %v3191_v32 }
 0x1da   :  { %3806 = vst [vmem:[#allocation26_spill] sm:$0xff] %v3195_v40 }
 0x1db   :  { %3807 = vst [vmem:[#allocation27_spill] sm:$0xff] %v3203_v51 }
 0x1dc   :  { %3808 = vst [vmem:[#allocation28_spill] sm:$0xff] %v3207_v7 }
 0x1dd   :  { %3810 = vst [vmem:[#allocation4_spill] sm:$0xff] %v3215_v56 }
 0x1de   :  { %3811 = vst [vmem:[#allocation29_spill] sm:$0xff] %v3219_v62 }
 0x1df   :  { %3812 = vst [vmem:[#allocation30_spill] sm:$0xff] %v3223_v33 }
 0x1e0   :  { %3814 = vst [vmem:[#allocation5_spill] sm:$0xff] %v3227_v23  ;;  %v3821_v23 = vld [vmem:[#allocation7_spill] sm:$0xff] }
 0x1e1   :  { %3815 = vst [vmem:[#allocation31_spill] sm:$0xff] %v3231_v30  ;;  %v3251_v48 = vadd.f32 %v2995_v39, %v3821_v23 }
 0x1e2   :  { %3816 = vst [vmem:[#allocation32_spill] sm:$0xff] %v3235_v27  ;;  %v3824_v27 = vld [vmem:[#allocation8_spill] sm:$0xff] }
 0x1e3   :  { %3817 = vst [vmem:[#allocation33_spill] sm:$0xff] %v3239_v61  ;;  %v3259_v53 = vadd.f32 %v2995_v39, %v3824_v27  ;;  %v3357_v61 = vmul.f32 0.2, %v3135_v12  ;;  %v3377_v12 = vmul.f32 0.2, %v3159_v26 }
 0x1e4   :  { %3818 = vst [vmem:[#allocation34_spill] sm:$0xff] %v3243_v63  ;;  %v3354_v63 = vmul.f32 0.2, %v3131_v9  ;;  %v3374_v9 = vmul.f32 0.2, %v3155_v60 }
 0x1e5   :  { %3820 = vst [vmem:[#allocation6_spill] sm:$0xff] %v3247_v24  ;;  %v3828_v24 = vld [vmem:[#allocation9_spill] sm:$0xff]  ;;  %v3394_v60 = vmul.f32 0.2, %v3179_v10  ;;  %v3397_v26 = vmul.f32 0.2, %v3183_v46 }
 0x1e6   :  { %3822 = vst [vmem:[#allocation7_spill] sm:$0xff] %v3251_v48  ;;  %v3271_v23 = vadd.f32 %v2995_v39, %v3828_v24  ;;  %v3291_v24 = vadd.f32 %v2995_v39, %v3030_v36  ;;  %v3311_v36 = vadd.f32 %v2995_v39, %v3050_v15  ;;  %v1150_v15 = vmul.f32 0.2, %v3095_v49 }
 0x1e7   :  { %3823 = vst [vmem:[#allocation35_spill] sm:$0xff] %v3255_v59  ;;  %v3831_v59 = vld [vmem:[#allocation10_spill] sm:$0xff]  ;;  %v3347_v48 = vmul.f32 0.2, %v3123_v5  ;;  %v3367_v5 = vmul.f32 0.2, %v3147_v13 }
 0x1e8   :  { %3825 = vst [vmem:[#allocation8_spill] sm:$0xff] %v3259_v53  ;;  %v3279_v27 = vadd.f32 %v2995_v39, %v3831_v59  ;;  %v3302_v59 = vadd.f32 %v2995_v39, %v3040_v29  ;;  %v3318_v29 = vadd.f32 %v2995_v39, %v3055_v16  ;;  %v3337_v16 = vmul.f32 0.2, %v3111_v57 }
 0x1e9   :  { %3826 = vst [vmem:[#allocation36_spill] sm:$0xff] %v3263_v22  ;;  %v3834_v22 = vld [vmem:[#allocation11_spill] sm:$0xff]  ;;  %v3344_v53 = vmul.f32 0.2, %v3119_v58  ;;  %v3364_v58 = vmul.f32 0.2, %v3143_v21 }
 0x1ea   :  { %3827 = vst [vmem:[#allocation37_spill] sm:$0xff] %v3267_v25  ;;  %v3287_v28 = vadd.f32 %v2995_v39, %v3834_v22  ;;  %v1142_v22 = vmul.f32 0.2, %v3063_v47  ;;  %v3341_v25 = vmul.f32 0.2, %v3115_v54 }
 0x1eb   :  { %3829 = vst [vmem:[#allocation9_spill] sm:$0xff] %v3271_v23  ;;  %v3294_v23 = vmul.f32 0.2, %v3059_v14  ;;  %v3384_v21 = vmul.f32 0.2, %v3167_v41 }
 0x1ec   :  { %3830 = vst [vmem:[#allocation38_spill] sm:$0xff] %v3275_v1  ;;  %v3298_v1 = vadd.f32 %v2995_v39, %v3837_v31  ;;  %v1145_v31 = vmul.f32 0.2, %v3075_v2  ;;  %v3334_v39 = vmul.f32 0.2, %v3107_v44 }
 0x1ed   :  { %3832 = vst [vmem:[#allocation10_spill] sm:$0xff] %v3279_v27  ;;  %v3331_v27 = vmul.f32 0.2, %v3103_v45  ;;  %v3387_v13 = vmul.f32 0.2, %v3171_v0 }
 0x1ee   :  { %3833 = vst [vmem:[#allocation39_spill] sm:$0xff] %v3283_v35  ;;  %v1205_v35 = vmax.f32 %v3059_v14, %v3294_v23  ;;  %v3351_v23 = vmul.f32 0.2, %v3127_v6  ;;  %v3404_v41 = vmul.f32 0.2, %v3191_v32 }
 0x1ef   :  { %3835 = vst [vmem:[#allocation11_spill] sm:$0xff] %v3287_v28  ;;  %v1144_v28 = vmul.f32 0.2, %v3071_v8  ;;  %v3407_v0 = vmul.f32 0.2, %v3195_v40 }
 0x1f0   :  { %3836 = vst [vmem:[#allocation40_spill] sm:$0xff] %v3291_v24  ;;  %v1143_v24 = vmul.f32 0.2, %v3067_v17  ;;  %v3414_v10 = vmul.f32 0.2, %v3203_v51  ;;  %v3845_v51 = vld [vmem:[#allocation5_spill] sm:$0xff] }
 0x1f1   :  { %3838 = vst [vmem:[#allocation12_spill] sm:$0xff] %v3298_v1  ;;  %v1149_v1 = vmul.f32 0.2, %v3091_v50  ;;  %v3417_v46 = vmul.f32 0.2, %v3207_v7 }
 0x1f2   :  { %3839 = vst [vmem:[#allocation41_spill] sm:$0xff] %v3302_v59  ;;  %v1146_v59 = vmul.f32 0.2, %v3079_v4  ;;  %v1207_v14 = vmax.f32 %v3067_v17, %v1143_v24  ;;  %v1209_v17 = vmax.f32 %v3075_v2, %v1145_v31  ;;  %v3371_v24 = vmul.f32 0.2, %v3151_v20 }
 0x1f3   :  { %3840 = vst [vmem:[#allocation42_spill] sm:$0xff] %v3306_v18  ;;  %v1148_v18 = vmul.f32 0.2, %v3087_v55  ;;  %v1211_v2 = vmax.f32 %v3083_v42, %v1147_v19  ;;  %v3391_v31 = vmul.f32 0.2, %v3175_v38  ;;  %v1213_v42 = vmax.f32 %v3091_v50, %v1149_v1 }
 0x1f4   :  { %3841 = vst [vmem:[#allocation43_spill] sm:$0xff] %v3311_v36  ;;  %v3326_v36 = vmul.f32 0.2, %v3099_v52  ;;  %v3411_v19 = vmul.f32 0.2, %v3199_v3 }
 0x1f5   :  { %3842 = vst [vmem:[#allocation44_spill] sm:$0xff] %v3318_v29  ;;  %v1206_v29 = vmax.f32 %v3063_v47, %v1142_v22  ;;  %v1208_v47 = vmax.f32 %v3071_v8, %v1144_v28  ;;  %v3361_v22 = vmul.f32 0.2, %v3139_v11  ;;  %v1210_v8 = vmax.f32 %v3079_v4, %v1146_v59 }
 0x1f6   :  { %v3381_v28 = vmul.f32 0.2, %v3163_v37  ;;  %v1212_v4 = vmax.f32 %v3087_v55, %v1148_v18  ;;  %v3401_v59 = vmul.f32 0.2, %v3187_v43  ;;  %v1214_v55 = vmax.f32 %v3095_v49, %v1150_v15 }
 0x1f7   :  { %v3421_v18 = vmul.f32 0.2, %v3211_v34  ;;  %v3424_v32 = vmul.f32 0.2, %v3215_v56  ;;  %v3427_v40 = vmul.f32 0.2, %v3219_v62  ;;  %v1215_v50 = vmax.f32 %v3099_v52, %v3326_v36 }
 0x1f8   :  { %v3432_v1 = vmul.f32 0.2, %v3223_v33  ;;  %v3435_v7 = vmul.f32 0.2, %v3845_v51  ;;  %v3438_v49 = vmul.f32 0.2, %v3231_v30  ;;  %v1216_v15 = vmax.f32 %v3103_v45, %v3331_v27 }
 0x1f9   :  { %3843 = vst [vmem:[#allocation45_spill] sm:$0xff] %v3427_v40  ;;  %v1217_v56 = vmax.f32 %v3107_v44, %v3334_v39  ;;  %v1218_v62 = vmax.f32 %v3111_v57, %v3337_v16  ;;  %v1894_v40 = vpack.c.bf16 %v1206_v29, %v1205_v35  ;;  %v1899_v52 = vpack.c.bf16 %v1208_v47, %v1207_v14  ;;  %v3848_v51 = vld [vmem:[#allocation13_spill] sm:$0xff]  ;;  %v3850_v45 = vld [vmem:[#allocation14_spill] sm:$0xff]  ;;  %v3853_v35 = vld [vmem:[#allocation16_spill] sm:$0xff] }
 0x1fa   :  { %3844 = vst [vmem:[#allocation46_spill] sm:$0xff] %v3432_v1  ;;  %v1219_v36 = vmax.f32 %v3115_v54, %v3341_v25  ;;  %v1904_v33 = vpack.c.bf16 %v1210_v8, %v1209_v17  ;;  %v1909_v30 = vpack.c.bf16 %v1212_v4, %v1211_v2  ;;  %v1221_v27 = vmax.f32 %v3850_v45, %v3347_v48  ;;  %v3851_v54 = vld [vmem:[#allocation33_spill] sm:$0xff]  ;;  %v3857_v47 = vld [vmem:[#allocation18_spill] sm:$0xff]  ;;  %v3867_v45 = vld [vmem:[#allocation24_spill] sm:$0xff] }
 0x1fb   :  { %3846 = vst [vmem:[#allocation47_spill] sm:$0xff] %v3435_v7  ;;  %v1220_v7 = vmax.f32 %v3848_v51, %v3344_v53  ;;  %v1222_v44 = vmax.f32 %v3127_v6, %v3351_v23  ;;  %v1914_v57 = vpack.c.bf16 %v1214_v55, %v1213_v42  ;;  %v3461_v25 = vmul.f32 0.2, %v3851_v54  ;;  %v3852_v51 = vld [vmem:[#allocation15_spill] sm:$0xff]  ;;  %v3854_v6 = vld [vmem:[#allocation34_spill] sm:$0xff]  ;;  %v3855_v16 = vld [vmem:[#allocation17_spill] sm:$0xff] }
 0x1fc   :  { %3847 = vst [vmem:[#allocation48_spill] sm:$0xff] %v3438_v49  ;;  %v3849_v49 = vld [vmem:[#allocation32_spill] sm:$0xff]  ;;  %v1223_v53 = vmax.f32 %v3852_v51, %v3354_v63  ;;  %v1224_v29 = vmax.f32 %v3853_v35, %v3357_v61  ;;  %v1919_v48 = vpack.c.bf16 %v1216_v15, %v1215_v50  ;;  %v3471_v39 = vmul.f32 0.2, %v3854_v6  ;;  %v3856_v61 = vld [vmem:[#allocation6_spill] sm:$0xff] }
 0x1fd   :  { %v3451_v1 = vmul.f32 0.2, %v3849_v49  ;;  %1895 = vst [vmem:[%s3679_s4] sm:$0xff] %v1894_v40   ;;  %v1225_v40 = vmax.f32 %v3139_v11, %v3361_v22  ;;  %v1226_v14 = vmax.f32 %v3855_v16, %v3364_v58  ;;  %v1924_v63 = vpack.c.bf16 %v1218_v62, %v1217_v56  ;;  %v3858_v58 = vld [vmem:[#allocation7_spill] sm:$0xff]  ;;  %v3860_v62 = vld [vmem:[#allocation20_spill] sm:$0xff]  ;;  %v3864_v55 = vld [vmem:[#allocation22_spill] sm:$0xff] }
 0x1fe   :  { %2113 = vst [vmem:[%s3679_s4 + $0x8] sm:$0xff] %v1899_v52   ;;  %v3481_v23 = vmul.f32 0.2, %v3856_v61  ;;  %v1227_v17 = vmax.f32 %v3857_v47, %v3367_v5  ;;  %v1228_v8 = vmax.f32 %v3151_v20, %v3371_v24  ;;  %v1929_v11 = vpack.c.bf16 %v1220_v7, %v1219_v36  ;;  %v3861_v20 = vld [vmem:[#allocation35_spill] sm:$0xff]  ;;  %v3871_v35 = vld [vmem:[#allocation26_spill] sm:$0xff] }
 0x1ff   :  { %2114 = vst [vmem:[%s3679_s4 + $0x10] sm:$0xff] %v1904_v33   ;;  %v3491_v22 = vmul.f32 0.2, %v3858_v58  ;;  %v3859_v33 = vld [vmem:[#allocation19_spill] sm:$0xff]  ;;  %v1230_v2 = vmax.f32 %v3860_v62, %v3377_v12  ;;  %v1934_v5 = vpack.c.bf16 %v1222_v44, %v1221_v27  ;;  %v3501_v24 = vmul.f32 0.2, %v3861_v20 }
 0x200   :  { %2115 = vst [vmem:[%s3679_s4 + $0x18] sm:$0xff] %v1909_v30   ;;  %v1229_v56 = vmax.f32 %v3859_v33, %v3374_v9  ;;  %v1231_v7 = vmax.f32 %v3163_v37, %v3381_v28  ;;  %v3862_v30 = vld [vmem:[#allocation21_spill] sm:$0xff]  ;;  %v1939_v9 = vpack.c.bf16 %v1224_v29, %v1223_v53  ;;  %v3863_v12 = vld [vmem:[#allocation8_spill] sm:$0xff]  ;;  %v1233_v50 = vmax.f32 %v3864_v55, %v3387_v13  ;;  %v3866_v52 = vld [vmem:[#allocation23_spill] sm:$0xff] }
 0x201   :  { %2116 = vst [vmem:[%s3679_s4 + $0x20] sm:$0xff] %v1914_v57   ;;  %v1232_v4 = vmax.f32 %v3862_v30, %v3384_v21  ;;  %v3511_v42 = vmul.f32 0.2, %v3863_v12  ;;  %v1234_v15 = vmax.f32 %v3175_v38, %v3391_v31  ;;  %v1944_v37 = vpack.c.bf16 %v1226_v14, %v1225_v40  ;;  %v3865_v21 = vld [vmem:[#allocation36_spill] sm:$0xff]  ;;  %v3868_v38 = vld [vmem:[#allocation37_spill] sm:$0xff]  ;;  %v3873_v40 = vld [vmem:[#allocation27_spill] sm:$0xff] }
 0x202   :  { %2117 = vst [vmem:[%s3679_s4 + $0x28] sm:$0xff] %v1919_v48   ;;  %v3521_v28 = vmul.f32 0.2, %v3865_v21  ;;  %v1235_v36 = vmax.f32 %v3866_v52, %v3394_v60  ;;  %v1236_v27 = vmax.f32 %v3867_v45, %v3397_v26  ;;  %v1949_v13 = vpack.c.bf16 %v1228_v8, %v1227_v17  ;;  %v3869_v57 = vld [vmem:[#allocation25_spill] sm:$0xff]  ;;  %v3874_v14 = vld [vmem:[#allocation28_spill] sm:$0xff]  ;;  %v3883_v30 = vld [vmem:[#allocation47_spill] sm:$0xff] }
 0x203   :  { %2118 = vst [vmem:[%s3679_s4 + $0x30] sm:$0xff] %v1924_v63   ;;  %v3531_v31 = vmul.f32 0.2, %v3868_v38  ;;  %v1237_v44 = vmax.f32 %v3187_v43, %v3401_v59  ;;  %v1238_v51 = vmax.f32 %v3869_v57, %v3404_v41  ;;  %v1954_v60 = vpack.c.bf16 %v1230_v2, %v1229_v56  ;;  %v3870_v26 = vld [vmem:[#allocation9_spill] sm:$0xff]  ;;  %v3872_v41 = vld [vmem:[#allocation38_spill] sm:$0xff]  ;;  %v3876_v17 = vld [vmem:[#allocation4_spill] sm:$0xff] }
 0x204   :  { %2119 = vst [vmem:[%s3679_s4 + $0x38] sm:$0xff] %v1929_v11   ;;  %v3541_v53 = vmul.f32 0.2, %v3870_v26  ;;  %v1239_v29 = vmax.f32 %v3871_v35, %v3407_v0  ;;  %v1240_v48 = vmax.f32 %v3199_v3, %v3411_v19  ;;  %v1959_v43 = vpack.c.bf16 %v1232_v4, %v1231_v7  ;;  %v3875_v3 = vld [vmem:[#allocation10_spill] sm:$0xff]  ;;  %v3877_v11 = vld [vmem:[#allocation39_spill] sm:$0xff]  ;;  %v3878_v33 = vld [vmem:[#allocation45_spill] sm:$0xff] }
 0x205   :  { %2120 = vst [vmem:[%s3679_s4 + $0x40] sm:$0xff] %v1934_v5   ;;  %v3551_v59 = vmul.f32 0.2, %v3872_v41  ;;  %v1241_v16 = vmax.f32 %v3873_v40, %v3414_v10  ;;  %v1242_v63 = vmax.f32 %v3874_v14, %v3417_v46  ;;  %v1964_v0 = vpack.c.bf16 %v1234_v15, %v1233_v50  ;;  %v3879_v56 = vld [vmem:[#allocation29_spill] sm:$0xff]  ;;  %v3880_v2 = vld [vmem:[#allocation46_spill] sm:$0xff]  ;;  %v3885_v55 = vld [vmem:[#allocation48_spill] sm:$0xff] }
 0x206   :  { %2121 = vst [vmem:[%s3679_s4 + $0x48] sm:$0xff] %v1939_v9   ;;  %v1196_v19 = vmul.f32 0.2, %v3875_v3  ;;  %v1243_v47 = vmax.f32 %v3211_v34, %v3421_v18  ;;  %v1244_v8 = vmax.f32 %v3876_v17, %v3424_v32  ;;  %v1969_v10 = vpack.c.bf16 %v1236_v27, %v1235_v36  ;;  %v3881_v5 = vld [vmem:[#allocation30_spill] sm:$0xff]  ;;  %v3882_v18 = vld [vmem:[#allocation11_spill] sm:$0xff]  ;;  %v3884_v4 = vld [vmem:[#allocation5_spill] sm:$0xff] }
 0x207   :  { %2122 = vst [vmem:[%s3679_s4 + $0x50] sm:$0xff] %v1944_v37   ;;  %v1197_v46 = vmul.f32 0.2, %v3877_v11  ;;  %v1245_v62 = vmax.f32 %v3879_v56, %v3878_v33  ;;  %v1246_v7 = vmax.f32 %v3881_v5, %v3880_v2  ;;  %v1974_v34 = vpack.c.bf16 %v1238_v51, %v1237_v44  ;;  %v3886_v50 = vld [vmem:[#allocation31_spill] sm:$0xff]  ;;  %v3887_v52 = vld [vmem:[#allocation40_spill] sm:$0xff] }
 0x208   :  { %2123 = vst [vmem:[%s3679_s4 + $0x58] sm:$0xff] %v1949_v13   ;;  %v1198_v32 = vmul.f32 0.2, %v3882_v18  ;;  %v1247_v9 = vmax.f32 %v3884_v4, %v3883_v30  ;;  %v1248_v15 = vmax.f32 %v3886_v50, %v3885_v55  ;;  %v1979_v37 = vpack.c.bf16 %v1240_v48, %v1239_v29  ;;  %v3888_v44 = vld [vmem:[#allocation12_spill] sm:$0xff] }
 0x209   :  { %2124 = vst [vmem:[%s3679_s4 + $0x60] sm:$0xff] %v1954_v60   ;;  %v1199_v36 = vmul.f32 0.2, %v3887_v52  ;;  %v1249_v45 = vmax.f32 %v3849_v49, %v3451_v1  ;;  %v1250_v27 = vmax.f32 %v3851_v54, %v3461_v25  ;;  %v1984_v13 = vpack.c.bf16 %v1242_v63, %v1241_v16  ;;  %v3889_v49 = vld [vmem:[#allocation41_spill] sm:$0xff] }
 0x20a   :  { %2125 = vst [vmem:[%s3679_s4 + $0x68] sm:$0xff] %v1959_v43   ;;  %v1200_v57 = vmul.f32 0.2, %v3888_v44  ;;  %v1251_v51 = vmax.f32 %v3854_v6, %v3471_v39  ;;  %v1252_v60 = vmax.f32 %v3856_v61, %v3481_v23  ;;  %v1989_v1 = vpack.c.bf16 %v1244_v8, %v1243_v47  ;;  %v3890_v39 = vld [vmem:[#allocation42_spill] sm:$0xff] }
 0x20b   :  { %2126 = vst [vmem:[%s3679_s4 + $0x70] sm:$0xff] %v1964_v0   ;;  %v1201_v54 = vmul.f32 0.2, %v3889_v49  ;;  %v1253_v25 = vmax.f32 %v3858_v58, %v3491_v22  ;;  %v1254_v35 = vmax.f32 %v3861_v20, %v3501_v24  ;;  %v1994_v6 = vpack.c.bf16 %v1246_v7, %v1245_v62  ;;  %v3891_v22 = vld [vmem:[#allocation43_spill] sm:$0xff] }
 0x20c   :  { %2127 = vst [vmem:[%s3679_s4 + $0x78] sm:$0xff] %v1969_v10   ;;  %v1202_v61 = vmul.f32 0.2, %v3890_v39  ;;  %v1255_v23 = vmax.f32 %v3863_v12, %v3511_v42  ;;  %v1256_v29 = vmax.f32 %v3865_v21, %v3521_v28  ;;  %v1999_v58 = vpack.c.bf16 %v1248_v15, %v1247_v9  ;;  %v3892_v42 = vld [vmem:[#allocation44_spill] sm:$0xff] }
 0x20d   :  { %2128 = vst [vmem:[%s3679_s4 + $0x80] sm:$0xff] %v1974_v34   ;;  %v1203_v20 = vmul.f32 0.2, %v3891_v22  ;;  %v1257_v24 = vmax.f32 %v3868_v38, %v3531_v31  ;;  %v1258_v48 = vmax.f32 %v3870_v26, %v3541_v53  ;;  %v2004_v12 = vpack.c.bf16 %v1250_v27, %v1249_v45 }
 0x20e   :  { %2129 = vst [vmem:[%s3679_s4 + $0x88] sm:$0xff] %v1979_v37   ;;  %v1204_v21 = vmul.f32 0.2, %v3892_v42  ;;  %v1259_v28 = vmax.f32 %v3872_v41, %v3551_v59  ;;  %v1260_v43 = vmax.f32 %v3875_v3, %v1196_v19  ;;  %v2009_v38 = vpack.c.bf16 %v1252_v60, %v1251_v51 }
 0x20f   :  { %2130 = vst [vmem:[%s3679_s4 + $0x90] sm:$0xff] %v1984_v13   ;;  %v1261_v31 = vmax.f32 %v3877_v11, %v1197_v46  ;;  %v1262_v26 = vmax.f32 %v3882_v18, %v1198_v32  ;;  %v2014_v53 = vpack.c.bf16 %v1254_v35, %v1253_v25  ;;  %v1263_v40 = vmax.f32 %v3887_v52, %v1199_v36 }
 0x210   :  { %2131 = vst [vmem:[%s3679_s4 + $0x98] sm:$0xff] %v1989_v1   ;;  %v1264_v41 = vmax.f32 %v3888_v44, %v1200_v57  ;;  %v2019_v59 = vpack.c.bf16 %v1256_v29, %v1255_v23  ;;  %v1265_v16 = vmax.f32 %v3889_v49, %v1201_v54  ;;  %v1266_v14 = vmax.f32 %v3890_v39, %v1202_v61 }
 0x211   :  { %2132 = vst [vmem:[%s3679_s4 + $0xa0] sm:$0xff] %v1994_v6   ;;  %v2024_v63 = vpack.c.bf16 %v1258_v48, %v1257_v24  ;;  %v1267_v0 = vmax.f32 %v3891_v22, %v1203_v20  ;;  %v1268_v3 = vmax.f32 %v3892_v42, %v1204_v21  ;;  %v2029_v19 = vpack.c.bf16 %v1260_v43, %v1259_v28 }
 0x212   :  { %2133 = vst [vmem:[%s3679_s4 + $0xa8] sm:$0xff] %v1999_v58   ;;  %v2034_v47 = vpack.c.bf16 %v1262_v26, %v1261_v31  ;;  %v2039_v17 = vpack.c.bf16 %v1264_v41, %v1263_v40  ;;  %v2044_v8 = vpack.c.bf16 %v1266_v14, %v1265_v16 }
 0x213   :  { %2134 = vst [vmem:[%s3679_s4 + $0xb0] sm:$0xff] %v2004_v12   ;;  %v2049_v10 = vpack.c.bf16 %v1268_v3, %v1267_v0 }
 0x214   :  { %2135 = vst [vmem:[%s3679_s4 + $0xb8] sm:$0xff] %v2009_v38  }
 0x215   :  { %2136 = vst [vmem:[%s3679_s4 + $0xc0] sm:$0xff] %v2014_v53  }
 0x216   :  { %2137 = vst [vmem:[%s3679_s4 + $0xc8] sm:$0xff] %v2019_v59  }
 0x217   :  { %2138 = vst [vmem:[%s3679_s4 + $0xd0] sm:$0xff] %v2024_v63  }
 0x218   :  { %2139 = vst [vmem:[%s3679_s4 + $0xd8] sm:$0xff] %v2029_v19  }
 0x219   :  { %2140 = vst [vmem:[%s3679_s4 + $0xe0] sm:$0xff] %v2034_v47  }
 0x21a   :  { %2141 = vst [vmem:[%s3679_s4 + $0xe8] sm:$0xff] %v2039_v17  }
 0x21b   :  { %2142 = vst [vmem:[%s3679_s4 + $0xf0] sm:$0xff] %v2044_v8  }
 0x21c   :  { %2143 = vst [vmem:[%s3679_s4 + $0xf8] sm:$0xff] %v2049_v10  }

// kernel: discriminator_forward.5
= control target key start
LH: loop header
LB: loop body
LE: loop exit
PB: predicated region body
PF: predicated region fallthrough
CT: control target
= control target key end

     0   :  { %s3066_s1 = inlined_call_operand.vmem [shape: bf16[1024,128], index: 1, kind: input, shape index: {}]   ;;  %s3067_s0 = inlined_call_operand.vmem [shape: bf16[128,1024], index: 0, kind: input, shape index: {}]   ;;  %s3068_s2 = inlined_call_operand.vmem [shape: f32[1,128], index: 2, kind: input, shape index: {}]   ;;  %s3069_s3 = inlined_call_operand.vmem [shape: f32[1,128], index: 3, kind: input, shape index: {}]   ;;  %s3070_s4 = inlined_call_operand.vmem [shape: bf16[128,128], index: 4, kind: output, shape index: {}]  }
   0x1   :  { %v2161_v0 = vld [vmem:[%s3066_s1 + $0x38] sm:$0xff]  ;;  %v2160_v4 = vld [vmem:[%s3066_s1 + $0x30] sm:$0xff]  ;;  %v2159_v8 = vld [vmem:[%s3066_s1 + $0x28] sm:$0xff] }
   0x2   :  { %v2169_v1 = vld [vmem:[%s3066_s1 + $0x78] sm:$0xff]  ;;  %919 = vmatpush.bf16.msra.mxu0 %v2161_v0  ;;  %v2168_v5 = vld [vmem:[%s3066_s1 + $0x70] sm:$0xff]  ;;  %v2167_v9 = vld [vmem:[%s3066_s1 + $0x68] sm:$0xff] }
   0x3   :  { %v2177_v2 = vld [vmem:[%s3066_s1 + $0xb8] sm:$0xff]  ;;  %968 = vmatpush.bf16.msra.mxu1 %v2169_v1  ;;  %v2176_v6 = vld [vmem:[%s3066_s1 + $0xb0] sm:$0xff]  ;;  %v2175_v10 = vld [vmem:[%s3066_s1 + $0xa8] sm:$0xff] }
   0x4   :  { %v2185_v3 = vld [vmem:[%s3066_s1 + $0xf8] sm:$0xff]  ;;  %1017 = vmatpush.bf16.msra.mxu2 %v2177_v2  ;;  %v2184_v7 = vld [vmem:[%s3066_s1 + $0xf0] sm:$0xff]  ;;  %v2183_v11 = vld [vmem:[%s3066_s1 + $0xe8] sm:$0xff] }
   0x5   :  { %1066 = vmatpush.bf16.msra.mxu3 %v2185_v3  ;;  %v2158_v12 = vld [vmem:[%s3066_s1 + $0x20] sm:$0xff]  ;;  %v2157_v16 = vld [vmem:[%s3066_s1 + $0x18] sm:$0xff]  ;;  %v2156_v20 = vld [vmem:[%s3066_s1 + $0x10] sm:$0xff] }
   0x6   :  { %920 = vmatpush.bf16.msra.mxu0 %v2160_v4  ;;  %v2166_v13 = vld [vmem:[%s3066_s1 + $0x60] sm:$0xff]  ;;  %v2165_v17 = vld [vmem:[%s3066_s1 + $0x58] sm:$0xff]  ;;  %v2164_v21 = vld [vmem:[%s3066_s1 + $0x50] sm:$0xff] }
   0x7   :  { %969 = vmatpush.bf16.msra.mxu1 %v2168_v5  ;;  %v2174_v14 = vld [vmem:[%s3066_s1 + $0xa0] sm:$0xff]  ;;  %v2173_v18 = vld [vmem:[%s3066_s1 + $0x98] sm:$0xff]  ;;  %v2172_v22 = vld [vmem:[%s3066_s1 + $0x90] sm:$0xff] }
   0x8   :  { %1018 = vmatpush.bf16.msra.mxu2 %v2176_v6  ;;  %v2182_v15 = vld [vmem:[%s3066_s1 + $0xe0] sm:$0xff]  ;;  %v2181_v19 = vld [vmem:[%s3066_s1 + $0xd8] sm:$0xff]  ;;  %v2180_v23 = vld [vmem:[%s3066_s1 + $0xd0] sm:$0xff] }
   0x9   :  { %1067 = vmatpush.bf16.msra.mxu3 %v2184_v7  ;;  %v2155_v24 = vld [vmem:[%s3066_s1 + $0x8] sm:$0xff]  ;;  %v2154_v28 = vld [vmem:[%s3066_s1] sm:$0xff]  ;;  %v2209_v40 = vld [vmem:[%s3066_s1 + $0x1b8] sm:$0xff] }
   0xa   :  { %921 = vmatpush.bf16.msra.mxu0 %v2159_v8  ;;  %v2163_v25 = vld [vmem:[%s3066_s1 + $0x48] sm:$0xff]  ;;  %v2162_v29 = vld [vmem:[%s3066_s1 + $0x40] sm:$0xff]  ;;  %v2193_v41 = vld [vmem:[%s3066_s1 + $0x138] sm:$0xff] }
   0xb   :  { %970 = vmatpush.bf16.msra.mxu1 %v2167_v9  ;;  %v2171_v26 = vld [vmem:[%s3066_s1 + $0x88] sm:$0xff]  ;;  %v2170_v30 = vld [vmem:[%s3066_s1 + $0x80] sm:$0xff]  ;;  %v2217_v46 = vld [vmem:[%s3066_s1 + $0x1f8] sm:$0xff] }
   0xc   :  { %1019 = vmatpush.bf16.msra.mxu2 %v2175_v10  ;;  %v2179_v27 = vld [vmem:[%s3066_s1 + $0xc8] sm:$0xff]  ;;  %v2178_v31 = vld [vmem:[%s3066_s1 + $0xc0] sm:$0xff]  ;;  %v2201_v47 = vld [vmem:[%s3066_s1 + $0x178] sm:$0xff] }
   0xd   :  { %1068 = vmatpush.bf16.msra.mxu3 %v2183_v11  ;;  %v1580_v32 = vld [vmem:[%s3067_s0] sm:$0xf]  ;;  %v2090_v34 = vld [vmem:[%s3067_s0 + $0x4] sm:$0xf]  ;;  %v1588_v36 = vld [vmem:[%s3067_s0 + $0x8] sm:$0xf] }
   0xe   :  { %922 = vmatpush.bf16.msra.mxu0 %v2158_v12  ;;  %v2094_v33 = vld [vmem:[%s3067_s0 + $0x1c] sm:$0xf0]  ;;  %v1582_v35 = vld [vmem:[%s3067_s0 + $0x20] sm:$0xf0]  ;;  %v2095_v37 = vld [vmem:[%s3067_s0 + $0x24] sm:$0xf0] }
   0xf   :  { %971 = vmatpush.bf16.msra.mxu1 %v2166_v13  ;;  %v2091_v38 = vld [vmem:[%s3067_s0 + $0xc] sm:$0xf]  ;;  %v1581_v42 = vor.u32 %v2094_v33, %v1580_v32  ;;  %v1585_v43 = vor.u32 %v2090_v34, %v1582_v35  ;;  %v1589_v44 = vor.u32 %v2095_v37, %v1588_v36  ;;  %v2208_v48 = vld [vmem:[%s3066_s1 + $0x1b0] sm:$0xff]  ;;  %v1612_v56 = vld [vmem:[%s3067_s0 + $0x40] sm:$0xf] }
  0x10   :  { %1020 = vmatpush.bf16.msra.mxu2 %v2174_v14  ;;  %v1590_v39 = vld [vmem:[%s3067_s0 + $0x28] sm:$0xf0]  ;;  %v2192_v49 = vld [vmem:[%s3066_s1 + $0x130] sm:$0xff]  ;;  %v2102_v57 = vld [vmem:[%s3067_s0 + $0x5c] sm:$0xf0] }
  0x11   :  { %1069 = vmatpush.bf16.msra.mxu3 %v2182_v15  ;;  %v1593_v45 = vor.u32 %v2091_v38, %v1590_v39  ;;  %v2216_v50 = vld [vmem:[%s3066_s1 + $0x1f0] sm:$0xff]  ;;  %v2207_v52 = vld [vmem:[%s3066_s1 + $0x1a8] sm:$0xff]  ;;  %v2098_v58 = vld [vmem:[%s3067_s0 + $0x44] sm:$0xf]  ;;  %v1613_v0 = vor.u32 %v2102_v57, %v1612_v56 }
  0x12   :  { %923 = vmatpush.bf16.msra.mxu0 %v2157_v16  ;;  %v2200_v51 = vld [vmem:[%s3066_s1 + $0x170] sm:$0xff]  ;;  %v2191_v53 = vld [vmem:[%s3066_s1 + $0x128] sm:$0xff]  ;;  %v1614_v59 = vld [vmem:[%s3067_s0 + $0x60] sm:$0xf0] }
  0x13   :  { %972 = vmatpush.bf16.msra.mxu1 %v2165_v17  ;;  %v2215_v54 = vld [vmem:[%s3066_s1 + $0x1e8] sm:$0xff]  ;;  %v1617_v1 = vor.u32 %v2098_v58, %v1614_v59  ;;  %v2206_v4 = vld [vmem:[%s3066_s1 + $0x1a0] sm:$0xff]  ;;  %v2204_v36 = vld [vmem:[%s3066_s1 + $0x190] sm:$0xff] }
  0x14   :  { %1021 = vmatpush.bf16.msra.mxu2 %v2173_v18  ;;  %v2199_v55 = vld [vmem:[%s3066_s1 + $0x168] sm:$0xff]  ;;  %v2190_v5 = vld [vmem:[%s3066_s1 + $0x120] sm:$0xff]  ;;  %v2188_v37 = vld [vmem:[%s3066_s1 + $0x110] sm:$0xff] }
  0x15   :  { %1070 = vmatpush.bf16.msra.mxu3 %v2181_v19  ;;  %v1620_v60 = vld [vmem:[%s3067_s0 + $0x48] sm:$0xf]  ;;  %v2099_v62 = vld [vmem:[%s3067_s0 + $0x4c] sm:$0xf]  ;;  %v2214_v6 = vld [vmem:[%s3066_s1 + $0x1e0] sm:$0xff] }
  0x16   :  { %924 = vmatpush.bf16.msra.mxu0 %v2156_v20  ;;  %v2103_v61 = vld [vmem:[%s3067_s0 + $0x64] sm:$0xf0]  ;;  %v1622_v63 = vld [vmem:[%s3067_s0 + $0x68] sm:$0xf0]  ;;  %v2198_v7 = vld [vmem:[%s3066_s1 + $0x160] sm:$0xff] }
  0x17   :  { %973 = vmatpush.bf16.msra.mxu1 %v2164_v21  ;;  %v1621_v2 = vor.u32 %v2103_v61, %v1620_v60  ;;  %v1625_v3 = vor.u32 %v2099_v62, %v1622_v63  ;;  %v1644_v8 = vld [vmem:[%s3067_s0 + $0x80] sm:$0xf]  ;;  %v2106_v10 = vld [vmem:[%s3067_s0 + $0x84] sm:$0xf]  ;;  %v1652_v12 = vld [vmem:[%s3067_s0 + $0x88] sm:$0xf] }
  0x18   :  { %1022 = vmatpush.bf16.msra.mxu2 %v2172_v22  ;;  %v2110_v9 = vld [vmem:[%s3067_s0 + $0x9c] sm:$0xf0]  ;;  %v1646_v11 = vld [vmem:[%s3067_s0 + $0xa0] sm:$0xf0]  ;;  %v2111_v13 = vld [vmem:[%s3067_s0 + $0xa4] sm:$0xf0] }
  0x19   :  { %1071 = vmatpush.bf16.msra.mxu3 %v2180_v23  ;;  %v2107_v14 = vld [vmem:[%s3067_s0 + $0x8c] sm:$0xf]  ;;  %v1645_v16 = vor.u32 %v2110_v9, %v1644_v8  ;;  %v1649_v17 = vor.u32 %v2106_v10, %v1646_v11  ;;  %v1653_v18 = vor.u32 %v2111_v13, %v1652_v12  ;;  %v2205_v20 = vld [vmem:[%s3066_s1 + $0x198] sm:$0xff]  ;;  %v2212_v38 = vld [vmem:[%s3066_s1 + $0x1d0] sm:$0xff] }
  0x1a   :  { %925 = vmatpush.bf16.msra.mxu0 %v2155_v24  ;;  %v1654_v15 = vld [vmem:[%s3067_s0 + $0xa8] sm:$0xf0]  ;;  %v2189_v21 = vld [vmem:[%s3066_s1 + $0x118] sm:$0xff]  ;;  %v1676_v24 = vld [vmem:[%s3067_s0 + $0xc0] sm:$0xf] }
  0x1b   :  { %974 = vmatpush.bf16.msra.mxu1 %v2163_v25  ;;  %v1657_v19 = vor.u32 %v2107_v14, %v1654_v15  ;;  %v2213_v22 = vld [vmem:[%s3066_s1 + $0x1d8] sm:$0xff]  ;;  %v2118_v25 = vld [vmem:[%s3067_s0 + $0xdc] sm:$0xf0]  ;;  %v2196_v39 = vld [vmem:[%s3066_s1 + $0x150] sm:$0xff] }
  0x1c   :  { %1023 = vmatpush.bf16.msra.mxu2 %v2171_v26  ;;  %v2197_v23 = vld [vmem:[%s3066_s1 + $0x158] sm:$0xff]  ;;  %v2114_v26 = vld [vmem:[%s3067_s0 + $0xc4] sm:$0xf]  ;;  %v1677_v32 = vor.u32 %v2118_v25, %v1676_v24  ;;  %v1740_v56 = vld [vmem:[%s3067_s0 + $0x140] sm:$0xf] }
  0x1d   :  { %1072 = vmatpush.bf16.msra.mxu3 %v2179_v27  ;;  %v1678_v27 = vld [vmem:[%s3067_s0 + $0xe0] sm:$0xf0]  ;;  %v2134_v57 = vld [vmem:[%s3067_s0 + $0x15c] sm:$0xf0]  ;;  %v1748_v60 = vld [vmem:[%s3067_s0 + $0x148] sm:$0xf] }
  0x1e   :  { %926 = vmatpush.bf16.msra.mxu0 %v2154_v28  ;;  %v1684_v28 = vld [vmem:[%s3067_s0 + $0xc8] sm:$0xf]  ;;  %v1681_v33 = vor.u32 %v2114_v26, %v1678_v27  ;;  %v2130_v58 = vld [vmem:[%s3067_s0 + $0x144] sm:$0xf]  ;;  %v2131_v62 = vld [vmem:[%s3067_s0 + $0x14c] sm:$0xf] }
  0x1f   :  { %975 = vmatpush.bf16.msra.mxu1 %v2162_v29  ;;  %v2119_v29 = vld [vmem:[%s3067_s0 + $0xe4] sm:$0xf0]  ;;  %v1742_v59 = vld [vmem:[%s3067_s0 + $0x160] sm:$0xf0]  ;;  %v1750_v63 = vld [vmem:[%s3067_s0 + $0x168] sm:$0xf0] }
  0x20   :  { %1024 = vmatpush.bf16.msra.mxu2 %v2170_v30  ;;  %v2115_v30 = vld [vmem:[%s3067_s0 + $0xcc] sm:$0xf]  ;;  %v1685_v34 = vor.u32 %v2119_v29, %v1684_v28  ;;  %v2135_v61 = vld [vmem:[%s3067_s0 + $0x164] sm:$0xf0]  ;;  %v1772_v8 = vld [vmem:[%s3067_s0 + $0x180] sm:$0xf] }
  0x21   :  { %1073 = vmatpush.bf16.msra.mxu3 %v2178_v31  ;;  %927 = vmatmul.bf16.vlgmr.msra.gmra.mxu0 %v1581_v42  ;;  %v1686_v31 = vld [vmem:[%s3067_s0 + $0xe8] sm:$0xf0]  ;;  %v2122_v42 = vld [vmem:[%s3067_s0 + $0x104] sm:$0xf]  ;;  %v2142_v9 = vld [vmem:[%s3067_s0 + $0x19c] sm:$0xf0] }
  0x22   :  { %1115 = vmatpush.bf16.msrb.mxu0 %v2193_v41  ;;  %976 = vmatmul.bf16.vlgmr.msra.gmra.mxu1 %v1585_v43  ;;  %v1689_v35 = vor.u32 %v2115_v30, %v1686_v31  ;;  %v2126_v41 = vld [vmem:[%s3067_s0 + $0x11c] sm:$0xf0]  ;;  %v1710_v43 = vld [vmem:[%s3067_s0 + $0x120] sm:$0xf0]  ;;  %v1780_v12 = vld [vmem:[%s3067_s0 + $0x188] sm:$0xf] }
  0x23   :  { %1025 = vmatmul.bf16.vlgmr.msra.gmra.mxu2 %v1589_v44  ;;  %1164 = vmatpush.bf16.msrb.mxu1 %v2201_v47  ;;  %v1716_v44 = vld [vmem:[%s3067_s0 + $0x108] sm:$0xf]  ;;  %v1718_v47 = vld [vmem:[%s3067_s0 + $0x128] sm:$0xf0]  ;;  %v2138_v10 = vld [vmem:[%s3067_s0 + $0x184] sm:$0xf] }
  0x24   :  { %1213 = vmatpush.bf16.msrb.mxu2 %v2209_v40  ;;  %1074 = vmatmul.bf16.vlgmr.msra.gmra.mxu3 %v1593_v45  ;;  %v1708_v40 = vld [vmem:[%s3067_s0 + $0x100] sm:$0xf]  ;;  %v2127_v45 = vld [vmem:[%s3067_s0 + $0x124] sm:$0xf0]  ;;  %v1774_v11 = vld [vmem:[%s3067_s0 + $0x1a0] sm:$0xf0] }
  0x25   :  { %1262 = vmatpush.bf16.msrb.mxu3 %v2217_v46  ;;  %v2123_v46 = vld [vmem:[%s3067_s0 + $0x10c] sm:$0xf]  ;;  %v2143_v13 = vld [vmem:[%s3067_s0 + $0x1a4] sm:$0xf0] }
  0x26   :  { %1116 = vmatpush.bf16.msrb.mxu0 %v2192_v49  ;;  %v1713_v49 = vor.u32 %v2122_v42, %v1710_v43  ;;  %v2139_v14 = vld [vmem:[%s3067_s0 + $0x18c] sm:$0xf]  ;;  %v1812_v24 = vld [vmem:[%s3067_s0 + $0x1c8] sm:$0xf] }
  0x27   :  { %1165 = vmatpush.bf16.msrb.mxu1 %v2200_v51  ;;  %v1721_v51 = vor.u32 %v2123_v46, %v1718_v47  ;;  %v1782_v15 = vld [vmem:[%s3067_s0 + $0x1a8] sm:$0xf0]  ;;  %v2151_v25 = vld [vmem:[%s3067_s0 + $0x1e4] sm:$0xf0] }
  0x28   :  { %1214 = vmatpush.bf16.msrb.mxu2 %v2208_v48  ;;  %v1709_v48 = vor.u32 %v2126_v41, %v1708_v40  ;;  %v2147_v26 = vld [vmem:[%s3067_s0 + $0x1cc] sm:$0xf]  ;;  %v1813_v30 = vor.u32 %v2151_v25, %v1812_v24 }
  0x29   :  { %1263 = vmatpush.bf16.msrb.mxu3 %v2216_v50  ;;  %v1717_v50 = vor.u32 %v2127_v45, %v1716_v44  ;;  %v1814_v27 = vld [vmem:[%s3067_s0 + $0x1e8] sm:$0xf0] }
  0x2a   :  { %1117 = vmatpush.bf16.msrb.mxu0 %v2191_v53  ;;  %v2187_v53 = vld [vmem:[%s3066_s1 + $0x108] sm:$0xff]  ;;  %v1817_v31 = vor.u32 %v2147_v26, %v1814_v27 }
  0x2b   :  { %1166 = vmatpush.bf16.msrb.mxu1 %v2199_v55  ;;  %v2195_v55 = vld [vmem:[%s3066_s1 + $0x148] sm:$0xff] }
  0x2c   :  { %1215 = vmatpush.bf16.msrb.mxu2 %v2207_v52  ;;  %v2203_v52 = vld [vmem:[%s3066_s1 + $0x188] sm:$0xff] }
  0x2d   :  { %1264 = vmatpush.bf16.msrb.mxu3 %v2215_v54  ;;  %v2211_v54 = vld [vmem:[%s3066_s1 + $0x1c8] sm:$0xff] }
  0x2e   :  { %1118 = vmatpush.bf16.msrb.mxu0 %v2190_v5  ;;  %v2186_v5 = vld [vmem:[%s3066_s1 + $0x100] sm:$0xff] }
  0x2f   :  { %1167 = vmatpush.bf16.msrb.mxu1 %v2198_v7  ;;  %v2194_v7 = vld [vmem:[%s3066_s1 + $0x140] sm:$0xff] }
  0x30   :  { %1216 = vmatpush.bf16.msrb.mxu2 %v2206_v4  ;;  %v2202_v4 = vld [vmem:[%s3066_s1 + $0x180] sm:$0xff] }
  0x31   :  { %932 = vmatmul.bf16.gmra.mxu0 %v1613_v0  ;;  %1265 = vmatpush.bf16.msrb.mxu3 %v2214_v6  ;;  %v1741_v0 = vor.u32 %v2134_v57, %v1740_v56  ;;  %v2210_v6 = vld [vmem:[%s3066_s1 + $0x1c0] sm:$0xff]  ;;  %v2100_v56 = vld [vmem:[%s3067_s0 + $0x54] sm:$0xf] }
  0x32   :  { %981 = vmatmul.bf16.gmra.mxu1 %v1617_v1  ;;  %1119 = vmatpush.bf16.msrb.mxu0 %v2189_v21  ;;  %v1745_v1 = vor.u32 %v2130_v58, %v1742_v59  ;;  %v2150_v21 = vld [vmem:[%s3067_s0 + $0x1dc] sm:$0xf0]  ;;  %v1630_v57 = vld [vmem:[%s3067_s0 + $0x70] sm:$0xf0]  ;;  %v1636_v58 = vld [vmem:[%s3067_s0 + $0x58] sm:$0xf] }
  0x33   :  { %1030 = vmatmul.bf16.gmra.mxu2 %v1621_v2  ;;  %1168 = vmatpush.bf16.msrb.mxu1 %v2197_v23  ;;  %v1749_v2 = vor.u32 %v2135_v61, %v1748_v60  ;;  %v1806_v23 = vld [vmem:[%s3067_s0 + $0x1e0] sm:$0xf0]  ;;  %v2105_v59 = vld [vmem:[%s3067_s0 + $0x74] sm:$0xf0]  ;;  %v2101_v60 = vld [vmem:[%s3067_s0 + $0x5c] sm:$0xf] }
  0x34   :  { %1079 = vmatmul.bf16.gmra.mxu3 %v1625_v3  ;;  %1217 = vmatpush.bf16.msrb.mxu2 %v2205_v20  ;;  %v1753_v3 = vor.u32 %v2131_v62, %v1750_v63  ;;  %v1804_v20 = vld [vmem:[%s3067_s0 + $0x1c0] sm:$0xf]  ;;  %v1638_v61 = vld [vmem:[%s3067_s0 + $0x78] sm:$0xf0] }
  0x35   :  { %1266 = vmatpush.bf16.msrb.mxu3 %v2213_v22  ;;  %v2146_v22 = vld [vmem:[%s3067_s0 + $0x1c4] sm:$0xf]  ;;  %v1805_v28 = vor.u32 %v2150_v21, %v1804_v20  ;;  %v1668_v20 = vld [vmem:[%s3067_s0 + $0x98] sm:$0xf] }
  0x36   :  { %1120 = vmatpush.bf16.msrb.mxu0 %v2188_v37  ;;  %v1809_v29 = vor.u32 %v2146_v22, %v1806_v23  ;;  %v2097_v37 = vld [vmem:[%s3067_s0 + $0x34] sm:$0xf0]  ;;  %v2109_v22 = vld [vmem:[%s3067_s0 + $0x9c] sm:$0xf] }
  0x37   :  { %1169 = vmatpush.bf16.msrb.mxu1 %v2196_v39  ;;  %v1606_v39 = vld [vmem:[%s3067_s0 + $0x38] sm:$0xf0]  ;;  %v2113_v21 = vld [vmem:[%s3067_s0 + $0xb4] sm:$0xf0] }
  0x38   :  { %1218 = vmatpush.bf16.msrb.mxu2 %v2204_v36  ;;  %v1604_v36 = vld [vmem:[%s3067_s0 + $0x18] sm:$0xf]  ;;  %v1670_v23 = vld [vmem:[%s3067_s0 + $0xb8] sm:$0xf0] }
  0x39   :  { %1267 = vmatpush.bf16.msrb.mxu3 %v2212_v38  ;;  %v2093_v38 = vld [vmem:[%s3067_s0 + $0x1c] sm:$0xf]  ;;  %v1605_v44 = vor.u32 %v2097_v37, %v1604_v36 }
  0x3a   :  { %1121 = vmatpush.bf16.msrb.mxu0 %v2187_v53  ;;  %v1609_v45 = vor.u32 %v2093_v38, %v1606_v39 }
  0x3b   :  { %1170 = vmatpush.bf16.msrb.mxu1 %v2195_v55  ;;  %v2104_v55 = vld [vmem:[%s3067_s0 + $0x6c] sm:$0xf0] }
  0x3c   :  { %1219 = vmatpush.bf16.msrb.mxu2 %v2203_v52 }
  0x3d   :  { %1268 = vmatpush.bf16.msrb.mxu3 %v2211_v54  ;;  %v1628_v54 = vld [vmem:[%s3067_s0 + $0x50] sm:$0xf] }
  0x3e   :  { %1122 = vmatpush.bf16.msrb.mxu0 %v2186_v5  ;;  %v1637_v5 = vor.u32 %v2105_v59, %v1636_v58 }
  0x3f   :  { %1171 = vmatpush.bf16.msrb.mxu1 %v2194_v7 }
  0x40   :  { %1220 = vmatpush.bf16.msrb.mxu2 %v2202_v4 }
  0x41   :  { %937 = vmatmul.bf16.gmra.mxu0 %v1645_v16  ;;  %1269 = vmatpush.bf16.msrb.mxu3 %v2210_v6  ;;  %v1773_v16 = vor.u32 %v2142_v9, %v1772_v8  ;;  %v1641_v6 = vor.u32 %v2101_v60, %v1638_v61 }
  0x42   :  { %986 = vmatmul.bf16.gmra.mxu1 %v1649_v17  ;;  %v1777_v17 = vor.u32 %v2138_v10, %v1774_v11 }
  0x43   :  { %1035 = vmatmul.bf16.gmra.mxu2 %v1653_v18  ;;  %v1781_v18 = vor.u32 %v2143_v13, %v1780_v12 }
  0x44   :  { %1084 = vmatmul.bf16.gmra.mxu3 %v1657_v19  ;;  %v1785_v19 = vor.u32 %v2139_v14, %v1782_v15 }
  0x51   :  { %942 = vmatmul.bf16.gmra.mxu0 %v1677_v32  ;;  %v1596_v32 = vld [vmem:[%s3067_s0 + $0x10] sm:$0xf] }
  0x52   :  { %991 = vmatmul.bf16.gmra.mxu1 %v1681_v33  ;;  %v2096_v33 = vld [vmem:[%s3067_s0 + $0x2c] sm:$0xf0] }
  0x53   :  { %1040 = vmatmul.bf16.gmra.mxu2 %v1685_v34  ;;  %v2092_v34 = vld [vmem:[%s3067_s0 + $0x14] sm:$0xf]  ;;  %v1597_v40 = vor.u32 %v2096_v33, %v1596_v32  ;;  %v1673_v32 = vor.u32 %v2109_v22, %v1670_v23 }
  0x54   :  { %1089 = vmatmul.bf16.gmra.mxu3 %v1689_v35  ;;  %v1598_v35 = vld [vmem:[%s3067_s0 + $0x30] sm:$0xf0] }
  0x55   :  { %v1601_v41 = vor.u32 %v2092_v34, %v1598_v35 }
  0x61   :  { %947 = vmatmul.bf16.gmra.mxu0 %v1709_v48 }
  0x62   :  { %996 = vmatmul.bf16.gmra.mxu1 %v1713_v49 }
  0x63   :  { %1045 = vmatmul.bf16.gmra.mxu2 %v1717_v50 }
  0x64   :  { %1094 = vmatmul.bf16.gmra.mxu3 %v1721_v51 }
  0x71   :  { %952 = vmatmul.bf16.gmra.mxu0 %v1741_v0  ;;  %v1629_v0 = vor.u32 %v2104_v55, %v1628_v54 }
  0x72   :  { %1001 = vmatmul.bf16.gmra.mxu1 %v1745_v1  ;;  %v1633_v1 = vor.u32 %v2100_v56, %v1630_v57 }
  0x73   :  { %1050 = vmatmul.bf16.gmra.mxu2 %v1749_v2 }
  0x74   :  { %1099 = vmatmul.bf16.gmra.mxu3 %v1753_v3 }
  0x81   :  { %957 = vmatmul.bf16.gmra.mxu0 %v1773_v16  ;;  %v1660_v16 = vld [vmem:[%s3067_s0 + $0x90] sm:$0xf] }
  0x82   :  { %1006 = vmatmul.bf16.gmra.mxu1 %v1777_v17  ;;  %v2112_v17 = vld [vmem:[%s3067_s0 + $0xac] sm:$0xf0] }
  0x83   :  { %1055 = vmatmul.bf16.gmra.mxu2 %v1781_v18  ;;  %v2108_v18 = vld [vmem:[%s3067_s0 + $0x94] sm:$0xf]  ;;  %v1661_v26 = vor.u32 %v2112_v17, %v1660_v16 }
  0x84   :  { %1104 = vmatmul.bf16.gmra.mxu3 %v1785_v19  ;;  %v1662_v19 = vld [vmem:[%s3067_s0 + $0xb0] sm:$0xf0] }
  0x85   :  { %v1665_v27 = vor.u32 %v2108_v18, %v1662_v19 }
  0x91   :  { %962 = vmatmul.bf16.gmra.mxu0 %v1805_v28 }
  0x92   :  { %1011 = vmatmul.bf16.gmra.mxu1 %v1809_v29 }
  0x93   :  { %1060 = vmatmul.bf16.gmra.mxu2 %v1813_v30 }
  0x94   :  { %1109 = vmatmul.bf16.gmra.mxu3 %v1817_v31  ;;  %v1669_v31 = vor.u32 %v2113_v21, %v1668_v20 }
  0x9e   :  { %v928_v42 = vpop.f32.mrf.mxu0 }
  0x9f   :  { %v977_v43 = vpop.f32.mrf.mxu1 }
  0xa0   :  { %v978_v46 = vadd.f32 %v977_v43, %v928_v42  ;;  %v1692_v42 = vld [vmem:[%s3067_s0 + $0xd0] sm:$0xf] }
  0xa1   :  { %1123 = vmatmul.bf16.vlgmr.msrb.gmra.mxu0 %v1597_v40  ;;  %v2120_v43 = vld [vmem:[%s3067_s0 + $0xec] sm:$0xf0] }
  0xa2   :  { %1172 = vmatmul.bf16.vlgmr.msrb.gmra.mxu1 %v1601_v41 }
  0xa3   :  { %1221 = vmatmul.bf16.vlgmr.msrb.gmra.mxu2 %v1605_v44  ;;  %v2116_v44 = vld [vmem:[%s3067_s0 + $0xd4] sm:$0xf] }
  0xa4   :  { %1270 = vmatmul.bf16.vlgmr.msrb.gmra.mxu3 %v1609_v45  ;;  %v1694_v45 = vld [vmem:[%s3067_s0 + $0xf0] sm:$0xf0] }
  0xa5   :  { %v1697_v54 = vor.u32 %v2116_v44, %v1694_v45 }
  0xa6   :  { %v1026_v47 = vpop.f32.mrf.mxu2  ;;  %v930_v50 = vpop.f32.mrf.mxu0 }
  0xa7   :  { %v1075_v48 = vpop.f32.mrf.mxu3  ;;  %v1027_v49 = vadd.f32 %v1026_v47, %v978_v46  ;;  %v979_v51 = vpop.f32.mrf.mxu1  ;;  %v1700_v46 = vld [vmem:[%s3067_s0 + $0xd8] sm:$0xf] }
  0xa8   :  { %v980_v52 = vadd.f32 %v979_v51, %v930_v50  ;;  %v2121_v47 = vld [vmem:[%s3067_s0 + $0xf4] sm:$0xf0] }
  0xa9   :  { %v2788_v53 = vadd.f32 %v1075_v48, %v1027_v49  ;;  %v2117_v48 = vld [vmem:[%s3067_s0 + $0xdc] sm:$0xf]  ;;  %v1701_v58 = vor.u32 %v2121_v47, %v1700_v46 }
  0xaa   :  { %v1702_v49 = vld [vmem:[%s3067_s0 + $0xf8] sm:$0xf0] }
  0xab   :  { %v1705_v59 = vor.u32 %v2117_v48, %v1702_v49 }
  0xae   :  { %v1028_v62 = vpop.f32.mrf.mxu2  ;;  %v933_v3 = vpop.f32.mrf.mxu0 }
  0xaf   :  { %v1077_v63 = vpop.f32.mrf.mxu3  ;;  %v1029_v2 = vadd.f32 %v1028_v62, %v980_v52  ;;  %v982_v4 = vpop.f32.mrf.mxu1  ;;  %v1693_v52 = vor.u32 %v2120_v43, %v1692_v42  ;;  %v1766_v42 = vld [vmem:[%s3067_s0 + $0x178] sm:$0xf0] }
  0xb0   :  { %v983_v7 = vadd.f32 %v982_v4, %v933_v3 }
  0xb1   :  { %v2814_v8 = vadd.f32 %v1077_v63, %v1029_v2  ;;  %1128 = vmatmul.bf16.gmra.mxu0 %v1629_v0 }
  0xb2   :  { %1177 = vmatmul.bf16.gmra.mxu1 %v1633_v1 }
  0xb3   :  { %1226 = vmatmul.bf16.gmra.mxu2 %v1637_v5  ;;  %v1724_v5 = vld [vmem:[%s3067_s0 + $0x110] sm:$0xf] }
  0xb4   :  { %1275 = vmatmul.bf16.gmra.mxu3 %v1641_v6  ;;  %v2128_v6 = vld [vmem:[%s3067_s0 + $0x12c] sm:$0xf0] }
  0xb5   :  { %v1725_v17 = vor.u32 %v2128_v6, %v1724_v5  ;;  %v2145_v5 = vld [vmem:[%s3067_s0 + $0x1b4] sm:$0xf0]  ;;  %v2141_v6 = vld [vmem:[%s3067_s0 + $0x19c] sm:$0xf] }
  0xb6   :  { %v1031_v9 = vpop.f32.mrf.mxu2  ;;  %v935_v12 = vpop.f32.mrf.mxu0 }
  0xb7   :  { %v1080_v10 = vpop.f32.mrf.mxu3  ;;  %v1032_v11 = vadd.f32 %v1031_v9, %v983_v7  ;;  %v984_v13 = vpop.f32.mrf.mxu1  ;;  %v2124_v7 = vld [vmem:[%s3067_s0 + $0x114] sm:$0xf] }
  0xb8   :  { %v985_v14 = vadd.f32 %v984_v13, %v935_v12  ;;  %v1726_v9 = vld [vmem:[%s3067_s0 + $0x130] sm:$0xf0]  ;;  %v2125_v12 = vld [vmem:[%s3067_s0 + $0x11c] sm:$0xf] }
  0xb9   :  { %v2816_v15 = vadd.f32 %v1080_v10, %v1032_v11  ;;  %v1732_v10 = vld [vmem:[%s3067_s0 + $0x118] sm:$0xf]  ;;  %v1734_v13 = vld [vmem:[%s3067_s0 + $0x138] sm:$0xf0]  ;;  %v1729_v18 = vor.u32 %v2124_v7, %v1726_v9 }
  0xba   :  { %v2129_v11 = vld [vmem:[%s3067_s0 + $0x134] sm:$0xf0]  ;;  %v1737_v23 = vor.u32 %v2125_v12, %v1734_v13  ;;  %v1798_v7 = vld [vmem:[%s3067_s0 + $0x1b8] sm:$0xf0] }
  0xbb   :  { %v1733_v22 = vor.u32 %v2129_v11, %v1732_v10 }
  0xbe   :  { %v1033_v24 = vpop.f32.mrf.mxu2  ;;  %v938_v29 = vpop.f32.mrf.mxu0 }
  0xbf   :  { %v1082_v25 = vpop.f32.mrf.mxu3  ;;  %v1034_v28 = vadd.f32 %v1033_v24, %v985_v14  ;;  %v987_v30 = vpop.f32.mrf.mxu1 }
  0xc0   :  { %v988_v33 = vadd.f32 %v987_v30, %v938_v29 }
  0xc1   :  { %v2842_v34 = vadd.f32 %v1082_v25, %v1034_v28  ;;  %1133 = vmatmul.bf16.gmra.mxu0 %v1661_v26 }
  0xc2   :  { %1182 = vmatmul.bf16.gmra.mxu1 %v1665_v27 }
  0xc3   :  { %1231 = vmatmul.bf16.gmra.mxu2 %v1669_v31 }
  0xc4   :  { %1280 = vmatmul.bf16.gmra.mxu3 %v1673_v32 }
  0xc6   :  { %v1036_v35 = vpop.f32.mrf.mxu2  ;;  %v940_v38 = vpop.f32.mrf.mxu0 }
  0xc7   :  { %v1085_v36 = vpop.f32.mrf.mxu3  ;;  %v1037_v37 = vadd.f32 %v1036_v35, %v988_v33  ;;  %v989_v39 = vpop.f32.mrf.mxu1  ;;  %v1756_v33 = vld [vmem:[%s3067_s0 + $0x150] sm:$0xf] }
  0xc8   :  { %v990_v40 = vadd.f32 %v989_v39, %v940_v38  ;;  %v2136_v35 = vld [vmem:[%s3067_s0 + $0x16c] sm:$0xf0]  ;;  %v1764_v38 = vld [vmem:[%s3067_s0 + $0x158] sm:$0xf] }
  0xc9   :  { %v2844_v41 = vadd.f32 %v1085_v36, %v1037_v37  ;;  %v2132_v36 = vld [vmem:[%s3067_s0 + $0x154] sm:$0xf]  ;;  %v2137_v39 = vld [vmem:[%s3067_s0 + $0x174] sm:$0xf0]  ;;  %v1757_v45 = vor.u32 %v2136_v35, %v1756_v33 }
  0xca   :  { %v1758_v37 = vld [vmem:[%s3067_s0 + $0x170] sm:$0xf0]  ;;  %v1828_v35 = vld [vmem:[%s3067_s0 + $0x1d8] sm:$0xf] }
  0xcb   :  { %v1761_v46 = vor.u32 %v2132_v36, %v1758_v37  ;;  %v1822_v33 = vld [vmem:[%s3067_s0 + $0x1f0] sm:$0xf0]  ;;  %v2153_v36 = vld [vmem:[%s3067_s0 + $0x1f4] sm:$0xf0]  ;;  %v2149_v37 = vld [vmem:[%s3067_s0 + $0x1dc] sm:$0xf] }
  0xce   :  { %v1038_v50 = vpop.f32.mrf.mxu2  ;;  %v943_v56 = vpop.f32.mrf.mxu0 }
  0xcf   :  { %v1087_v51 = vpop.f32.mrf.mxu3  ;;  %v1039_v55 = vadd.f32 %v1038_v50, %v990_v40  ;;  %v992_v57 = vpop.f32.mrf.mxu1  ;;  %v2133_v40 = vld [vmem:[%s3067_s0 + $0x15c] sm:$0xf]  ;;  %v1765_v50 = vor.u32 %v2137_v39, %v1764_v38 }
  0xd0   :  { %v993_v60 = vadd.f32 %v992_v57, %v943_v56  ;;  %v1830_v38 = vld [vmem:[%s3067_s0 + $0x1f8] sm:$0xf0] }
  0xd1   :  { %v2870_v61 = vadd.f32 %v1087_v51, %v1039_v55  ;;  %1138 = vmatmul.bf16.gmra.mxu0 %v1693_v52  ;;  %v1769_v51 = vor.u32 %v2133_v40, %v1766_v42 }
  0xd2   :  { %1187 = vmatmul.bf16.gmra.mxu1 %v1697_v54 }
  0xd3   :  { %1236 = vmatmul.bf16.gmra.mxu2 %v1701_v58 }
  0xd4   :  { %1285 = vmatmul.bf16.gmra.mxu3 %v1705_v59 }
  0xd6   :  { %v1041_v62 = vpop.f32.mrf.mxu2  ;;  %v945_v1 = vpop.f32.mrf.mxu0 }
  0xd7   :  { %v1090_v63 = vpop.f32.mrf.mxu3  ;;  %v1042_v0 = vadd.f32 %v1041_v62, %v993_v60  ;;  %v994_v2 = vpop.f32.mrf.mxu1 }
  0xd8   :  { %v995_v3 = vadd.f32 %v994_v2, %v945_v1  ;;  %v2140_v1 = vld [vmem:[%s3067_s0 + $0x194] sm:$0xf] }
  0xd9   :  { %v2872_v4 = vadd.f32 %v1090_v63, %v1042_v0  ;;  %v1788_v63 = vld [vmem:[%s3067_s0 + $0x190] sm:$0xf]  ;;  %v1790_v2 = vld [vmem:[%s3067_s0 + $0x1b0] sm:$0xf0] }
  0xda   :  { %v2144_v0 = vld [vmem:[%s3067_s0 + $0x1ac] sm:$0xf0]  ;;  %v1793_v12 = vor.u32 %v2140_v1, %v1790_v2 }
  0xdb   :  { %v1789_v11 = vor.u32 %v2144_v0, %v1788_v63 }
  0xde   :  { %v1043_v14 = vpop.f32.mrf.mxu2  ;;  %v948_v20 = vpop.f32.mrf.mxu0 }
  0xdf   :  { %v1092_v16 = vpop.f32.mrf.mxu3  ;;  %v1044_v19 = vadd.f32 %v1043_v14, %v995_v3  ;;  %v997_v21 = vpop.f32.mrf.mxu1  ;;  %v1796_v3 = vld [vmem:[%s3067_s0 + $0x198] sm:$0xf] }
  0xe0   :  { %v998_v24 = vadd.f32 %v997_v21, %v948_v20 }
  0xe1   :  { %v2898_v25 = vadd.f32 %v1092_v16, %v1044_v19  ;;  %1143 = vmatmul.bf16.gmra.mxu0 %v1725_v17  ;;  %v1797_v17 = vor.u32 %v2145_v5, %v1796_v3 }
  0xe2   :  { %1192 = vmatmul.bf16.gmra.mxu1 %v1729_v18  ;;  %v1801_v18 = vor.u32 %v2141_v6, %v1798_v7 }
  0xe3   :  { %1241 = vmatmul.bf16.gmra.mxu2 %v1733_v22 }
  0xe4   :  { %1290 = vmatmul.bf16.gmra.mxu3 %v1737_v23 }
  0xe6   :  { %v1046_v26 = vpop.f32.mrf.mxu2  ;;  %v950_v29 = vpop.f32.mrf.mxu0 }
  0xe7   :  { %v1095_v27 = vpop.f32.mrf.mxu3  ;;  %v1047_v28 = vadd.f32 %v1046_v26, %v998_v24  ;;  %v999_v30 = vpop.f32.mrf.mxu1 }
  0xe8   :  { %v1000_v31 = vadd.f32 %v999_v30, %v950_v29  ;;  %v1820_v29 = vld [vmem:[%s3067_s0 + $0x1d0] sm:$0xf] }
  0xe9   :  { %v2900_v32 = vadd.f32 %v1095_v27, %v1047_v28  ;;  %v2152_v30 = vld [vmem:[%s3067_s0 + $0x1ec] sm:$0xf0] }
  0xea   :  { %v1821_v42 = vor.u32 %v2152_v30, %v1820_v29 }
  0xee   :  { %v1048_v43 = vpop.f32.mrf.mxu2  ;;  %v953_v48 = vpop.f32.mrf.mxu0 }
  0xef   :  { %v1097_v44 = vpop.f32.mrf.mxu3  ;;  %v1049_v47 = vadd.f32 %v1048_v43, %v1000_v31  ;;  %v1002_v49 = vpop.f32.mrf.mxu1  ;;  %v2148_v31 = vld [vmem:[%s3067_s0 + $0x1d4] sm:$0xf] }
  0xf0   :  { %v1003_v52 = vadd.f32 %v1002_v49, %v953_v48  ;;  %v1825_v43 = vor.u32 %v2148_v31, %v1822_v33  ;;  %v1833_v48 = vor.u32 %v2149_v37, %v1830_v38 }
  0xf1   :  { %v2926_v54 = vadd.f32 %v1097_v44, %v1049_v47  ;;  %1148 = vmatmul.bf16.gmra.mxu0 %v1757_v45  ;;  %v1829_v47 = vor.u32 %v2153_v36, %v1828_v35 }
  0xf2   :  { %1197 = vmatmul.bf16.gmra.mxu1 %v1761_v46 }
  0xf3   :  { %1246 = vmatmul.bf16.gmra.mxu2 %v1765_v50 }
  0xf4   :  { %1295 = vmatmul.bf16.gmra.mxu3 %v1769_v51 }
  0xf6   :  { %v1051_v55 = vpop.f32.mrf.mxu2  ;;  %v955_v58 = vpop.f32.mrf.mxu0 }
  0xf7   :  { %v1100_v56 = vpop.f32.mrf.mxu3  ;;  %v1052_v57 = vadd.f32 %v1051_v55, %v1003_v52  ;;  %v1004_v59 = vpop.f32.mrf.mxu1 }
  0xf8   :  { %v1005_v60 = vadd.f32 %v1004_v59, %v955_v58 }
  0xf9   :  { %v2928_v62 = vadd.f32 %v1100_v56, %v1052_v57 }
  0xfe   :  { %v1053_v9 = vpop.f32.mrf.mxu2  ;;  %v958_v14 = vpop.f32.mrf.mxu0 }
  0xff   :  { %v1102_v10 = vpop.f32.mrf.mxu3  ;;  %v1054_v13 = vadd.f32 %v1053_v9, %v1005_v60  ;;  %v1007_v16 = vpop.f32.mrf.mxu1 }
 0x100   :  { %v1008_v19 = vadd.f32 %v1007_v16, %v958_v14 }
 0x101   :  { %v2954_v20 = vadd.f32 %v1102_v10, %v1054_v13  ;;  %1153 = vmatmul.bf16.gmra.mxu0 %v1789_v11 }
 0x102   :  { %1202 = vmatmul.bf16.gmra.mxu1 %v1793_v12 }
 0x103   :  { %1251 = vmatmul.bf16.gmra.mxu2 %v1797_v17 }
 0x104   :  { %1300 = vmatmul.bf16.gmra.mxu3 %v1801_v18 }
 0x106   :  { %v1056_v21 = vpop.f32.mrf.mxu2  ;;  %v960_v24 = vpop.f32.mrf.mxu0 }
 0x107   :  { %v1105_v22 = vpop.f32.mrf.mxu3  ;;  %v1057_v23 = vadd.f32 %v1056_v21, %v1008_v19  ;;  %v1009_v26 = vpop.f32.mrf.mxu1 }
 0x108   :  { %v1010_v27 = vadd.f32 %v1009_v26, %v960_v24 }
 0x109   :  { %v2956_v28 = vadd.f32 %v1105_v22, %v1057_v23 }
 0x10e   :  { %v1058_v39 = vpop.f32.mrf.mxu2  ;;  %v963_v45 = vpop.f32.mrf.mxu0 }
 0x10f   :  { %v1107_v40 = vpop.f32.mrf.mxu3  ;;  %v1059_v44 = vadd.f32 %v1058_v39, %v1010_v27  ;;  %v1012_v46 = vpop.f32.mrf.mxu1 }
 0x110   :  { %v1013_v49 = vadd.f32 %v1012_v46, %v963_v45 }
 0x111   :  { %v2982_v50 = vadd.f32 %v1107_v40, %v1059_v44  ;;  %1158 = vmatmul.bf16.gmra.mxu0 %v1821_v42 }
 0x112   :  { %1207 = vmatmul.bf16.gmra.mxu1 %v1825_v43 }
 0x113   :  { %1256 = vmatmul.bf16.gmra.mxu2 %v1829_v47 }
 0x114   :  { %1305 = vmatmul.bf16.gmra.mxu3 %v1833_v48 }
 0x116   :  { %v1061_v51 = vpop.f32.mrf.mxu2  ;;  %v965_v56 = vpop.f32.mrf.mxu0 }
 0x117   :  { %v1110_v52 = vpop.f32.mrf.mxu3  ;;  %v1062_v55 = vadd.f32 %v1061_v51, %v1013_v49  ;;  %v1014_v57 = vpop.f32.mrf.mxu1 }
 0x118   :  { %v1015_v58 = vadd.f32 %v1014_v57, %v965_v56 }
 0x119   :  { %v2984_v59 = vadd.f32 %v1110_v52, %v1062_v55 }
 0x11e   :  { %v1063_v60 = vpop.f32.mrf.mxu2  ;;  %v1124_v1 = vpop.f32.mrf.mxu0 }
 0x11f   :  { %v1112_v63 = vpop.f32.mrf.mxu3  ;;  %v1064_v0 = vadd.f32 %v1063_v60, %v1015_v58  ;;  %v1173_v2 = vpop.f32.mrf.mxu1  ;;  %v1125_v3 = vadd.f32 %v1124_v1, %v2788_v53 }
 0x121   :  { %v2987_v5 = vadd.f32 %v1112_v63, %v1064_v0  ;;  %v1174_v6 = vadd.f32 %v1173_v2, %v1125_v3 }
 0x126   :  { %v1222_v7 = vpop.f32.mrf.mxu2  ;;  %v1126_v11 = vpop.f32.mrf.mxu0 }
 0x127   :  { %v1271_v9 = vpop.f32.mrf.mxu3  ;;  %v1223_v10 = vadd.f32 %v1222_v7, %v1174_v6  ;;  %v1175_v12 = vpop.f32.mrf.mxu1  ;;  %v1127_v13 = vadd.f32 %v1126_v11, %v2814_v8 }
 0x129   :  { %v1272_v14 = vadd.f32 %v1271_v9, %v1223_v10  ;;  %v1176_v16 = vadd.f32 %v1175_v12, %v1127_v13 }
 0x12b   :  { %v1336_v26 = vmul.f32 %v1272_v14, %v1272_v14 }
 0x12e   :  { %v1224_v17 = vpop.f32.mrf.mxu2  ;;  %v1129_v21 = vpop.f32.mrf.mxu0 }
 0x12f   :  { %v1273_v18 = vpop.f32.mrf.mxu3  ;;  %v1225_v19 = vadd.f32 %v1224_v17, %v1176_v16  ;;  %v1178_v22 = vpop.f32.mrf.mxu1  ;;  %v1130_v23 = vadd.f32 %v1129_v21, %v2816_v15 }
 0x131   :  { %v1274_v53 = vadd.f32 %v1273_v18, %v1225_v19  ;;  %v1179_v24 = vadd.f32 %v1178_v22, %v1130_v23 }
 0x133   :  { %v1312_v27 = vadd.f32 %v1274_v53, %v1272_v14  ;;  %v1337_v29 = vmul.f32 %v1274_v53, %v1274_v53  ;;  %v2991_v30 = vpack.c.bf16 %v1274_v53, %v1272_v14 }
 0x135   :  { %v1352_v31 = vadd.f32 %v1337_v29, %v1336_v26 }
 0x136   :  { %v1227_v33 = vpop.f32.mrf.mxu2  ;;  %v1131_v36 = vpop.f32.mrf.mxu0 }
 0x137   :  { %v1276_v35 = vpop.f32.mrf.mxu3  ;;  %v1228_v8 = vadd.f32 %v1227_v33, %v1179_v24  ;;  %v1180_v37 = vpop.f32.mrf.mxu1  ;;  %v1132_v38 = vadd.f32 %v1131_v36, %v2842_v34 }
 0x139   :  { %v1277_v39 = vadd.f32 %v1276_v35, %v1228_v8  ;;  %v1181_v40 = vadd.f32 %v1180_v37, %v1132_v38 }
 0x13b   :  { %v1313_v42 = vadd.f32 %v1312_v27, %v1277_v39  ;;  %v1338_v43 = vmul.f32 %v1277_v39, %v1277_v39 }
 0x13d   :  { %v1353_v15 = vadd.f32 %v1352_v31, %v1338_v43 }
 0x13e   :  { %v1229_v44 = vpop.f32.mrf.mxu2  ;;  %v1134_v47 = vpop.f32.mrf.mxu0 }
 0x13f   :  { %v1278_v45 = vpop.f32.mrf.mxu3  ;;  %v1230_v46 = vadd.f32 %v1229_v44, %v1181_v40  ;;  %v1183_v48 = vpop.f32.mrf.mxu1  ;;  %v1135_v49 = vadd.f32 %v1134_v47, %v2844_v41 }
 0x141   :  { %v1279_v51 = vadd.f32 %v1278_v45, %v1230_v46  ;;  %v1184_v52 = vadd.f32 %v1183_v48, %v1135_v49 }
 0x143   :  { %v1314_v55 = vadd.f32 %v1313_v42, %v1279_v51  ;;  %v1339_v56 = vmul.f32 %v1279_v51, %v1279_v51  ;;  %v2995_v57 = vpack.c.bf16 %v1279_v51, %v1277_v39 }
 0x145   :  { %v1354_v58 = vadd.f32 %v1353_v15, %v1339_v56 }
 0x146   :  { %v1232_v34 = vpop.f32.mrf.mxu2  ;;  %v1136_v0 = vpop.f32.mrf.mxu0 }
 0x147   :  { %v1281_v60 = vpop.f32.mrf.mxu3  ;;  %v1233_v63 = vadd.f32 %v1232_v34, %v1184_v52  ;;  %v1185_v1 = vpop.f32.mrf.mxu1  ;;  %v1137_v3 = vadd.f32 %v1136_v0, %v2870_v61 }
 0x149   :  { %v1282_v2 = vadd.f32 %v1281_v60, %v1233_v63  ;;  %v1186_v10 = vadd.f32 %v1185_v1, %v1137_v3 }
 0x14b   :  { %v1315_v6 = vadd.f32 %v1314_v55, %v1282_v2  ;;  %v1340_v7 = vmul.f32 %v1282_v2, %v1282_v2 }
 0x14d   :  { %v1355_v9 = vadd.f32 %v1354_v58, %v1340_v7 }
 0x14e   :  { %v1234_v41 = vpop.f32.mrf.mxu2  ;;  %v1139_v13 = vpop.f32.mrf.mxu0 }
 0x14f   :  { %v1283_v11 = vpop.f32.mrf.mxu3  ;;  %v1235_v12 = vadd.f32 %v1234_v41, %v1186_v10  ;;  %v1188_v14 = vpop.f32.mrf.mxu1  ;;  %v1140_v17 = vadd.f32 %v1139_v13, %v2872_v4 }
 0x151   :  { %v1284_v16 = vadd.f32 %v1283_v11, %v1235_v12  ;;  %v1189_v23 = vadd.f32 %v1188_v14, %v1140_v17 }
 0x153   :  { %v1316_v18 = vadd.f32 %v1315_v6, %v1284_v16  ;;  %v1341_v19 = vmul.f32 %v1284_v16, %v1284_v16  ;;  %v2999_v21 = vpack.c.bf16 %v1284_v16, %v1282_v2 }
 0x155   :  { %v1356_v22 = vadd.f32 %v1355_v9, %v1341_v19 }
 0x156   :  { %v1237_v53 = vpop.f32.mrf.mxu2  ;;  %v1141_v26 = vpop.f32.mrf.mxu0 }
 0x157   :  { %v1286_v61 = vpop.f32.mrf.mxu3  ;;  %v1238_v24 = vadd.f32 %v1237_v53, %v1189_v23  ;;  %v1190_v27 = vpop.f32.mrf.mxu1  ;;  %v1142_v31 = vadd.f32 %v1141_v26, %v2898_v25 }
 0x159   :  { %v1287_v29 = vadd.f32 %v1286_v61, %v1238_v24  ;;  %v1191_v36 = vadd.f32 %v1190_v27, %v1142_v31  ;;  %v2354_v31 = vmov 0.0  }
 0x15a   :  { %21 = vst [vmem:[#allocation2] sm:$0x1] %v2354_v31 }
 0x15b   :  { %v1317_v33 = vadd.f32 %v1316_v18, %v1287_v29  ;;  %v1342_v35 = vmul.f32 %v1287_v29, %v1287_v29  ;;  %22 = vst [vmem:[#allocation3] sm:$0x1] %v2354_v31 }
 0x15d   :  { %v1357_v8 = vadd.f32 %v1356_v22, %v1342_v35 }
 0x15e   :  { %v1239_v37 = vpop.f32.mrf.mxu2  ;;  %v1144_v39 = vpop.f32.mrf.mxu0 }
 0x15f   :  { %v1288_v4 = vpop.f32.mrf.mxu3  ;;  %v1240_v38 = vadd.f32 %v1239_v37, %v1191_v36  ;;  %v1193_v40 = vpop.f32.mrf.mxu1  ;;  %v1145_v43 = vadd.f32 %v1144_v39, %v2900_v32 }
 0x161   :  { %v1289_v42 = vadd.f32 %v1288_v4, %v1240_v38  ;;  %v1194_v47 = vadd.f32 %v1193_v40, %v1145_v43  ;;  %v1311_v31 = vld [vmem:[#allocation2] sm:$0x1] }
 0x163   :  { %v1318_v15 = vadd.f32 %v1317_v33, %v1289_v42  ;;  %v1343_v44 = vmul.f32 %v1289_v42, %v1289_v42  ;;  %v3003_v45 = vpack.c.bf16 %v1289_v42, %v1287_v29 }
 0x165   :  { %v1358_v46 = vadd.f32 %v1357_v8, %v1343_v44 }
 0x166   :  { %v1242_v48 = vpop.f32.mrf.mxu2  ;;  %v1146_v51 = vpop.f32.mrf.mxu0 }
 0x167   :  { %v1291_v25 = vpop.f32.mrf.mxu3  ;;  %v1243_v49 = vadd.f32 %v1242_v48, %v1194_v47  ;;  %v1195_v52 = vpop.f32.mrf.mxu1  ;;  %v1147_v56 = vadd.f32 %v1146_v51, %v2926_v54 }
 0x169   :  { %v1292_v55 = vadd.f32 %v1291_v25, %v1243_v49  ;;  %v1196_v63 = vadd.f32 %v1195_v52, %v1147_v56 }
 0x16b   :  { %v1319_v58 = vadd.f32 %v1318_v15, %v1292_v55  ;;  %v1344_v34 = vmul.f32 %v1292_v55, %v1292_v55 }
 0x16d   :  { %v1359_v60 = vadd.f32 %v1358_v46, %v1344_v34 }
 0x16e   :  { %v1244_v0 = vpop.f32.mrf.mxu2  ;;  %v1149_v2 = vpop.f32.mrf.mxu0 }
 0x16f   :  { %v1293_v32 = vpop.f32.mrf.mxu3  ;;  %v1245_v1 = vadd.f32 %v1244_v0, %v1196_v63  ;;  %v1198_v3 = vpop.f32.mrf.mxu1  ;;  %v1150_v7 = vadd.f32 %v1149_v2, %v2928_v62 }
 0x171   :  { %v1294_v6 = vadd.f32 %v1293_v32, %v1245_v1  ;;  %v1199_v12 = vadd.f32 %v1198_v3, %v1150_v7 }
 0x173   :  { %v1320_v9 = vadd.f32 %v1319_v58, %v1294_v6  ;;  %v1345_v10 = vmul.f32 %v1294_v6, %v1294_v6  ;;  %v3007_v41 = vpack.c.bf16 %v1294_v6, %v1292_v55 }
 0x175   :  { %v1360_v11 = vadd.f32 %v1359_v60, %v1345_v10 }
 0x176   :  { %v1247_v13 = vpop.f32.mrf.mxu2  ;;  %v1151_v16 = vpop.f32.mrf.mxu0 }
 0x177   :  { %v1296_v54 = vpop.f32.mrf.mxu3  ;;  %v1248_v14 = vadd.f32 %v1247_v13, %v1199_v12  ;;  %v1200_v17 = vpop.f32.mrf.mxu1  ;;  %v1152_v19 = vadd.f32 %v1151_v16, %v2954_v20 }
 0x179   :  { %v1297_v18 = vadd.f32 %v1296_v54, %v1248_v14  ;;  %v1201_v61 = vadd.f32 %v1200_v17, %v1152_v19 }
 0x17b   :  { %v1321_v22 = vadd.f32 %v1320_v9, %v1297_v18  ;;  %v1346_v23 = vmul.f32 %v1297_v18, %v1297_v18 }
 0x17d   :  { %v1361_v53 = vadd.f32 %v1360_v11, %v1346_v23 }
 0x17e   :  { %v1249_v24 = vpop.f32.mrf.mxu2  ;;  %v1154_v27 = vpop.f32.mrf.mxu0 }
 0x17f   :  { %v1298_v62 = vpop.f32.mrf.mxu3  ;;  %v1250_v26 = vadd.f32 %v1249_v24, %v1201_v61  ;;  %v1203_v29 = vpop.f32.mrf.mxu1  ;;  %v1155_v35 = vadd.f32 %v1154_v27, %v2956_v28 }
 0x181   :  { %v1299_v33 = vadd.f32 %v1298_v62, %v1250_v26  ;;  %v1204_v4 = vadd.f32 %v1203_v29, %v1155_v35 }
 0x183   :  { %v1322_v8 = vadd.f32 %v1321_v22, %v1299_v33  ;;  %v1347_v36 = vmul.f32 %v1299_v33, %v1299_v33  ;;  %v3011_v37 = vpack.c.bf16 %v1299_v33, %v1297_v18 }
 0x185   :  { %v1362_v20 = vadd.f32 %v1361_v53, %v1347_v36 }
 0x186   :  { %v1252_v38 = vpop.f32.mrf.mxu2  ;;  %v1156_v42 = vpop.f32.mrf.mxu0 }
 0x187   :  { %v1301_v39 = vpop.f32.mrf.mxu3  ;;  %v1253_v40 = vadd.f32 %v1252_v38, %v1204_v4  ;;  %v1205_v43 = vpop.f32.mrf.mxu1  ;;  %v1157_v44 = vadd.f32 %v1156_v42, %v2982_v50 }
 0x189   :  { %v1302_v15 = vadd.f32 %v1301_v39, %v1253_v40  ;;  %v1206_v25 = vadd.f32 %v1205_v43, %v1157_v44 }
 0x18b   :  { %v1323_v46 = vadd.f32 %v1322_v8, %v1302_v15  ;;  %v1348_v47 = vmul.f32 %v1302_v15, %v1302_v15  ;;  %v1335_v8 = vld [vmem:[#allocation3] sm:$0x1] }
 0x18d   :  { %v1363_v48 = vadd.f32 %v1362_v20, %v1348_v47 }
 0x18e   :  { %v1254_v28 = vpop.f32.mrf.mxu2  ;;  %v1159_v52 = vpop.f32.mrf.mxu0 }
 0x18f   :  { %v1303_v49 = vpop.f32.mrf.mxu3  ;;  %v1255_v51 = vadd.f32 %v1254_v28, %v1206_v25  ;;  %v1160_v56 = vadd.f32 %v1159_v52, %v2984_v59  ;;  %v1208_v58 = vpop.f32.mrf.mxu1 }
 0x191   :  { %v1304_v55 = vadd.f32 %v1303_v49, %v1255_v51  ;;  %v1209_v32 = vadd.f32 %v1208_v58, %v1160_v56  ;;  %v1422_v51 = vld [vmem:[%s3068_s2] sm:$0x1]  ;;  %v2260_v58 = vunpack.c.l.bf16 %v2991_v30 }
 0x193   :  { %v1324_v34 = vadd.f32 %v1323_v46, %v1304_v55  ;;  %v1349_v60 = vmul.f32 %v1304_v55, %v1304_v55  ;;  %v3015_v63 = vpack.c.bf16 %v1304_v55, %v1302_v15 }
 0x195   :  { %v1364_v0 = vadd.f32 %v1363_v48, %v1349_v60  ;;  %v1435_v60 = vld [vmem:[%s3069_s3] sm:$0x1] }
 0x196   :  { %v1257_v1 = vpop.f32.mrf.mxu2  ;;  %v1161_v3 = vpop.f32.mrf.mxu0 }
 0x197   :  { %v1306_v50 = vpop.f32.mrf.mxu3  ;;  %v1258_v2 = vadd.f32 %v1257_v1, %v1209_v32  ;;  %v1162_v7 = vadd.f32 %v1161_v3, %v2987_v5  ;;  %v1210_v11 = vpop.f32.mrf.mxu1  ;;  %v2265_v32 = vunpack.c.h.bf16 %v2995_v57  ;;  %v2269_v3 = vunpack.c.h.bf16 %v2999_v21 }
 0x199   :  { %v1307_v6 = vadd.f32 %v1306_v50, %v1258_v2  ;;  %v1211_v13 = vadd.f32 %v1210_v11, %v1162_v7  ;;  %v2268_v2 = vunpack.c.l.bf16 %v2999_v21  ;;  %v2273_v7 = vunpack.c.h.bf16 %v3003_v45 }
 0x19b   :  { %v1325_v9 = vadd.f32 %v1324_v34, %v1307_v6  ;;  %v1350_v10 = vmul.f32 %v1307_v6, %v1307_v6  ;;  %v2261_v34 = vunpack.c.h.bf16 %v2991_v30  ;;  %v2276_v30 = vunpack.c.l.bf16 %v3007_v41 }
 0x19d   :  { %v1365_v12 = vadd.f32 %v1364_v0, %v1350_v10  ;;  %v2264_v0 = vunpack.c.l.bf16 %v2995_v57  ;;  %v2280_v10 = vunpack.c.l.bf16 %v3011_v37  ;;  %v2284_v57 = vunpack.c.l.bf16 %v3015_v63 }
 0x19e   :  { %v1259_v59 = vpop.f32.mrf.mxu2 }
 0x19f   :  { %v1260_v54 = vadd.f32 %v1259_v59, %v1211_v13  ;;  %v1308_v14 = vpop.f32.mrf.mxu3  ;;  %v2285_v13 = vunpack.c.h.bf16 %v3015_v63 }
 0x1a1   :  { %v1309_v16 = vadd.f32 %v1308_v14, %v1260_v54 }
 0x1a3   :  { %v1326_v17 = vadd.f32 %v1325_v9, %v1309_v16  ;;  %v1351_v18 = vmul.f32 %v1309_v16, %v1309_v16  ;;  %v3018_v19 = vpack.c.bf16 %v1309_v16, %v1307_v6  ;;  %v2272_v6 = vunpack.c.l.bf16 %v3003_v45 }
 0x1a4   :  { %v2277_v9 = vunpack.c.h.bf16 %v3007_v41 }
 0x1a5   :  { %v1327_v22 = vrot.slane %v1326_v17, 4  ;;  %v1366_v23 = vadd.f32 %v1365_v12, %v1351_v18  ;;  %v2281_v12 = vunpack.c.h.bf16 %v3011_v37  ;;  %v2288_v59 = vunpack.c.l.bf16 %v3018_v19 }
 0x1a6   :  { %v2289_v21 = vunpack.c.h.bf16 %v3018_v19 }
 0x1a7   :  { %v1328_v53 = vadd.f32 %v1327_v22, %v1326_v17  ;;  %v1367_v61 = vrot.slane %v1366_v23, 4 }
 0x1a9   :  { %v1329_v24 = vrot.slane %v1328_v53, 2  ;;  %v1368_v62 = vadd.f32 %v1367_v61, %v1366_v23 }
 0x1ab   :  { %v1330_v5 = vadd.f32 %v1329_v24, %v1328_v53  ;;  %v1369_v26 = vrot.slane %v1368_v62, 2 }
 0x1ad   :  { %v1331_v27 = vrot.slane %v1330_v5, 1  ;;  %v1370_v29 = vadd.f32 %v1369_v26, %v1368_v62 }
 0x1af   :  { %v1332_v33 = vadd.f32 %v1331_v27, %v1330_v5  ;;  %v1371_v35 = vrot.slane %v1370_v29, 1 }
 0x1b1   :  { %v1333_v36 = vadd.f32 %v1332_v33, %v1311_v31  ;;  %v1372_v20 = vadd.f32 %v1371_v35, %v1370_v29 }
 0x1b3   :  { %1334 = vst [vmem:[#allocation2] sm:$0x1] %v1333_v36  ;;  %v1373_v4 = vadd.f32 %v1372_v20, %v1335_v8 }
 0x1b5   :  { %1374 = vst [vmem:[#allocation3] sm:$0x1] %v1373_v4 }
 0x1ba   :  { %v1415_v38 = vld [vmem:[#allocation2] sm:$0x1] }
 0x1bb   :  { %v1416_v39 = vmul.f32 0.0078125, %v1415_v38 }
 0x1bc   :  { %v1417_v40 = vld [vmem:[#allocation3] sm:$0x1] }
 0x1bd   :  { %v1418_v42 = vmul.f32 0.0078125, %v1417_v40  ;;  %v1419_v43 = vmul.f32 %v1416_v39, %v1416_v39 }
 0x1bf   :  { %v1420_v15 = vsub.f32 %v1418_v42, %v1419_v43 }
 0x1c1   :  { %v1421_v44 = vmax.f32 %v1420_v15, 0.0 }
 0x1c3   :  { %v1423_v46 = vadd.f32 1e-05, %v1421_v44 }
 0x1c5   :  { %2352 = vrsqrt.f32 %v1423_v46  ;;  %vm1430_vm1 = vweird.f32 %v1423_v46 }
 0x1cb   :  { %v2353_v47 = vpop.eup %2352 }
 0x1cc   :  { %v1425_v48 = vmul.f32 %v2353_v47, %v1423_v46  ;;  %vm1431_vm0 = vweird.f32 %v2353_v47 }
 0x1cd   :  { %vm1432_vm2 = vmor %vm1430_vm1, %vm1431_vm0 }
 0x1ce   :  { %v1426_v25 = vmul.f32 %v2353_v47, %v1425_v48 }
 0x1d0   :  { %v1427_v28 = vmul.f32 0.5, %v1426_v25 }
 0x1d2   :  { %v1428_v49 = vsub.f32 1.5, %v1427_v28 }
 0x1d4   :  { %v1429_v52 = vmul.f32 %v2353_v47, %v1428_v49 }
 0x1d6   :  { %v1433_v55 = vsel %vm1432_vm2, %v2353_v47, %v1429_v52 }
 0x1d7   :  { %v1434_v56 = vmul.f32 %v1433_v55, %v1422_v51 }
 0x1d9   :  { %v1436_v1 = vmul.f32 %v1434_v56, %v1416_v39  ;;  %v1471_v50 = vperm.slane %v1434_v56, 0 }
 0x1db   :  { %v1437_v11 = vsub.f32 %v1435_v60, %v1436_v1  ;;  %v1473_v54 = vmul.f32 %v2260_v58, %v1471_v50  ;;  %v1474_v14 = vmul.f32 %v2261_v34, %v1471_v50  ;;  %v1475_v45 = vmul.f32 %v2264_v0, %v1471_v50 }
 0x1dc   :  { %v1476_v16 = vmul.f32 %v2265_v32, %v1471_v50  ;;  %v1477_v17 = vmul.f32 %v2268_v2, %v1471_v50  ;;  %v1478_v18 = vmul.f32 %v2269_v3, %v1471_v50  ;;  %v1479_v41 = vmul.f32 %v2272_v6, %v1471_v50 }
 0x1dd   :  { %v1480_v22 = vmul.f32 %v2273_v7, %v1471_v50  ;;  %v1481_v23 = vmul.f32 %v2276_v30, %v1471_v50  ;;  %v1482_v53 = vmul.f32 %v2277_v9, %v1471_v50  ;;  %v1490_v61 = vperm.slane %v1437_v11, 0 }
 0x1de   :  { %v1483_v37 = vmul.f32 %v2280_v10, %v1471_v50  ;;  %v1484_v24 = vmul.f32 %v2281_v12, %v1471_v50  ;;  %v1485_v62 = vmul.f32 %v2284_v57, %v1471_v50  ;;  %v1486_v5 = vmul.f32 %v2285_v13, %v1471_v50 }
 0x1df   :  { %v1487_v63 = vmul.f32 %v2288_v59, %v1471_v50  ;;  %v1492_v26 = vadd.f32 %v1490_v61, %v1473_v54  ;;  %v1493_v27 = vadd.f32 %v1490_v61, %v1474_v14  ;;  %v1494_v29 = vadd.f32 %v1490_v61, %v1475_v45 }
 0x1e0   :  { %v1488_v19 = vmul.f32 %v2289_v21, %v1471_v50  ;;  %v1495_v31 = vadd.f32 %v1490_v61, %v1476_v16  ;;  %v1496_v33 = vadd.f32 %v1490_v61, %v1477_v17  ;;  %v1497_v35 = vadd.f32 %v1490_v61, %v1478_v18 }
 0x1e1   :  { %v1498_v8 = vadd.f32 %v1490_v61, %v1479_v41  ;;  %v1499_v36 = vadd.f32 %v1490_v61, %v1480_v22  ;;  %v1500_v20 = vadd.f32 %v1490_v61, %v1481_v23  ;;  %v1501_v4 = vadd.f32 %v1490_v61, %v1482_v53 }
 0x1e2   :  { %v1502_v38 = vadd.f32 %v1490_v61, %v1483_v37  ;;  %v1503_v39 = vadd.f32 %v1490_v61, %v1484_v24  ;;  %v1504_v40 = vadd.f32 %v1490_v61, %v1485_v62  ;;  %v1505_v42 = vadd.f32 %v1490_v61, %v1486_v5 }
 0x1e3   :  { %v1506_v43 = vadd.f32 %v1490_v61, %v1487_v63  ;;  %v1508_v15 = vmul.f32 0.2, %v1492_v26  ;;  %v1509_v44 = vmul.f32 0.2, %v1493_v27  ;;  %v1510_v46 = vmul.f32 0.2, %v1494_v29 }
 0x1e4   :  { %v1507_v47 = vadd.f32 %v1490_v61, %v1488_v19  ;;  %v1511_v48 = vmul.f32 0.2, %v1495_v31  ;;  %v1512_v25 = vmul.f32 0.2, %v1496_v33  ;;  %v1513_v28 = vmul.f32 0.2, %v1497_v35 }
 0x1e5   :  { %v1514_v49 = vmul.f32 0.2, %v1498_v8  ;;  %v1515_v51 = vmul.f32 0.2, %v1499_v36  ;;  %v1516_v52 = vmul.f32 0.2, %v1500_v20  ;;  %v1524_v55 = vmax.f32 %v1492_v26, %v1508_v15 }
 0x1e6   :  { %v1517_v56 = vmul.f32 0.2, %v1501_v4  ;;  %v1518_v58 = vmul.f32 0.2, %v1502_v38  ;;  %v1519_v34 = vmul.f32 0.2, %v1503_v39  ;;  %v1525_v60 = vmax.f32 %v1493_v27, %v1509_v44 }
 0x1e7   :  { %v1520_v0 = vmul.f32 0.2, %v1504_v40  ;;  %v1521_v32 = vmul.f32 0.2, %v1505_v42  ;;  %v1522_v1 = vmul.f32 0.2, %v1506_v43  ;;  %v1526_v50 = vmax.f32 %v1494_v29, %v1510_v46 }
 0x1e8   :  { %v1523_v2 = vmul.f32 0.2, %v1507_v47  ;;  %v1527_v3 = vmax.f32 %v1495_v31, %v1511_v48  ;;  %v1528_v6 = vmax.f32 %v1496_v33, %v1512_v25  ;;  %v1529_v7 = vmax.f32 %v1497_v35, %v1513_v28 }
 0x1e9   :  { %v1530_v30 = vmax.f32 %v1498_v8, %v1514_v49  ;;  %v1531_v9 = vmax.f32 %v1499_v36, %v1515_v51  ;;  %v1532_v10 = vmax.f32 %v1500_v20, %v1516_v52  ;;  %v1533_v11 = vmax.f32 %v1501_v4, %v1517_v56 }
 0x1ea   :  { %v1534_v12 = vmax.f32 %v1502_v38, %v1518_v58  ;;  %v1535_v57 = vmax.f32 %v1503_v39, %v1519_v34  ;;  %v1536_v13 = vmax.f32 %v1504_v40, %v1520_v0  ;;  %v1537_v59 = vmax.f32 %v1505_v42, %v1521_v32 }
 0x1eb   :  { %v2293_v21 = vpack.c.bf16 %v1525_v60, %v1524_v55  ;;  %v2298_v54 = vpack.c.bf16 %v1527_v3, %v1526_v50  ;;  %v1538_v14 = vmax.f32 %v1506_v43, %v1522_v1  ;;  %v1539_v45 = vmax.f32 %v1507_v47, %v1523_v2 }
 0x1ec   :  { %v2303_v16 = vpack.c.bf16 %v1529_v7, %v1528_v6  ;;  %v2308_v17 = vpack.c.bf16 %v1531_v9, %v1530_v30  ;;  %v2313_v18 = vpack.c.bf16 %v1533_v11, %v1532_v10  ;;  %v2318_v41 = vpack.c.bf16 %v1535_v57, %v1534_v12 }
 0x1ed   :  { %2294 = vst [vmem:[%s3070_s4] sm:$0xff] %v2293_v21   ;;  %v2323_v22 = vpack.c.bf16 %v1537_v59, %v1536_v13  ;;  %v2328_v23 = vpack.c.bf16 %v1539_v45, %v1538_v14 }
 0x1ee   :  { %2344 = vst [vmem:[%s3070_s4 + $0x8] sm:$0xff] %v2298_v54  }
 0x1ef   :  { %2345 = vst [vmem:[%s3070_s4 + $0x10] sm:$0xff] %v2303_v16  }
 0x1f0   :  { %2346 = vst [vmem:[%s3070_s4 + $0x18] sm:$0xff] %v2308_v17  }
 0x1f1   :  { %2347 = vst [vmem:[%s3070_s4 + $0x20] sm:$0xff] %v2313_v18  }
 0x1f2   :  { %2348 = vst [vmem:[%s3070_s4 + $0x28] sm:$0xff] %v2318_v41  }
 0x1f3   :  { %2349 = vst [vmem:[%s3070_s4 + $0x30] sm:$0xff] %v2323_v22  }
 0x1f4   :  { %2350 = vst [vmem:[%s3070_s4 + $0x38] sm:$0xff] %v2328_v23  }

// kernel: discriminator_forward.6
= control target key start
LH: loop header
LB: loop body
LE: loop exit
PB: predicated region body
PF: predicated region fallthrough
CT: control target
= control target key end

     0   :  { %vm2385_vm1 = vcmask 1040384   ;;  %s5969_s1 = inlined_call_operand.vmem [shape: bf16[2048,256], index: 1, kind: input, shape index: {}]   ;;  %s5970_s0 = inlined_call_operand.vmem [shape: bf16[32,2048], index: 0, kind: input, shape index: {}]   ;;  %s5971_s2 = inlined_call_operand.vmem [shape: f32[1,256], index: 2, kind: input, shape index: {}]   ;;  %s5972_s3 = inlined_call_operand.vmem [shape: f32[1,256], index: 3, kind: input, shape index: {}]   ;;  %s5973_s4 = inlined_call_operand.vmem [shape: bf16[32,256], index: 4, kind: output, shape index: {}]  }
   0x1   :  { %v2725_v0 = vld [vmem:[%s5969_s1 + $0x70] sm:$0xf]  ;;  %v3738_v1 = vld [vmem:[%s5969_s1 + $0x74] sm:$0xf0]  ;;  %v2717_v11 = vld [vmem:[%s5969_s1 + $0x60] sm:$0xf] }
   0x2   :  { %v2789_v2 = vld [vmem:[%s5969_s1 + $0xf0] sm:$0xf]  ;;  %v2726_v3 = vor.u32 %v3738_v1, %v2725_v0  ;;  %v3754_v4 = vld [vmem:[%s5969_s1 + $0xf4] sm:$0xf0]  ;;  %v3736_v13 = vld [vmem:[%s5969_s1 + $0x64] sm:$0xf0] }
   0x3   :  { %v2853_v5 = vld [vmem:[%s5969_s1 + $0x170] sm:$0xf]  ;;  %v3770_v6 = vld [vmem:[%s5969_s1 + $0x174] sm:$0xf0]  ;;  %v2790_v7 = vor.u32 %v3754_v4, %v2789_v2  ;;  %v2781_v14 = vld [vmem:[%s5969_s1 + $0xe0] sm:$0xf]  ;;  %v2718_v16 = vor.u32 %v3736_v13, %v2717_v11 }
   0x4   :  { %v2854_v8 = vor.u32 %v3770_v6, %v2853_v5  ;;  %v2917_v9 = vld [vmem:[%s5969_s1 + $0x1f0] sm:$0xf]  ;;  %v3786_v10 = vld [vmem:[%s5969_s1 + $0x1f4] sm:$0xf0]  ;;  %1755 = vmatpush.bf16.msra.mxu0 %v2726_v3  ;;  %v3752_v15 = vld [vmem:[%s5969_s1 + $0xe4] sm:$0xf0] }
   0x5   :  { %v2918_v12 = vor.u32 %v3786_v10, %v2917_v9  ;;  %1774 = vmatpush.bf16.msra.mxu1 %v2790_v7  ;;  %v2782_v17 = vor.u32 %v3752_v15, %v2781_v14  ;;  %v2845_v18 = vld [vmem:[%s5969_s1 + $0x160] sm:$0xf]  ;;  %v3768_v19 = vld [vmem:[%s5969_s1 + $0x164] sm:$0xf0]  ;;  %v2709_v23 = vld [vmem:[%s5969_s1 + $0x50] sm:$0xf] }
   0x6   :  { %1793 = vmatpush.bf16.msra.mxu2 %v2854_v8  ;;  %v2909_v20 = vld [vmem:[%s5969_s1 + $0x1e0] sm:$0xf]  ;;  %v2846_v21 = vor.u32 %v3768_v19, %v2845_v18  ;;  %v3784_v22 = vld [vmem:[%s5969_s1 + $0x1e4] sm:$0xf0]  ;;  %v3734_v24 = vld [vmem:[%s5969_s1 + $0x54] sm:$0xf0] }
   0x7   :  { %1812 = vmatpush.bf16.msra.mxu3 %v2918_v12  ;;  %v2910_v25 = vor.u32 %v3784_v22, %v2909_v20  ;;  %v2773_v26 = vld [vmem:[%s5969_s1 + $0xd0] sm:$0xf]  ;;  %v3750_v27 = vld [vmem:[%s5969_s1 + $0xd4] sm:$0xf0]  ;;  %v2710_v29 = vor.u32 %v3734_v24, %v2709_v23  ;;  %v2701_v35 = vld [vmem:[%s5969_s1 + $0x40] sm:$0xf] }
   0x8   :  { %v2837_v28 = vld [vmem:[%s5969_s1 + $0x150] sm:$0xf]  ;;  %1756 = vmatpush.bf16.msra.mxu0 %v2718_v16  ;;  %v3766_v30 = vld [vmem:[%s5969_s1 + $0x154] sm:$0xf0]  ;;  %v2774_v33 = vor.u32 %v3750_v27, %v2773_v26  ;;  %v3732_v36 = vld [vmem:[%s5969_s1 + $0x44] sm:$0xf0] }
   0x9   :  { %v2901_v31 = vld [vmem:[%s5969_s1 + $0x1d0] sm:$0xf]  ;;  %v3782_v32 = vld [vmem:[%s5969_s1 + $0x1d4] sm:$0xf0]  ;;  %1775 = vmatpush.bf16.msra.mxu1 %v2782_v17  ;;  %v2838_v34 = vor.u32 %v3766_v30, %v2837_v28  ;;  %v2765_v37 = vld [vmem:[%s5969_s1 + $0xc0] sm:$0xf]  ;;  %v2702_v44 = vor.u32 %v3732_v36, %v2701_v35 }
   0xa   :  { %1794 = vmatpush.bf16.msra.mxu2 %v2846_v21  ;;  %v2902_v38 = vor.u32 %v3782_v32, %v2901_v31  ;;  %v3748_v39 = vld [vmem:[%s5969_s1 + $0xc4] sm:$0xf0]  ;;  %v2829_v40 = vld [vmem:[%s5969_s1 + $0x140] sm:$0xf]  ;;  %v2693_v47 = vld [vmem:[%s5969_s1 + $0x30] sm:$0xf] }
   0xb   :  { %1813 = vmatpush.bf16.msra.mxu3 %v2910_v25  ;;  %v3764_v41 = vld [vmem:[%s5969_s1 + $0x144] sm:$0xf0]  ;;  %v2893_v42 = vld [vmem:[%s5969_s1 + $0x1c0] sm:$0xf]  ;;  %v2766_v45 = vor.u32 %v3748_v39, %v2765_v37  ;;  %v3730_v48 = vld [vmem:[%s5969_s1 + $0x34] sm:$0xf0] }
   0xc   :  { %v3780_v43 = vld [vmem:[%s5969_s1 + $0x1c4] sm:$0xf0]  ;;  %1757 = vmatpush.bf16.msra.mxu0 %v2710_v29  ;;  %v2830_v46 = vor.u32 %v3764_v41, %v2829_v40  ;;  %v2757_v49 = vld [vmem:[%s5969_s1 + $0xb0] sm:$0xf]  ;;  %v3746_v51 = vld [vmem:[%s5969_s1 + $0xb4] sm:$0xf0]  ;;  %v2694_v56 = vor.u32 %v3730_v48, %v2693_v47 }
   0xd   :  { %1776 = vmatpush.bf16.msra.mxu1 %v2774_v33  ;;  %v2894_v50 = vor.u32 %v3780_v43, %v2893_v42  ;;  %v2821_v52 = vld [vmem:[%s5969_s1 + $0x130] sm:$0xf]  ;;  %v3762_v53 = vld [vmem:[%s5969_s1 + $0x134] sm:$0xf0]  ;;  %v2758_v57 = vor.u32 %v3746_v51, %v2757_v49  ;;  %v2685_v59 = vld [vmem:[%s5969_s1 + $0x20] sm:$0xf] }
   0xe   :  { %1795 = vmatpush.bf16.msra.mxu2 %v2838_v34  ;;  %v2885_v54 = vld [vmem:[%s5969_s1 + $0x1b0] sm:$0xf]  ;;  %v3778_v55 = vld [vmem:[%s5969_s1 + $0x1b4] sm:$0xf0]  ;;  %v2822_v58 = vor.u32 %v3762_v53, %v2821_v52  ;;  %v3728_v60 = vld [vmem:[%s5969_s1 + $0x24] sm:$0xf0] }
   0xf   :  { %1814 = vmatpush.bf16.msra.mxu3 %v2902_v38  ;;  %v2749_v61 = vld [vmem:[%s5969_s1 + $0xa0] sm:$0xf]  ;;  %v2886_v62 = vor.u32 %v3778_v55, %v2885_v54  ;;  %v3744_v63 = vld [vmem:[%s5969_s1 + $0xa4] sm:$0xf0]  ;;  %v2686_v4 = vor.u32 %v3728_v60, %v2685_v59  ;;  %v2677_v7 = vld [vmem:[%s5969_s1 + $0x10] sm:$0xf] }
  0x10   :  { %1758 = vmatpush.bf16.msra.mxu0 %v2702_v44  ;;  %v2813_v0 = vld [vmem:[%s5969_s1 + $0x120] sm:$0xf]  ;;  %v3760_v1 = vld [vmem:[%s5969_s1 + $0x124] sm:$0xf0]  ;;  %v2750_v5 = vor.u32 %v3744_v63, %v2749_v61  ;;  %v3726_v8 = vld [vmem:[%s5969_s1 + $0x14] sm:$0xf0] }
  0x11   :  { %1777 = vmatpush.bf16.msra.mxu1 %v2766_v45  ;;  %v2877_v2 = vld [vmem:[%s5969_s1 + $0x1a0] sm:$0xf]  ;;  %v3776_v3 = vld [vmem:[%s5969_s1 + $0x1a4] sm:$0xf0]  ;;  %v2814_v6 = vor.u32 %v3760_v1, %v2813_v0  ;;  %v2741_v9 = vld [vmem:[%s5969_s1 + $0x90] sm:$0xf]  ;;  %v2678_v17 = vor.u32 %v3726_v8, %v2677_v7 }
  0x12   :  { %1796 = vmatpush.bf16.msra.mxu2 %v2830_v46  ;;  %v2878_v10 = vor.u32 %v3776_v3, %v2877_v2  ;;  %v3742_v11 = vld [vmem:[%s5969_s1 + $0x94] sm:$0xf0]  ;;  %v2805_v12 = vld [vmem:[%s5969_s1 + $0x110] sm:$0xf]  ;;  %v2669_v16 = vld [vmem:[%s5969_s1] sm:$0xf] }
  0x13   :  { %1815 = vmatpush.bf16.msra.mxu3 %v2894_v50  ;;  %v3758_v13 = vld [vmem:[%s5969_s1 + $0x114] sm:$0xf0]  ;;  %v2869_v14 = vld [vmem:[%s5969_s1 + $0x190] sm:$0xf]  ;;  %v3724_v18 = vld [vmem:[%s5969_s1 + $0x4] sm:$0xf0]  ;;  %v2742_v21 = vor.u32 %v3742_v11, %v2741_v9 }
  0x14   :  { %1759 = vmatpush.bf16.msra.mxu0 %v2694_v56  ;;  %v3774_v15 = vld [vmem:[%s5969_s1 + $0x194] sm:$0xf0]  ;;  %v2733_v19 = vld [vmem:[%s5969_s1 + $0x80] sm:$0xf]  ;;  %v3740_v20 = vld [vmem:[%s5969_s1 + $0x84] sm:$0xf0]  ;;  %v2806_v22 = vor.u32 %v3758_v13, %v2805_v12  ;;  %v2670_v34 = vor.u32 %v3724_v18, %v2669_v16 }
  0x15   :  { %1778 = vmatpush.bf16.msra.mxu1 %v2758_v57  ;;  %v2797_v23 = vld [vmem:[%s5969_s1 + $0x100] sm:$0xf]  ;;  %v3756_v24 = vld [vmem:[%s5969_s1 + $0x104] sm:$0xf0]  ;;  %v2870_v26 = vor.u32 %v3774_v15, %v2869_v14  ;;  %v3691_v30 = vld [vmem:[%s5970_s0 + $0x4] sm:$0xf]  ;;  %v2734_v38 = vor.u32 %v3740_v20, %v2733_v19 }
  0x16   :  { %1797 = vmatpush.bf16.msra.mxu2 %v2822_v58  ;;  %v2861_v25 = vld [vmem:[%s5969_s1 + $0x180] sm:$0xf]  ;;  %v3772_v27 = vld [vmem:[%s5969_s1 + $0x184] sm:$0xf0]  ;;  %v2543_v31 = vld [vmem:[%s5970_s0 + $0x40] sm:$0xf0]  ;;  %v2798_v39 = vor.u32 %v3756_v24, %v2797_v23 }
  0x17   :  { %1816 = vmatpush.bf16.msra.mxu3 %v2886_v62  ;;  %v2541_v28 = vld [vmem:[%s5970_s0] sm:$0xf]  ;;  %v3109_v32 = vld [vmem:[%s5969_s1 + $0x370] sm:$0xf]  ;;  %v3834_v33 = vld [vmem:[%s5969_s1 + $0x374] sm:$0xf0]  ;;  %v2862_v43 = vor.u32 %v3772_v27, %v2861_v25  ;;  %v4256_v53 = vor.u32 %v3691_v30, %v2543_v31 }
  0x18   :  { %1760 = vmatpush.bf16.msra.mxu0 %v2686_v4  ;;  %v3699_v29 = vld [vmem:[%s5970_s0 + $0x3c] sm:$0xf0]  ;;  %v2549_v35 = vld [vmem:[%s5970_s0 + $0x8] sm:$0xf]  ;;  %v3045_v36 = vld [vmem:[%s5969_s1 + $0x2f0] sm:$0xf]  ;;  %v3110_v44 = vor.u32 %v3834_v33, %v3109_v32 }
  0x19   :  { %1779 = vmatpush.bf16.msra.mxu1 %v2750_v5  ;;  %v3818_v37 = vld [vmem:[%s5969_s1 + $0x2f4] sm:$0xf0]  ;;  %v3700_v40 = vld [vmem:[%s5970_s0 + $0x44] sm:$0xf0]  ;;  %v3692_v41 = vld [vmem:[%s5970_s0 + $0xc] sm:$0xf]  ;;  %v4245_v48 = vor.u32 %v3699_v29, %v2541_v28 }
  0x1a   :  { %1798 = vmatpush.bf16.msra.mxu2 %v2814_v6  ;;  %v2551_v42 = vld [vmem:[%s5970_s0 + $0x48] sm:$0xf0]  ;;  %v2981_v45 = vld [vmem:[%s5969_s1 + $0x270] sm:$0xf]  ;;  %v3802_v46 = vld [vmem:[%s5969_s1 + $0x274] sm:$0xf0]  ;;  %v3046_v49 = vor.u32 %v3818_v37, %v3045_v36  ;;  %v4258_v54 = vor.u32 %v3700_v40, %v2549_v35 }
  0x1b   :  { %1817 = vmatpush.bf16.msra.mxu3 %v2878_v10  ;;  %v3173_v47 = vld [vmem:[%s5969_s1 + $0x3f0] sm:$0xf]  ;;  %v3850_v50 = vld [vmem:[%s5969_s1 + $0x3f4] sm:$0xf0]  ;;  %v3101_v51 = vld [vmem:[%s5969_s1 + $0x360] sm:$0xf]  ;;  %v4266_v57 = vor.u32 %v3692_v41, %v2551_v42  ;;  %v2982_v58 = vor.u32 %v3802_v46, %v2981_v45 }
  0x1c   :  { %1761 = vmatpush.bf16.msra.mxu0 %v2678_v17  ;;  %v3832_v52 = vld [vmem:[%s5969_s1 + $0x364] sm:$0xf0]  ;;  %v3037_v55 = vld [vmem:[%s5969_s1 + $0x2e0] sm:$0xf]  ;;  %v3174_v59 = vor.u32 %v3850_v50, %v3173_v47  ;;  %v3093_v2 = vld [vmem:[%s5969_s1 + $0x350] sm:$0xf] }
  0x1d   :  { %1780 = vmatpush.bf16.msra.mxu1 %v2742_v21  ;;  %v3816_v56 = vld [vmem:[%s5969_s1 + $0x2e4] sm:$0xf0]  ;;  %v3102_v60 = vor.u32 %v3832_v52, %v3101_v51  ;;  %v2973_v61 = vld [vmem:[%s5969_s1 + $0x260] sm:$0xf]  ;;  %v3830_v3 = vld [vmem:[%s5969_s1 + $0x354] sm:$0xf0] }
  0x1e   :  { %1799 = vmatpush.bf16.msra.mxu2 %v2806_v22  ;;  %v3800_v62 = vld [vmem:[%s5969_s1 + $0x264] sm:$0xf0]  ;;  %v3165_v63 = vld [vmem:[%s5969_s1 + $0x3e0] sm:$0xf]  ;;  %v3038_v0 = vor.u32 %v3816_v56, %v3037_v55  ;;  %v3029_v4 = vld [vmem:[%s5969_s1 + $0x2d0] sm:$0xf]  ;;  %v3094_v8 = vor.u32 %v3830_v3, %v3093_v2 }
  0x1f   :  { %1818 = vmatpush.bf16.msra.mxu3 %v2870_v26  ;;  %v3848_v1 = vld [vmem:[%s5969_s1 + $0x3e4] sm:$0xf0]  ;;  %v3814_v5 = vld [vmem:[%s5969_s1 + $0x2d4] sm:$0xf0]  ;;  %v2974_v6 = vor.u32 %v3800_v62, %v2973_v61  ;;  %v2965_v9 = vld [vmem:[%s5969_s1 + $0x250] sm:$0xf] }
  0x20   :  { %1762 = vmatpush.bf16.msra.mxu0 %v2670_v34  ;;  %v3166_v7 = vor.u32 %v3848_v1, %v3165_v63  ;;  %v3798_v10 = vld [vmem:[%s5969_s1 + $0x254] sm:$0xf0]  ;;  %v3157_v11 = vld [vmem:[%s5969_s1 + $0x3d0] sm:$0xf]  ;;  %v3030_v12 = vor.u32 %v3814_v5, %v3029_v4  ;;  %v3085_v14 = vld [vmem:[%s5969_s1 + $0x340] sm:$0xf] }
  0x21   :  { %1781 = vmatpush.bf16.msra.mxu1 %v2734_v38  ;;  %v3846_v13 = vld [vmem:[%s5969_s1 + $0x3d4] sm:$0xf0]  ;;  %v3828_v15 = vld [vmem:[%s5969_s1 + $0x344] sm:$0xf0]  ;;  %v3021_v16 = vld [vmem:[%s5969_s1 + $0x2c0] sm:$0xf]  ;;  %v2966_v18 = vor.u32 %v3798_v10, %v2965_v9 }
  0x22   :  { %1800 = vmatpush.bf16.msra.mxu2 %v2798_v39  ;;  %v3812_v17 = vld [vmem:[%s5969_s1 + $0x2c4] sm:$0xf0]  ;;  %v2957_v19 = vld [vmem:[%s5969_s1 + $0x240] sm:$0xf]  ;;  %v3158_v22 = vor.u32 %v3846_v13, %v3157_v11  ;;  %v3086_v23 = vor.u32 %v3828_v15, %v3085_v14  ;;  %v3707_v28 = vld [vmem:[%s5970_s0 + $0x84] sm:$0xf] }
  0x23   :  { %1819 = vmatpush.bf16.msra.mxu3 %v2862_v43  ;;  %1763 = vmatmul.bf16.vlgmr.msra.gmra.mxu0 %v4245_v48  ;;  %v3796_v20 = vld [vmem:[%s5969_s1 + $0x244] sm:$0xf0]  ;;  %v3149_v21 = vld [vmem:[%s5969_s1 + $0x3c0] sm:$0xf]  ;;  %v3022_v27 = vor.u32 %v3812_v17, %v3021_v16  ;;  %v2607_v29 = vld [vmem:[%s5970_s0 + $0xc0] sm:$0xf0] }
  0x24   :  { %1782 = vmatmul.bf16.vlgmr.msra.gmra.mxu1 %v4256_v53  ;;  %1831 = vmatpush.bf16.msrb.mxu0 %v2982_v58  ;;  %v3844_v24 = vld [vmem:[%s5969_s1 + $0x3c4] sm:$0xf0]  ;;  %v2605_v25 = vld [vmem:[%s5970_s0 + $0x80] sm:$0xf]  ;;  %v3077_v30 = vld [vmem:[%s5969_s1 + $0x330] sm:$0xf]  ;;  %v2958_v35 = vor.u32 %v3796_v20, %v2957_v19  ;;  %v4388_v50 = vor.u32 %v3707_v28, %v2607_v29 }
  0x25   :  { %1850 = vmatpush.bf16.msrb.mxu1 %v3046_v49  ;;  %1801 = vmatmul.bf16.vlgmr.msra.gmra.mxu2 %v4258_v54  ;;  %v3715_v26 = vld [vmem:[%s5970_s0 + $0xbc] sm:$0xf0]  ;;  %v3826_v31 = vld [vmem:[%s5969_s1 + $0x334] sm:$0xf0]  ;;  %v2613_v32 = vld [vmem:[%s5970_s0 + $0x88] sm:$0xf]  ;;  %v3150_v39 = vor.u32 %v3844_v24, %v3149_v21 }
  0x26   :  { %1869 = vmatpush.bf16.msrb.mxu2 %v3110_v44  ;;  %1820 = vmatmul.bf16.vlgmr.msra.gmra.mxu3 %v4266_v57  ;;  %v3013_v33 = vld [vmem:[%s5969_s1 + $0x2b0] sm:$0xf]  ;;  %v3810_v34 = vld [vmem:[%s5969_s1 + $0x2b4] sm:$0xf0]  ;;  %v3716_v36 = vld [vmem:[%s5970_s0 + $0xc4] sm:$0xf0]  ;;  %v3078_v40 = vor.u32 %v3826_v31, %v3077_v30  ;;  %v4377_v44 = vor.u32 %v3715_v26, %v2605_v25 }
  0x27   :  { %1888 = vmatpush.bf16.msrb.mxu3 %v3174_v59  ;;  %v3708_v37 = vld [vmem:[%s5970_s0 + $0x8c] sm:$0xf]  ;;  %v2949_v41 = vld [vmem:[%s5969_s1 + $0x230] sm:$0xf]  ;;  %v3794_v42 = vld [vmem:[%s5969_s1 + $0x234] sm:$0xf0]  ;;  %v3014_v45 = vor.u32 %v3810_v34, %v3013_v33  ;;  %v4390_v51 = vor.u32 %v3716_v36, %v2613_v32 }
  0x28   :  { %1832 = vmatpush.bf16.msrb.mxu0 %v2974_v6  ;;  %v2615_v38 = vld [vmem:[%s5970_s0 + $0xc8] sm:$0xf0]  ;;  %v3141_v43 = vld [vmem:[%s5969_s1 + $0x3b0] sm:$0xf]  ;;  %v3842_v46 = vld [vmem:[%s5969_s1 + $0x3b4] sm:$0xf0]  ;;  %v2950_v58 = vor.u32 %v3794_v42, %v2949_v41 }
  0x29   :  { %1851 = vmatpush.bf16.msrb.mxu1 %v3038_v0  ;;  %v3069_v47 = vld [vmem:[%s5969_s1 + $0x320] sm:$0xf]  ;;  %v3824_v49 = vld [vmem:[%s5969_s1 + $0x324] sm:$0xf0]  ;;  %v4398_v56 = vor.u32 %v3708_v37, %v2615_v38  ;;  %v3142_v59 = vor.u32 %v3842_v46, %v3141_v43  ;;  %v3061_v2 = vld [vmem:[%s5969_s1 + $0x310] sm:$0xf] }
  0x2a   :  { %1870 = vmatpush.bf16.msrb.mxu2 %v3102_v60  ;;  %v3005_v52 = vld [vmem:[%s5969_s1 + $0x2a0] sm:$0xf]  ;;  %v3808_v55 = vld [vmem:[%s5969_s1 + $0x2a4] sm:$0xf0]  ;;  %v3070_v60 = vor.u32 %v3824_v49, %v3069_v47  ;;  %v3822_v3 = vld [vmem:[%s5969_s1 + $0x314] sm:$0xf0] }
  0x2b   :  { %1889 = vmatpush.bf16.msrb.mxu3 %v3166_v7  ;;  %v2941_v61 = vld [vmem:[%s5969_s1 + $0x220] sm:$0xf]  ;;  %v3792_v62 = vld [vmem:[%s5969_s1 + $0x224] sm:$0xf0]  ;;  %v3006_v0 = vor.u32 %v3808_v55, %v3005_v52  ;;  %v2997_v4 = vld [vmem:[%s5969_s1 + $0x290] sm:$0xf]  ;;  %v3062_v9 = vor.u32 %v3822_v3, %v3061_v2 }
  0x2c   :  { %1833 = vmatpush.bf16.msrb.mxu0 %v2966_v18  ;;  %v3133_v63 = vld [vmem:[%s5969_s1 + $0x3a0] sm:$0xf]  ;;  %v3840_v1 = vld [vmem:[%s5969_s1 + $0x3a4] sm:$0xf0]  ;;  %v3806_v5 = vld [vmem:[%s5969_s1 + $0x294] sm:$0xf0]  ;;  %v2942_v6 = vor.u32 %v3792_v62, %v2941_v61 }
  0x2d   :  { %1852 = vmatpush.bf16.msrb.mxu1 %v3030_v12  ;;  %v2933_v7 = vld [vmem:[%s5969_s1 + $0x210] sm:$0xf]  ;;  %v3790_v10 = vld [vmem:[%s5969_s1 + $0x214] sm:$0xf0]  ;;  %v2998_v13 = vor.u32 %v3806_v5, %v2997_v4  ;;  %v3053_v14 = vld [vmem:[%s5969_s1 + $0x300] sm:$0xf] }
  0x2e   :  { %1871 = vmatpush.bf16.msrb.mxu2 %v3094_v8  ;;  %v3134_v8 = vor.u32 %v3840_v1, %v3133_v63  ;;  %v3125_v11 = vld [vmem:[%s5969_s1 + $0x390] sm:$0xf]  ;;  %v3838_v12 = vld [vmem:[%s5969_s1 + $0x394] sm:$0xf0]  ;;  %v3820_v15 = vld [vmem:[%s5969_s1 + $0x304] sm:$0xf0]  ;;  %v2934_v20 = vor.u32 %v3790_v10, %v2933_v7 }
  0x2f   :  { %1890 = vmatpush.bf16.msrb.mxu3 %v3158_v22  ;;  %v2989_v16 = vld [vmem:[%s5969_s1 + $0x280] sm:$0xf]  ;;  %v3804_v17 = vld [vmem:[%s5969_s1 + $0x284] sm:$0xf0]  ;;  %v3365_v18 = vld [vmem:[%s5969_s1 + $0x570] sm:$0xf]  ;;  %v3126_v24 = vor.u32 %v3838_v12, %v3125_v11  ;;  %v3054_v25 = vor.u32 %v3820_v15, %v3053_v14 }
  0x30   :  { %1834 = vmatpush.bf16.msrb.mxu0 %v2958_v35  ;;  %v3898_v19 = vld [vmem:[%s5969_s1 + $0x574] sm:$0xf0]  ;;  %v2925_v21 = vld [vmem:[%s5969_s1 + $0x200] sm:$0xf]  ;;  %v3301_v22 = vld [vmem:[%s5969_s1 + $0x4f0] sm:$0xf]  ;;  %v2990_v29 = vor.u32 %v3804_v17, %v2989_v16 }
  0x31   :  { %1853 = vmatpush.bf16.msrb.mxu1 %v3022_v27  ;;  %v3788_v26 = vld [vmem:[%s5969_s1 + $0x204] sm:$0xf0]  ;;  %v3117_v27 = vld [vmem:[%s5969_s1 + $0x380] sm:$0xf]  ;;  %v2557_v30 = vld [vmem:[%s5970_s0 + $0x10] sm:$0xf]  ;;  %v3366_v34 = vor.u32 %v3898_v19, %v3365_v18 }
  0x32   :  { %1872 = vmatpush.bf16.msrb.mxu2 %v3086_v23  ;;  %v3882_v23 = vld [vmem:[%s5969_s1 + $0x4f4] sm:$0xf0]  ;;  %v3836_v28 = vld [vmem:[%s5969_s1 + $0x384] sm:$0xf0]  ;;  %v3701_v31 = vld [vmem:[%s5970_s0 + $0x4c] sm:$0xf0]  ;;  %v2926_v42 = vor.u32 %v3788_v26, %v2925_v21 }
  0x33   :  { %1891 = vmatpush.bf16.msrb.mxu3 %v3150_v39  ;;  %1768 = vmatmul.bf16.gmra.mxu0 %v4377_v44  ;;  %v3693_v32 = vld [vmem:[%s5970_s0 + $0x14] sm:$0xf]  ;;  %v3237_v35 = vld [vmem:[%s5969_s1 + $0x470] sm:$0xf]  ;;  %v3866_v36 = vld [vmem:[%s5969_s1 + $0x474] sm:$0xf0]  ;;  %v3302_v38 = vor.u32 %v3882_v23, %v3301_v22  ;;  %v3118_v47 = vor.u32 %v3836_v28, %v3117_v27 }
  0x34   :  { %1787 = vmatmul.bf16.gmra.mxu1 %v4388_v50  ;;  %1835 = vmatpush.bf16.msrb.mxu0 %v2950_v58  ;;  %v2559_v33 = vld [vmem:[%s5970_s0 + $0x50] sm:$0xf0]  ;;  %v3429_v37 = vld [vmem:[%s5969_s1 + $0x5f0] sm:$0xf]  ;;  %v3914_v39 = vld [vmem:[%s5969_s1 + $0x5f4] sm:$0xf0]  ;;  %v3238_v52 = vor.u32 %v3866_v36, %v3237_v35 }
  0x35   :  { %1854 = vmatpush.bf16.msrb.mxu1 %v3014_v45  ;;  %1806 = vmatmul.bf16.gmra.mxu2 %v4390_v51  ;;  %v3896_v41 = vld [vmem:[%s5969_s1 + $0x564] sm:$0xf0]  ;;  %v2565_v43 = vld [vmem:[%s5970_s0 + $0x18] sm:$0xf]  ;;  %v3694_v46 = vld [vmem:[%s5970_s0 + $0x1c] sm:$0xf]  ;;  %v4535_v1 = vor.u32 %v3693_v32, %v2559_v33 }
  0x36   :  { %1873 = vmatpush.bf16.msrb.mxu2 %v3078_v40  ;;  %1825 = vmatmul.bf16.gmra.mxu3 %v4398_v56  ;;  %v3357_v40 = vld [vmem:[%s5969_s1 + $0x560] sm:$0xf]  ;;  %v3702_v45 = vld [vmem:[%s5970_s0 + $0x54] sm:$0xf0]  ;;  %v2567_v49 = vld [vmem:[%s5970_s0 + $0x58] sm:$0xf0] }
  0x37   :  { %1892 = vmatpush.bf16.msrb.mxu3 %v3142_v59  ;;  %v3229_v55 = vld [vmem:[%s5969_s1 + $0x460] sm:$0xf]  ;;  %v3864_v58 = vld [vmem:[%s5969_s1 + $0x464] sm:$0xf0]  ;;  %v3430_v59 = vor.u32 %v3914_v39, %v3429_v37  ;;  %v3349_v3 = vld [vmem:[%s5969_s1 + $0x550] sm:$0xf]  ;;  %v4546_v5 = vor.u32 %v3702_v45, %v2565_v43 }
  0x38   :  { %1836 = vmatpush.bf16.msrb.mxu0 %v2942_v6  ;;  %v3293_v61 = vld [vmem:[%s5969_s1 + $0x4e0] sm:$0xf]  ;;  %v3880_v62 = vld [vmem:[%s5969_s1 + $0x4e4] sm:$0xf0]  ;;  %v3894_v4 = vld [vmem:[%s5969_s1 + $0x554] sm:$0xf0]  ;;  %v4548_v6 = vor.u32 %v3694_v46, %v2567_v49  ;;  %v3230_v7 = vor.u32 %v3864_v58, %v3229_v55 }
  0x39   :  { %1855 = vmatpush.bf16.msrb.mxu1 %v3006_v0  ;;  %v3421_v63 = vld [vmem:[%s5969_s1 + $0x5e0] sm:$0xf]  ;;  %v4533_v0 = vor.u32 %v3701_v31, %v2557_v30  ;;  %v3912_v2 = vld [vmem:[%s5969_s1 + $0x5e4] sm:$0xf0]  ;;  %v3862_v10 = vld [vmem:[%s5969_s1 + $0x454] sm:$0xf0]  ;;  %v3350_v12 = vor.u32 %v3894_v4, %v3349_v3 }
  0x3a   :  { %1874 = vmatpush.bf16.msrb.mxu2 %v3070_v60  ;;  %v3358_v60 = vor.u32 %v3896_v41, %v3357_v40  ;;  %v3422_v11 = vor.u32 %v3912_v2, %v3421_v63  ;;  %v3878_v14 = vld [vmem:[%s5969_s1 + $0x4d4] sm:$0xf0]  ;;  %v3413_v15 = vld [vmem:[%s5969_s1 + $0x5d0] sm:$0xf]  ;;  %v3341_v17 = vld [vmem:[%s5969_s1 + $0x540] sm:$0xf] }
  0x3b   :  { %1893 = vmatpush.bf16.msrb.mxu3 %v3134_v8  ;;  %v3294_v8 = vor.u32 %v3880_v62, %v3293_v61  ;;  %v3910_v16 = vld [vmem:[%s5969_s1 + $0x5d4] sm:$0xf0]  ;;  %v3892_v18 = vld [vmem:[%s5969_s1 + $0x544] sm:$0xf0]  ;;  %v3213_v21 = vld [vmem:[%s5969_s1 + $0x440] sm:$0xf] }
  0x3c   :  { %1837 = vmatpush.bf16.msrb.mxu0 %v2934_v20  ;;  %v3860_v22 = vld [vmem:[%s5969_s1 + $0x444] sm:$0xf0]  ;;  %v3414_v23 = vor.u32 %v3910_v16, %v3413_v15  ;;  %v3405_v27 = vld [vmem:[%s5969_s1 + $0x5c0] sm:$0xf]  ;;  %v3890_v30 = vld [vmem:[%s5969_s1 + $0x534] sm:$0xf0] }
  0x3d   :  { %1856 = vmatpush.bf16.msrb.mxu1 %v2998_v13  ;;  %v3285_v13 = vld [vmem:[%s5969_s1 + $0x4d0] sm:$0xf]  ;;  %v3876_v26 = vld [vmem:[%s5969_s1 + $0x4c4] sm:$0xf0]  ;;  %v3214_v31 = vor.u32 %v3860_v22, %v3213_v21  ;;  %v2623_v39 = vld [vmem:[%s5970_s0 + $0xd0] sm:$0xf0] }
  0x3e   :  { %1875 = vmatpush.bf16.msrb.mxu2 %v3062_v9  ;;  %v3221_v9 = vld [vmem:[%s5969_s1 + $0x450] sm:$0xf]  ;;  %v3286_v20 = vor.u32 %v3878_v14, %v3285_v13  ;;  %v3908_v28 = vld [vmem:[%s5969_s1 + $0x5c4] sm:$0xf0]  ;;  %v3906_v45 = vld [vmem:[%s5969_s1 + $0x5b4] sm:$0xf0] }
  0x3f   :  { %1894 = vmatpush.bf16.msrb.mxu3 %v3126_v24  ;;  %v3222_v19 = vor.u32 %v3862_v10, %v3221_v9  ;;  %v3342_v24 = vor.u32 %v3892_v18, %v3341_v17  ;;  %v3205_v33 = vld [vmem:[%s5969_s1 + $0x430] sm:$0xf]  ;;  %v3406_v35 = vor.u32 %v3908_v28, %v3405_v27  ;;  %v3325_v46 = vld [vmem:[%s5969_s1 + $0x520] sm:$0xf]  ;;  %v2629_v49 = vld [vmem:[%s5970_s0 + $0x98] sm:$0xf] }
  0x40   :  { %1838 = vmatpush.bf16.msrb.mxu0 %v2926_v42  ;;  %v2621_v36 = vld [vmem:[%s5970_s0 + $0x90] sm:$0xf]  ;;  %v3874_v42 = vld [vmem:[%s5969_s1 + $0x4b4] sm:$0xf0]  ;;  %v3710_v55 = vld [vmem:[%s5970_s0 + $0x9c] sm:$0xf] }
  0x41   :  { %1857 = vmatpush.bf16.msrb.mxu1 %v2990_v29  ;;  %v3333_v29 = vld [vmem:[%s5969_s1 + $0x530] sm:$0xf]  ;;  %v2631_v58 = vld [vmem:[%s5970_s0 + $0xd8] sm:$0xf0]  ;;  %v3197_v61 = vld [vmem:[%s5969_s1 + $0x420] sm:$0xf] }
  0x42   :  { %1876 = vmatpush.bf16.msrb.mxu2 %v3054_v25  ;;  %v3277_v25 = vld [vmem:[%s5969_s1 + $0x4c0] sm:$0xf]  ;;  %v3717_v37 = vld [vmem:[%s5970_s0 + $0xcc] sm:$0xf0]  ;;  %v3334_v40 = vor.u32 %v3890_v30, %v3333_v29  ;;  %v3856_v62 = vld [vmem:[%s5969_s1 + $0x424] sm:$0xf0]  ;;  %v4680_v14 = vor.u32 %v3710_v55, %v2631_v58 }
  0x43   :  { %1895 = vmatpush.bf16.msrb.mxu3 %v3118_v47  ;;  %1839 = vmatmul.bf16.vlgmr.msrb.gmra.mxu0 %v4533_v0  ;;  %v3278_v32 = vor.u32 %v3876_v26, %v3277_v25  ;;  %v3269_v41 = vld [vmem:[%s5969_s1 + $0x4b0] sm:$0xf]  ;;  %v3888_v47 = vld [vmem:[%s5969_s1 + $0x524] sm:$0xf0]  ;;  %v3261_v3 = vld [vmem:[%s5969_s1 + $0x4a0] sm:$0xf]  ;;  %v3198_v15 = vor.u32 %v3856_v62, %v3197_v61 }
  0x44   :  { %1907 = vmatpush.bf16.msra.mxu0 %v3238_v52  ;;  %1858 = vmatmul.bf16.vlgmr.msrb.gmra.mxu1 %v4535_v1  ;;  %v3397_v43 = vld [vmem:[%s5969_s1 + $0x5b0] sm:$0xf]  ;;  %v3718_v52 = vld [vmem:[%s5970_s0 + $0xd4] sm:$0xf0]  ;;  %v3326_v2 = vor.u32 %v3888_v47, %v3325_v46  ;;  %v3872_v4 = vld [vmem:[%s5969_s1 + $0x4a4] sm:$0xf0] }
  0x45   :  { %1926 = vmatpush.bf16.msra.mxu1 %v3302_v38  ;;  %1877 = vmatmul.bf16.vlgmr.msrb.gmra.mxu2 %v4546_v5  ;;  %v3709_v38 = vld [vmem:[%s5970_s0 + $0x94] sm:$0xf]  ;;  %v3398_v63 = vor.u32 %v3906_v45, %v3397_v43  ;;  %v3904_v10 = vld [vmem:[%s5969_s1 + $0x5a4] sm:$0xf0]  ;;  %v4678_v13 = vor.u32 %v3718_v52, %v2629_v49  ;;  %v3262_v16 = vor.u32 %v3872_v4, %v3261_v3  ;;  %v3189_v17 = vld [vmem:[%s5969_s1 + $0x410] sm:$0xf] }
  0x46   :  { %1945 = vmatpush.bf16.msra.mxu2 %v3366_v34  ;;  %1896 = vmatmul.bf16.vlgmr.msrb.gmra.mxu3 %v4548_v6  ;;  %v3858_v34 = vld [vmem:[%s5969_s1 + $0x434] sm:$0xf0]  ;;  %v4667_v9 = vor.u32 %v3709_v38, %v2623_v39  ;;  %v3253_v21 = vld [vmem:[%s5969_s1 + $0x490] sm:$0xf]  ;;  %v3309_v25 = vld [vmem:[%s5969_s1 + $0x500] sm:$0xf] }
  0x47   :  { %1964 = vmatpush.bf16.msra.mxu3 %v3430_v59  ;;  %v3206_v59 = vor.u32 %v3858_v34, %v3205_v33  ;;  %v3854_v18 = vld [vmem:[%s5969_s1 + $0x414] sm:$0xf0]  ;;  %v3884_v26 = vld [vmem:[%s5969_s1 + $0x504] sm:$0xf0]  ;;  %v3621_v27 = vld [vmem:[%s5969_s1 + $0x770] sm:$0xf] }
  0x48   :  { %1908 = vmatpush.bf16.msra.mxu0 %v3230_v7  ;;  %v3389_v7 = vld [vmem:[%s5969_s1 + $0x5a0] sm:$0xf]  ;;  %v3870_v22 = vld [vmem:[%s5969_s1 + $0x494] sm:$0xf0]  ;;  %v3190_v29 = vor.u32 %v3854_v18, %v3189_v17  ;;  %v3900_v38 = vld [vmem:[%s5969_s1 + $0x584] sm:$0xf0] }
  0x49   :  { %1927 = vmatpush.bf16.msra.mxu1 %v3294_v8  ;;  %v4665_v8 = vor.u32 %v3717_v37, %v2621_v36  ;;  %v3962_v28 = vld [vmem:[%s5969_s1 + $0x774] sm:$0xf0]  ;;  %v3254_v30 = vor.u32 %v3870_v22, %v3253_v21  ;;  %v3245_v33 = vld [vmem:[%s5969_s1 + $0x480] sm:$0xf]  ;;  %v3868_v36 = vld [vmem:[%s5969_s1 + $0x484] sm:$0xf0] }
  0x4a   :  { %1946 = vmatpush.bf16.msra.mxu2 %v3358_v60  ;;  %v3270_v60 = vor.u32 %v3874_v42, %v3269_v41  ;;  %v3373_v37 = vld [vmem:[%s5969_s1 + $0x580] sm:$0xf]  ;;  %v3622_v39 = vor.u32 %v3962_v28, %v3621_v27  ;;  %v3930_v41 = vld [vmem:[%s5969_s1 + $0x674] sm:$0xf0]  ;;  %v3557_v42 = vld [vmem:[%s5969_s1 + $0x6f0] sm:$0xf]  ;;  %v3246_v49 = vor.u32 %v3868_v36, %v3245_v33 }
  0x4b   :  { %1965 = vmatpush.bf16.msra.mxu3 %v3422_v11  ;;  %v3317_v11 = vld [vmem:[%s5969_s1 + $0x510] sm:$0xf]  ;;  %v3946_v43 = vld [vmem:[%s5969_s1 + $0x6f4] sm:$0xf0]  ;;  %v3613_v52 = vld [vmem:[%s5969_s1 + $0x760] sm:$0xf]  ;;  %v3374_v58 = vor.u32 %v3900_v38, %v3373_v37 }
  0x4c   :  { %1909 = vmatpush.bf16.msra.mxu0 %v3222_v19  ;;  %v3390_v19 = vor.u32 %v3904_v10, %v3389_v7  ;;  %v3685_v45 = vld [vmem:[%s5969_s1 + $0x7f0] sm:$0xf]  ;;  %v3978_v46 = vld [vmem:[%s5969_s1 + $0x7f4] sm:$0xf0]  ;;  %v3960_v55 = vld [vmem:[%s5969_s1 + $0x764] sm:$0xf0] }
  0x4d   :  { %1928 = vmatpush.bf16.msra.mxu1 %v3286_v20  ;;  %v3695_v61 = vld [vmem:[%s5970_s0 + $0x24] sm:$0xf]  ;;  %v3686_v3 = vor.u32 %v3978_v46, %v3685_v45  ;;  %v3485_v4 = vld [vmem:[%s5969_s1 + $0x660] sm:$0xf]  ;;  %v3928_v7 = vld [vmem:[%s5969_s1 + $0x664] sm:$0xf0] }
  0x4e   :  { %1947 = vmatpush.bf16.msra.mxu2 %v3350_v12  ;;  %v3886_v12 = vld [vmem:[%s5969_s1 + $0x514] sm:$0xf0]  ;;  %v2581_v10 = vld [vmem:[%s5970_s0 + $0x28] sm:$0xf]  ;;  %v3549_v17 = vld [vmem:[%s5969_s1 + $0x6e0] sm:$0xf] }
  0x4f   :  { %1966 = vmatpush.bf16.msra.mxu3 %v3414_v23  ;;  %v3318_v20 = vor.u32 %v3886_v12, %v3317_v11  ;;  %v3381_v23 = vld [vmem:[%s5969_s1 + $0x590] sm:$0xf]  ;;  %v3704_v11 = vld [vmem:[%s5970_s0 + $0x64] sm:$0xf0]  ;;  %v3696_v12 = vld [vmem:[%s5970_s0 + $0x2c] sm:$0xf] }
  0x50   :  { %1910 = vmatpush.bf16.msra.mxu0 %v3214_v31  ;;  %v3181_v31 = vld [vmem:[%s5969_s1 + $0x400] sm:$0xf]  ;;  %v3944_v18 = vld [vmem:[%s5969_s1 + $0x6e4] sm:$0xf0]  ;;  %v3605_v22 = vld [vmem:[%s5969_s1 + $0x750] sm:$0xf]  ;;  %v4816_v28 = vor.u32 %v3704_v11, %v2581_v10 }
  0x51   :  { %1929 = vmatpush.bf16.msra.mxu1 %v3278_v32  ;;  %v3852_v32 = vld [vmem:[%s5969_s1 + $0x404] sm:$0xf0]  ;;  %v3926_v27 = vld [vmem:[%s5969_s1 + $0x654] sm:$0xf0]  ;;  %v3669_v36 = vld [vmem:[%s5969_s1 + $0x7d0] sm:$0xf] }
  0x52   :  { %1948 = vmatpush.bf16.msra.mxu2 %v3342_v24  ;;  %v3902_v24 = vld [vmem:[%s5969_s1 + $0x594] sm:$0xf0]  ;;  %v3182_v47 = vor.u32 %v3852_v32, %v3181_v31  ;;  %v3976_v21 = vld [vmem:[%s5969_s1 + $0x7e4] sm:$0xf0]  ;;  %v3541_v32 = vld [vmem:[%s5969_s1 + $0x6d0] sm:$0xf] }
  0x53   :  { %1967 = vmatpush.bf16.msra.mxu3 %v3406_v35  ;;  %1844 = vmatmul.bf16.gmra.mxu0 %v4665_v8  ;;  %v3382_v34 = vor.u32 %v3902_v24, %v3381_v23  ;;  %v3310_v35 = vor.u32 %v3884_v26, %v3309_v25  ;;  %v3958_v25 = vld [vmem:[%s5969_s1 + $0x754] sm:$0xf0]  ;;  %v3477_v26 = vld [vmem:[%s5969_s1 + $0x650] sm:$0xf]  ;;  %v3597_v38 = vld [vmem:[%s5969_s1 + $0x740] sm:$0xf] }
  0x54   :  { %1911 = vmatpush.bf16.msra.mxu0 %v3206_v59  ;;  %1863 = vmatmul.bf16.gmra.mxu1 %v4667_v9  ;;  %v2573_v59 = vld [vmem:[%s5970_s0 + $0x20] sm:$0xf]  ;;  %v3942_v33 = vld [vmem:[%s5969_s1 + $0x6d4] sm:$0xf0]  ;;  %v3940_v46 = vld [vmem:[%s5969_s1 + $0x6c4] sm:$0xf0] }
  0x55   :  { %1930 = vmatpush.bf16.msra.mxu1 %v3270_v60  ;;  %1882 = vmatmul.bf16.gmra.mxu2 %v4678_v13  ;;  %v3703_v60 = vld [vmem:[%s5970_s0 + $0x5c] sm:$0xf0]  ;;  %v3974_v37 = vld [vmem:[%s5969_s1 + $0x7d4] sm:$0xf0]  ;;  %v3711_v10 = vld [vmem:[%s5970_s0 + $0xa4] sm:$0xf] }
  0x56   :  { %1949 = vmatpush.bf16.msra.mxu2 %v3334_v40  ;;  %1901 = vmatmul.bf16.gmra.mxu3 %v4680_v14  ;;  %v3493_v40 = vld [vmem:[%s5969_s1 + $0x670] sm:$0xf]  ;;  %v4803_v23 = vor.u32 %v3703_v60, %v2573_v59  ;;  %v3533_v45 = vld [vmem:[%s5969_s1 + $0x6c0] sm:$0xf]  ;;  %v3954_v59 = vld [vmem:[%s5969_s1 + $0x734] sm:$0xf0] }
  0x57   :  { %1968 = vmatpush.bf16.msra.mxu3 %v3398_v63  ;;  %v3494_v62 = vor.u32 %v3930_v41, %v3493_v40  ;;  %v2575_v63 = vld [vmem:[%s5970_s0 + $0x60] sm:$0xf0]  ;;  %v3469_v40 = vld [vmem:[%s5969_s1 + $0x640] sm:$0xf]  ;;  %v3924_v41 = vld [vmem:[%s5969_s1 + $0x644] sm:$0xf0] }
  0x58   :  { %1912 = vmatpush.bf16.msra.mxu0 %v3198_v15  ;;  %v3614_v15 = vor.u32 %v3960_v55, %v3613_v52  ;;  %v4805_v24 = vor.u32 %v3695_v61, %v2575_v63  ;;  %v3661_v52 = vld [vmem:[%s5969_s1 + $0x7c0] sm:$0xf]  ;;  %v3972_v55 = vld [vmem:[%s5969_s1 + $0x7c4] sm:$0xf0]  ;;  %v3461_v60 = vld [vmem:[%s5969_s1 + $0x630] sm:$0xf] }
  0x59   :  { %1931 = vmatpush.bf16.msra.mxu1 %v3262_v16  ;;  %v2583_v16 = vld [vmem:[%s5970_s0 + $0x68] sm:$0xf0]  ;;  %v3922_v61 = vld [vmem:[%s5969_s1 + $0x634] sm:$0xf0]  ;;  %v3662_v63 = vor.u32 %v3972_v55, %v3661_v52  ;;  %v2639_v11 = vld [vmem:[%s5970_s0 + $0xe0] sm:$0xf0] }
  0x5a   :  { %1950 = vmatpush.bf16.msra.mxu2 %v3326_v2  ;;  %v3558_v2 = vor.u32 %v3946_v43, %v3557_v42  ;;  %v3542_v42 = vor.u32 %v3942_v33, %v3541_v32  ;;  %v3670_v43 = vor.u32 %v3974_v37, %v3669_v36  ;;  %v3517_v32 = vld [vmem:[%s5969_s1 + $0x6a0] sm:$0xf]  ;;  %v3936_v33 = vld [vmem:[%s5969_s1 + $0x6a4] sm:$0xf0]  ;;  %v3509_v52 = vld [vmem:[%s5969_s1 + $0x690] sm:$0xf] }
  0x5b   :  { %1969 = vmatpush.bf16.msra.mxu3 %v3390_v19  ;;  %v3486_v19 = vor.u32 %v3928_v7, %v3485_v4  ;;  %v2637_v4 = vld [vmem:[%s5970_s0 + $0xa0] sm:$0xf]  ;;  %v3968_v37 = vld [vmem:[%s5969_s1 + $0x7a4] sm:$0xf0]  ;;  %v3934_v55 = vld [vmem:[%s5969_s1 + $0x694] sm:$0xf0] }
  0x5c   :  { %1913 = vmatpush.bf16.msra.mxu0 %v3190_v29  ;;  %v4818_v29 = vor.u32 %v3696_v12, %v2583_v16  ;;  %v3719_v7 = vld [vmem:[%s5970_s0 + $0xdc] sm:$0xf0]  ;;  %v3653_v16 = vld [vmem:[%s5969_s1 + $0x7b0] sm:$0xf] }
  0x5d   :  { %1932 = vmatpush.bf16.msra.mxu1 %v3254_v30  ;;  %v3550_v30 = vor.u32 %v3944_v18, %v3549_v17  ;;  %v3970_v17 = vld [vmem:[%s5969_s1 + $0x7b4] sm:$0xf0]  ;;  %v3581_v18 = vld [vmem:[%s5969_s1 + $0x720] sm:$0xf] }
  0x5e   :  { %1951 = vmatpush.bf16.msra.mxu2 %v3318_v20  ;;  %v3677_v20 = vld [vmem:[%s5969_s1 + $0x7e0] sm:$0xf] }
  0x5f   :  { %1970 = vmatpush.bf16.msra.mxu3 %v3382_v34  ;;  %v3678_v31 = vor.u32 %v3976_v21, %v3677_v20  ;;  %v3606_v34 = vor.u32 %v3958_v25, %v3605_v22  ;;  %v3453_v20 = vld [vmem:[%s5969_s1 + $0x620] sm:$0xf]  ;;  %v3920_v21 = vld [vmem:[%s5969_s1 + $0x624] sm:$0xf0] }
  0x60   :  { %1914 = vmatpush.bf16.msra.mxu0 %v3182_v47  ;;  %v2645_v22 = vld [vmem:[%s5970_s0 + $0xa8] sm:$0xf]  ;;  %v3645_v36 = vld [vmem:[%s5969_s1 + $0x7a0] sm:$0xf] }
  0x61   :  { %1933 = vmatpush.bf16.msra.mxu1 %v3246_v49  ;;  %v3470_v49 = vor.u32 %v3924_v41, %v3469_v40  ;;  %v3720_v25 = vld [vmem:[%s5970_s0 + $0xe4] sm:$0xf0]  ;;  %v4937_v40 = vor.u32 %v3711_v10, %v2639_v11  ;;  %v3950_v41 = vld [vmem:[%s5969_s1 + $0x714] sm:$0xf0]  ;;  %v3737_v10 = vld [vmem:[%s5969_s1 + $0x74] sm:$0xf] }
  0x62   :  { %1952 = vmatpush.bf16.msra.mxu2 %v3310_v35  ;;  %v3478_v35 = vor.u32 %v3926_v27, %v3477_v26  ;;  %v3712_v26 = vld [vmem:[%s5970_s0 + $0xac] sm:$0xf]  ;;  %v2727_v11 = vld [vmem:[%s5969_s1 + $0x78] sm:$0xf0] }
  0x63   :  { %1971 = vmatpush.bf16.msra.mxu3 %v3374_v58  ;;  %1915 = vmatmul.bf16.vlgmr.msra.gmra.mxu0 %v4803_v23  ;;  %v3589_v58 = vld [vmem:[%s5969_s1 + $0x730] sm:$0xf]  ;;  %v2647_v27 = vld [vmem:[%s5970_s0 + $0xe8] sm:$0xf0] }
  0x64   :  { %1983 = vmatpush.bf16.msrb.mxu0 %v3494_v62  ;;  %1934 = vmatmul.bf16.vlgmr.msra.gmra.mxu1 %v4805_v24  ;;  %v3534_v62 = vor.u32 %v3940_v46, %v3533_v45  ;;  %v3590_v12 = vor.u32 %v3954_v59, %v3589_v58  ;;  %v4948_v45 = vor.u32 %v3720_v25, %v2645_v22  ;;  %v3637_v58 = vld [vmem:[%s5969_s1 + $0x790] sm:$0xf]  ;;  %v3753_v22 = vld [vmem:[%s5969_s1 + $0xf4] sm:$0xf]  ;;  %v2791_v25 = vld [vmem:[%s5969_s1 + $0xf8] sm:$0xf0] }
  0x65   :  { %2002 = vmatpush.bf16.msrb.mxu1 %v3558_v2  ;;  %1953 = vmatmul.bf16.vlgmr.msra.gmra.mxu2 %v4816_v28  ;;  %v3525_v2 = vld [vmem:[%s5969_s1 + $0x6b0] sm:$0xf]  ;;  %v4950_v46 = vor.u32 %v3712_v26, %v2647_v27  ;;  %v2730_v27 = vor.u32 %v3737_v10, %v2727_v11 }
  0x66   :  { %2021 = vmatpush.bf16.msrb.mxu2 %v3622_v39  ;;  %v3956_v39 = vld [vmem:[%s5969_s1 + $0x744] sm:$0xf0]  ;;  %1972 = vmatmul.bf16.vlgmr.msra.gmra.mxu3 %v4818_v29 }
  0x67   :  { %2040 = vmatpush.bf16.msrb.mxu3 %v3686_v3  ;;  %v3598_v47 = vor.u32 %v3956_v39, %v3597_v38  ;;  %v3938_v3 = vld [vmem:[%s5969_s1 + $0x6b4] sm:$0xf0]  ;;  %v3573_v38 = vld [vmem:[%s5969_s1 + $0x710] sm:$0xf]  ;;  %v4935_v39 = vor.u32 %v3719_v7, %v2637_v4  ;;  %v3769_v4 = vld [vmem:[%s5969_s1 + $0x174] sm:$0xf] }
  0x68   :  { %1984 = vmatpush.bf16.msrb.mxu0 %v3486_v19  ;;  %v3952_v19 = vld [vmem:[%s5969_s1 + $0x724] sm:$0xf0]  ;;  %v3574_v59 = vor.u32 %v3950_v41, %v3573_v38  ;;  %v2855_v7 = vld [vmem:[%s5969_s1 + $0x178] sm:$0xf0]  ;;  %v2589_v38 = vld [vmem:[%s5970_s0 + $0x30] sm:$0xf] }
  0x69   :  { %2003 = vmatpush.bf16.msrb.mxu1 %v3550_v30  ;;  %v3526_v30 = vor.u32 %v3938_v3, %v3525_v2  ;;  %v3437_v2 = vld [vmem:[%s5969_s1 + $0x600] sm:$0xf]  ;;  %v3916_v3 = vld [vmem:[%s5969_s1 + $0x604] sm:$0xf0]  ;;  %v2858_v26 = vor.u32 %v3769_v4, %v2855_v7  ;;  %v3705_v41 = vld [vmem:[%s5970_s0 + $0x6c] sm:$0xf0] }
  0x6a   :  { %2022 = vmatpush.bf16.msrb.mxu2 %v3614_v15  ;;  %v3462_v15 = vor.u32 %v3922_v61, %v3461_v60  ;;  %v3966_v61 = vld [vmem:[%s5969_s1 + $0x794] sm:$0xf0]  ;;  %v3765_v4 = vld [vmem:[%s5969_s1 + $0x154] sm:$0xf]  ;;  %v2839_v7 = vld [vmem:[%s5969_s1 + $0x158] sm:$0xf0] }
  0x6b   :  { %2041 = vmatpush.bf16.msrb.mxu3 %v3678_v31  ;;  %v3654_v31 = vor.u32 %v3970_v17, %v3653_v16  ;;  %v3501_v16 = vld [vmem:[%s5969_s1 + $0x680] sm:$0xf]  ;;  %v3932_v17 = vld [vmem:[%s5969_s1 + $0x684] sm:$0xf0] }
  0x6c   :  { %1985 = vmatpush.bf16.msrb.mxu0 %v3478_v35  ;;  %v3454_v35 = vor.u32 %v3920_v21, %v3453_v20  ;;  %v3438_v20 = vor.u32 %v3916_v3, %v3437_v2  ;;  %v3964_v21 = vld [vmem:[%s5969_s1 + $0x784] sm:$0xf0]  ;;  %v3698_v2 = vld [vmem:[%s5970_s0 + $0x3c] sm:$0xf] }
  0x6d   :  { %2004 = vmatpush.bf16.msrb.mxu1 %v3542_v42  ;;  %v3445_v42 = vld [vmem:[%s5969_s1 + $0x610] sm:$0xf]  ;;  %v2599_v3 = vld [vmem:[%s5970_s0 + $0x78] sm:$0xf0] }
  0x6e   :  { %2023 = vmatpush.bf16.msrb.mxu2 %v3606_v34  ;;  %v3582_v34 = vor.u32 %v3952_v19, %v3581_v18  ;;  %v3629_v18 = vld [vmem:[%s5969_s1 + $0x780] sm:$0xf] }
  0x6f   :  { %2042 = vmatpush.bf16.msrb.mxu3 %v3670_v43  ;;  %v3918_v43 = vld [vmem:[%s5969_s1 + $0x614] sm:$0xf0] }
  0x70   :  { %1986 = vmatpush.bf16.msrb.mxu0 %v3470_v49  ;;  %v3646_v49 = vor.u32 %v3968_v37, %v3645_v36  ;;  %v3446_v60 = vor.u32 %v3918_v43, %v3445_v42  ;;  %v3502_v36 = vor.u32 %v3932_v17, %v3501_v16  ;;  %v3630_v37 = vor.u32 %v3964_v21, %v3629_v18  ;;  %v3697_v42 = vld [vmem:[%s5970_s0 + $0x34] sm:$0xf]  ;;  %v2903_v21 = vld [vmem:[%s5969_s1 + $0x1d8] sm:$0xf0] }
  0x71   :  { %2005 = vmatpush.bf16.msrb.mxu1 %v3534_v62  ;;  %v3565_v62 = vld [vmem:[%s5969_s1 + $0x700] sm:$0xf]  ;;  %v2591_v43 = vld [vmem:[%s5970_s0 + $0x70] sm:$0xf0]  ;;  %v5079_v17 = vor.u32 %v3705_v41, %v2589_v38  ;;  %v3779_v38 = vld [vmem:[%s5969_s1 + $0x1c4] sm:$0xf] }
  0x72   :  { %2024 = vmatpush.bf16.msrb.mxu2 %v3598_v47  ;;  %v3518_v47 = vor.u32 %v3936_v33, %v3517_v32  ;;  %v3767_v32 = vld [vmem:[%s5969_s1 + $0x164] sm:$0xf]  ;;  %v2847_v33 = vld [vmem:[%s5969_s1 + $0x168] sm:$0xf0]  ;;  %v3749_v16 = vld [vmem:[%s5969_s1 + $0xd4] sm:$0xf]  ;;  %v5081_v18 = vor.u32 %v3697_v42, %v2591_v43 }
  0x73   :  { %2043 = vmatpush.bf16.msrb.mxu3 %v3662_v63  ;;  %v3948_v63 = vld [vmem:[%s5969_s1 + $0x704] sm:$0xf0]  ;;  %1920 = vmatmul.bf16.gmra.mxu0 %v4935_v39  ;;  %v2895_v41 = vld [vmem:[%s5969_s1 + $0x1c8] sm:$0xf0] }
  0x74   :  { %1987 = vmatpush.bf16.msrb.mxu0 %v3462_v15  ;;  %1939 = vmatmul.bf16.gmra.mxu1 %v4937_v40  ;;  %v3638_v15 = vor.u32 %v3966_v61, %v3637_v58  ;;  %v3566_v19 = vor.u32 %v3948_v63, %v3565_v62  ;;  %v2911_v61 = vld [vmem:[%s5969_s1 + $0x1e8] sm:$0xf0]  ;;  %v2597_v62 = vld [vmem:[%s5970_s0 + $0x38] sm:$0xf] }
  0x75   :  { %2006 = vmatpush.bf16.msrb.mxu1 %v3526_v30  ;;  %1958 = vmatmul.bf16.gmra.mxu2 %v4948_v45  ;;  %v3785_v30 = vld [vmem:[%s5969_s1 + $0x1f4] sm:$0xf]  ;;  %v3706_v63 = vld [vmem:[%s5970_s0 + $0x74] sm:$0xf0] }
  0x76   :  { %2025 = vmatpush.bf16.msrb.mxu2 %v3590_v12  ;;  %1977 = vmatmul.bf16.gmra.mxu3 %v4950_v46  ;;  %v3510_v12 = vor.u32 %v3934_v55, %v3509_v52  ;;  %v3751_v52 = vld [vmem:[%s5969_s1 + $0xe4] sm:$0xf]  ;;  %v2850_v55 = vor.u32 %v3767_v32, %v2847_v33 }
  0x77   :  { %2044 = vmatpush.bf16.msrb.mxu3 %v3654_v31  ;;  %v2919_v31 = vld [vmem:[%s5969_s1 + $0x1f8] sm:$0xf0] }
  0x78   :  { %1988 = vmatpush.bf16.msrb.mxu0 %v3454_v35  ;;  %v2719_v35 = vld [vmem:[%s5969_s1 + $0x68] sm:$0xf0] }
  0x79   :  { %2007 = vmatpush.bf16.msrb.mxu1 %v3518_v47  ;;  %v2794_v47 = vor.u32 %v3753_v22, %v2791_v25  ;;  %v5092_v22 = vor.u32 %v3706_v63, %v2597_v62  ;;  %v5094_v25 = vor.u32 %v3698_v2, %v2599_v3  ;;  %v3777_v62 = vld [vmem:[%s5969_s1 + $0x1b4] sm:$0xf]  ;;  %v2887_v63 = vld [vmem:[%s5969_s1 + $0x1b8] sm:$0xf0] }
  0x7a   :  { %2026 = vmatpush.bf16.msrb.mxu2 %v3582_v34  ;;  %v3735_v34 = vld [vmem:[%s5969_s1 + $0x64] sm:$0xf] }
  0x7b   :  { %2045 = vmatpush.bf16.msrb.mxu3 %v3646_v49  ;;  %v2922_v49 = vor.u32 %v3785_v30, %v2919_v31  ;;  %v2722_v58 = vor.u32 %v3735_v34, %v2719_v35  ;;  %v3763_v30 = vld [vmem:[%s5969_s1 + $0x144] sm:$0xf]  ;;  %v2831_v31 = vld [vmem:[%s5969_s1 + $0x148] sm:$0xf0] }
  0x7c   :  { %1989 = vmatpush.bf16.msrb.mxu0 %v3446_v60  ;;  %v3783_v60 = vld [vmem:[%s5969_s1 + $0x1e4] sm:$0xf]  ;;  %v2703_v35 = vld [vmem:[%s5969_s1 + $0x48] sm:$0xf0]  ;;  %v2834_v42 = vor.u32 %v3763_v30, %v2831_v31 }
  0x7d   :  { %2008 = vmatpush.bf16.msrb.mxu1 %v3510_v12  ;;  %v2914_v11 = vor.u32 %v3783_v60, %v2911_v61  ;;  %v3733_v12 = vld [vmem:[%s5969_s1 + $0x54] sm:$0xf]  ;;  %v3731_v34 = vld [vmem:[%s5969_s1 + $0x44] sm:$0xf]  ;;  %v2759_v61 = vld [vmem:[%s5969_s1 + $0xb8] sm:$0xf0] }
  0x7e   :  { %2027 = vmatpush.bf16.msrb.mxu2 %v3574_v59  ;;  %v2783_v59 = vld [vmem:[%s5969_s1 + $0xe8] sm:$0xf0]  ;;  %v2706_v43 = vor.u32 %v3731_v34, %v2703_v35  ;;  %v3745_v60 = vld [vmem:[%s5969_s1 + $0xb4] sm:$0xf]  ;;  %v3775_v30 = vld [vmem:[%s5969_s1 + $0x1a4] sm:$0xf] }
  0x7f   :  { %2046 = vmatpush.bf16.msrb.mxu3 %v3638_v15  ;;  %v2786_v10 = vor.u32 %v3751_v52, %v2783_v59  ;;  %v2711_v15 = vld [vmem:[%s5969_s1 + $0x58] sm:$0xf0]  ;;  %v2879_v31 = vld [vmem:[%s5969_s1 + $0x1a8] sm:$0xf0] }
  0x80   :  { %1990 = vmatpush.bf16.msrb.mxu0 %v3438_v20  ;;  %v3781_v20 = vld [vmem:[%s5969_s1 + $0x1d4] sm:$0xf]  ;;  %v2695_v59 = vld [vmem:[%s5969_s1 + $0x38] sm:$0xf0] }
  0x81   :  { %2009 = vmatpush.bf16.msrb.mxu1 %v3502_v36  ;;  %v2906_v33 = vor.u32 %v3781_v20, %v2903_v21  ;;  %v3747_v36 = vld [vmem:[%s5969_s1 + $0xc4] sm:$0xf]  ;;  %v2687_v21 = vld [vmem:[%s5969_s1 + $0x28] sm:$0xf0]  ;;  %v3714_v34 = vld [vmem:[%s5970_s0 + $0xbc] sm:$0xf] }
  0x82   :  { %2028 = vmatpush.bf16.msrb.mxu2 %v3566_v19  ;;  %v2775_v19 = vld [vmem:[%s5969_s1 + $0xd8] sm:$0xf0]  ;;  %v3727_v20 = vld [vmem:[%s5969_s1 + $0x24] sm:$0xf] }
  0x83   :  { %2047 = vmatpush.bf16.msrb.mxu3 %v3630_v37  ;;  %v2778_v32 = vor.u32 %v3749_v16, %v2775_v19  ;;  %1991 = vmatmul.bf16.vlgmr.msrb.gmra.mxu0 %v5079_v17  ;;  %v2767_v37 = vld [vmem:[%s5969_s1 + $0xc8] sm:$0xf0]  ;;  %v2762_v16 = vor.u32 %v3745_v60, %v2759_v61  ;;  %v2890_v19 = vor.u32 %v3777_v62, %v2887_v63  ;;  %v2663_v35 = vld [vmem:[%s5970_s0 + $0xf8] sm:$0xf0]  ;;  %v3773_v60 = vld [vmem:[%s5969_s1 + $0x194] sm:$0xf] }
  0x84   :  { %2059 = vmatpush.bf16.msra.mxu0 %v2730_v27  ;;  %v2714_v27 = vor.u32 %v3733_v12, %v2711_v15  ;;  %2010 = vmatmul.bf16.vlgmr.msrb.gmra.mxu1 %v5081_v18  ;;  %v2770_v52 = vor.u32 %v3747_v36, %v2767_v37  ;;  %v3713_v12 = vld [vmem:[%s5970_s0 + $0xb4] sm:$0xf]  ;;  %v2690_v37 = vor.u32 %v3727_v20, %v2687_v21  ;;  %v2871_v61 = vld [vmem:[%s5969_s1 + $0x198] sm:$0xf0]  ;;  %v3771_v20 = vld [vmem:[%s5969_s1 + $0x184] sm:$0xf] }
  0x85   :  { %2078 = vmatpush.bf16.msra.mxu1 %v2794_v47  ;;  %2029 = vmatmul.bf16.vlgmr.msrb.gmra.mxu2 %v5092_v22  ;;  %v3761_v47 = vld [vmem:[%s5969_s1 + $0x134] sm:$0xf]  ;;  %v5226_v63 = vor.u32 %v3714_v34, %v2663_v35  ;;  %v2863_v21 = vld [vmem:[%s5969_s1 + $0x188] sm:$0xf0]  ;;  %v3047_v35 = vld [vmem:[%s5969_s1 + $0x2f8] sm:$0xf0] }
  0x86   :  { %2097 = vmatpush.bf16.msra.mxu2 %v2858_v26  ;;  %v2842_v26 = vor.u32 %v3765_v4, %v2839_v7  ;;  %2048 = vmatmul.bf16.vlgmr.msrb.gmra.mxu3 %v5094_v25  ;;  %v3759_v4 = vld [vmem:[%s5969_s1 + $0x124] sm:$0xf]  ;;  %v2815_v7 = vld [vmem:[%s5969_s1 + $0x128] sm:$0xf0]  ;;  %v2655_v15 = vld [vmem:[%s5970_s0 + $0xf0] sm:$0xf0] }
  0x87   :  { %2116 = vmatpush.bf16.msra.mxu3 %v2922_v49  ;;  %v2823_v49 = vld [vmem:[%s5969_s1 + $0x138] sm:$0xf0]  ;;  %v2818_v36 = vor.u32 %v3759_v4, %v2815_v7  ;;  %v2799_v7 = vld [vmem:[%s5969_s1 + $0x108] sm:$0xf0] }
  0x88   :  { %2060 = vmatpush.bf16.msra.mxu0 %v2722_v58  ;;  %v3729_v58 = vld [vmem:[%s5969_s1 + $0x34] sm:$0xf]  ;;  %v2826_v2 = vor.u32 %v3761_v47, %v2823_v49  ;;  %v2679_v49 = vld [vmem:[%s5969_s1 + $0x18] sm:$0xf0] }
  0x89   :  { %2079 = vmatpush.bf16.msra.mxu1 %v2786_v10  ;;  %v2698_v3 = vor.u32 %v3729_v58, %v2695_v59  ;;  %v2653_v10 = vld [vmem:[%s5970_s0 + $0xb0] sm:$0xf]  ;;  %v3725_v47 = vld [vmem:[%s5969_s1 + $0x14] sm:$0xf]  ;;  %v5213_v58 = vor.u32 %v3713_v12, %v2655_v15  ;;  %v2743_v59 = vld [vmem:[%s5969_s1 + $0x98] sm:$0xf0]  ;;  %v2874_v15 = vor.u32 %v3773_v60, %v2871_v61 }
  0x8a   :  { %2098 = vmatpush.bf16.msra.mxu2 %v2850_v55  ;;  %v2898_v55 = vor.u32 %v3779_v38, %v2895_v41  ;;  %v3757_v38 = vld [vmem:[%s5969_s1 + $0x114] sm:$0xf]  ;;  %v2807_v41 = vld [vmem:[%s5969_s1 + $0x118] sm:$0xf0]  ;;  %v2682_v4 = vor.u32 %v3725_v47, %v2679_v49  ;;  %v3831_v47 = vld [vmem:[%s5969_s1 + $0x364] sm:$0xf] }
  0x8b   :  { %2117 = vmatpush.bf16.msra.mxu3 %v2914_v11  ;;  %v3721_v11 = vld [vmem:[%s5970_s0 + $0xec] sm:$0xf0]  ;;  %v3103_v49 = vld [vmem:[%s5969_s1 + $0x368] sm:$0xf0]  ;;  %v3799_v60 = vld [vmem:[%s5969_s1 + $0x264] sm:$0xf] }
  0x8c   :  { %2061 = vmatpush.bf16.msra.mxu0 %v2714_v27  ;;  %v2751_v27 = vld [vmem:[%s5969_s1 + $0xa8] sm:$0xf0] }
  0x8d   :  { %2080 = vmatpush.bf16.msra.mxu1 %v2778_v32  ;;  %v2661_v32 = vld [vmem:[%s5970_s0 + $0xb8] sm:$0xf]  ;;  %v2975_v61 = vld [vmem:[%s5969_s1 + $0x268] sm:$0xf0] }
  0x8e   :  { %2099 = vmatpush.bf16.msra.mxu2 %v2842_v26  ;;  %v3743_v26 = vld [vmem:[%s5969_s1 + $0xa4] sm:$0xf] }
  0x8f   :  { %2118 = vmatpush.bf16.msra.mxu3 %v2906_v33  ;;  %v3722_v33 = vld [vmem:[%s5970_s0 + $0xf4] sm:$0xf0] }
  0x90   :  { %2062 = vmatpush.bf16.msra.mxu0 %v2706_v43  ;;  %v2882_v43 = vor.u32 %v3775_v30, %v2879_v31  ;;  %v5224_v62 = vor.u32 %v3722_v33, %v2661_v32  ;;  %v3801_v30 = vld [vmem:[%s5969_s1 + $0x274] sm:$0xf]  ;;  %v2983_v31 = vld [vmem:[%s5969_s1 + $0x278] sm:$0xf0] }
  0x91   :  { %2081 = vmatpush.bf16.msra.mxu1 %v2770_v52  ;;  %v3741_v52 = vld [vmem:[%s5969_s1 + $0x94] sm:$0xf] }
  0x92   :  { %2100 = vmatpush.bf16.msra.mxu2 %v2834_v42  ;;  %v2754_v42 = vor.u32 %v3743_v26, %v2751_v27  ;;  %v2746_v12 = vor.u32 %v3741_v52, %v2743_v59  ;;  %v3833_v26 = vld [vmem:[%s5969_s1 + $0x374] sm:$0xf]  ;;  %v3111_v27 = vld [vmem:[%s5969_s1 + $0x378] sm:$0xf0] }
  0x93   :  { %2119 = vmatpush.bf16.msra.mxu3 %v2898_v55  ;;  %v5211_v55 = vor.u32 %v3721_v11, %v2653_v10  ;;  %v3723_v10 = vld [vmem:[%s5969_s1 + $0x4] sm:$0xf]  ;;  %v2671_v11 = vld [vmem:[%s5969_s1 + $0x8] sm:$0xf0]  ;;  %v3817_v32 = vld [vmem:[%s5969_s1 + $0x2f4] sm:$0xf] }
  0x94   :  { %2063 = vmatpush.bf16.msra.mxu0 %v2698_v3  ;;  %v2810_v3 = vor.u32 %v3757_v38, %v2807_v41  ;;  %2015 = vmatmul.bf16.gmra.mxu1 %v5213_v58  ;;  %v2674_v34 = vor.u32 %v3723_v10, %v2671_v11  ;;  %v2866_v41 = vor.u32 %v3771_v20, %v2863_v21  ;;  %v3797_v20 = vld [vmem:[%s5969_s1 + $0x254] sm:$0xf]  ;;  %v2967_v21 = vld [vmem:[%s5969_s1 + $0x258] sm:$0xf0] }
  0x95   :  { %2082 = vmatpush.bf16.msra.mxu1 %v2762_v16  ;;  %v3739_v16 = vld [vmem:[%s5969_s1 + $0x84] sm:$0xf]  ;;  %1996 = vmatmul.bf16.gmra.mxu0 %v5211_v55  ;;  %v3050_v52 = vor.u32 %v3817_v32, %v3047_v35  ;;  %v3106_v10 = vor.u32 %v3831_v47, %v3103_v49  ;;  %v2978_v11 = vor.u32 %v3799_v60, %v2975_v61  ;;  %v3159_v32 = vld [vmem:[%s5969_s1 + $0x3d8] sm:$0xf0]  ;;  %v2959_v47 = vld [vmem:[%s5969_s1 + $0x248] sm:$0xf0] }
  0x96   :  { %2101 = vmatpush.bf16.msra.mxu2 %v2826_v2  ;;  %v3755_v2 = vld [vmem:[%s5969_s1 + $0x104] sm:$0xf]  ;;  %2053 = vmatmul.bf16.gmra.mxu3 %v5226_v63  ;;  %v3151_v60 = vld [vmem:[%s5969_s1 + $0x3c8] sm:$0xf0]  ;;  %v3825_v61 = vld [vmem:[%s5969_s1 + $0x334] sm:$0xf] }
  0x97   :  { %2120 = vmatpush.bf16.msra.mxu3 %v2890_v19  ;;  %v2735_v19 = vld [vmem:[%s5969_s1 + $0x88] sm:$0xf0]  ;;  %2034 = vmatmul.bf16.gmra.mxu2 %v5224_v62  ;;  %v2802_v33 = vor.u32 %v3755_v2, %v2799_v7  ;;  %v3815_v2 = vld [vmem:[%s5969_s1 + $0x2e4] sm:$0xf] }
  0x98   :  { %2064 = vmatpush.bf16.msra.mxu0 %v2690_v37  ;;  %v3175_v37 = vld [vmem:[%s5969_s1 + $0x3f8] sm:$0xf0]  ;;  %v2738_v38 = vor.u32 %v3739_v16, %v2735_v19  ;;  %v3167_v7 = vld [vmem:[%s5969_s1 + $0x3e8] sm:$0xf0]  ;;  %v3829_v16 = vld [vmem:[%s5969_s1 + $0x354] sm:$0xf] }
  0x99   :  { %2083 = vmatpush.bf16.msra.mxu1 %v2754_v42  ;;  %v3114_v42 = vor.u32 %v3833_v26, %v3111_v27  ;;  %v3095_v19 = vld [vmem:[%s5969_s1 + $0x358] sm:$0xf0]  ;;  %v3813_v26 = vld [vmem:[%s5969_s1 + $0x2d4] sm:$0xf]  ;;  %v3811_v49 = vld [vmem:[%s5969_s1 + $0x2c4] sm:$0xf] }
  0x9a   :  { %2102 = vmatpush.bf16.msra.mxu2 %v2818_v36  ;;  %v3849_v36 = vld [vmem:[%s5969_s1 + $0x3f4] sm:$0xf]  ;;  %v3098_v35 = vor.u32 %v3829_v16, %v3095_v19  ;;  %v3015_v16 = vld [vmem:[%s5969_s1 + $0x2b8] sm:$0xf0] }
  0x9b   :  { %2121 = vmatpush.bf16.msra.mxu3 %v2882_v43  ;;  %v2986_v43 = vor.u32 %v3801_v30, %v2983_v31  ;;  %v3178_v59 = vor.u32 %v3849_v36, %v3175_v37  ;;  %v3031_v30 = vld [vmem:[%s5969_s1 + $0x2d8] sm:$0xf0]  ;;  %v3845_v31 = vld [vmem:[%s5969_s1 + $0x3d4] sm:$0xf]  ;;  %v2970_v36 = vor.u32 %v3797_v20, %v2967_v21  ;;  %v3827_v37 = vld [vmem:[%s5969_s1 + $0x344] sm:$0xf] }
  0x9c   :  { %2065 = vmatpush.bf16.msra.mxu0 %v2682_v4  ;;  %v3847_v4 = vld [vmem:[%s5969_s1 + $0x3e4] sm:$0xf]  ;;  %v3841_v19 = vld [vmem:[%s5969_s1 + $0x3b4] sm:$0xf]  ;;  %v3143_v20 = vld [vmem:[%s5969_s1 + $0x3b8] sm:$0xf0] }
  0x9d   :  { %2084 = vmatpush.bf16.msra.mxu1 %v2746_v12 }
  0x9e   :  { %2103 = vmatpush.bf16.msra.mxu2 %v2810_v3  ;;  %v3039_v3 = vld [vmem:[%s5969_s1 + $0x2e8] sm:$0xf0] }
  0x9f   :  { %2122 = vmatpush.bf16.msra.mxu3 %v2874_v15  ;;  %v3042_v12 = vor.u32 %v3815_v2, %v3039_v3  ;;  %v3170_v15 = vor.u32 %v3847_v4, %v3167_v7  ;;  %v3079_v2 = vld [vmem:[%s5969_s1 + $0x338] sm:$0xf0] }
  0xa0   :  { %2066 = vmatpush.bf16.msra.mxu0 %v2674_v34  ;;  %v1764_v27 = vpop.f32.mrf.mxu0 }
  0xa1   :  { %2085 = vmatpush.bf16.msra.mxu1 %v2738_v38  ;;  %v3087_v38 = vld [vmem:[%s5969_s1 + $0x348] sm:$0xf0] }
  0xa2   :  { %2104 = vmatpush.bf16.msra.mxu2 %v2802_v33  ;;  %v1783_v33 = vpop.f32.mrf.mxu1 }
  0xa3   :  { %2123 = vmatpush.bf16.msra.mxu3 %v2866_v41  ;;  %v1784_v34 = vadd.f32 %v1783_v33, %v1764_v27  ;;  %v3034_v41 = vor.u32 %v3813_v26, %v3031_v30  ;;  %v3082_v26 = vor.u32 %v3825_v61, %v3079_v2  ;;  %v3071_v33 = vld [vmem:[%s5969_s1 + $0x328] sm:$0xf0]  ;;  %v3789_v61 = vld [vmem:[%s5969_s1 + $0x214] sm:$0xf]  ;;  %v2935_v2 = vld [vmem:[%s5969_s1 + $0x218] sm:$0xf0] }
  0xa4   :  { %2135 = vmatpush.bf16.msrb.mxu0 %v2986_v43  ;;  %v3795_v43 = vld [vmem:[%s5969_s1 + $0x244] sm:$0xf]  ;;  %2086 = vmatmul.bf16.vlgmr.msra.gmra.mxu1 %v4256_v53 }
  0xa5   :  { %2154 = vmatpush.bf16.msrb.mxu1 %v3050_v52  ;;  %2067 = vmatmul.bf16.vlgmr.msra.gmra.mxu0 %v4245_v48  ;;  %v3023_v52 = vld [vmem:[%s5969_s1 + $0x2c8] sm:$0xf0]  ;;  %v3090_v48 = vor.u32 %v3827_v37, %v3087_v38  ;;  %v2962_v53 = vor.u32 %v3795_v43, %v2959_v47  ;;  %v3807_v38 = vld [vmem:[%s5969_s1 + $0x2a4] sm:$0xf] }
  0xa6   :  { %2173 = vmatpush.bf16.msrb.mxu2 %v3114_v42  ;;  %v3162_v42 = vor.u32 %v3845_v31, %v3159_v32  ;;  %2124 = vmatmul.bf16.vlgmr.msra.gmra.mxu3 %v4266_v57  ;;  %v3026_v4 = vor.u32 %v3811_v49, %v3023_v52  ;;  %v2951_v57 = vld [vmem:[%s5969_s1 + $0x238] sm:$0xf0]  ;;  %v3823_v32 = vld [vmem:[%s5969_s1 + $0x324] sm:$0xf]  ;;  %v2943_v37 = vld [vmem:[%s5969_s1 + $0x228] sm:$0xf0] }
  0xa7   :  { %2192 = vmatpush.bf16.msrb.mxu3 %v3178_v59  ;;  %v3843_v59 = vld [vmem:[%s5969_s1 + $0x3c4] sm:$0xf]  ;;  %2105 = vmatmul.bf16.vlgmr.msra.gmra.mxu2 %v4258_v54  ;;  %v3793_v54 = vld [vmem:[%s5969_s1 + $0x234] sm:$0xf]  ;;  %v3135_v43 = vld [vmem:[%s5969_s1 + $0x3a8] sm:$0xf0]  ;;  %v3074_v47 = vor.u32 %v3823_v32, %v3071_v33 }
  0xa8   :  { %2136 = vmatpush.bf16.msrb.mxu0 %v2978_v11  ;;  %v1802_v3 = vpop.f32.mrf.mxu2  ;;  %v3154_v7 = vor.u32 %v3843_v59, %v3151_v60  ;;  %v2954_v31 = vor.u32 %v3793_v54, %v2951_v57  ;;  %v3821_v52 = vld [vmem:[%s5969_s1 + $0x314] sm:$0xf]  ;;  %v3063_v59 = vld [vmem:[%s5969_s1 + $0x318] sm:$0xf0] }
  0xa9   :  { %2155 = vmatpush.bf16.msrb.mxu1 %v3042_v12  ;;  %v1803_v11 = vadd.f32 %v1802_v3, %v1784_v34  ;;  %v1821_v12 = vpop.f32.mrf.mxu3  ;;  %v3805_v3 = vld [vmem:[%s5969_s1 + $0x294] sm:$0xf]  ;;  %v2999_v57 = vld [vmem:[%s5969_s1 + $0x298] sm:$0xf0] }
  0xaa   :  { %2174 = vmatpush.bf16.msrb.mxu2 %v3106_v10  ;;  %v3809_v10 = vld [vmem:[%s5969_s1 + $0x2b4] sm:$0xf]  ;;  %v1785_v21 = vpop.f32.mrf.mxu1  ;;  %v3002_v32 = vor.u32 %v3805_v3, %v2999_v57 }
  0xab   :  { %2193 = vmatpush.bf16.msrb.mxu3 %v3170_v15  ;;  %v1766_v15 = vpop.f32.mrf.mxu0  ;;  %v5380_v27 = vadd.f32 %v1821_v12, %v1803_v11  ;;  %v3018_v34 = vor.u32 %v3809_v10, %v3015_v16  ;;  %v3837_v10 = vld [vmem:[%s5969_s1 + $0x394] sm:$0xf]  ;;  %v3127_v11 = vld [vmem:[%s5969_s1 + $0x398] sm:$0xf0]  ;;  %v3819_v16 = vld [vmem:[%s5969_s1 + $0x304] sm:$0xf] }
  0xac   :  { %2137 = vmatpush.bf16.msrb.mxu0 %v2970_v36  ;;  %v1786_v30 = vadd.f32 %v1785_v21, %v1766_v15  ;;  %v3791_v36 = vld [vmem:[%s5969_s1 + $0x224] sm:$0xf]  ;;  %v3066_v15 = vor.u32 %v3821_v52, %v3063_v59  ;;  %v2938_v21 = vor.u32 %v3789_v61, %v2935_v2  ;;  %v3130_v33 = vor.u32 %v3837_v10, %v3127_v11 }
  0xad   :  { %2156 = vmatpush.bf16.msrb.mxu1 %v3034_v41  ;;  %v3007_v41 = vld [vmem:[%s5969_s1 + $0x2a8] sm:$0xf0]  ;;  %v2946_v49 = vor.u32 %v3791_v36, %v2943_v37  ;;  %v3835_v36 = vld [vmem:[%s5969_s1 + $0x384] sm:$0xf] }
  0xae   :  { %2175 = vmatpush.bf16.msrb.mxu2 %v3098_v35  ;;  %v3146_v35 = vor.u32 %v3841_v19, %v3143_v20  ;;  %v3119_v37 = vld [vmem:[%s5969_s1 + $0x388] sm:$0xf0]  ;;  %v3863_v11 = vld [vmem:[%s5969_s1 + $0x464] sm:$0xf] }
  0xaf   :  { %2194 = vmatpush.bf16.msrb.mxu3 %v3162_v42  ;;  %v3839_v42 = vld [vmem:[%s5969_s1 + $0x3a4] sm:$0xf] }
  0xb0   :  { %2138 = vmatpush.bf16.msrb.mxu0 %v2962_v53  ;;  %v1804_v60 = vpop.f32.mrf.mxu2  ;;  %v3138_v53 = vor.u32 %v3839_v42, %v3135_v43  ;;  %v3881_v42 = vld [vmem:[%s5969_s1 + $0x4f4] sm:$0xf] }
  0xb1   :  { %2157 = vmatpush.bf16.msrb.mxu1 %v3026_v4  ;;  %v1805_v4 = vadd.f32 %v1804_v60, %v1786_v30  ;;  %v3787_v30 = vld [vmem:[%s5969_s1 + $0x204] sm:$0xf]  ;;  %v3122_v60 = vor.u32 %v3835_v36, %v3119_v37  ;;  %v3351_v36 = vld [vmem:[%s5969_s1 + $0x558] sm:$0xf0] }
  0xb2   :  { %2176 = vmatpush.bf16.msrb.mxu2 %v3090_v48  ;;  %v3010_v48 = vor.u32 %v3807_v38, %v3007_v41  ;;  %v1788_v12 = vpop.f32.mrf.mxu1  ;;  %v3897_v38 = vld [vmem:[%s5969_s1 + $0x574] sm:$0xf]  ;;  %v3367_v41 = vld [vmem:[%s5969_s1 + $0x578] sm:$0xf0] }
  0xb3   :  { %2195 = vmatpush.bf16.msrb.mxu3 %v3154_v7  ;;  %v1823_v7 = vpop.f32.mrf.mxu3  ;;  %v1769_v54 = vpop.f32.mrf.mxu0  ;;  %v3370_v2 = vor.u32 %v3897_v38, %v3367_v41  ;;  %v3861_v38 = vld [vmem:[%s5969_s1 + $0x454] sm:$0xf]  ;;  %v3223_v41 = vld [vmem:[%s5969_s1 + $0x458] sm:$0xf0] }
  0xb4   :  { %2139 = vmatpush.bf16.msrb.mxu0 %v2954_v31  ;;  %v5433_v19 = vadd.f32 %v1823_v7, %v1805_v4  ;;  %v1789_v20 = vadd.f32 %v1788_v12, %v1769_v54  ;;  %v2927_v31 = vld [vmem:[%s5969_s1 + $0x208] sm:$0xf0]  ;;  %2091 = vmatmul.bf16.gmra.mxu1 %v4388_v50  ;;  %v3239_v50 = vld [vmem:[%s5969_s1 + $0x478] sm:$0xf0]  ;;  %v3895_v4 = vld [vmem:[%s5969_s1 + $0x564] sm:$0xf] }
  0xb5   :  { %2158 = vmatpush.bf16.msrb.mxu1 %v3018_v34  ;;  %v3803_v34 = vld [vmem:[%s5969_s1 + $0x284] sm:$0xf]  ;;  %2072 = vmatmul.bf16.gmra.mxu0 %v4377_v44  ;;  %v3865_v44 = vld [vmem:[%s5969_s1 + $0x474] sm:$0xf]  ;;  %v3359_v7 = vld [vmem:[%s5969_s1 + $0x568] sm:$0xf0] }
  0xb6   :  { %2177 = vmatpush.bf16.msrb.mxu2 %v3082_v26  ;;  %v3055_v26 = vld [vmem:[%s5969_s1 + $0x308] sm:$0xf0]  ;;  %2129 = vmatmul.bf16.gmra.mxu3 %v4398_v56  ;;  %v3913_v56 = vld [vmem:[%s5969_s1 + $0x5f4] sm:$0xf]  ;;  %v3242_v3 = vor.u32 %v3865_v44, %v3239_v50 }
  0xb7   :  { %2196 = vmatpush.bf16.msrb.mxu3 %v3146_v35  ;;  %v2991_v35 = vld [vmem:[%s5969_s1 + $0x288] sm:$0xf0]  ;;  %2110 = vmatmul.bf16.gmra.mxu2 %v4390_v51  ;;  %v3058_v43 = vor.u32 %v3819_v16, %v3055_v26  ;;  %v3303_v51 = vld [vmem:[%s5969_s1 + $0x4f8] sm:$0xf0]  ;;  %v3911_v26 = vld [vmem:[%s5969_s1 + $0x5e4] sm:$0xf] }
  0xb8   :  { %2140 = vmatpush.bf16.msrb.mxu0 %v2946_v49  ;;  %v3431_v49 = vld [vmem:[%s5969_s1 + $0x5f8] sm:$0xf0]  ;;  %v1807_v52 = vpop.f32.mrf.mxu2  ;;  %v2994_v59 = vor.u32 %v3803_v34, %v2991_v35  ;;  %v3306_v57 = vor.u32 %v3881_v42, %v3303_v51  ;;  %v3231_v12 = vld [vmem:[%s5969_s1 + $0x468] sm:$0xf0]  ;;  %v3893_v35 = vld [vmem:[%s5969_s1 + $0x554] sm:$0xf] }
  0xb9   :  { %2159 = vmatpush.bf16.msrb.mxu1 %v3010_v48  ;;  %v1808_v48 = vadd.f32 %v1807_v52, %v1789_v20  ;;  %v3434_v10 = vor.u32 %v3913_v56, %v3431_v49  ;;  %v3877_v44 = vld [vmem:[%s5969_s1 + $0x4d4] sm:$0xf]  ;;  %v3415_v51 = vld [vmem:[%s5969_s1 + $0x5d8] sm:$0xf0] }
  0xba   :  { %2178 = vmatpush.bf16.msrb.mxu2 %v3074_v47  ;;  %v2930_v47 = vor.u32 %v3787_v30, %v2927_v31  ;;  %v1790_v54 = vpop.f32.mrf.mxu1  ;;  %v3423_v30 = vld [vmem:[%s5969_s1 + $0x5e8] sm:$0xf0]  ;;  %v3362_v31 = vor.u32 %v3895_v4, %v3359_v7  ;;  %v3859_v4 = vld [vmem:[%s5969_s1 + $0x444] sm:$0xf] }
  0xbb   :  { %2197 = vmatpush.bf16.msrb.mxu3 %v3138_v53  ;;  %v1826_v53 = vpop.f32.mrf.mxu3  ;;  %v1771_v61 = vpop.f32.mrf.mxu0  ;;  %v3426_v34 = vor.u32 %v3911_v26, %v3423_v30  ;;  %v3875_v7 = vld [vmem:[%s5969_s1 + $0x4c4] sm:$0xf]  ;;  %v3873_v26 = vld [vmem:[%s5969_s1 + $0x4b4] sm:$0xf] }
  0xbc   :  { %2141 = vmatpush.bf16.msrb.mxu0 %v2938_v21  ;;  %v5499_v16 = vadd.f32 %v1826_v53, %v1808_v48  ;;  %v1791_v20 = vadd.f32 %v1790_v54, %v1771_v61  ;;  %v3295_v21 = vld [vmem:[%s5969_s1 + $0x4e8] sm:$0xf0]  ;;  %v3226_v48 = vor.u32 %v3861_v38, %v3223_v41  ;;  %v3891_v53 = vld [vmem:[%s5969_s1 + $0x544] sm:$0xf] }
  0xbd   :  { %2160 = vmatpush.bf16.msrb.mxu1 %v3002_v32  ;;  %v3234_v32 = vor.u32 %v3863_v11, %v3231_v12  ;;  %v3343_v61 = vld [vmem:[%s5969_s1 + $0x548] sm:$0xf0]  ;;  %v3889_v12 = vld [vmem:[%s5969_s1 + $0x534] sm:$0xf] }
  0xbe   :  { %2179 = vmatpush.bf16.msrb.mxu2 %v3066_v15  ;;  %v3879_v15 = vld [vmem:[%s5969_s1 + $0x4e4] sm:$0xf]  ;;  %v3407_v11 = vld [vmem:[%s5969_s1 + $0x5c8] sm:$0xf0] }
  0xbf   :  { %2198 = vmatpush.bf16.msrb.mxu3 %v3130_v33  ;;  %v3298_v33 = vor.u32 %v3879_v15, %v3295_v21  ;;  %v3335_v15 = vld [vmem:[%s5969_s1 + $0x538] sm:$0xf0] }
  0xc0   :  { %2142 = vmatpush.bf16.msrb.mxu0 %v2930_v47  ;;  %v1809_v37 = vpop.f32.mrf.mxu2  ;;  %v3909_v47 = vld [vmem:[%s5969_s1 + $0x5d4] sm:$0xf]  ;;  %v3338_v41 = vor.u32 %v3889_v12, %v3335_v15  ;;  %v3383_v15 = vld [vmem:[%s5969_s1 + $0x598] sm:$0xf0] }
  0xc1   :  { %2161 = vmatpush.bf16.msrb.mxu1 %v2994_v59  ;;  %v1810_v50 = vadd.f32 %v1809_v37, %v1791_v20  ;;  %v3901_v12 = vld [vmem:[%s5969_s1 + $0x594] sm:$0xf] }
  0xc2   :  { %2180 = vmatpush.bf16.msrb.mxu2 %v3058_v43  ;;  %v3287_v43 = vld [vmem:[%s5969_s1 + $0x4d8] sm:$0xf0]  ;;  %v1859_v49 = vpop.f32.mrf.mxu1 }
  0xc3   :  { %2199 = vmatpush.bf16.msrb.mxu3 %v3122_v60  ;;  %v1828_v42 = vpop.f32.mrf.mxu3  ;;  %v1840_v56 = vpop.f32.mrf.mxu0  ;;  %v3354_v60 = vor.u32 %v3893_v35, %v3351_v36 }
  0xc4   :  { %2211 = vmatpush.bf16.msra.mxu0 %v3242_v3  ;;  %v5534_v52 = vadd.f32 %v1828_v42, %v1810_v50  ;;  %v1841_v59 = vadd.f32 %v1840_v56, %v5380_v27  ;;  %v3418_v3 = vor.u32 %v3909_v47, %v3415_v51  ;;  %v3215_v27 = vld [vmem:[%s5969_s1 + $0x448] sm:$0xf0]  ;;  %2162 = vmatmul.bf16.vlgmr.msrb.gmra.mxu1 %v4535_v1  ;;  %v3887_v50 = vld [vmem:[%s5969_s1 + $0x524] sm:$0xf] }
  0xc5   :  { %2230 = vmatpush.bf16.msra.mxu1 %v3306_v57  ;;  %2143 = vmatmul.bf16.vlgmr.msrb.gmra.mxu0 %v4533_v0  ;;  %v3279_v57 = vld [vmem:[%s5969_s1 + $0x4c8] sm:$0xf0]  ;;  %v3346_v0 = vor.u32 %v3891_v53, %v3343_v61  ;;  %v3218_v1 = vor.u32 %v3859_v4, %v3215_v27  ;;  %v3319_v4 = vld [vmem:[%s5969_s1 + $0x518] sm:$0xf0] }
  0xc6   :  { %2249 = vmatpush.bf16.msra.mxu2 %v3370_v2  ;;  %v3290_v2 = vor.u32 %v3877_v44, %v3287_v43  ;;  %v1860_v54 = vadd.f32 %v1859_v49, %v1841_v59  ;;  %2200 = vmatmul.bf16.vlgmr.msrb.gmra.mxu3 %v4548_v6  ;;  %v3282_v20 = vor.u32 %v3875_v7, %v3279_v57  ;;  %v3207_v6 = vld [vmem:[%s5969_s1 + $0x438] sm:$0xf0]  ;;  %v3327_v42 = vld [vmem:[%s5969_s1 + $0x528] sm:$0xf0]  ;;  %v3871_v49 = vld [vmem:[%s5969_s1 + $0x4a4] sm:$0xf] }
  0xc7   :  { %2268 = vmatpush.bf16.msra.mxu3 %v3434_v10  ;;  %v3907_v10 = vld [vmem:[%s5969_s1 + $0x5c4] sm:$0xf]  ;;  %2181 = vmatmul.bf16.vlgmr.msrb.gmra.mxu2 %v4546_v5  ;;  %v3857_v5 = vld [vmem:[%s5969_s1 + $0x434] sm:$0xf]  ;;  %v3199_v56 = vld [vmem:[%s5969_s1 + $0x428] sm:$0xf0]  ;;  %v3330_v61 = vor.u32 %v3887_v50, %v3327_v42 }
  0xc8   :  { %2212 = vmatpush.bf16.msra.mxu0 %v3234_v32  ;;  %v3410_v21 = vor.u32 %v3907_v10, %v3407_v11  ;;  %v1878_v30 = vpop.f32.mrf.mxu2  ;;  %v3271_v32 = vld [vmem:[%s5969_s1 + $0x4b8] sm:$0xf0]  ;;  %v3210_v44 = vor.u32 %v3857_v5, %v3207_v6  ;;  %v3391_v53 = vld [vmem:[%s5969_s1 + $0x5a8] sm:$0xf0]  ;;  %v3869_v10 = vld [vmem:[%s5969_s1 + $0x494] sm:$0xf] }
  0xc9   :  { %2231 = vmatpush.bf16.msra.mxu1 %v3298_v33  ;;  %v3905_v33 = vld [vmem:[%s5969_s1 + $0x5b4] sm:$0xf]  ;;  %v1879_v35 = vadd.f32 %v1878_v30, %v1860_v54  ;;  %v3274_v47 = vor.u32 %v3873_v26, %v3271_v32  ;;  %v3191_v57 = vld [vmem:[%s5969_s1 + $0x418] sm:$0xf0]  ;;  %v3883_v6 = vld [vmem:[%s5969_s1 + $0x504] sm:$0xf] }
  0xca   :  { %2250 = vmatpush.bf16.msra.mxu2 %v3362_v31  ;;  %v1861_v37 = vpop.f32.mrf.mxu1  ;;  %v3853_v54 = vld [vmem:[%s5969_s1 + $0x414] sm:$0xf]  ;;  %v3311_v32 = vld [vmem:[%s5969_s1 + $0x508] sm:$0xf0] }
  0xcb   :  { %2269 = vmatpush.bf16.msra.mxu3 %v3426_v34  ;;  %v1897_v31 = vpop.f32.mrf.mxu3  ;;  %v3399_v34 = vld [vmem:[%s5969_s1 + $0x5b8] sm:$0xf0]  ;;  %v1842_v36 = vpop.f32.mrf.mxu0  ;;  %v3375_v50 = vld [vmem:[%s5969_s1 + $0x588] sm:$0xf0]  ;;  %v3961_v42 = vld [vmem:[%s5969_s1 + $0x774] sm:$0xf] }
  0xcc   :  { %2213 = vmatpush.bf16.msra.mxu0 %v3226_v48  ;;  %v1843_v38 = vadd.f32 %v1842_v36, %v5433_v19  ;;  %v5596_v43 = vadd.f32 %v1897_v31, %v1879_v35  ;;  %v3402_v51 = vor.u32 %v3905_v33, %v3399_v34  ;;  %v3855_v19 = vld [vmem:[%s5969_s1 + $0x424] sm:$0xf]  ;;  %v3194_v31 = vor.u32 %v3853_v54, %v3191_v57  ;;  %v3183_v34 = vld [vmem:[%s5969_s1 + $0x408] sm:$0xf0] }
  0xcd   :  { %2232 = vmatpush.bf16.msra.mxu1 %v3290_v2  ;;  %v3903_v48 = vld [vmem:[%s5969_s1 + $0x5a4] sm:$0xf]  ;;  %v3202_v2 = vor.u32 %v3855_v19, %v3199_v56  ;;  %v3386_v36 = vor.u32 %v3901_v12, %v3383_v15  ;;  %v3314_v19 = vor.u32 %v3883_v6, %v3311_v32  ;;  %v3551_v15 = vld [vmem:[%s5969_s1 + $0x6e8] sm:$0xf0]  ;;  %v3957_v32 = vld [vmem:[%s5969_s1 + $0x754] sm:$0xf] }
  0xce   :  { %2251 = vmatpush.bf16.msra.mxu2 %v3354_v60  ;;  %v1862_v59 = vadd.f32 %v1861_v37, %v1843_v38  ;;  %v3263_v60 = vld [vmem:[%s5969_s1 + $0x4a8] sm:$0xf0]  ;;  %v3394_v7 = vor.u32 %v3903_v48, %v3391_v53  ;;  %v3851_v33 = vld [vmem:[%s5969_s1 + $0x404] sm:$0xf] }
  0xcf   :  { %2270 = vmatpush.bf16.msra.mxu3 %v3418_v3  ;;  %v3885_v3 = vld [vmem:[%s5969_s1 + $0x514] sm:$0xf]  ;;  %v3266_v27 = vor.u32 %v3871_v49, %v3263_v60  ;;  %v3867_v37 = vld [vmem:[%s5969_s1 + $0x484] sm:$0xf]  ;;  %v3247_v38 = vld [vmem:[%s5969_s1 + $0x488] sm:$0xf0]  ;;  %v3186_v56 = vor.u32 %v3851_v33, %v3183_v34 }
  0xd0   :  { %2214 = vmatpush.bf16.msra.mxu0 %v3218_v1  ;;  %v1880_v11 = vpop.f32.mrf.mxu2  ;;  %v3255_v1 = vld [vmem:[%s5969_s1 + $0x498] sm:$0xf0]  ;;  %v3322_v30 = vor.u32 %v3885_v3, %v3319_v4  ;;  %v3959_v3 = vld [vmem:[%s5969_s1 + $0x764] sm:$0xf]  ;;  %v3615_v4 = vld [vmem:[%s5969_s1 + $0x768] sm:$0xf0] }
  0xd1   :  { %2233 = vmatpush.bf16.msra.mxu1 %v3282_v20  ;;  %v1881_v20 = vadd.f32 %v1880_v11, %v1862_v59  ;;  %v3687_v49 = vld [vmem:[%s5969_s1 + $0x7f8] sm:$0xf0]  ;;  %v3250_v59 = vor.u32 %v3867_v37, %v3247_v38  ;;  %v3927_v11 = vld [vmem:[%s5969_s1 + $0x664] sm:$0xf]  ;;  %v3925_v34 = vld [vmem:[%s5969_s1 + $0x654] sm:$0xf] }
  0xd2   :  { %2252 = vmatpush.bf16.msra.mxu2 %v3346_v0  ;;  %v1864_v5 = vpop.f32.mrf.mxu1  ;;  %v3607_v33 = vld [vmem:[%s5969_s1 + $0x758] sm:$0xf0] }
  0xd3   :  { %2271 = vmatpush.bf16.msra.mxu3 %v3410_v21  ;;  %v1899_v0 = vpop.f32.mrf.mxu3  ;;  %v1845_v21 = vpop.f32.mrf.mxu0 }
  0xd4   :  { %2215 = vmatpush.bf16.msra.mxu0 %v3210_v44  ;;  %v1846_v26 = vadd.f32 %v1845_v21, %v5499_v16  ;;  %v5653_v35 = vadd.f32 %v1899_v0, %v1881_v20  ;;  %v3258_v16 = vor.u32 %v3869_v10, %v3255_v1  ;;  %2167 = vmatmul.bf16.gmra.mxu1 %v4667_v9  ;;  %v3495_v9 = vld [vmem:[%s5969_s1 + $0x678] sm:$0xf0]  ;;  %v3487_v0 = vld [vmem:[%s5969_s1 + $0x668] sm:$0xf0]  ;;  %v3943_v1 = vld [vmem:[%s5969_s1 + $0x6e4] sm:$0xf] }
  0xd5   :  { %2234 = vmatpush.bf16.msra.mxu1 %v3274_v47  ;;  %2148 = vmatmul.bf16.gmra.mxu0 %v4665_v8  ;;  %v3623_v47 = vld [vmem:[%s5969_s1 + $0x778] sm:$0xf0]  ;;  %v3929_v8 = vld [vmem:[%s5969_s1 + $0x674] sm:$0xf]  ;;  %v3975_v20 = vld [vmem:[%s5969_s1 + $0x7e4] sm:$0xf] }
  0xd6   :  { %2253 = vmatpush.bf16.msra.mxu2 %v3338_v41  ;;  %v3899_v41 = vld [vmem:[%s5969_s1 + $0x584] sm:$0xf]  ;;  %v1865_v44 = vadd.f32 %v1864_v5, %v1846_v26  ;;  %2205 = vmatmul.bf16.gmra.mxu3 %v4680_v14  ;;  %v3977_v14 = vld [vmem:[%s5969_s1 + $0x7f4] sm:$0xf]  ;;  %v3679_v21 = vld [vmem:[%s5969_s1 + $0x7e8] sm:$0xf0]  ;;  %v3490_v26 = vor.u32 %v3927_v11, %v3487_v0 }
  0xd7   :  { %2272 = vmatpush.bf16.msra.mxu3 %v3402_v51  ;;  %2186 = vmatmul.bf16.gmra.mxu2 %v4678_v13  ;;  %v3945_v51 = vld [vmem:[%s5969_s1 + $0x6f4] sm:$0xf]  ;;  %v3559_v13 = vld [vmem:[%s5969_s1 + $0x6f8] sm:$0xf0]  ;;  %v3378_v60 = vor.u32 %v3899_v41, %v3375_v50  ;;  %v3690_v10 = vor.u32 %v3977_v14, %v3687_v49 }
  0xd8   :  { %2216 = vmatpush.bf16.msra.mxu0 %v3202_v2  ;;  %v1883_v48 = vpop.f32.mrf.mxu2  ;;  %v3498_v2 = vor.u32 %v3929_v8, %v3495_v9  ;;  %v3562_v57 = vor.u32 %v3945_v51, %v3559_v13  ;;  %v3543_v41 = vld [vmem:[%s5969_s1 + $0x6d8] sm:$0xf0]  ;;  %v3610_v51 = vor.u32 %v3957_v32, %v3607_v33  ;;  %v3599_v13 = vld [vmem:[%s5969_s1 + $0x748] sm:$0xf0] }
  0xd9   :  { %2235 = vmatpush.bf16.msra.mxu1 %v3266_v27  ;;  %v1884_v27 = vadd.f32 %v1883_v48, %v1865_v44  ;;  %v3973_v44 = vld [vmem:[%s5969_s1 + $0x7d4] sm:$0xf]  ;;  %v3671_v50 = vld [vmem:[%s5969_s1 + $0x7d8] sm:$0xf0]  ;;  %v3939_v48 = vld [vmem:[%s5969_s1 + $0x6c4] sm:$0xf] }
  0xda   :  { %2254 = vmatpush.bf16.msra.mxu2 %v3330_v61  ;;  %v3626_v61 = vor.u32 %v3961_v42, %v3623_v47  ;;  %v1866_v54 = vpop.f32.mrf.mxu1  ;;  %v3527_v0 = vld [vmem:[%s5969_s1 + $0x6b8] sm:$0xf0] }
  0xdb   :  { %2273 = vmatpush.bf16.msra.mxu3 %v3394_v7  ;;  %v1902_v53 = vpop.f32.mrf.mxu3  ;;  %v1847_v7 = vpop.f32.mrf.mxu0 }
  0xdc   :  { %2217 = vmatpush.bf16.msra.mxu0 %v3194_v31  ;;  %v1848_v12 = vadd.f32 %v1847_v7, %v5534_v52  ;;  %v5720_v5 = vadd.f32 %v1902_v53, %v1884_v27  ;;  %v3618_v52 = vor.u32 %v3959_v3, %v3615_v4  ;;  %v3682_v31 = vor.u32 %v3975_v20, %v3679_v21  ;;  %v3663_v3 = vld [vmem:[%s5969_s1 + $0x7c8] sm:$0xf0]  ;;  %v3953_v4 = vld [vmem:[%s5969_s1 + $0x734] sm:$0xf]  ;;  %v3591_v27 = vld [vmem:[%s5969_s1 + $0x738] sm:$0xf0] }
  0xdd   :  { %2236 = vmatpush.bf16.msra.mxu1 %v3258_v16  ;;  %v3479_v16 = vld [vmem:[%s5969_s1 + $0x658] sm:$0xf0] }
  0xde   :  { %2255 = vmatpush.bf16.msra.mxu2 %v3322_v30  ;;  %v1867_v6 = vadd.f32 %v1866_v54, %v1848_v12  ;;  %v3554_v30 = vor.u32 %v3943_v1, %v3551_v15  ;;  %v3969_v1 = vld [vmem:[%s5969_s1 + $0x7b4] sm:$0xf]  ;;  %v3655_v12 = vld [vmem:[%s5969_s1 + $0x7b8] sm:$0xf0] }
  0xdf   :  { %2274 = vmatpush.bf16.msra.mxu3 %v3386_v36  ;;  %v3941_v36 = vld [vmem:[%s5969_s1 + $0x6d4] sm:$0xf] }
  0xe0   :  { %2218 = vmatpush.bf16.msra.mxu0 %v3186_v56  ;;  %v1885_v37 = vpop.f32.mrf.mxu2  ;;  %v3955_v56 = vld [vmem:[%s5969_s1 + $0x744] sm:$0xf]  ;;  %v3546_v49 = vor.u32 %v3941_v36, %v3543_v41 }
  0xe1   :  { %2237 = vmatpush.bf16.msra.mxu1 %v3250_v59  ;;  %v1886_v42 = vadd.f32 %v1885_v37, %v1867_v6  ;;  %v3674_v59 = vor.u32 %v3973_v44, %v3671_v50  ;;  %v3935_v36 = vld [vmem:[%s5969_s1 + $0x6a4] sm:$0xf]  ;;  %v3647_v44 = vld [vmem:[%s5969_s1 + $0x7a8] sm:$0xf0] }
  0xe2   :  { %2256 = vmatpush.bf16.msra.mxu2 %v3314_v19  ;;  %v1935_v8 = vpop.f32.mrf.mxu1  ;;  %v3482_v19 = vor.u32 %v3925_v34, %v3479_v16  ;;  %v3658_v34 = vor.u32 %v3969_v1, %v3655_v12  ;;  %v3455_v16 = vld [vmem:[%s5969_s1 + $0x628] sm:$0xf0]  ;;  %v3967_v41 = vld [vmem:[%s5969_s1 + $0x7a4] sm:$0xf] }
  0xe3   :  { %2275 = vmatpush.bf16.msra.mxu3 %v3378_v60  ;;  %v1904_v38 = vpop.f32.mrf.mxu3  ;;  %v1916_v47 = vpop.f32.mrf.mxu0  ;;  %v3923_v60 = vld [vmem:[%s5969_s1 + $0x644] sm:$0xf]  ;;  %v3631_v1 = vld [vmem:[%s5969_s1 + $0x788] sm:$0xf0] }
  0xe4   :  { %2287 = vmatpush.bf16.msrb.mxu0 %v3498_v2  ;;  %v1917_v9 = vadd.f32 %v1916_v47, %v5596_v43  ;;  %v5753_v14 = vadd.f32 %v1904_v38, %v1886_v42  ;;  %v3471_v43 = vld [vmem:[%s5969_s1 + $0x648] sm:$0xf0]  ;;  %2238 = vmatmul.bf16.vlgmr.msra.gmra.mxu1 %v4805_v24  ;;  %v3971_v2 = vld [vmem:[%s5969_s1 + $0x7c4] sm:$0xf]  ;;  %v3949_v47 = vld [vmem:[%s5969_s1 + $0x714] sm:$0xf] }
  0xe5   :  { %2306 = vmatpush.bf16.msrb.mxu1 %v3562_v57  ;;  %2219 = vmatmul.bf16.vlgmr.msra.gmra.mxu0 %v4803_v23  ;;  %v3602_v23 = vor.u32 %v3955_v56, %v3599_v13  ;;  %v3474_v24 = vor.u32 %v3923_v60, %v3471_v43  ;;  %v3666_v54 = vor.u32 %v3971_v2, %v3663_v3  ;;  %v3937_v57 = vld [vmem:[%s5969_s1 + $0x6b4] sm:$0xf]  ;;  %v3519_v38 = vld [vmem:[%s5969_s1 + $0x6a8] sm:$0xf0]  ;;  %v3447_v56 = vld [vmem:[%s5969_s1 + $0x618] sm:$0xf0] }
  0xe6   :  { %2325 = vmatpush.bf16.msrb.mxu2 %v3626_v61  ;;  %v1936_v53 = vadd.f32 %v1935_v8, %v1917_v9  ;;  %v3535_v61 = vld [vmem:[%s5969_s1 + $0x6c8] sm:$0xf0]  ;;  %2276 = vmatmul.bf16.vlgmr.msra.gmra.mxu3 %v4818_v29  ;;  %v3463_v29 = vld [vmem:[%s5969_s1 + $0x638] sm:$0xf0]  ;;  %v3530_v33 = vor.u32 %v3937_v57, %v3527_v0  ;;  %v3522_v9 = vor.u32 %v3935_v36, %v3519_v38  ;;  %v3933_v13 = vld [vmem:[%s5969_s1 + $0x694] sm:$0xf] }
  0xe7   :  { %2344 = vmatpush.bf16.msrb.mxu3 %v3690_v10  ;;  %2257 = vmatmul.bf16.vlgmr.msra.gmra.mxu2 %v4816_v28  ;;  %v3538_v7 = vor.u32 %v3939_v48, %v3535_v61  ;;  %v3921_v28 = vld [vmem:[%s5969_s1 + $0x634] sm:$0xf]  ;;  %v3575_v8 = vld [vmem:[%s5969_s1 + $0x718] sm:$0xf0]  ;;  %v3931_v57 = vld [vmem:[%s5969_s1 + $0x684] sm:$0xf] }
  0xe8   :  { %2288 = vmatpush.bf16.msrb.mxu0 %v3490_v26  ;;  %v1954_v10 = vpop.f32.mrf.mxu2  ;;  %v3466_v26 = vor.u32 %v3921_v28, %v3463_v29  ;;  %v3511_v60 = vld [vmem:[%s5969_s1 + $0x698] sm:$0xf0]  ;;  %v3965_v43 = vld [vmem:[%s5969_s1 + $0x794] sm:$0xf]  ;;  %v3439_v29 = vld [vmem:[%s5969_s1 + $0x608] sm:$0xf0] }
  0xe9   :  { %2307 = vmatpush.bf16.msrb.mxu1 %v3554_v30  ;;  %v1955_v15 = vadd.f32 %v1954_v10, %v1936_v53  ;;  %v3951_v30 = vld [vmem:[%s5969_s1 + $0x724] sm:$0xf]  ;;  %v3639_v48 = vld [vmem:[%s5969_s1 + $0x798] sm:$0xf0] }
  0xea   :  { %2326 = vmatpush.bf16.msrb.mxu2 %v3618_v52  ;;  %v1937_v21 = vpop.f32.mrf.mxu1  ;;  %v3594_v52 = vor.u32 %v3953_v4, %v3591_v27  ;;  %v3947_v4 = vld [vmem:[%s5969_s1 + $0x704] sm:$0xf]  ;;  %v3567_v27 = vld [vmem:[%s5969_s1 + $0x708] sm:$0xf0]  ;;  %v3642_v28 = vor.u32 %v3965_v43, %v3639_v48 }
  0xeb   :  { %2345 = vmatpush.bf16.msrb.mxu3 %v3682_v31  ;;  %v1973_v11 = vpop.f32.mrf.mxu3  ;;  %v1918_v20 = vpop.f32.mrf.mxu0  ;;  %v3583_v31 = vld [vmem:[%s5969_s1 + $0x728] sm:$0xf0]  ;;  %v3963_v0 = vld [vmem:[%s5969_s1 + $0x784] sm:$0xf] }
  0xec   :  { %2289 = vmatpush.bf16.msrb.mxu0 %v3482_v19  ;;  %v1919_v6 = vadd.f32 %v1918_v20, %v5653_v35  ;;  %v5808_v32 = vadd.f32 %v1973_v11, %v1955_v15  ;;  %v3919_v35 = vld [vmem:[%s5969_s1 + $0x624] sm:$0xf]  ;;  %v3586_v50 = vor.u32 %v3951_v30, %v3583_v31  ;;  %v3917_v19 = vld [vmem:[%s5969_s1 + $0x614] sm:$0xf]  ;;  %v3503_v11 = vld [vmem:[%s5969_s1 + $0x688] sm:$0xf0]  ;;  %v3634_v15 = vor.u32 %v3963_v0, %v3631_v1 }
  0xed   :  { %2308 = vmatpush.bf16.msrb.mxu1 %v3546_v49  ;;  %v3458_v42 = vor.u32 %v3919_v35, %v3455_v16  ;;  %v3506_v12 = vor.u32 %v3931_v57, %v3503_v11 }
  0xee   :  { %2327 = vmatpush.bf16.msrb.mxu2 %v3610_v51  ;;  %v1938_v37 = vadd.f32 %v1937_v21, %v1919_v6  ;;  %v3650_v51 = vor.u32 %v3967_v41, %v3647_v44 }
  0xef   :  { %2346 = vmatpush.bf16.msrb.mxu3 %v3674_v59 }
  0xf0   :  { %2290 = vmatpush.bf16.msrb.mxu0 %v3474_v24  ;;  %v1956_v49 = vpop.f32.mrf.mxu2  ;;  %v3450_v24 = vor.u32 %v3917_v19, %v3447_v56 }
  0xf1   :  { %2309 = vmatpush.bf16.msrb.mxu1 %v3538_v7  ;;  %v1957_v53 = vadd.f32 %v1956_v49, %v1938_v37 }
  0xf2   :  { %2328 = vmatpush.bf16.msrb.mxu2 %v3602_v23  ;;  %v1940_v2 = vpop.f32.mrf.mxu1  ;;  %v3578_v23 = vor.u32 %v3949_v47, %v3575_v8 }
  0xf3   :  { %2347 = vmatpush.bf16.msrb.mxu3 %v3666_v54  ;;  %v1975_v59 = vpop.f32.mrf.mxu3  ;;  %v1921_v61 = vpop.f32.mrf.mxu0  ;;  %v3514_v54 = vor.u32 %v3933_v13, %v3511_v60 }
  0xf4   :  { %2291 = vmatpush.bf16.msrb.mxu0 %v3466_v26  ;;  %v1922_v3 = vadd.f32 %v1921_v61, %v5720_v5  ;;  %v1976_v7 = vadd.f32 %v1975_v59, %v1957_v53  ;;  %v3915_v5 = vld [vmem:[%s5969_s1 + $0x604] sm:$0xf]  ;;  %2243 = vmatmul.bf16.gmra.mxu1 %v4937_v40 }
  0xf5   :  { %2310 = vmatpush.bf16.msrb.mxu1 %v3530_v33  ;;  %2224 = vmatmul.bf16.gmra.mxu0 %v4935_v39  ;;  %v3570_v39 = vor.u32 %v3947_v4, %v3567_v27  ;;  %v3442_v40 = vor.u32 %v3915_v5, %v3439_v29 }
  0xf6   :  { %2329 = vmatpush.bf16.msrb.mxu2 %v3594_v52  ;;  %v1941_v10 = vadd.f32 %v1940_v2, %v1922_v3  ;;  %2281 = vmatmul.bf16.gmra.mxu3 %v4950_v46 }
  0xf7   :  { %2348 = vmatpush.bf16.msrb.mxu3 %v3658_v34  ;;  %2262 = vmatmul.bf16.gmra.mxu2 %v4948_v45 }
  0xf8   :  { %2292 = vmatpush.bf16.msrb.mxu0 %v3458_v42  ;;  %v1959_v20 = vpop.f32.mrf.mxu2 }
  0xf9   :  { %2311 = vmatpush.bf16.msrb.mxu1 %v3522_v9  ;;  %v1960_v6 = vadd.f32 %v1959_v20, %v1941_v10 }
  0xfa   :  { %2330 = vmatpush.bf16.msrb.mxu2 %v3586_v50  ;;  %v1942_v26 = vpop.f32.mrf.mxu1 }
  0xfb   :  { %2349 = vmatpush.bf16.msrb.mxu3 %v3650_v51  ;;  %v1978_v21 = vpop.f32.mrf.mxu3  ;;  %v1923_v52 = vpop.f32.mrf.mxu0 }
  0xfc   :  { %2293 = vmatpush.bf16.msrb.mxu0 %v3450_v24  ;;  %v1924_v30 = vadd.f32 %v1923_v52, %v5753_v14  ;;  %v1979_v45 = vadd.f32 %v1978_v21, %v1960_v6 }
  0xfd   :  { %2312 = vmatpush.bf16.msrb.mxu1 %v3514_v54 }
  0xfe   :  { %2331 = vmatpush.bf16.msrb.mxu2 %v3578_v23  ;;  %v1943_v46 = vadd.f32 %v1942_v26, %v1924_v30 }
  0xff   :  { %2350 = vmatpush.bf16.msrb.mxu3 %v3642_v28 }
 0x100   :  { %2294 = vmatpush.bf16.msrb.mxu0 %v3442_v40  ;;  %v1961_v31 = vpop.f32.mrf.mxu2 }
 0x101   :  { %2313 = vmatpush.bf16.msrb.mxu1 %v3506_v12  ;;  %v1962_v34 = vadd.f32 %v1961_v31, %v1943_v46 }
 0x102   :  { %2332 = vmatpush.bf16.msrb.mxu2 %v3570_v39  ;;  %v2011_v16 = vpop.f32.mrf.mxu1 }
 0x103   :  { %2351 = vmatpush.bf16.msrb.mxu3 %v3634_v15  ;;  %v1980_v33 = vpop.f32.mrf.mxu3  ;;  %v1992_v35 = vpop.f32.mrf.mxu0 }
 0x104   :  { %v1993_v36 = vadd.f32 %v1992_v35, %v5808_v32  ;;  %v1981_v37 = vadd.f32 %v1980_v33, %v1962_v34  ;;  %2314 = vmatmul.bf16.vlgmr.msrb.gmra.mxu1 %v5081_v18 }
 0x105   :  { %2295 = vmatmul.bf16.vlgmr.msrb.gmra.mxu0 %v5079_v17 }
 0x106   :  { %v2012_v38 = vadd.f32 %v2011_v16, %v1993_v36  ;;  %2352 = vmatmul.bf16.vlgmr.msrb.gmra.mxu3 %v5094_v25 }
 0x107   :  { %2333 = vmatmul.bf16.vlgmr.msrb.gmra.mxu2 %v5092_v22 }
 0x108   :  { %v2030_v14 = vpop.f32.mrf.mxu2 }
 0x109   :  { %v2031_v44 = vadd.f32 %v2030_v14, %v2012_v38 }
 0x10a   :  { %v2013_v42 = vpop.f32.mrf.mxu1 }
 0x10b   :  { %v2049_v41 = vpop.f32.mrf.mxu3  ;;  %v1994_v50 = vpop.f32.mrf.mxu0 }
 0x10c   :  { %v1995_v47 = vadd.f32 %v1994_v50, %v1976_v7  ;;  %v5887_v8 = vadd.f32 %v2049_v41, %v2031_v44 }
 0x10e   :  { %v2014_v9 = vadd.f32 %v2013_v42, %v1995_v47  ;;  %v2395_v25 = vmul.f32 %v5887_v8, %v5887_v8 }
 0x110   :  { %v2032_v32 = vpop.f32.mrf.mxu2 }
 0x111   :  { %v2033_v19 = vadd.f32 %v2032_v32, %v2014_v9 }
 0x112   :  { %v2016_v17 = vpop.f32.mrf.mxu1 }
 0x113   :  { %v2051_v51 = vpop.f32.mrf.mxu3  ;;  %v1997_v56 = vpop.f32.mrf.mxu0 }
 0x114   :  { %v1998_v13 = vadd.f32 %v1997_v56, %v1979_v45  ;;  %v5889_v18 = vadd.f32 %v2051_v51, %v2033_v19  ;;  %2319 = vmatmul.bf16.gmra.mxu1 %v5213_v58 }
 0x115   :  { %2300 = vmatmul.bf16.gmra.mxu0 %v5211_v55 }
 0x116   :  { %v2017_v22 = vadd.f32 %v2016_v17, %v1998_v13  ;;  %v2364_v49 = vadd.f32 %v5889_v18, %v5887_v8  ;;  %v2397_v59 = vmul.f32 %v5889_v18, %v5889_v18  ;;  %2357 = vmatmul.bf16.gmra.mxu3 %v5226_v63 }
 0x117   :  { %2338 = vmatmul.bf16.gmra.mxu2 %v5224_v62 }
 0x118   :  { %v2403_v60 = vadd.f32 %v2397_v59, %v2395_v25 }
 0x11a   :  { %v2035_v43 = vpop.f32.mrf.mxu2  ;;  %v2018_v61 = vpop.f32.mrf.mxu1 }
 0x11b   :  { %v2054_v48 = vpop.f32.mrf.mxu3  ;;  %v2036_v53 = vadd.f32 %v2035_v43, %v2017_v22  ;;  %v1999_v55 = vpop.f32.mrf.mxu0 }
 0x11c   :  { %v2000_v58 = vadd.f32 %v1999_v55, %v1981_v37 }
 0x11d   :  { %v5901_v2 = vadd.f32 %v2054_v48, %v2036_v53 }
 0x11e   :  { %v2019_v3 = vadd.f32 %v2018_v61, %v2000_v58 }
 0x11f   :  { %v2365_v23 = vadd.f32 %v2364_v49, %v5901_v2  ;;  %v2399_v24 = vmul.f32 %v5901_v2, %v5901_v2 }
 0x121   :  { %v2404_v4 = vadd.f32 %v2403_v60, %v2399_v24 }
 0x122   :  { %v2037_v27 = vpop.f32.mrf.mxu2  ;;  %v2087_v54 = vpop.f32.mrf.mxu1 }
 0x123   :  { %v2056_v62 = vpop.f32.mrf.mxu3  ;;  %v2038_v7 = vadd.f32 %v2037_v27, %v2019_v3  ;;  %v2068_v63 = vpop.f32.mrf.mxu0 }
 0x124   :  { %v2088_v28 = vadd.f32 %v2087_v54, %v2068_v63 }
 0x125   :  { %v5906_v5 = vadd.f32 %v2056_v62, %v2038_v7 }
 0x127   :  { %v5909_v29 = vadd.f32 %v2365_v23, %v5906_v5  ;;  %v2401_v57 = vmul.f32 %v5906_v5, %v5906_v5 }
 0x129   :  { %v5913_v10 = vadd.f32 %v2404_v4, %v2401_v57 }
 0x12a   :  { %v2106_v11 = vpop.f32.mrf.mxu2  ;;  %v2089_v40 = vpop.f32.mrf.mxu1 }
 0x12b   :  { %v2125_v0 = vpop.f32.mrf.mxu3  ;;  %v2107_v1 = vadd.f32 %v2106_v11, %v2088_v28  ;;  %v2070_v39 = vpop.f32.mrf.mxu0 }
 0x12c   :  { %v2090_v12 = vadd.f32 %v2089_v40, %v2070_v39 }
 0x12d   :  { %v2126_v15 = vadd.f32 %v2125_v0, %v2107_v1 }
 0x132   :  { %v2108_v20 = vpop.f32.mrf.mxu2  ;;  %v2092_v26 = vpop.f32.mrf.mxu1 }
 0x133   :  { %v2127_v21 = vpop.f32.mrf.mxu3  ;;  %v2109_v6 = vadd.f32 %v2108_v20, %v2090_v12  ;;  %v2073_v52 = vpop.f32.mrf.mxu0 }
 0x134   :  { %v2093_v30 = vadd.f32 %v2092_v26, %v2073_v52 }
 0x135   :  { %v2128_v45 = vadd.f32 %v2127_v21, %v2109_v6 }
 0x13a   :  { %v2111_v46 = vpop.f32.mrf.mxu2  ;;  %v2094_v35 = vpop.f32.mrf.mxu1 }
 0x13b   :  { %v2130_v31 = vpop.f32.mrf.mxu3  ;;  %v2112_v33 = vadd.f32 %v2111_v46, %v2093_v30  ;;  %v2075_v34 = vpop.f32.mrf.mxu0 }
 0x13c   :  { %v2095_v16 = vadd.f32 %v2094_v35, %v2075_v34 }
 0x13d   :  { %v2131_v36 = vadd.f32 %v2130_v31, %v2112_v33 }
 0x142   :  { %v2113_v37 = vpop.f32.mrf.mxu2  ;;  %v2163_v44 = vpop.f32.mrf.mxu1 }
 0x143   :  { %v2132_v38 = vpop.f32.mrf.mxu3  ;;  %v2114_v14 = vadd.f32 %v2113_v37, %v2095_v16  ;;  %v2144_v41 = vpop.f32.mrf.mxu0 }
 0x144   :  { %v2145_v50 = vadd.f32 %v2144_v41, %v2126_v15 }
 0x145   :  { %v2133_v42 = vadd.f32 %v2132_v38, %v2114_v14  ;;  %v2452_v38 = vld [vmem:[%s5971_s2] sm:$0x3] }
 0x146   :  { %v2164_v47 = vadd.f32 %v2163_v44, %v2145_v50 }
 0x14a   :  { %v2182_v9 = vpop.f32.mrf.mxu2  ;;  %v2165_v56 = vpop.f32.mrf.mxu1 }
 0x14b   :  { %v2201_v32 = vpop.f32.mrf.mxu3  ;;  %v2183_v51 = vadd.f32 %v2182_v9, %v2164_v47  ;;  %v2146_v19 = vpop.f32.mrf.mxu0 }
 0x14c   :  { %v2147_v54 = vadd.f32 %v2146_v19, %v2128_v45  ;;  %v21_v45 = vlaneseq }
 0x14d   :  { %v2202_v17 = vadd.f32 %v2201_v32, %v2183_v51 }
 0x14e   :  { %v2166_v28 = vadd.f32 %v2165_v56, %v2147_v54  ;;  %vm5915_vm0 = vcmp.lt.s32.totalorder %v21_v45, 256 }
 0x152   :  { %v2184_v13 = vpop.f32.mrf.mxu2  ;;  %v2168_v49 = vpop.f32.mrf.mxu1 }
 0x153   :  { %v2203_v22 = vpop.f32.mrf.mxu3  ;;  %v2149_v25 = vpop.f32.mrf.mxu0  ;;  %v2185_v1 = vadd.f32 %v2184_v13, %v2166_v28 }
 0x154   :  { %v2150_v12 = vadd.f32 %v2149_v25, %v2131_v36  ;;  %v3982_v36 = vmov 0.0  }
 0x155   :  { %v2204_v20 = vadd.f32 %v2203_v22, %v2185_v1  ;;  %25 = vst.msk [vmem:[#allocation2] sm:$0x3] %vm5915_vm0, %v3982_v36 }
 0x156   :  { %v2169_v6 = vadd.f32 %v2168_v49, %v2150_v12  ;;  %26 = vst.msk [vmem:[#allocation3] sm:$0x3] %vm5915_vm0, %v3982_v36 }
 0x15a   :  { %v2187_v59 = vpop.f32.mrf.mxu2  ;;  %v2170_v48 = vpop.f32.mrf.mxu1 }
 0x15b   :  { %v2206_v60 = vpop.f32.mrf.mxu3  ;;  %v2151_v43 = vpop.f32.mrf.mxu0  ;;  %v2188_v46 = vadd.f32 %v2187_v59, %v2169_v6 }
 0x15c   :  { %v2152_v35 = vadd.f32 %v2151_v43, %v2133_v42 }
 0x15d   :  { %v2207_v14 = vadd.f32 %v2206_v60, %v2188_v46 }
 0x15e   :  { %v2171_v44 = vadd.f32 %v2170_v48, %v2152_v35 }
 0x162   :  { %v2189_v53 = vpop.f32.mrf.mxu2  ;;  %v2239_v58 = vpop.f32.mrf.mxu1 }
 0x163   :  { %v2208_v55 = vpop.f32.mrf.mxu3  ;;  %v2220_v61 = vpop.f32.mrf.mxu0  ;;  %v2190_v9 = vadd.f32 %v2189_v53, %v2171_v44 }
 0x164   :  { %v2221_v57 = vadd.f32 %v2220_v61, %v2202_v17 }
 0x165   :  { %v2209_v49 = vadd.f32 %v2208_v55, %v2190_v9 }
 0x166   :  { %v2240_v15 = vadd.f32 %v2239_v58, %v2221_v57 }
 0x16a   :  { %v2258_v3 = vpop.f32.mrf.mxu2  ;;  %v2241_v4 = vpop.f32.mrf.mxu1 }
 0x16b   :  { %v2277_v23 = vpop.f32.mrf.mxu3  ;;  %v2222_v24 = vpop.f32.mrf.mxu0  ;;  %v2259_v21 = vadd.f32 %v2258_v3, %v2240_v15 }
 0x16c   :  { %v2223_v52 = vadd.f32 %v2222_v24, %v2204_v20 }
 0x16d   :  { %v2278_v31 = vadd.f32 %v2277_v23, %v2259_v21 }
 0x16e   :  { %v2242_v16 = vadd.f32 %v2241_v4, %v2223_v52 }
 0x172   :  { %v2260_v27 = vpop.f32.mrf.mxu2  ;;  %v2244_v63 = vpop.f32.mrf.mxu1 }
 0x173   :  { %v2279_v62 = vpop.f32.mrf.mxu3  ;;  %v2225_v7 = vpop.f32.mrf.mxu0  ;;  %v2261_v41 = vadd.f32 %v2260_v27, %v2242_v16 }
 0x174   :  { %v2226_v50 = vadd.f32 %v2225_v7, %v2207_v14 }
 0x175   :  { %v2280_v51 = vadd.f32 %v2279_v62, %v2261_v41 }
 0x176   :  { %v2245_v13 = vadd.f32 %v2244_v63, %v2226_v50 }
 0x17a   :  { %v2263_v11 = vpop.f32.mrf.mxu2  ;;  %v2246_v40 = vpop.f32.mrf.mxu1 }
 0x17b   :  { %v2282_v0 = vpop.f32.mrf.mxu3  ;;  %v2227_v39 = vpop.f32.mrf.mxu0  ;;  %v2264_v59 = vadd.f32 %v2263_v11, %v2245_v13 }
 0x17c   :  { %v2228_v43 = vadd.f32 %v2227_v39, %v2209_v49 }
 0x17d   :  { %v2283_v3 = vadd.f32 %v2282_v0, %v2264_v59  ;;  %v2363_v59 = vld [vmem:[#allocation2] sm:$0x3] }
 0x17e   :  { %v2247_v24 = vadd.f32 %v2246_v40, %v2228_v43 }
 0x182   :  { %v2265_v26 = vpop.f32.mrf.mxu2  ;;  %v2315_v34 = vpop.f32.mrf.mxu1 }
 0x183   :  { %v2284_v30 = vpop.f32.mrf.mxu3  ;;  %v2296_v33 = vpop.f32.mrf.mxu0  ;;  %v2266_v62 = vadd.f32 %v2265_v26, %v2247_v24  ;;  %v2367_v26 = vrot.slane %v5909_v29, 4 }
 0x184   :  { %v2297_v37 = vadd.f32 %v2296_v33, %v2278_v31  ;;  %v2406_v33 = vrot.slane %v5913_v10, 4 }
 0x185   :  { %v2285_v39 = vadd.f32 %v2284_v30, %v2266_v62  ;;  %v2368_v30 = vadd.f32 %v2367_v26, %v5909_v29 }
 0x186   :  { %v2316_v47 = vadd.f32 %v2315_v34, %v2297_v37  ;;  %v2407_v16 = vadd.f32 %v2406_v33, %v5913_v10 }
 0x187   :  { %v2369_v14 = vrot.slane %v2368_v30, 2 }
 0x188   :  { %v2408_v50 = vrot.slane %v2407_v16, 2 }
 0x18a   :  { %v2334_v42 = vpop.f32.mrf.mxu2  ;;  %v2317_v17 = vpop.f32.mrf.mxu1 }
 0x18b   :  { %v2353_v32 = vpop.f32.mrf.mxu3  ;;  %v2335_v19 = vadd.f32 %v2334_v42, %v2316_v47  ;;  %v2298_v56 = vpop.f32.mrf.mxu0  ;;  %v2370_v42 = vadd.f32 %v2369_v14, %v2368_v30 }
 0x18c   :  { %v2299_v25 = vadd.f32 %v2298_v56, %v2280_v51 }
 0x18d   :  { %v2354_v22 = vadd.f32 %v2353_v32, %v2335_v19  ;;  %v2409_v19 = vadd.f32 %v2408_v50, %v2407_v16 }
 0x18e   :  { %v2318_v61 = vadd.f32 %v2317_v17, %v2299_v25  ;;  %v2371_v17 = vrot.slane %v2370_v42, 1 }
 0x18f   :  { %v5924_v60 = vpack.c.bf16 %v2354_v22, %v5887_v8  ;;  %v2396_v63 = vmul.f32 %v2354_v22, %v2354_v22 }
 0x192   :  { %v2336_v48 = vpop.f32.mrf.mxu2  ;;  %v2320_v7 = vpop.f32.mrf.mxu1 }
 0x193   :  { %v2355_v58 = vpop.f32.mrf.mxu3  ;;  %v2337_v53 = vadd.f32 %v2336_v48, %v2318_v61  ;;  %v2301_v23 = vpop.f32.mrf.mxu0 }
 0x194   :  { %v2302_v27 = vadd.f32 %v2301_v23, %v2283_v3  ;;  %v2394_v3 = vld [vmem:[#allocation3] sm:$0x3] }
 0x195   :  { %v2356_v4 = vadd.f32 %v2355_v58, %v2337_v53 }
 0x196   :  { %v2321_v57 = vadd.f32 %v2320_v7, %v2302_v27 }
 0x197   :  { %v2373_v54 = vadd.f32 %v2356_v4, %v2354_v22  ;;  %v2398_v28 = vmul.f32 %v2356_v4, %v2356_v4  ;;  %v5927_v55 = vpack.c.bf16 %v2356_v4, %v5889_v18  ;;  %v2410_v22 = vrot.slane %v2409_v19, 1 }
 0x199   :  { %v2412_v8 = vadd.f32 %v2398_v28, %v2396_v63  ;;  %v2411_v48 = vadd.f32 %v2410_v22, %v2409_v19  ;;  %v2477_v33 = vunpack.c.l.bf16 %v5927_v55 }
 0x19a   :  { %v2339_v11 = vpop.f32.mrf.mxu2  ;;  %v2322_v52 = vpop.f32.mrf.mxu1 }
 0x19b   :  { %v2358_v1 = vpop.f32.mrf.mxu3  ;;  %v2340_v12 = vadd.f32 %v2339_v11, %v2321_v57  ;;  %v2303_v0 = vpop.f32.mrf.mxu0 }
 0x19c   :  { %v2304_v20 = vadd.f32 %v2303_v0, %v2285_v39 }
 0x19d   :  { %v2359_v15 = vadd.f32 %v2358_v1, %v2340_v12 }
 0x19e   :  { %v2323_v18 = vadd.f32 %v2322_v52, %v2304_v20 }
 0x19f   :  { %v2374_v40 = vadd.f32 %v2373_v54, %v2359_v15  ;;  %v2400_v21 = vmul.f32 %v2359_v15, %v2359_v15  ;;  %v5930_v6 = vpack.c.bf16 %v2359_v15, %v5901_v2 }
 0x1a1   :  { %v2413_v46 = vadd.f32 %v2412_v8, %v2400_v21  ;;  %v2465_v21 = vld [vmem:[%s5972_s3] sm:$0x3]  ;;  %v2479_v30 = vunpack.c.l.bf16 %v5930_v6 }
 0x1a2   :  { %v2341_v31 = vpop.f32.mrf.mxu2 }
 0x1a3   :  { %v2342_v34 = vadd.f32 %v2341_v31, %v2323_v18  ;;  %v2360_v45 = vpop.f32.mrf.mxu3  ;;  %v2475_v18 = vunpack.c.l.bf16 %v5924_v60  ;;  %v2476_v31 = vunpack.c.h.bf16 %v5924_v60 }
 0x1a5   :  { %v2361_v35 = vadd.f32 %v2360_v45, %v2342_v34  ;;  %v2478_v45 = vunpack.c.h.bf16 %v5927_v55 }
 0x1a7   :  { %v2375_v37 = vadd.f32 %v2374_v40, %v2361_v35  ;;  %v2402_v36 = vmul.f32 %v2361_v35, %v2361_v35  ;;  %v5937_v2 = vpack.c.bf16 %v2361_v35, %v5906_v5  ;;  %v2372_v5 = vadd.f32 %v2371_v17, %v2370_v42 }
 0x1a8   :  { %v2480_v35 = vunpack.c.h.bf16 %v5930_v6 }
 0x1a9   :  { %v2376_v41 = vrot.slane %v2375_v37, 4  ;;  %v2414_v44 = vadd.f32 %v2413_v46, %v2402_v36  ;;  %v2481_v16 = vunpack.c.l.bf16 %v5937_v2 }
 0x1ab   :  { %v2377_v47 = vadd.f32 %v2376_v41, %v2375_v37  ;;  %v2415_v9 = vrot.slane %v2414_v44, 4  ;;  %v2482_v37 = vunpack.c.h.bf16 %v5937_v2 }
 0x1ad   :  { %v2378_v32 = vrot.slane %v2377_v47, 2  ;;  %v2416_v51 = vadd.f32 %v2415_v9, %v2414_v44 }
 0x1af   :  { %v2379_v56 = vadd.f32 %v2378_v32, %v2377_v47  ;;  %v2417_v29 = vrot.slane %v2416_v51, 2 }
 0x1b1   :  { %v2380_v13 = vrot.slane %v2379_v56, 1  ;;  %v2418_v10 = vadd.f32 %v2417_v29, %v2416_v51 }
 0x1b3   :  { %v2381_v25 = vadd.f32 %v2380_v13, %v2379_v56  ;;  %v2419_v49 = vrot.slane %v2418_v10, 1 }
 0x1b5   :  { %v2384_v43 = vrot.slane %v2381_v25, 7  ;;  %v2420_v61 = vadd.f32 %v2419_v49, %v2418_v10 }
 0x1b7   :  { %v2386_v58 = vsel %vm2385_vm1, %v2372_v5, %v2384_v43  ;;  %v2423_v53 = vrot.slane %v2420_v61, 7 }
 0x1b8   :  { %v2388_v23 = vadd.f32 %v2386_v58, %v2363_v59 }
 0x1b9   :  { %v2424_v24 = vsel %vm2385_vm1, %v2411_v48, %v2423_v53 }
 0x1ba   :  { %2393 = vst.msk [vmem:[#allocation2] sm:$0x3] %vm5915_vm0, %v2388_v23  ;;  %v2426_v4 = vadd.f32 %v2424_v24, %v2394_v3 }
 0x1bc   :  { %2427 = vst.msk [vmem:[#allocation3] sm:$0x3] %vm5915_vm0, %v2426_v4 }
 0x1c1   :  { %v2445_v27 = vld [vmem:[#allocation2] sm:$0x3] }
 0x1c2   :  { %v2446_v62 = vmul.f32 0.03125, %v2445_v27 }
 0x1c3   :  { %v2447_v7 = vld [vmem:[#allocation3] sm:$0x3] }
 0x1c4   :  { %v2448_v63 = vmul.f32 0.03125, %v2447_v7  ;;  %v2449_v54 = vmul.f32 %v2446_v62, %v2446_v62 }
 0x1c6   :  { %v2450_v28 = vsub.f32 %v2448_v63, %v2449_v54 }
 0x1c8   :  { %v2451_v8 = vmax.f32 %v2450_v28, 0.0 }
 0x1ca   :  { %v2453_v57 = vadd.f32 1e-05, %v2451_v8 }
 0x1cc   :  { %3980 = vrsqrt.f32 %v2453_v57  ;;  %vm2460_vm3 = vweird.f32 %v2453_v57 }
 0x1d2   :  { %v3981_v11 = vpop.eup %3980 }
 0x1d3   :  { %v2455_v1 = vmul.f32 %v3981_v11, %v2453_v57  ;;  %vm2461_vm2 = vweird.f32 %v3981_v11 }
 0x1d4   :  { %vm2462_vm4 = vmor %vm2460_vm3, %vm2461_vm2 }
 0x1d5   :  { %v2456_v39 = vmul.f32 %v3981_v11, %v2455_v1 }
 0x1d7   :  { %v2457_v12 = vmul.f32 0.5, %v2456_v39 }
 0x1d9   :  { %v2458_v0 = vsub.f32 1.5, %v2457_v12 }
 0x1db   :  { %v2459_v15 = vmul.f32 %v3981_v11, %v2458_v0 }
 0x1dd   :  { %v2463_v20 = vsel %vm2462_vm4, %v3981_v11, %v2459_v15 }
 0x1de   :  { %v2464_v40 = vmul.f32 %v2463_v20, %v2452_v38 }
 0x1e0   :  { %v2466_v52 = vmul.f32 %v2464_v40, %v2446_v62  ;;  %v2484_v26 = vperm.slane %v2464_v40, 0  ;;  %v2485_v46 = vperm.slane %v2464_v40, 1 }
 0x1e2   :  { %v2467_v34 = vsub.f32 %v2465_v21, %v2466_v52  ;;  %v2488_v36 = vmul.f32 %v2484_v26, %v2475_v18  ;;  %v2489_v14 = vmul.f32 %v2485_v46, %v2476_v31  ;;  %v2490_v41 = vmul.f32 %v2484_v26, %v2477_v33 }
 0x1e3   :  { %v2491_v44 = vmul.f32 %v2485_v46, %v2478_v45  ;;  %v2492_v60 = vmul.f32 %v2484_v26, %v2479_v30  ;;  %v2493_v9 = vmul.f32 %v2485_v46, %v2480_v35  ;;  %v2494_v42 = vmul.f32 %v2484_v26, %v2481_v16 }
 0x1e4   :  { %v2497_v50 = vperm.slane %v2467_v34, 0  ;;  %v2498_v47 = vperm.slane %v2467_v34, 1  ;;  %v2495_v32 = vmul.f32 %v2485_v46, %v2482_v37 }
 0x1e6   :  { %v2501_v51 = vadd.f32 %v2497_v50, %v2488_v36  ;;  %v2502_v55 = vadd.f32 %v2498_v47, %v2489_v14  ;;  %v2503_v19 = vadd.f32 %v2497_v50, %v2490_v41  ;;  %v2504_v56 = vadd.f32 %v2498_v47, %v2491_v44 }
 0x1e7   :  { %v2505_v29 = vadd.f32 %v2497_v50, %v2492_v60  ;;  %v2506_v6 = vadd.f32 %v2498_v47, %v2493_v9  ;;  %v2507_v17 = vadd.f32 %v2497_v50, %v2494_v42  ;;  %v2508_v13 = vadd.f32 %v2498_v47, %v2495_v32 }
 0x1e8   :  { %v2509_v10 = vmul.f32 0.2, %v2501_v51  ;;  %v2510_v2 = vmul.f32 0.2, %v2502_v55  ;;  %v2511_v22 = vmul.f32 0.2, %v2503_v19 }
 0x1e9   :  { %v2512_v25 = vmul.f32 0.2, %v2504_v56  ;;  %v2513_v49 = vmul.f32 0.2, %v2505_v29  ;;  %v2514_v5 = vmul.f32 0.2, %v2506_v6 }
 0x1ea   :  { %v2515_v59 = vmul.f32 0.2, %v2507_v17  ;;  %v2516_v43 = vmul.f32 0.2, %v2508_v13  ;;  %v2517_v61 = vmax.f32 %v2501_v51, %v2509_v10  ;;  %v2518_v48 = vmax.f32 %v2502_v55, %v2510_v2 }
 0x1eb   :  { %v2519_v58 = vmax.f32 %v2503_v19, %v2511_v22  ;;  %v2520_v3 = vmax.f32 %v2504_v56, %v2512_v25  ;;  %v2521_v53 = vmax.f32 %v2505_v29, %v2513_v49  ;;  %v2522_v23 = vmax.f32 %v2506_v6, %v2514_v5 }
 0x1ec   :  { %v2523_v24 = vmax.f32 %v2507_v17, %v2515_v59  ;;  %v2524_v4 = vmax.f32 %v2508_v13, %v2516_v43  ;;  %v2525_v27 = vpack.c.bf16 %v2518_v48, %v2517_v61 }
 0x1ed   :  { %v2526_v62 = vpack.c.bf16 %v2520_v3, %v2519_v58  ;;  %v2527_v7 = vpack.c.bf16 %v2522_v23, %v2521_v53 }
 0x1ee   :  { %v2528_v63 = vpack.c.bf16 %v2524_v4, %v2523_v24  ;;  %2529 = vst [vmem:[%s5973_s4] sm:$0xff] %v2525_v27 }
 0x1ef   :  { %2530 = vst [vmem:[%s5973_s4 + $0x8] sm:$0xff] %v2526_v62 }
 0x1f0   :  { %2531 = vst [vmem:[%s5973_s4 + $0x10] sm:$0xff] %v2527_v7 }
 0x1f1   :  { %2532 = vst [vmem:[%s5973_s4 + $0x18] sm:$0xff] %v2528_v63 }

// kernel: discriminator_forward.7
= control target key start
LH: loop header
LB: loop body
LE: loop exit
PB: predicated region body
PF: predicated region fallthrough
CT: control target
= control target key end

     0   :  { %s5174_s1 = inlined_call_operand.vmem [shape: bf16[4096,128], index: 1, kind: input, shape index: {}]   ;;  %s5175_s0 = inlined_call_operand.vmem [shape: bf16[16,4096], index: 0, kind: input, shape index: {}]   ;;  %s5176_s2 = inlined_call_operand.vmem [shape: f32[16,128], index: 2, kind: output, shape index: {}]  }
   0x1   :  { %v3936_v0 = vld [vmem:[%s5174_s1 + $0x38] sm:$0xff]  ;;  %v3935_v4 = vld [vmem:[%s5174_s1 + $0x30] sm:$0xff]  ;;  %v3934_v8 = vld [vmem:[%s5174_s1 + $0x28] sm:$0xff] }
   0x2   :  { %v3944_v1 = vld [vmem:[%s5174_s1 + $0x78] sm:$0xff]  ;;  %2251 = vmatpush.bf16.msra.mxu0 %v3936_v0  ;;  %v3943_v5 = vld [vmem:[%s5174_s1 + $0x70] sm:$0xff]  ;;  %v3942_v9 = vld [vmem:[%s5174_s1 + $0x68] sm:$0xff] }
   0x3   :  { %v3952_v2 = vld [vmem:[%s5174_s1 + $0xb8] sm:$0xff]  ;;  %2265 = vmatpush.bf16.msra.mxu1 %v3944_v1  ;;  %v3951_v6 = vld [vmem:[%s5174_s1 + $0xb0] sm:$0xff]  ;;  %v3950_v10 = vld [vmem:[%s5174_s1 + $0xa8] sm:$0xff] }
   0x4   :  { %v3960_v3 = vld [vmem:[%s5174_s1 + $0xf8] sm:$0xff]  ;;  %2279 = vmatpush.bf16.msra.mxu2 %v3952_v2  ;;  %v3959_v7 = vld [vmem:[%s5174_s1 + $0xf0] sm:$0xff]  ;;  %v3958_v11 = vld [vmem:[%s5174_s1 + $0xe8] sm:$0xff] }
   0x5   :  { %2293 = vmatpush.bf16.msra.mxu3 %v3960_v3  ;;  %v3933_v12 = vld [vmem:[%s5174_s1 + $0x20] sm:$0xff]  ;;  %v3932_v16 = vld [vmem:[%s5174_s1 + $0x18] sm:$0xff]  ;;  %v3931_v20 = vld [vmem:[%s5174_s1 + $0x10] sm:$0xff] }
   0x6   :  { %2252 = vmatpush.bf16.msra.mxu0 %v3935_v4  ;;  %v3941_v13 = vld [vmem:[%s5174_s1 + $0x60] sm:$0xff]  ;;  %v3940_v17 = vld [vmem:[%s5174_s1 + $0x58] sm:$0xff]  ;;  %v3939_v21 = vld [vmem:[%s5174_s1 + $0x50] sm:$0xff] }
   0x7   :  { %2266 = vmatpush.bf16.msra.mxu1 %v3943_v5  ;;  %v3949_v14 = vld [vmem:[%s5174_s1 + $0xa0] sm:$0xff]  ;;  %v3948_v18 = vld [vmem:[%s5174_s1 + $0x98] sm:$0xff]  ;;  %v3947_v22 = vld [vmem:[%s5174_s1 + $0x90] sm:$0xff] }
   0x8   :  { %2280 = vmatpush.bf16.msra.mxu2 %v3951_v6  ;;  %v3957_v15 = vld [vmem:[%s5174_s1 + $0xe0] sm:$0xff]  ;;  %v3956_v19 = vld [vmem:[%s5174_s1 + $0xd8] sm:$0xff]  ;;  %v3955_v23 = vld [vmem:[%s5174_s1 + $0xd0] sm:$0xff] }
   0x9   :  { %2294 = vmatpush.bf16.msra.mxu3 %v3959_v7  ;;  %v3930_v24 = vld [vmem:[%s5174_s1 + $0x8] sm:$0xff]  ;;  %v3929_v28 = vld [vmem:[%s5174_s1] sm:$0xff]  ;;  %v3968_v32 = vld [vmem:[%s5174_s1 + $0x138] sm:$0xff] }
   0xa   :  { %2253 = vmatpush.bf16.msra.mxu0 %v3934_v8  ;;  %v3938_v25 = vld [vmem:[%s5174_s1 + $0x48] sm:$0xff]  ;;  %v3937_v29 = vld [vmem:[%s5174_s1 + $0x40] sm:$0xff]  ;;  %v3976_v33 = vld [vmem:[%s5174_s1 + $0x178] sm:$0xff] }
   0xb   :  { %2267 = vmatpush.bf16.msra.mxu1 %v3942_v9  ;;  %v3946_v26 = vld [vmem:[%s5174_s1 + $0x88] sm:$0xff]  ;;  %v3945_v30 = vld [vmem:[%s5174_s1 + $0x80] sm:$0xff]  ;;  %v3984_v42 = vld [vmem:[%s5174_s1 + $0x1b8] sm:$0xff] }
   0xc   :  { %2281 = vmatpush.bf16.msra.mxu2 %v3950_v10  ;;  %v3954_v27 = vld [vmem:[%s5174_s1 + $0xc8] sm:$0xff]  ;;  %v3953_v31 = vld [vmem:[%s5174_s1 + $0xc0] sm:$0xff]  ;;  %v3992_v43 = vld [vmem:[%s5174_s1 + $0x1f8] sm:$0xff] }
   0xd   :  { %2295 = vmatpush.bf16.msra.mxu3 %v3958_v11  ;;  %v2745_v34 = vld [vmem:[%s5175_s0] sm:$0xf]  ;;  %v2753_v36 = vld [vmem:[%s5175_s0 + $0x8] sm:$0xf]  ;;  %v3897_v38 = vld [vmem:[%s5175_s0 + $0x4] sm:$0xf] }
   0xe   :  { %2254 = vmatpush.bf16.msra.mxu0 %v3933_v12  ;;  %v3913_v35 = vld [vmem:[%s5175_s0 + $0x7c] sm:$0xf0]  ;;  %v3914_v37 = vld [vmem:[%s5175_s0 + $0x84] sm:$0xf0]  ;;  %v2747_v39 = vld [vmem:[%s5175_s0 + $0x80] sm:$0xf0] }
   0xf   :  { %2268 = vmatpush.bf16.msra.mxu1 %v3941_v13  ;;  %v3898_v40 = vld [vmem:[%s5175_s0 + $0xc] sm:$0xf]  ;;  %v2746_v44 = vor.u32 %v3913_v35, %v2745_v34  ;;  %v2754_v45 = vor.u32 %v3914_v37, %v2753_v36  ;;  %v2750_v46 = vor.u32 %v3897_v38, %v2747_v39  ;;  %v3967_v48 = vld [vmem:[%s5174_s1 + $0x130] sm:$0xff]  ;;  %v3965_v56 = vld [vmem:[%s5174_s1 + $0x120] sm:$0xff] }
  0x10   :  { %2282 = vmatpush.bf16.msra.mxu2 %v3949_v14  ;;  %v2755_v41 = vld [vmem:[%s5175_s0 + $0x88] sm:$0xf0]  ;;  %v3975_v49 = vld [vmem:[%s5174_s1 + $0x170] sm:$0xff]  ;;  %v3973_v57 = vld [vmem:[%s5174_s1 + $0x160] sm:$0xff] }
  0x11   :  { %2296 = vmatpush.bf16.msra.mxu3 %v3957_v15  ;;  %v2758_v47 = vor.u32 %v3898_v40, %v2755_v41  ;;  %v3983_v50 = vld [vmem:[%s5174_s1 + $0x1b0] sm:$0xff]  ;;  %v3966_v52 = vld [vmem:[%s5174_s1 + $0x128] sm:$0xff]  ;;  %v3981_v58 = vld [vmem:[%s5174_s1 + $0x1a0] sm:$0xff] }
  0x12   :  { %2255 = vmatpush.bf16.msra.mxu0 %v3932_v16  ;;  %v3991_v51 = vld [vmem:[%s5174_s1 + $0x1f0] sm:$0xff]  ;;  %v3974_v53 = vld [vmem:[%s5174_s1 + $0x168] sm:$0xff]  ;;  %v3989_v59 = vld [vmem:[%s5174_s1 + $0x1e0] sm:$0xff] }
  0x13   :  { %2269 = vmatpush.bf16.msra.mxu1 %v3940_v17  ;;  %v3982_v54 = vld [vmem:[%s5174_s1 + $0x1a8] sm:$0xff]  ;;  %v3964_v60 = vld [vmem:[%s5174_s1 + $0x118] sm:$0xff]  ;;  %v3963_v0 = vld [vmem:[%s5174_s1 + $0x110] sm:$0xff] }
  0x14   :  { %2283 = vmatpush.bf16.msra.mxu2 %v3948_v18  ;;  %v3990_v55 = vld [vmem:[%s5174_s1 + $0x1e8] sm:$0xff]  ;;  %v3972_v61 = vld [vmem:[%s5174_s1 + $0x158] sm:$0xff]  ;;  %v3971_v1 = vld [vmem:[%s5174_s1 + $0x150] sm:$0xff] }
  0x15   :  { %2297 = vmatpush.bf16.msra.mxu3 %v3956_v19  ;;  %v3980_v62 = vld [vmem:[%s5174_s1 + $0x198] sm:$0xff]  ;;  %v3979_v2 = vld [vmem:[%s5174_s1 + $0x190] sm:$0xff]  ;;  %v3962_v4 = vld [vmem:[%s5174_s1 + $0x108] sm:$0xff] }
  0x16   :  { %2256 = vmatpush.bf16.msra.mxu0 %v3931_v20  ;;  %v3988_v63 = vld [vmem:[%s5174_s1 + $0x1d8] sm:$0xff]  ;;  %v3987_v3 = vld [vmem:[%s5174_s1 + $0x1d0] sm:$0xff]  ;;  %v3970_v5 = vld [vmem:[%s5174_s1 + $0x148] sm:$0xff] }
  0x17   :  { %2270 = vmatpush.bf16.msra.mxu1 %v3939_v21  ;;  %v3978_v6 = vld [vmem:[%s5174_s1 + $0x188] sm:$0xff]  ;;  %v3961_v8 = vld [vmem:[%s5174_s1 + $0x100] sm:$0xff]  ;;  %v4000_v12 = vld [vmem:[%s5174_s1 + $0x238] sm:$0xff] }
  0x18   :  { %2284 = vmatpush.bf16.msra.mxu2 %v3947_v22  ;;  %v3986_v7 = vld [vmem:[%s5174_s1 + $0x1c8] sm:$0xff]  ;;  %v3969_v9 = vld [vmem:[%s5174_s1 + $0x140] sm:$0xff]  ;;  %v4008_v13 = vld [vmem:[%s5174_s1 + $0x278] sm:$0xff] }
  0x19   :  { %2298 = vmatpush.bf16.msra.mxu3 %v3955_v23  ;;  %v3977_v10 = vld [vmem:[%s5174_s1 + $0x180] sm:$0xff]  ;;  %v2761_v14 = vld [vmem:[%s5175_s0 + $0x10] sm:$0xf]  ;;  %v2769_v16 = vld [vmem:[%s5175_s0 + $0x18] sm:$0xf] }
  0x1a   :  { %2257 = vmatpush.bf16.msra.mxu0 %v3930_v24  ;;  %v3985_v11 = vld [vmem:[%s5174_s1 + $0x1c0] sm:$0xff]  ;;  %v3915_v15 = vld [vmem:[%s5175_s0 + $0x8c] sm:$0xf0]  ;;  %v3916_v17 = vld [vmem:[%s5175_s0 + $0x94] sm:$0xf0] }
  0x1b   :  { %2271 = vmatpush.bf16.msra.mxu1 %v3938_v25  ;;  %v3899_v18 = vld [vmem:[%s5175_s0 + $0x14] sm:$0xf]  ;;  %v3900_v20 = vld [vmem:[%s5175_s0 + $0x1c] sm:$0xf]  ;;  %v2762_v24 = vor.u32 %v3915_v15, %v2761_v14  ;;  %v2770_v25 = vor.u32 %v3916_v17, %v2769_v16  ;;  %v4014_v34 = vld [vmem:[%s5174_s1 + $0x2a8] sm:$0xff] }
  0x1c   :  { %2285 = vmatpush.bf16.msra.mxu2 %v3946_v26  ;;  %v2763_v19 = vld [vmem:[%s5175_s0 + $0x90] sm:$0xf0]  ;;  %v2771_v21 = vld [vmem:[%s5175_s0 + $0x98] sm:$0xf0]  ;;  %v4022_v35 = vld [vmem:[%s5174_s1 + $0x2e8] sm:$0xff] }
  0x1d   :  { %2299 = vmatpush.bf16.msra.mxu3 %v3954_v27  ;;  %v4016_v22 = vld [vmem:[%s5174_s1 + $0x2b8] sm:$0xff]  ;;  %v2766_v26 = vor.u32 %v3899_v18, %v2763_v19  ;;  %v2774_v27 = vor.u32 %v3900_v20, %v2771_v21  ;;  %v3997_v36 = vld [vmem:[%s5174_s1 + $0x220] sm:$0xff]  ;;  %v4046_v14 = vld [vmem:[%s5174_s1 + $0x3a8] sm:$0xff] }
  0x1e   :  { %2258 = vmatpush.bf16.msra.mxu0 %v3929_v28  ;;  %v4024_v23 = vld [vmem:[%s5174_s1 + $0x2f8] sm:$0xff]  ;;  %v3999_v28 = vld [vmem:[%s5174_s1 + $0x230] sm:$0xff]  ;;  %v4005_v37 = vld [vmem:[%s5174_s1 + $0x260] sm:$0xff] }
  0x1f   :  { %2272 = vmatpush.bf16.msra.mxu1 %v3937_v29  ;;  %v4007_v29 = vld [vmem:[%s5174_s1 + $0x270] sm:$0xff]  ;;  %v4013_v38 = vld [vmem:[%s5174_s1 + $0x2a0] sm:$0xff]  ;;  %v3996_v40 = vld [vmem:[%s5174_s1 + $0x218] sm:$0xff] }
  0x20   :  { %2286 = vmatpush.bf16.msra.mxu2 %v3945_v30  ;;  %v4015_v30 = vld [vmem:[%s5174_s1 + $0x2b0] sm:$0xff]  ;;  %v4021_v39 = vld [vmem:[%s5174_s1 + $0x2e0] sm:$0xff]  ;;  %v4004_v41 = vld [vmem:[%s5174_s1 + $0x258] sm:$0xff] }
  0x21   :  { %2300 = vmatpush.bf16.msra.mxu3 %v3953_v31  ;;  %2259 = vmatmul.bf16.vlgmr.msra.gmra.mxu0 %v2746_v44  ;;  %v4023_v31 = vld [vmem:[%s5174_s1 + $0x2f0] sm:$0xff]  ;;  %v4054_v15 = vld [vmem:[%s5174_s1 + $0x3e8] sm:$0xff]  ;;  %v4029_v16 = vld [vmem:[%s5174_s1 + $0x320] sm:$0xff] }
  0x22   :  { %2307 = vmatpush.bf16.msrb.mxu0 %v3968_v32  ;;  %2273 = vmatmul.bf16.vlgmr.msra.gmra.mxu1 %v2750_v46  ;;  %v3998_v32 = vld [vmem:[%s5174_s1 + $0x228] sm:$0xff]  ;;  %v3995_v44 = vld [vmem:[%s5174_s1 + $0x210] sm:$0xff]  ;;  %v4037_v17 = vld [vmem:[%s5174_s1 + $0x360] sm:$0xff] }
  0x23   :  { %2321 = vmatpush.bf16.msrb.mxu1 %v3976_v33  ;;  %2287 = vmatmul.bf16.vlgmr.msra.gmra.mxu2 %v2754_v45  ;;  %v4006_v33 = vld [vmem:[%s5174_s1 + $0x268] sm:$0xff]  ;;  %v4003_v45 = vld [vmem:[%s5174_s1 + $0x250] sm:$0xff]  ;;  %v4045_v18 = vld [vmem:[%s5174_s1 + $0x3a0] sm:$0xff] }
  0x24   :  { %2335 = vmatpush.bf16.msrb.mxu2 %v3984_v42  ;;  %2301 = vmatmul.bf16.vlgmr.msra.gmra.mxu3 %v2758_v47  ;;  %v4012_v42 = vld [vmem:[%s5174_s1 + $0x298] sm:$0xff]  ;;  %v4011_v46 = vld [vmem:[%s5174_s1 + $0x290] sm:$0xff]  ;;  %v4053_v19 = vld [vmem:[%s5174_s1 + $0x3e0] sm:$0xff] }
  0x25   :  { %2349 = vmatpush.bf16.msrb.mxu3 %v3992_v43  ;;  %v4020_v43 = vld [vmem:[%s5174_s1 + $0x2d8] sm:$0xff]  ;;  %v4019_v47 = vld [vmem:[%s5174_s1 + $0x2d0] sm:$0xff] }
  0x26   :  { %2308 = vmatpush.bf16.msrb.mxu0 %v3967_v48  ;;  %v3994_v48 = vld [vmem:[%s5174_s1 + $0x208] sm:$0xff]  ;;  %v4028_v20 = vld [vmem:[%s5174_s1 + $0x318] sm:$0xff] }
  0x27   :  { %2322 = vmatpush.bf16.msrb.mxu1 %v3975_v49  ;;  %v4002_v49 = vld [vmem:[%s5174_s1 + $0x248] sm:$0xff]  ;;  %v4036_v21 = vld [vmem:[%s5174_s1 + $0x358] sm:$0xff] }
  0x28   :  { %2336 = vmatpush.bf16.msrb.mxu2 %v3983_v50  ;;  %v4010_v50 = vld [vmem:[%s5174_s1 + $0x288] sm:$0xff] }
  0x29   :  { %2350 = vmatpush.bf16.msrb.mxu3 %v3991_v51  ;;  %v4018_v51 = vld [vmem:[%s5174_s1 + $0x2c8] sm:$0xff] }
  0x2a   :  { %2309 = vmatpush.bf16.msrb.mxu0 %v3966_v52  ;;  %v3993_v52 = vld [vmem:[%s5174_s1 + $0x200] sm:$0xff] }
  0x2b   :  { %2323 = vmatpush.bf16.msrb.mxu1 %v3974_v53  ;;  %v4001_v53 = vld [vmem:[%s5174_s1 + $0x240] sm:$0xff] }
  0x2c   :  { %2337 = vmatpush.bf16.msrb.mxu2 %v3982_v54  ;;  %v4009_v54 = vld [vmem:[%s5174_s1 + $0x280] sm:$0xff] }
  0x2d   :  { %2351 = vmatpush.bf16.msrb.mxu3 %v3990_v55  ;;  %v4017_v55 = vld [vmem:[%s5174_s1 + $0x2c0] sm:$0xff] }
  0x2e   :  { %2310 = vmatpush.bf16.msrb.mxu0 %v3965_v56  ;;  %v4032_v56 = vld [vmem:[%s5174_s1 + $0x338] sm:$0xff] }
  0x2f   :  { %2324 = vmatpush.bf16.msrb.mxu1 %v3973_v57  ;;  %v4040_v57 = vld [vmem:[%s5174_s1 + $0x378] sm:$0xff] }
  0x30   :  { %2338 = vmatpush.bf16.msrb.mxu2 %v3981_v58  ;;  %v2777_v58 = vld [vmem:[%s5175_s0 + $0x20] sm:$0xf] }
  0x31   :  { %2352 = vmatpush.bf16.msrb.mxu3 %v3989_v59  ;;  %v3917_v59 = vld [vmem:[%s5175_s0 + $0x9c] sm:$0xf0] }
  0x32   :  { %2311 = vmatpush.bf16.msrb.mxu0 %v3964_v60  ;;  %v2785_v60 = vld [vmem:[%s5175_s0 + $0x28] sm:$0xf] }
  0x33   :  { %2325 = vmatpush.bf16.msrb.mxu1 %v3972_v61  ;;  %v3918_v61 = vld [vmem:[%s5175_s0 + $0xa4] sm:$0xf0] }
  0x34   :  { %2339 = vmatpush.bf16.msrb.mxu2 %v3980_v62  ;;  %v3901_v62 = vld [vmem:[%s5175_s0 + $0x24] sm:$0xf] }
  0x35   :  { %2353 = vmatpush.bf16.msrb.mxu3 %v3988_v63  ;;  %v2779_v63 = vld [vmem:[%s5175_s0 + $0xa0] sm:$0xf0] }
  0x36   :  { %2312 = vmatpush.bf16.msrb.mxu0 %v3963_v0  ;;  %v3902_v0 = vld [vmem:[%s5175_s0 + $0x2c] sm:$0xf] }
  0x37   :  { %2326 = vmatpush.bf16.msrb.mxu1 %v3971_v1  ;;  %v2787_v1 = vld [vmem:[%s5175_s0 + $0xa8] sm:$0xf0] }
  0x38   :  { %2340 = vmatpush.bf16.msrb.mxu2 %v3979_v2  ;;  %v4048_v2 = vld [vmem:[%s5174_s1 + $0x3b8] sm:$0xff] }
  0x39   :  { %2354 = vmatpush.bf16.msrb.mxu3 %v3987_v3  ;;  %v4056_v3 = vld [vmem:[%s5174_s1 + $0x3f8] sm:$0xff] }
  0x3a   :  { %2313 = vmatpush.bf16.msrb.mxu0 %v3962_v4  ;;  %v2778_v4 = vor.u32 %v3917_v59, %v2777_v58  ;;  %v4078_v58 = vld [vmem:[%s5174_s1 + $0x4a8] sm:$0xff] }
  0x3b   :  { %2327 = vmatpush.bf16.msrb.mxu1 %v3970_v5  ;;  %v2786_v5 = vor.u32 %v3918_v61, %v2785_v60  ;;  %v4086_v59 = vld [vmem:[%s5174_s1 + $0x4e8] sm:$0xff]  ;;  %v4061_v60 = vld [vmem:[%s5174_s1 + $0x420] sm:$0xff] }
  0x3c   :  { %2341 = vmatpush.bf16.msrb.mxu2 %v3978_v6  ;;  %v2782_v6 = vor.u32 %v3901_v62, %v2779_v63  ;;  %v4069_v61 = vld [vmem:[%s5174_s1 + $0x460] sm:$0xff] }
  0x3d   :  { %2355 = vmatpush.bf16.msrb.mxu3 %v3986_v7  ;;  %v2790_v7 = vor.u32 %v3902_v0, %v2787_v1  ;;  %v4077_v62 = vld [vmem:[%s5174_s1 + $0x4a0] sm:$0xff]  ;;  %v4060_v0 = vld [vmem:[%s5174_s1 + $0x418] sm:$0xff] }
  0x3e   :  { %2314 = vmatpush.bf16.msrb.mxu0 %v3961_v8  ;;  %v4031_v8 = vld [vmem:[%s5174_s1 + $0x330] sm:$0xff]  ;;  %v4085_v63 = vld [vmem:[%s5174_s1 + $0x4e0] sm:$0xff]  ;;  %v4068_v1 = vld [vmem:[%s5174_s1 + $0x458] sm:$0xff] }
  0x3f   :  { %2328 = vmatpush.bf16.msrb.mxu1 %v3969_v9  ;;  %v4039_v9 = vld [vmem:[%s5174_s1 + $0x370] sm:$0xff] }
  0x40   :  { %2342 = vmatpush.bf16.msrb.mxu2 %v3977_v10  ;;  %v4047_v10 = vld [vmem:[%s5174_s1 + $0x3b0] sm:$0xff] }
  0x41   :  { %2356 = vmatpush.bf16.msrb.mxu3 %v3985_v11  ;;  %2315 = vmatmul.bf16.vlgmr.msrb.gmra.mxu0 %v2762_v24  ;;  %v4055_v11 = vld [vmem:[%s5174_s1 + $0x3f0] sm:$0xff] }
  0x42   :  { %2363 = vmatpush.bf16.msra.mxu0 %v4000_v12  ;;  %2329 = vmatmul.bf16.vlgmr.msrb.gmra.mxu1 %v2766_v26  ;;  %v4030_v12 = vld [vmem:[%s5174_s1 + $0x328] sm:$0xff]  ;;  %v4027_v24 = vld [vmem:[%s5174_s1 + $0x310] sm:$0xff] }
  0x43   :  { %2377 = vmatpush.bf16.msra.mxu1 %v4008_v13  ;;  %2343 = vmatmul.bf16.vlgmr.msrb.gmra.mxu2 %v2770_v25  ;;  %v4038_v13 = vld [vmem:[%s5174_s1 + $0x368] sm:$0xff]  ;;  %v4035_v25 = vld [vmem:[%s5174_s1 + $0x350] sm:$0xff] }
  0x44   :  { %2391 = vmatpush.bf16.msra.mxu2 %v4016_v22  ;;  %2357 = vmatmul.bf16.vlgmr.msrb.gmra.mxu3 %v2774_v27  ;;  %v4044_v22 = vld [vmem:[%s5174_s1 + $0x398] sm:$0xff]  ;;  %v4043_v26 = vld [vmem:[%s5174_s1 + $0x390] sm:$0xff] }
  0x45   :  { %2405 = vmatpush.bf16.msra.mxu3 %v4024_v23  ;;  %v4052_v23 = vld [vmem:[%s5174_s1 + $0x3d8] sm:$0xff]  ;;  %v4051_v27 = vld [vmem:[%s5174_s1 + $0x3d0] sm:$0xff] }
  0x46   :  { %2364 = vmatpush.bf16.msra.mxu0 %v3999_v28  ;;  %v4026_v28 = vld [vmem:[%s5174_s1 + $0x308] sm:$0xff] }
  0x47   :  { %2378 = vmatpush.bf16.msra.mxu1 %v4007_v29  ;;  %v4034_v29 = vld [vmem:[%s5174_s1 + $0x348] sm:$0xff] }
  0x48   :  { %2392 = vmatpush.bf16.msra.mxu2 %v4015_v30  ;;  %v4042_v30 = vld [vmem:[%s5174_s1 + $0x388] sm:$0xff] }
  0x49   :  { %2406 = vmatpush.bf16.msra.mxu3 %v4023_v31  ;;  %v4050_v31 = vld [vmem:[%s5174_s1 + $0x3c8] sm:$0xff] }
  0x4a   :  { %2365 = vmatpush.bf16.msra.mxu0 %v3998_v32  ;;  %v4025_v32 = vld [vmem:[%s5174_s1 + $0x300] sm:$0xff] }
  0x4b   :  { %2379 = vmatpush.bf16.msra.mxu1 %v4006_v33  ;;  %v4033_v33 = vld [vmem:[%s5174_s1 + $0x340] sm:$0xff] }
  0x4c   :  { %2393 = vmatpush.bf16.msra.mxu2 %v4014_v34  ;;  %v4041_v34 = vld [vmem:[%s5174_s1 + $0x380] sm:$0xff] }
  0x4d   :  { %2407 = vmatpush.bf16.msra.mxu3 %v4022_v35  ;;  %v4049_v35 = vld [vmem:[%s5174_s1 + $0x3c0] sm:$0xff] }
  0x4e   :  { %2366 = vmatpush.bf16.msra.mxu0 %v3997_v36  ;;  %v4064_v36 = vld [vmem:[%s5174_s1 + $0x438] sm:$0xff] }
  0x4f   :  { %2380 = vmatpush.bf16.msra.mxu1 %v4005_v37  ;;  %v4072_v37 = vld [vmem:[%s5174_s1 + $0x478] sm:$0xff] }
  0x50   :  { %2394 = vmatpush.bf16.msra.mxu2 %v4013_v38  ;;  %v2793_v38 = vld [vmem:[%s5175_s0 + $0x30] sm:$0xf] }
  0x51   :  { %2408 = vmatpush.bf16.msra.mxu3 %v4021_v39  ;;  %v3919_v39 = vld [vmem:[%s5175_s0 + $0xac] sm:$0xf0] }
  0x52   :  { %2367 = vmatpush.bf16.msra.mxu0 %v3996_v40  ;;  %v2801_v40 = vld [vmem:[%s5175_s0 + $0x38] sm:$0xf] }
  0x53   :  { %2381 = vmatpush.bf16.msra.mxu1 %v4004_v41  ;;  %v3920_v41 = vld [vmem:[%s5175_s0 + $0xb4] sm:$0xf0] }
  0x54   :  { %2395 = vmatpush.bf16.msra.mxu2 %v4012_v42  ;;  %v3903_v42 = vld [vmem:[%s5175_s0 + $0x34] sm:$0xf] }
  0x55   :  { %2409 = vmatpush.bf16.msra.mxu3 %v4020_v43  ;;  %v2795_v43 = vld [vmem:[%s5175_s0 + $0xb0] sm:$0xf0] }
  0x56   :  { %2368 = vmatpush.bf16.msra.mxu0 %v3995_v44  ;;  %v3904_v44 = vld [vmem:[%s5175_s0 + $0x3c] sm:$0xf] }
  0x57   :  { %2382 = vmatpush.bf16.msra.mxu1 %v4003_v45  ;;  %v2803_v45 = vld [vmem:[%s5175_s0 + $0xb8] sm:$0xf0] }
  0x58   :  { %2396 = vmatpush.bf16.msra.mxu2 %v4011_v46  ;;  %v4080_v46 = vld [vmem:[%s5174_s1 + $0x4b8] sm:$0xff] }
  0x59   :  { %2410 = vmatpush.bf16.msra.mxu3 %v4019_v47  ;;  %v4088_v47 = vld [vmem:[%s5174_s1 + $0x4f8] sm:$0xff] }
  0x5a   :  { %2369 = vmatpush.bf16.msra.mxu0 %v3994_v48  ;;  %v2794_v48 = vor.u32 %v3919_v39, %v2793_v38  ;;  %v4110_v38 = vld [vmem:[%s5174_s1 + $0x5a8] sm:$0xff] }
  0x5b   :  { %2383 = vmatpush.bf16.msra.mxu1 %v4002_v49  ;;  %v2802_v49 = vor.u32 %v3920_v41, %v2801_v40  ;;  %v4118_v39 = vld [vmem:[%s5174_s1 + $0x5e8] sm:$0xff]  ;;  %v4093_v40 = vld [vmem:[%s5174_s1 + $0x520] sm:$0xff] }
  0x5c   :  { %2397 = vmatpush.bf16.msra.mxu2 %v4010_v50  ;;  %v2798_v50 = vor.u32 %v3903_v42, %v2795_v43  ;;  %v4101_v41 = vld [vmem:[%s5174_s1 + $0x560] sm:$0xff] }
  0x5d   :  { %2411 = vmatpush.bf16.msra.mxu3 %v4018_v51  ;;  %v2806_v51 = vor.u32 %v3904_v44, %v2803_v45  ;;  %v4109_v42 = vld [vmem:[%s5174_s1 + $0x5a0] sm:$0xff]  ;;  %v4092_v44 = vld [vmem:[%s5174_s1 + $0x518] sm:$0xff] }
  0x5e   :  { %2370 = vmatpush.bf16.msra.mxu0 %v3993_v52  ;;  %v4063_v52 = vld [vmem:[%s5174_s1 + $0x430] sm:$0xff]  ;;  %v4117_v43 = vld [vmem:[%s5174_s1 + $0x5e0] sm:$0xff]  ;;  %v4100_v45 = vld [vmem:[%s5174_s1 + $0x558] sm:$0xff] }
  0x5f   :  { %2384 = vmatpush.bf16.msra.mxu1 %v4001_v53  ;;  %v4071_v53 = vld [vmem:[%s5174_s1 + $0x470] sm:$0xff] }
  0x60   :  { %2398 = vmatpush.bf16.msra.mxu2 %v4009_v54  ;;  %v4079_v54 = vld [vmem:[%s5174_s1 + $0x4b0] sm:$0xff] }
  0x61   :  { %2412 = vmatpush.bf16.msra.mxu3 %v4017_v55  ;;  %2371 = vmatmul.bf16.vlgmr.msra.gmra.mxu0 %v2778_v4  ;;  %v4087_v55 = vld [vmem:[%s5174_s1 + $0x4f0] sm:$0xff] }
  0x62   :  { %2419 = vmatpush.bf16.msrb.mxu0 %v4032_v56  ;;  %2385 = vmatmul.bf16.vlgmr.msra.gmra.mxu1 %v2782_v6  ;;  %v4062_v56 = vld [vmem:[%s5174_s1 + $0x428] sm:$0xff]  ;;  %v4059_v4 = vld [vmem:[%s5174_s1 + $0x410] sm:$0xff] }
  0x63   :  { %2433 = vmatpush.bf16.msrb.mxu1 %v4040_v57  ;;  %2399 = vmatmul.bf16.vlgmr.msra.gmra.mxu2 %v2786_v5  ;;  %v4070_v57 = vld [vmem:[%s5174_s1 + $0x468] sm:$0xff]  ;;  %v4067_v5 = vld [vmem:[%s5174_s1 + $0x450] sm:$0xff] }
  0x64   :  { %2447 = vmatpush.bf16.msrb.mxu2 %v4048_v2  ;;  %2413 = vmatmul.bf16.vlgmr.msra.gmra.mxu3 %v2790_v7  ;;  %v4076_v2 = vld [vmem:[%s5174_s1 + $0x498] sm:$0xff]  ;;  %v4075_v6 = vld [vmem:[%s5174_s1 + $0x490] sm:$0xff] }
  0x65   :  { %2461 = vmatpush.bf16.msrb.mxu3 %v4056_v3  ;;  %v4084_v3 = vld [vmem:[%s5174_s1 + $0x4d8] sm:$0xff]  ;;  %v4083_v7 = vld [vmem:[%s5174_s1 + $0x4d0] sm:$0xff] }
  0x66   :  { %2420 = vmatpush.bf16.msrb.mxu0 %v4031_v8  ;;  %v4058_v8 = vld [vmem:[%s5174_s1 + $0x408] sm:$0xff] }
  0x67   :  { %2434 = vmatpush.bf16.msrb.mxu1 %v4039_v9  ;;  %v4066_v9 = vld [vmem:[%s5174_s1 + $0x448] sm:$0xff] }
  0x68   :  { %2448 = vmatpush.bf16.msrb.mxu2 %v4047_v10  ;;  %v4074_v10 = vld [vmem:[%s5174_s1 + $0x488] sm:$0xff] }
  0x69   :  { %2462 = vmatpush.bf16.msrb.mxu3 %v4055_v11  ;;  %v4082_v11 = vld [vmem:[%s5174_s1 + $0x4c8] sm:$0xff] }
  0x6a   :  { %2421 = vmatpush.bf16.msrb.mxu0 %v4030_v12  ;;  %v4057_v12 = vld [vmem:[%s5174_s1 + $0x400] sm:$0xff] }
  0x6b   :  { %2435 = vmatpush.bf16.msrb.mxu1 %v4038_v13  ;;  %v4065_v13 = vld [vmem:[%s5174_s1 + $0x440] sm:$0xff] }
  0x6c   :  { %2449 = vmatpush.bf16.msrb.mxu2 %v4046_v14  ;;  %v4073_v14 = vld [vmem:[%s5174_s1 + $0x480] sm:$0xff] }
  0x6d   :  { %2463 = vmatpush.bf16.msrb.mxu3 %v4054_v15  ;;  %v4081_v15 = vld [vmem:[%s5174_s1 + $0x4c0] sm:$0xff] }
  0x6e   :  { %2422 = vmatpush.bf16.msrb.mxu0 %v4029_v16  ;;  %v4096_v16 = vld [vmem:[%s5174_s1 + $0x538] sm:$0xff] }
  0x6f   :  { %2436 = vmatpush.bf16.msrb.mxu1 %v4037_v17  ;;  %v4104_v17 = vld [vmem:[%s5174_s1 + $0x578] sm:$0xff] }
  0x70   :  { %2450 = vmatpush.bf16.msrb.mxu2 %v4045_v18  ;;  %v2809_v18 = vld [vmem:[%s5175_s0 + $0x40] sm:$0xf] }
  0x71   :  { %2464 = vmatpush.bf16.msrb.mxu3 %v4053_v19  ;;  %v3921_v19 = vld [vmem:[%s5175_s0 + $0xbc] sm:$0xf0] }
  0x72   :  { %2423 = vmatpush.bf16.msrb.mxu0 %v4028_v20  ;;  %v2817_v20 = vld [vmem:[%s5175_s0 + $0x48] sm:$0xf] }
  0x73   :  { %2437 = vmatpush.bf16.msrb.mxu1 %v4036_v21  ;;  %v3922_v21 = vld [vmem:[%s5175_s0 + $0xc4] sm:$0xf0] }
  0x74   :  { %2451 = vmatpush.bf16.msrb.mxu2 %v4044_v22  ;;  %v3905_v22 = vld [vmem:[%s5175_s0 + $0x44] sm:$0xf] }
  0x75   :  { %2465 = vmatpush.bf16.msrb.mxu3 %v4052_v23  ;;  %v2811_v23 = vld [vmem:[%s5175_s0 + $0xc0] sm:$0xf0] }
  0x76   :  { %2424 = vmatpush.bf16.msrb.mxu0 %v4027_v24  ;;  %v3906_v24 = vld [vmem:[%s5175_s0 + $0x4c] sm:$0xf] }
  0x77   :  { %2438 = vmatpush.bf16.msrb.mxu1 %v4035_v25  ;;  %v2819_v25 = vld [vmem:[%s5175_s0 + $0xc8] sm:$0xf0] }
  0x78   :  { %2452 = vmatpush.bf16.msrb.mxu2 %v4043_v26  ;;  %v4112_v26 = vld [vmem:[%s5174_s1 + $0x5b8] sm:$0xff] }
  0x79   :  { %2466 = vmatpush.bf16.msrb.mxu3 %v4051_v27  ;;  %v4120_v27 = vld [vmem:[%s5174_s1 + $0x5f8] sm:$0xff] }
  0x7a   :  { %2425 = vmatpush.bf16.msrb.mxu0 %v4026_v28  ;;  %v2810_v28 = vor.u32 %v3921_v19, %v2809_v18  ;;  %v4142_v18 = vld [vmem:[%s5174_s1 + $0x6a8] sm:$0xff] }
  0x7b   :  { %2439 = vmatpush.bf16.msrb.mxu1 %v4034_v29  ;;  %v2818_v29 = vor.u32 %v3922_v21, %v2817_v20  ;;  %v4150_v19 = vld [vmem:[%s5174_s1 + $0x6e8] sm:$0xff]  ;;  %v4125_v20 = vld [vmem:[%s5174_s1 + $0x620] sm:$0xff] }
  0x7c   :  { %2453 = vmatpush.bf16.msrb.mxu2 %v4042_v30  ;;  %v2814_v30 = vor.u32 %v3905_v22, %v2811_v23  ;;  %v4133_v21 = vld [vmem:[%s5174_s1 + $0x660] sm:$0xff] }
  0x7d   :  { %2467 = vmatpush.bf16.msrb.mxu3 %v4050_v31  ;;  %v2822_v31 = vor.u32 %v3906_v24, %v2819_v25  ;;  %v4141_v22 = vld [vmem:[%s5174_s1 + $0x6a0] sm:$0xff]  ;;  %v4124_v24 = vld [vmem:[%s5174_s1 + $0x618] sm:$0xff] }
  0x7e   :  { %2426 = vmatpush.bf16.msrb.mxu0 %v4025_v32  ;;  %v4095_v32 = vld [vmem:[%s5174_s1 + $0x530] sm:$0xff]  ;;  %v4149_v23 = vld [vmem:[%s5174_s1 + $0x6e0] sm:$0xff]  ;;  %v4132_v25 = vld [vmem:[%s5174_s1 + $0x658] sm:$0xff] }
  0x7f   :  { %2440 = vmatpush.bf16.msrb.mxu1 %v4033_v33  ;;  %v4103_v33 = vld [vmem:[%s5174_s1 + $0x570] sm:$0xff] }
  0x80   :  { %2454 = vmatpush.bf16.msrb.mxu2 %v4041_v34  ;;  %v4111_v34 = vld [vmem:[%s5174_s1 + $0x5b0] sm:$0xff] }
  0x81   :  { %2468 = vmatpush.bf16.msrb.mxu3 %v4049_v35  ;;  %2427 = vmatmul.bf16.vlgmr.msrb.gmra.mxu0 %v2794_v48  ;;  %v4119_v35 = vld [vmem:[%s5174_s1 + $0x5f0] sm:$0xff] }
  0x82   :  { %2475 = vmatpush.bf16.msra.mxu0 %v4064_v36  ;;  %2441 = vmatmul.bf16.vlgmr.msrb.gmra.mxu1 %v2798_v50  ;;  %v4094_v36 = vld [vmem:[%s5174_s1 + $0x528] sm:$0xff]  ;;  %v4091_v48 = vld [vmem:[%s5174_s1 + $0x510] sm:$0xff] }
  0x83   :  { %2489 = vmatpush.bf16.msra.mxu1 %v4072_v37  ;;  %2455 = vmatmul.bf16.vlgmr.msrb.gmra.mxu2 %v2802_v49  ;;  %v4102_v37 = vld [vmem:[%s5174_s1 + $0x568] sm:$0xff]  ;;  %v4099_v49 = vld [vmem:[%s5174_s1 + $0x550] sm:$0xff] }
  0x84   :  { %2503 = vmatpush.bf16.msra.mxu2 %v4080_v46  ;;  %2469 = vmatmul.bf16.vlgmr.msrb.gmra.mxu3 %v2806_v51  ;;  %v4108_v46 = vld [vmem:[%s5174_s1 + $0x598] sm:$0xff]  ;;  %v4107_v50 = vld [vmem:[%s5174_s1 + $0x590] sm:$0xff] }
  0x85   :  { %2517 = vmatpush.bf16.msra.mxu3 %v4088_v47  ;;  %v4116_v47 = vld [vmem:[%s5174_s1 + $0x5d8] sm:$0xff]  ;;  %v4115_v51 = vld [vmem:[%s5174_s1 + $0x5d0] sm:$0xff] }
  0x86   :  { %2476 = vmatpush.bf16.msra.mxu0 %v4063_v52  ;;  %v4090_v52 = vld [vmem:[%s5174_s1 + $0x508] sm:$0xff] }
  0x87   :  { %2490 = vmatpush.bf16.msra.mxu1 %v4071_v53  ;;  %v4098_v53 = vld [vmem:[%s5174_s1 + $0x548] sm:$0xff] }
  0x88   :  { %2504 = vmatpush.bf16.msra.mxu2 %v4079_v54  ;;  %v4106_v54 = vld [vmem:[%s5174_s1 + $0x588] sm:$0xff] }
  0x89   :  { %2518 = vmatpush.bf16.msra.mxu3 %v4087_v55  ;;  %v4114_v55 = vld [vmem:[%s5174_s1 + $0x5c8] sm:$0xff] }
  0x8a   :  { %2477 = vmatpush.bf16.msra.mxu0 %v4062_v56  ;;  %v4089_v56 = vld [vmem:[%s5174_s1 + $0x500] sm:$0xff] }
  0x8b   :  { %2491 = vmatpush.bf16.msra.mxu1 %v4070_v57  ;;  %v4097_v57 = vld [vmem:[%s5174_s1 + $0x540] sm:$0xff] }
  0x8c   :  { %2505 = vmatpush.bf16.msra.mxu2 %v4078_v58  ;;  %v4105_v58 = vld [vmem:[%s5174_s1 + $0x580] sm:$0xff] }
  0x8d   :  { %2519 = vmatpush.bf16.msra.mxu3 %v4086_v59  ;;  %v4113_v59 = vld [vmem:[%s5174_s1 + $0x5c0] sm:$0xff] }
  0x8e   :  { %2478 = vmatpush.bf16.msra.mxu0 %v4061_v60  ;;  %v4128_v60 = vld [vmem:[%s5174_s1 + $0x638] sm:$0xff] }
  0x8f   :  { %2492 = vmatpush.bf16.msra.mxu1 %v4069_v61  ;;  %v4136_v61 = vld [vmem:[%s5174_s1 + $0x678] sm:$0xff] }
  0x90   :  { %2506 = vmatpush.bf16.msra.mxu2 %v4077_v62  ;;  %v2825_v62 = vld [vmem:[%s5175_s0 + $0x50] sm:$0xf] }
  0x91   :  { %2520 = vmatpush.bf16.msra.mxu3 %v4085_v63  ;;  %v3923_v63 = vld [vmem:[%s5175_s0 + $0xcc] sm:$0xf0] }
  0x92   :  { %2479 = vmatpush.bf16.msra.mxu0 %v4060_v0  ;;  %v2833_v0 = vld [vmem:[%s5175_s0 + $0x58] sm:$0xf] }
  0x93   :  { %2493 = vmatpush.bf16.msra.mxu1 %v4068_v1  ;;  %v3924_v1 = vld [vmem:[%s5175_s0 + $0xd4] sm:$0xf0] }
  0x94   :  { %2507 = vmatpush.bf16.msra.mxu2 %v4076_v2  ;;  %v3907_v2 = vld [vmem:[%s5175_s0 + $0x54] sm:$0xf] }
  0x95   :  { %2521 = vmatpush.bf16.msra.mxu3 %v4084_v3  ;;  %v2827_v3 = vld [vmem:[%s5175_s0 + $0xd0] sm:$0xf0] }
  0x96   :  { %2480 = vmatpush.bf16.msra.mxu0 %v4059_v4  ;;  %v3908_v4 = vld [vmem:[%s5175_s0 + $0x5c] sm:$0xf] }
  0x97   :  { %2494 = vmatpush.bf16.msra.mxu1 %v4067_v5  ;;  %v2835_v5 = vld [vmem:[%s5175_s0 + $0xd8] sm:$0xf0] }
  0x98   :  { %2508 = vmatpush.bf16.msra.mxu2 %v4075_v6  ;;  %v4144_v6 = vld [vmem:[%s5174_s1 + $0x6b8] sm:$0xff] }
  0x99   :  { %2522 = vmatpush.bf16.msra.mxu3 %v4083_v7  ;;  %v4152_v7 = vld [vmem:[%s5174_s1 + $0x6f8] sm:$0xff] }
  0x9a   :  { %2481 = vmatpush.bf16.msra.mxu0 %v4058_v8  ;;  %v2826_v8 = vor.u32 %v3923_v63, %v2825_v62  ;;  %v4174_v62 = vld [vmem:[%s5174_s1 + $0x7a8] sm:$0xff] }
  0x9b   :  { %2495 = vmatpush.bf16.msra.mxu1 %v4066_v9  ;;  %v2834_v9 = vor.u32 %v3924_v1, %v2833_v0  ;;  %v4182_v63 = vld [vmem:[%s5174_s1 + $0x7e8] sm:$0xff]  ;;  %v4157_v0 = vld [vmem:[%s5174_s1 + $0x720] sm:$0xff] }
  0x9c   :  { %2509 = vmatpush.bf16.msra.mxu2 %v4074_v10  ;;  %v2830_v10 = vor.u32 %v3907_v2, %v2827_v3  ;;  %v4165_v1 = vld [vmem:[%s5174_s1 + $0x760] sm:$0xff] }
  0x9d   :  { %2523 = vmatpush.bf16.msra.mxu3 %v4082_v11  ;;  %v2838_v11 = vor.u32 %v3908_v4, %v2835_v5  ;;  %v4173_v2 = vld [vmem:[%s5174_s1 + $0x7a0] sm:$0xff]  ;;  %v4156_v4 = vld [vmem:[%s5174_s1 + $0x718] sm:$0xff] }
  0x9e   :  { %2482 = vmatpush.bf16.msra.mxu0 %v4057_v12  ;;  %v4127_v12 = vld [vmem:[%s5174_s1 + $0x630] sm:$0xff]  ;;  %v4181_v3 = vld [vmem:[%s5174_s1 + $0x7e0] sm:$0xff]  ;;  %v4164_v5 = vld [vmem:[%s5174_s1 + $0x758] sm:$0xff] }
  0x9f   :  { %2496 = vmatpush.bf16.msra.mxu1 %v4065_v13  ;;  %v4135_v13 = vld [vmem:[%s5174_s1 + $0x670] sm:$0xff] }
  0xa0   :  { %2510 = vmatpush.bf16.msra.mxu2 %v4073_v14  ;;  %v4143_v14 = vld [vmem:[%s5174_s1 + $0x6b0] sm:$0xff] }
  0xa1   :  { %2524 = vmatpush.bf16.msra.mxu3 %v4081_v15  ;;  %2483 = vmatmul.bf16.vlgmr.msra.gmra.mxu0 %v2810_v28  ;;  %v4151_v15 = vld [vmem:[%s5174_s1 + $0x6f0] sm:$0xff] }
  0xa2   :  { %2531 = vmatpush.bf16.msrb.mxu0 %v4096_v16  ;;  %2497 = vmatmul.bf16.vlgmr.msra.gmra.mxu1 %v2814_v30  ;;  %v4126_v16 = vld [vmem:[%s5174_s1 + $0x628] sm:$0xff]  ;;  %v4123_v28 = vld [vmem:[%s5174_s1 + $0x610] sm:$0xff] }
  0xa3   :  { %2545 = vmatpush.bf16.msrb.mxu1 %v4104_v17  ;;  %2511 = vmatmul.bf16.vlgmr.msra.gmra.mxu2 %v2818_v29  ;;  %v4134_v17 = vld [vmem:[%s5174_s1 + $0x668] sm:$0xff]  ;;  %v4131_v29 = vld [vmem:[%s5174_s1 + $0x650] sm:$0xff] }
  0xa4   :  { %2559 = vmatpush.bf16.msrb.mxu2 %v4112_v26  ;;  %2525 = vmatmul.bf16.vlgmr.msra.gmra.mxu3 %v2822_v31  ;;  %v4140_v26 = vld [vmem:[%s5174_s1 + $0x698] sm:$0xff]  ;;  %v4139_v30 = vld [vmem:[%s5174_s1 + $0x690] sm:$0xff] }
  0xa5   :  { %2573 = vmatpush.bf16.msrb.mxu3 %v4120_v27  ;;  %v4148_v27 = vld [vmem:[%s5174_s1 + $0x6d8] sm:$0xff]  ;;  %v4147_v31 = vld [vmem:[%s5174_s1 + $0x6d0] sm:$0xff] }
  0xa6   :  { %2532 = vmatpush.bf16.msrb.mxu0 %v4095_v32  ;;  %v4122_v32 = vld [vmem:[%s5174_s1 + $0x608] sm:$0xff] }
  0xa7   :  { %2546 = vmatpush.bf16.msrb.mxu1 %v4103_v33  ;;  %v4130_v33 = vld [vmem:[%s5174_s1 + $0x648] sm:$0xff] }
  0xa8   :  { %2560 = vmatpush.bf16.msrb.mxu2 %v4111_v34  ;;  %v4138_v34 = vld [vmem:[%s5174_s1 + $0x688] sm:$0xff] }
  0xa9   :  { %2574 = vmatpush.bf16.msrb.mxu3 %v4119_v35  ;;  %v4146_v35 = vld [vmem:[%s5174_s1 + $0x6c8] sm:$0xff] }
  0xaa   :  { %2533 = vmatpush.bf16.msrb.mxu0 %v4094_v36  ;;  %v4121_v36 = vld [vmem:[%s5174_s1 + $0x600] sm:$0xff] }
  0xab   :  { %2547 = vmatpush.bf16.msrb.mxu1 %v4102_v37  ;;  %v4129_v37 = vld [vmem:[%s5174_s1 + $0x640] sm:$0xff] }
  0xac   :  { %2561 = vmatpush.bf16.msrb.mxu2 %v4110_v38  ;;  %v4137_v38 = vld [vmem:[%s5174_s1 + $0x680] sm:$0xff] }
  0xad   :  { %2575 = vmatpush.bf16.msrb.mxu3 %v4118_v39  ;;  %v4145_v39 = vld [vmem:[%s5174_s1 + $0x6c0] sm:$0xff] }
  0xae   :  { %2534 = vmatpush.bf16.msrb.mxu0 %v4093_v40  ;;  %v4160_v40 = vld [vmem:[%s5174_s1 + $0x738] sm:$0xff] }
  0xaf   :  { %2548 = vmatpush.bf16.msrb.mxu1 %v4101_v41  ;;  %v4168_v41 = vld [vmem:[%s5174_s1 + $0x778] sm:$0xff] }
  0xb0   :  { %2562 = vmatpush.bf16.msrb.mxu2 %v4109_v42  ;;  %v2841_v42 = vld [vmem:[%s5175_s0 + $0x60] sm:$0xf] }
  0xb1   :  { %2576 = vmatpush.bf16.msrb.mxu3 %v4117_v43  ;;  %v3925_v43 = vld [vmem:[%s5175_s0 + $0xdc] sm:$0xf0] }
  0xb2   :  { %2535 = vmatpush.bf16.msrb.mxu0 %v4092_v44  ;;  %v2849_v44 = vld [vmem:[%s5175_s0 + $0x68] sm:$0xf] }
  0xb3   :  { %2549 = vmatpush.bf16.msrb.mxu1 %v4100_v45  ;;  %v3926_v45 = vld [vmem:[%s5175_s0 + $0xe4] sm:$0xf0] }
  0xb4   :  { %2563 = vmatpush.bf16.msrb.mxu2 %v4108_v46  ;;  %v3909_v46 = vld [vmem:[%s5175_s0 + $0x64] sm:$0xf] }
  0xb5   :  { %2577 = vmatpush.bf16.msrb.mxu3 %v4116_v47  ;;  %v2843_v47 = vld [vmem:[%s5175_s0 + $0xe0] sm:$0xf0] }
  0xb6   :  { %2536 = vmatpush.bf16.msrb.mxu0 %v4091_v48  ;;  %v3910_v48 = vld [vmem:[%s5175_s0 + $0x6c] sm:$0xf] }
  0xb7   :  { %2550 = vmatpush.bf16.msrb.mxu1 %v4099_v49  ;;  %v2851_v49 = vld [vmem:[%s5175_s0 + $0xe8] sm:$0xf0] }
  0xb8   :  { %2564 = vmatpush.bf16.msrb.mxu2 %v4107_v50  ;;  %v4176_v50 = vld [vmem:[%s5174_s1 + $0x7b8] sm:$0xff] }
  0xb9   :  { %2578 = vmatpush.bf16.msrb.mxu3 %v4115_v51  ;;  %v4184_v51 = vld [vmem:[%s5174_s1 + $0x7f8] sm:$0xff] }
  0xba   :  { %2537 = vmatpush.bf16.msrb.mxu0 %v4090_v52  ;;  %v2842_v52 = vor.u32 %v3925_v43, %v2841_v42 }
  0xbb   :  { %2551 = vmatpush.bf16.msrb.mxu1 %v4098_v53  ;;  %v2850_v53 = vor.u32 %v3926_v45, %v2849_v44 }
  0xbc   :  { %2565 = vmatpush.bf16.msrb.mxu2 %v4106_v54  ;;  %v2846_v54 = vor.u32 %v3909_v46, %v2843_v47 }
  0xbd   :  { %2579 = vmatpush.bf16.msrb.mxu3 %v4114_v55  ;;  %v2854_v55 = vor.u32 %v3910_v48, %v2851_v49 }
  0xbe   :  { %2538 = vmatpush.bf16.msrb.mxu0 %v4089_v56  ;;  %v4159_v56 = vld [vmem:[%s5174_s1 + $0x730] sm:$0xff] }
  0xbf   :  { %2552 = vmatpush.bf16.msrb.mxu1 %v4097_v57  ;;  %v4167_v57 = vld [vmem:[%s5174_s1 + $0x770] sm:$0xff] }
  0xc0   :  { %2566 = vmatpush.bf16.msrb.mxu2 %v4105_v58  ;;  %v4175_v58 = vld [vmem:[%s5174_s1 + $0x7b0] sm:$0xff] }
  0xc1   :  { %2580 = vmatpush.bf16.msrb.mxu3 %v4113_v59  ;;  %2539 = vmatmul.bf16.vlgmr.msrb.gmra.mxu0 %v2826_v8  ;;  %v4183_v59 = vld [vmem:[%s5174_s1 + $0x7f0] sm:$0xff] }
  0xc2   :  { %2587 = vmatpush.bf16.msra.mxu0 %v4128_v60  ;;  %2553 = vmatmul.bf16.vlgmr.msrb.gmra.mxu1 %v2830_v10  ;;  %v4158_v60 = vld [vmem:[%s5174_s1 + $0x728] sm:$0xff]  ;;  %v4155_v8 = vld [vmem:[%s5174_s1 + $0x710] sm:$0xff] }
  0xc3   :  { %2601 = vmatpush.bf16.msra.mxu1 %v4136_v61  ;;  %2567 = vmatmul.bf16.vlgmr.msrb.gmra.mxu2 %v2834_v9  ;;  %v4166_v61 = vld [vmem:[%s5174_s1 + $0x768] sm:$0xff]  ;;  %v4163_v9 = vld [vmem:[%s5174_s1 + $0x750] sm:$0xff] }
  0xc4   :  { %2615 = vmatpush.bf16.msra.mxu2 %v4144_v6  ;;  %2581 = vmatmul.bf16.vlgmr.msrb.gmra.mxu3 %v2838_v11  ;;  %v4172_v6 = vld [vmem:[%s5174_s1 + $0x798] sm:$0xff]  ;;  %v4171_v10 = vld [vmem:[%s5174_s1 + $0x790] sm:$0xff] }
  0xc5   :  { %2629 = vmatpush.bf16.msra.mxu3 %v4152_v7  ;;  %v4180_v7 = vld [vmem:[%s5174_s1 + $0x7d8] sm:$0xff]  ;;  %v4179_v11 = vld [vmem:[%s5174_s1 + $0x7d0] sm:$0xff] }
  0xc6   :  { %2588 = vmatpush.bf16.msra.mxu0 %v4127_v12  ;;  %v4154_v12 = vld [vmem:[%s5174_s1 + $0x708] sm:$0xff] }
  0xc7   :  { %2602 = vmatpush.bf16.msra.mxu1 %v4135_v13  ;;  %v4162_v13 = vld [vmem:[%s5174_s1 + $0x748] sm:$0xff] }
  0xc8   :  { %2616 = vmatpush.bf16.msra.mxu2 %v4143_v14  ;;  %v4170_v14 = vld [vmem:[%s5174_s1 + $0x788] sm:$0xff] }
  0xc9   :  { %2630 = vmatpush.bf16.msra.mxu3 %v4151_v15  ;;  %v4178_v15 = vld [vmem:[%s5174_s1 + $0x7c8] sm:$0xff] }
  0xca   :  { %2589 = vmatpush.bf16.msra.mxu0 %v4126_v16  ;;  %v4153_v16 = vld [vmem:[%s5174_s1 + $0x700] sm:$0xff] }
  0xcb   :  { %2603 = vmatpush.bf16.msra.mxu1 %v4134_v17  ;;  %v4161_v17 = vld [vmem:[%s5174_s1 + $0x740] sm:$0xff] }
  0xcc   :  { %2617 = vmatpush.bf16.msra.mxu2 %v4142_v18  ;;  %v4169_v18 = vld [vmem:[%s5174_s1 + $0x780] sm:$0xff] }
  0xcd   :  { %2631 = vmatpush.bf16.msra.mxu3 %v4150_v19  ;;  %v4177_v19 = vld [vmem:[%s5174_s1 + $0x7c0] sm:$0xff] }
  0xce   :  { %2590 = vmatpush.bf16.msra.mxu0 %v4125_v20  ;;  %v2857_v20 = vld [vmem:[%s5175_s0 + $0x70] sm:$0xf] }
  0xcf   :  { %2604 = vmatpush.bf16.msra.mxu1 %v4133_v21  ;;  %v3927_v21 = vld [vmem:[%s5175_s0 + $0xec] sm:$0xf0] }
  0xd0   :  { %2618 = vmatpush.bf16.msra.mxu2 %v4141_v22  ;;  %v3911_v22 = vld [vmem:[%s5175_s0 + $0x74] sm:$0xf] }
  0xd1   :  { %2632 = vmatpush.bf16.msra.mxu3 %v4149_v23  ;;  %v2859_v23 = vld [vmem:[%s5175_s0 + $0xf0] sm:$0xf0] }
  0xd2   :  { %2591 = vmatpush.bf16.msra.mxu0 %v4124_v24  ;;  %v2865_v24 = vld [vmem:[%s5175_s0 + $0x78] sm:$0xf] }
  0xd3   :  { %2605 = vmatpush.bf16.msra.mxu1 %v4132_v25  ;;  %v3928_v25 = vld [vmem:[%s5175_s0 + $0xf4] sm:$0xf0] }
  0xd4   :  { %2619 = vmatpush.bf16.msra.mxu2 %v4140_v26  ;;  %v3912_v26 = vld [vmem:[%s5175_s0 + $0x7c] sm:$0xf] }
  0xd5   :  { %2633 = vmatpush.bf16.msra.mxu3 %v4148_v27  ;;  %v2867_v27 = vld [vmem:[%s5175_s0 + $0xf8] sm:$0xf0] }
  0xd6   :  { %2592 = vmatpush.bf16.msra.mxu0 %v4123_v28  ;;  %v2858_v28 = vor.u32 %v3927_v21, %v2857_v20 }
  0xd7   :  { %2606 = vmatpush.bf16.msra.mxu1 %v4131_v29  ;;  %v2862_v29 = vor.u32 %v3911_v22, %v2859_v23 }
  0xd8   :  { %2620 = vmatpush.bf16.msra.mxu2 %v4139_v30  ;;  %v2260_v30 = vpop.f32.mrf.mxu0 }
  0xd9   :  { %2634 = vmatpush.bf16.msra.mxu3 %v4147_v31  ;;  %v2866_v31 = vor.u32 %v3928_v25, %v2865_v24 }
  0xda   :  { %2593 = vmatpush.bf16.msra.mxu0 %v4122_v32  ;;  %v2870_v32 = vor.u32 %v3912_v26, %v2867_v27 }
  0xdb   :  { %2607 = vmatpush.bf16.msra.mxu1 %v4130_v33  ;;  %v2274_v33 = vpop.f32.mrf.mxu1 }
  0xdc   :  { %2621 = vmatpush.bf16.msra.mxu2 %v4138_v34  ;;  %v2288_v34 = vpop.f32.mrf.mxu2 }
  0xdd   :  { %2635 = vmatpush.bf16.msra.mxu3 %v4146_v35  ;;  %v2302_v35 = vpop.f32.mrf.mxu3 }
  0xde   :  { %2594 = vmatpush.bf16.msra.mxu0 %v4121_v36 }
  0xdf   :  { %2608 = vmatpush.bf16.msra.mxu1 %v4129_v37 }
  0xe0   :  { %2622 = vmatpush.bf16.msra.mxu2 %v4137_v38  ;;  %v2262_v36 = vpop.f32.mrf.mxu0 }
  0xe1   :  { %2636 = vmatpush.bf16.msra.mxu3 %v4145_v39  ;;  %2595 = vmatmul.bf16.vlgmr.msra.gmra.mxu0 %v2842_v52 }
  0xe2   :  { %2643 = vmatpush.bf16.msrb.mxu0 %v4160_v40  ;;  %2609 = vmatmul.bf16.vlgmr.msra.gmra.mxu1 %v2846_v54 }
  0xe3   :  { %2657 = vmatpush.bf16.msrb.mxu1 %v4168_v41  ;;  %2623 = vmatmul.bf16.vlgmr.msra.gmra.mxu2 %v2850_v53  ;;  %v2276_v37 = vpop.f32.mrf.mxu1 }
  0xe4   :  { %2671 = vmatpush.bf16.msrb.mxu2 %v4176_v50  ;;  %2637 = vmatmul.bf16.vlgmr.msra.gmra.mxu3 %v2854_v55  ;;  %v2290_v38 = vpop.f32.mrf.mxu2  ;;  %v2275_v50 = vadd.f32 %v2274_v33, %v2260_v30 }
  0xe5   :  { %2685 = vmatpush.bf16.msrb.mxu3 %v4184_v51  ;;  %v2304_v39 = vpop.f32.mrf.mxu3 }
  0xe6   :  { %2644 = vmatpush.bf16.msrb.mxu0 %v4159_v56  ;;  %v2289_v53 = vadd.f32 %v2288_v34, %v2275_v50 }
  0xe7   :  { %2658 = vmatpush.bf16.msrb.mxu1 %v4167_v57 }
  0xe8   :  { %2672 = vmatpush.bf16.msrb.mxu2 %v4175_v58  ;;  %v2316_v40 = vpop.f32.mrf.mxu0  ;;  %v2303_v56 = vadd.f32 %v2302_v35, %v2289_v53 }
  0xe9   :  { %2686 = vmatpush.bf16.msrb.mxu3 %v4183_v59  ;;  %v2277_v59 = vadd.f32 %v2276_v37, %v2262_v36 }
  0xea   :  { %2645 = vmatpush.bf16.msrb.mxu0 %v4158_v60  ;;  %v2317_v60 = vadd.f32 %v2316_v40, %v2303_v56 }
  0xeb   :  { %2659 = vmatpush.bf16.msrb.mxu1 %v4166_v61  ;;  %v2330_v41 = vpop.f32.mrf.mxu1 }
  0xec   :  { %2673 = vmatpush.bf16.msrb.mxu2 %v4174_v62  ;;  %v2344_v42 = vpop.f32.mrf.mxu2 }
  0xed   :  { %2687 = vmatpush.bf16.msrb.mxu3 %v4182_v63  ;;  %v2358_v43 = vpop.f32.mrf.mxu3  ;;  %v2291_v63 = vadd.f32 %v2290_v38, %v2277_v59 }
  0xee   :  { %2646 = vmatpush.bf16.msrb.mxu0 %v4157_v0  ;;  %v2331_v0 = vadd.f32 %v2330_v41, %v2317_v60 }
  0xef   :  { %2660 = vmatpush.bf16.msrb.mxu1 %v4165_v1 }
  0xf0   :  { %2674 = vmatpush.bf16.msrb.mxu2 %v4173_v2  ;;  %v2318_v44 = vpop.f32.mrf.mxu0 }
  0xf1   :  { %2688 = vmatpush.bf16.msrb.mxu3 %v4181_v3  ;;  %v2305_v3 = vadd.f32 %v2304_v39, %v2291_v63 }
  0xf2   :  { %2647 = vmatpush.bf16.msrb.mxu0 %v4156_v4  ;;  %v2345_v4 = vadd.f32 %v2344_v42, %v2331_v0 }
  0xf3   :  { %2661 = vmatpush.bf16.msrb.mxu1 %v4164_v5  ;;  %v2332_v45 = vpop.f32.mrf.mxu1  ;;  %v2319_v5 = vadd.f32 %v2318_v44, %v2305_v3 }
  0xf4   :  { %2675 = vmatpush.bf16.msrb.mxu2 %v4172_v6  ;;  %v2346_v46 = vpop.f32.mrf.mxu2 }
  0xf5   :  { %2689 = vmatpush.bf16.msrb.mxu3 %v4180_v7  ;;  %v2360_v47 = vpop.f32.mrf.mxu3  ;;  %v2359_v7 = vadd.f32 %v2358_v43, %v2345_v4 }
  0xf6   :  { %2648 = vmatpush.bf16.msrb.mxu0 %v4155_v8 }
  0xf7   :  { %2662 = vmatpush.bf16.msrb.mxu1 %v4163_v9  ;;  %v2333_v9 = vadd.f32 %v2332_v45, %v2319_v5 }
  0xf8   :  { %2676 = vmatpush.bf16.msrb.mxu2 %v4171_v10  ;;  %v2372_v48 = vpop.f32.mrf.mxu0 }
  0xf9   :  { %2690 = vmatpush.bf16.msrb.mxu3 %v4179_v11  ;;  %v2373_v10 = vadd.f32 %v2372_v48, %v2359_v7  ;;  %v2347_v11 = vadd.f32 %v2346_v46, %v2333_v9 }
  0xfa   :  { %2649 = vmatpush.bf16.msrb.mxu0 %v4154_v12 }
  0xfb   :  { %2663 = vmatpush.bf16.msrb.mxu1 %v4162_v13  ;;  %v2386_v49 = vpop.f32.mrf.mxu1 }
  0xfc   :  { %2677 = vmatpush.bf16.msrb.mxu2 %v4170_v14  ;;  %v2400_v51 = vpop.f32.mrf.mxu2  ;;  %v2387_v14 = vadd.f32 %v2386_v49, %v2373_v10 }
  0xfd   :  { %2691 = vmatpush.bf16.msrb.mxu3 %v4178_v15  ;;  %v2414_v52 = vpop.f32.mrf.mxu3 }
  0xfe   :  { %2650 = vmatpush.bf16.msrb.mxu0 %v4153_v16  ;;  %v2361_v16 = vadd.f32 %v2360_v47, %v2347_v11 }
  0xff   :  { %2664 = vmatpush.bf16.msrb.mxu1 %v4161_v17  ;;  %v2401_v17 = vadd.f32 %v2400_v51, %v2387_v14 }
 0x100   :  { %2678 = vmatpush.bf16.msrb.mxu2 %v4169_v18  ;;  %v2374_v54 = vpop.f32.mrf.mxu0 }
 0x101   :  { %2692 = vmatpush.bf16.msrb.mxu3 %v4177_v19  ;;  %2651 = vmatmul.bf16.vlgmr.msrb.gmra.mxu0 %v2858_v28  ;;  %v2375_v19 = vadd.f32 %v2374_v54, %v2361_v16  ;;  %v2415_v20 = vadd.f32 %v2414_v52, %v2401_v17 }
 0x102   :  { %2665 = vmatmul.bf16.vlgmr.msrb.gmra.mxu1 %v2862_v29 }
 0x103   :  { %2679 = vmatmul.bf16.vlgmr.msrb.gmra.mxu2 %v2866_v31  ;;  %v2388_v55 = vpop.f32.mrf.mxu1 }
 0x104   :  { %2693 = vmatmul.bf16.vlgmr.msrb.gmra.mxu3 %v2870_v32  ;;  %v2402_v57 = vpop.f32.mrf.mxu2  ;;  %v2389_v23 = vadd.f32 %v2388_v55, %v2375_v19 }
 0x105   :  { %v2416_v58 = vpop.f32.mrf.mxu3 }
 0x106   :  { %v2403_v25 = vadd.f32 %v2402_v57, %v2389_v23 }
 0x108   :  { %v2428_v61 = vpop.f32.mrf.mxu0  ;;  %v2417_v29 = vadd.f32 %v2416_v58, %v2403_v25 }
 0x109   :  { %v2429_v24 = vadd.f32 %v2428_v61, %v2415_v20 }
 0x10b   :  { %v2442_v62 = vpop.f32.mrf.mxu1 }
 0x10c   :  { %v2456_v1 = vpop.f32.mrf.mxu2  ;;  %v2443_v27 = vadd.f32 %v2442_v62, %v2429_v24 }
 0x10d   :  { %v2470_v2 = vpop.f32.mrf.mxu3 }
 0x10e   :  { %v2457_v30 = vadd.f32 %v2456_v1, %v2443_v27 }
 0x110   :  { %v2430_v6 = vpop.f32.mrf.mxu0  ;;  %v2471_v34 = vadd.f32 %v2470_v2, %v2457_v30 }
 0x111   :  { %v2431_v31 = vadd.f32 %v2430_v6, %v2417_v29 }
 0x113   :  { %v2444_v8 = vpop.f32.mrf.mxu1 }
 0x114   :  { %v2458_v12 = vpop.f32.mrf.mxu2  ;;  %v2445_v36 = vadd.f32 %v2444_v8, %v2431_v31 }
 0x115   :  { %v2472_v13 = vpop.f32.mrf.mxu3 }
 0x116   :  { %v2459_v39 = vadd.f32 %v2458_v12, %v2445_v36 }
 0x118   :  { %v2473_v43 = vadd.f32 %v2472_v13, %v2459_v39 }
 0x11e   :  { %v2484_v15 = vpop.f32.mrf.mxu0 }
 0x11f   :  { %v2498_v18 = vpop.f32.mrf.mxu1  ;;  %v2485_v37 = vadd.f32 %v2484_v15, %v2471_v34 }
 0x121   :  { %v2499_v40 = vadd.f32 %v2498_v18, %v2485_v37 }
 0x126   :  { %v2512_v21 = vpop.f32.mrf.mxu2  ;;  %v2486_v26 = vpop.f32.mrf.mxu0 }
 0x127   :  { %v2526_v22 = vpop.f32.mrf.mxu3  ;;  %v2500_v28 = vpop.f32.mrf.mxu1  ;;  %v2513_v44 = vadd.f32 %v2512_v21, %v2499_v40  ;;  %v2487_v45 = vadd.f32 %v2486_v26, %v2473_v43 }
 0x129   :  { %v2527_v47 = vadd.f32 %v2526_v22, %v2513_v44  ;;  %v2501_v49 = vadd.f32 %v2500_v28, %v2487_v45 }
 0x12e   :  { %v2514_v32 = vpop.f32.mrf.mxu2 }
 0x12f   :  { %v2528_v33 = vpop.f32.mrf.mxu3  ;;  %v2515_v51 = vadd.f32 %v2514_v32, %v2501_v49 }
 0x131   :  { %v2529_v56 = vadd.f32 %v2528_v33, %v2515_v51 }
 0x13e   :  { %v2540_v35 = vpop.f32.mrf.mxu0 }
 0x13f   :  { %v2554_v38 = vpop.f32.mrf.mxu1  ;;  %v2541_v50 = vadd.f32 %v2540_v35, %v2527_v47 }
 0x141   :  { %v2555_v54 = vadd.f32 %v2554_v38, %v2541_v50 }
 0x146   :  { %v2568_v41 = vpop.f32.mrf.mxu2  ;;  %v2542_v46 = vpop.f32.mrf.mxu0 }
 0x147   :  { %v2582_v42 = vpop.f32.mrf.mxu3  ;;  %v2556_v48 = vpop.f32.mrf.mxu1  ;;  %v2569_v57 = vadd.f32 %v2568_v41, %v2555_v54  ;;  %v2543_v59 = vadd.f32 %v2542_v46, %v2529_v56 }
 0x149   :  { %v2583_v60 = vadd.f32 %v2582_v42, %v2569_v57  ;;  %v2557_v63 = vadd.f32 %v2556_v48, %v2543_v59 }
 0x14e   :  { %v2570_v52 = vpop.f32.mrf.mxu2 }
 0x14f   :  { %v2584_v53 = vpop.f32.mrf.mxu3  ;;  %v2571_v1 = vadd.f32 %v2570_v52, %v2557_v63 }
 0x151   :  { %v2585_v5 = vadd.f32 %v2584_v53, %v2571_v1 }
 0x15e   :  { %v2596_v55 = vpop.f32.mrf.mxu0 }
 0x15f   :  { %v2610_v58 = vpop.f32.mrf.mxu1  ;;  %v2597_v0 = vadd.f32 %v2596_v55, %v2583_v60 }
 0x161   :  { %v2611_v3 = vadd.f32 %v2610_v58, %v2597_v0 }
 0x166   :  { %v2624_v61 = vpop.f32.mrf.mxu2  ;;  %v2598_v2 = vpop.f32.mrf.mxu0 }
 0x167   :  { %v2638_v62 = vpop.f32.mrf.mxu3  ;;  %v2612_v4 = vpop.f32.mrf.mxu1  ;;  %v2625_v6 = vadd.f32 %v2624_v61, %v2611_v3  ;;  %v2599_v7 = vadd.f32 %v2598_v2, %v2585_v5 }
 0x169   :  { %v2639_v10 = vadd.f32 %v2638_v62, %v2625_v6  ;;  %v2613_v12 = vadd.f32 %v2612_v4, %v2599_v7 }
 0x16e   :  { %v2626_v8 = vpop.f32.mrf.mxu2 }
 0x16f   :  { %v2640_v9 = vpop.f32.mrf.mxu3  ;;  %v2627_v15 = vadd.f32 %v2626_v8, %v2613_v12 }
 0x171   :  { %v2641_v19 = vadd.f32 %v2640_v9, %v2627_v15 }
 0x17e   :  { %v2652_v11 = vpop.f32.mrf.mxu0 }
 0x17f   :  { %v2653_v13 = vadd.f32 %v2652_v11, %v2639_v10  ;;  %v2666_v14 = vpop.f32.mrf.mxu1 }
 0x181   :  { %v2667_v16 = vadd.f32 %v2666_v14, %v2653_v13 }
 0x186   :  { %v2680_v17 = vpop.f32.mrf.mxu2  ;;  %v2654_v21 = vpop.f32.mrf.mxu0 }
 0x187   :  { %v2694_v18 = vpop.f32.mrf.mxu3  ;;  %v2681_v20 = vadd.f32 %v2680_v17, %v2667_v16  ;;  %v2655_v23 = vadd.f32 %v2654_v21, %v2641_v19  ;;  %v2668_v25 = vpop.f32.mrf.mxu1 }
 0x189   :  { %v2695_v22 = vadd.f32 %v2694_v18, %v2681_v20  ;;  %v2669_v26 = vadd.f32 %v2668_v25, %v2655_v23 }
 0x18b   :  { %v3895_v24 = vmul.f32 -1.442695, %v2695_v22 }
 0x18d   :  { %4185 = vpow2.f32 %v3895_v24 }
 0x18e   :  { %v2682_v27 = vpop.f32.mrf.mxu2 }
 0x18f   :  { %v2683_v28 = vadd.f32 %v2682_v27, %v2669_v26  ;;  %v2696_v29 = vpop.f32.mrf.mxu3 }
 0x191   :  { %v2697_v30 = vadd.f32 %v2696_v29, %v2683_v28 }
 0x193   :  { %v4186_v31 = vpop.eup %4185  ;;  %v3896_v32 = vmul.f32 -1.442695, %v2697_v30 }
 0x194   :  { %v2705_v33 = vadd.f32 1.0, %v4186_v31 }
 0x195   :  { %4187 = vpow2.f32 %v3896_v32 }
 0x196   :  { %4189 = vrcp.f32 %v2705_v33  ;;  %v2718_v39 = vand.u32 2147483648, %v2705_v33  ;;  %v2716_v41 = vand.u32 2147483647, %v2705_v33  ;;  %vm2712_vm1 = vweird.f32 %v2705_v33 }
 0x198   :  { %v2719_v44 = vor.u32 1.1754944e-38, %v2718_v39  ;;  %vm2717_vm3 = vcmp.eq.f32.partialorder %v2716_v41, 8.507059e+37 }
 0x19b   :  { %v4188_v34 = vpop.eup %4187 }
 0x19c   :  { %v4190_v35 = vpop.eup %4189  ;;  %v2706_v36 = vadd.f32 1.0, %v4188_v34 }
 0x19d   :  { %v2708_v37 = vmul.f32 %v4190_v35, %v2705_v33  ;;  %vm2713_vm0 = vweird.f32 %v4190_v35 }
 0x19e   :  { %4191 = vrcp.f32 %v2706_v36  ;;  %vm2714_vm2 = vmor %vm2712_vm1, %vm2713_vm0  ;;  %v2733_v49 = vand.u32 2147483648, %v2706_v36  ;;  %v2731_v51 = vand.u32 2147483647, %v2706_v36  ;;  %vm2727_vm5 = vweird.f32 %v2706_v36 }
 0x19f   :  { %v2709_v38 = vsub.f32 1.0, %v2708_v37 }
 0x1a0   :  { %v2734_v53 = vor.u32 1.1754944e-38, %v2733_v49  ;;  %vm2732_vm7 = vcmp.eq.f32.partialorder %v2731_v51, 8.507059e+37 }
 0x1a1   :  { %v2710_v40 = vmul.f32 %v4190_v35, %v2709_v38 }
 0x1a3   :  { %v2711_v42 = vadd.f32 %v4190_v35, %v2710_v40 }
 0x1a4   :  { %v4192_v43 = vpop.eup %4191 }
 0x1a5   :  { %v2715_v45 = vsel %vm2714_vm2, %v4190_v35, %v2711_v42  ;;  %v2723_v46 = vmul.f32 %v4192_v43, %v2706_v36  ;;  %vm2728_vm4 = vweird.f32 %v4192_v43 }
 0x1a6   :  { %v2720_v47 = vsel %vm2717_vm3, %v2719_v44, %v2715_v45  ;;  %vm2729_vm6 = vmor %vm2727_vm5, %vm2728_vm4 }
 0x1a7   :  { %2737 = vst [vmem:[%s5176_s2] sm:$0xff] %v2720_v47  ;;  %v2724_v48 = vsub.f32 1.0, %v2723_v46 }
 0x1a9   :  { %v2725_v50 = vmul.f32 %v4192_v43, %v2724_v48 }
 0x1ab   :  { %v2726_v52 = vadd.f32 %v4192_v43, %v2725_v50 }
 0x1ad   :  { %v2730_v54 = vsel %vm2729_vm6, %v4192_v43, %v2726_v52 }
 0x1ae   :  { %v2735_v55 = vsel %vm2732_vm7, %v2734_v53, %v2730_v54 }
 0x1af   :  { %2738 = vst [vmem:[%s5176_s2 + $0x8] sm:$0xff] %v2735_v55 }

</bundles_post_ra>
